<compile_context>
chip_gen: v6e
topology: v6e:2x2x1
jax: 0.10.0
libtpu: 0.0.40
codegen_flags: <defaults>
</compile_context>

<pallas_src>
import functools
import numpy as np
import jax
import jax.numpy as jnp
from jax.experimental import pallas as pl
from jax.experimental.pallas import tpu as pltpu


# -----------------------------------------------------------------------------
# helpers
# -----------------------------------------------------------------------------
def _round_up(n, m):
    return ((n + m - 1) // m) * m


def _choose_tile(n, cap=2048):
    """Row-tile for (N, C) kernels.

    Prefers (a) a tile that divides N (no padding copy), (b) >= 2 (even) grid
    steps so a "parallel" axis can shard across v7x's two TensorCores, (c) the
    largest such tile <= cap.  Returns (tile, padded_n).
    """
    if n % 8 == 0 and n >= 16:
        limit = min(cap, n // 2)
        limit -= limit % 8
        t = limit
        while t >= 8:
            if n % t == 0:
                return t, n
            t -= 8
        return 8, n
    if n <= cap:
        return n, n            # single full-array block is always legal
    # TODO(synk): replace this pad fallback with a masked last tile (pl.when);
    # it is never hit for the configurations exercised here.
    t = 512
    return t, _round_up(n, t)


_INV_SQRT2 = float(1.0 / np.sqrt(2.0))


def _gelu(x):
    # exact (erf) GELU, matching torch.nn.functional.gelu's default.
    # (tanh approx would move the transcendental to the EUP slot, but deviates
    # from the PyTorch reference numerics -- kept exact.)
    return 0.5 * x * (1.0 + jax.lax.erf(x * _INV_SQRT2))


_PARALLEL = pltpu.CompilerParams(dimension_semantics=("parallel",))


# -----------------------------------------------------------------------------
# Kernel 1: fused 2-layer MLP tile   y = [gelu]( gelu(x@W0 + b0) @ W1 + b1 )
#   - used for the P0/P1 lifting (gelu_out=True)
#   - used for the fused Q heads (gelu_out=False, block-diag W1 padded to 128)
#   The (tn, H) hidden stays in VMEM; HBM sees only x (read) and y (write).
#   Matmul operands go to the MXU in bf16; accumulation / bias / GELU are f32.
# -----------------------------------------------------------------------------
def _mlp2_kernel(x_ref, w0_ref, b0_ref, w1_ref, b1_ref, o_ref, *, gelu_out):
    h = jnp.dot(x_ref[...].astype(jnp.bfloat16), w0_ref[...],
                preferred_element_type=jnp.float32) + b0_ref[...]
    h = _gelu(h)
    y = jnp.dot(h.astype(jnp.bfloat16), w1_ref[...],
                preferred_element_type=jnp.float32) + b1_ref[...]
    if gelu_out:
        y = _gelu(y)
    o_ref[...] = y.astype(o_ref.dtype)


def pallas_mlp2(x2d, w0, b0, w1, b1, *, gelu_out, cap=2048):
    N, K = x2d.shape
    H = w0.shape[1]
    M = w1.shape[1]
    tn, Np = _choose_tile(N, cap)
    xp = x2d if Np == N else jnp.pad(x2d, ((0, Np - N), (0, 0)))
    out = pl.pallas_call(
        functools.partial(_mlp2_kernel, gelu_out=gelu_out),
        out_shape=jax.ShapeDtypeStruct((Np, M), jnp.float32),
        grid=(Np // tn,),
        in_specs=[
            pl.BlockSpec((tn, K), lambda i: (i, 0)),
            pl.BlockSpec((K, H), lambda i: (0, 0)),
            pl.BlockSpec((1, H), lambda i: (0, 0)),
            pl.BlockSpec((H, M), lambda i: (0, 0)),
            pl.BlockSpec((1, M), lambda i: (0, 0)),
        ],
        out_specs=pl.BlockSpec((tn, M), lambda i: (i, 0)),
        compiler_params=_PARALLEL,
    )(xp, w0.astype(jnp.bfloat16), b0.reshape(1, H),
      w1.astype(jnp.bfloat16), b1.reshape(1, M))
    return out if Np == N else out[:N]


# -----------------------------------------------------------------------------
# Kernel 2: fused operator-block epilogue   y = gelu(x @ W + b + x_spectral)
#   (pointwise 1x1 Conv3d branch + spectral-branch residual add + GELU)
#   x stays f32 in HBM (it also feeds the FFT); cast to bf16 in-register.
# -----------------------------------------------------------------------------
def _pw_add_gelu_kernel(x_ref, x1_ref, w_ref, b_ref, o_ref):
    acc = jnp.dot(x_ref[...].astype(jnp.bfloat16), w_ref[...],
                  preferred_element_type=jnp.float32)
    o_ref[...] = _gelu(acc + b_ref[...] + x1_ref[...]).astype(o_ref.dtype)


def pallas_pw_add_gelu(x2d, spec2d, w, b, cap=2048):
    N, Cin = x2d.shape
    Cout = w.shape[1]
    tn, Np = _choose_tile(N, cap)
    if Np != N:
        x2d = jnp.pad(x2d, ((0, Np - N), (0, 0)))
        spec2d = jnp.pad(spec2d, ((0, Np - N), (0, 0)))
    out = pl.pallas_call(
        _pw_add_gelu_kernel,
        out_shape=jax.ShapeDtypeStruct((Np, Cout), jnp.float32),
        grid=(Np // tn,),
        in_specs=[
            pl.BlockSpec((tn, Cin), lambda i: (i, 0)),
            pl.BlockSpec((tn, Cout), lambda i: (i, 0)),
            pl.BlockSpec((Cin, Cout), lambda i: (0, 0)),
            pl.BlockSpec((1, Cout), lambda i: (0, 0)),
        ],
        out_specs=pl.BlockSpec((tn, Cout), lambda i: (i, 0)),
        compiler_params=_PARALLEL,
    )(x2d, spec2d, w.astype(jnp.bfloat16), b.reshape(1, Cout))
    return out if Np == N else out[:N]


# -----------------------------------------------------------------------------
# Kernel 3: complex per-frequency channel contraction, all 4 corners at once,
#           grid-tiled over the packed frequency axis P.
#   out[b, o, p] = sum_i x[b, i, p] * w[i, o, p]   (complex, split re/im)
#   x packed: (2*Cin*B, P)  rows = [re: i*B + b] ++ [im: Cin*B + i*B + b]
#   w packed: (2*Cin, Cout, P) rows 0..Cin-1 = re, Cin..2Cin-1 = im
#   out packed: (2*B, Cout, P) rows 0..B-1 = re, B..2B-1 = im
#   The Cin loop is an unrolled VPU multiply-accumulate over clean contiguous
#   row blocks; accumulators are (Cout, Ptile) and stay in the vreg file.
# -----------------------------------------------------------------------------
def _spectral_cmul_kernel(x_ref, w_ref, o_ref, *, cin, nb):
    cout = o_ref.shape[1]
    pt = o_ref.shape[2]
    for b in range(nb):
        acc_r = jnp.zeros((cout, pt), jnp.float32)
        acc_i = jnp.zeros((cout, pt), jnp.float32)
        for i in range(cin):                      # static unroll, cin is small
            r = i * nb + b
            xr = x_ref[r:r + 1, :]                # (1, Pt) contiguous row
            xi = x_ref[cin * nb + r:cin * nb + r + 1, :]
            wr = w_ref[i]                         # (Cout, Pt)
            wi = w_ref[cin + i]
            acc_r = acc_r + (xr * wr - xi * wi)
            acc_i = acc_i + (xr * wi + xi * wr)
        o_ref[b] = acc_r
        o_ref[nb + b] = acc_i


def _choose_p_tile(P, b, cin, cout):
    """Largest P-tile that (a) is a multiple of 128, (b) divides P with >= 2
    grid steps, (c) keeps the (Cout, Ptile) accumulators in the vreg file and
    (d) keeps the double-buffered per-step VMEM footprint small (v7x 64 MiB)."""
    if P % 128 != 0 or P < 256:
        return P                                   # full block (legal fallback)
    lane_elems = 2 * cin * cout + 2 * cin * b + 2 * b * cout   # f32 elems per P-lane
    vmem_cap = (6 << 20) // (4 * lane_elems)       # ~6 MiB per step (x2 dbl-buffer)
    acc_cap = max(1, 8192 // max(cout, 1))         # acc <= ~8K f32 elems
    cap = min(vmem_cap, acc_cap, P // 2)
    cap = max(128, (cap // 128) * 128)
    best = 128
    t = 256
    while t <= cap:
        if P % t == 0:
            best = t
        t += 128
    return best


def pallas_spectral_cmul(x_pack, w_pack, b, cin, cout, P):
    pt = _choose_p_tile(P, b, cin, cout)
    return pl.pallas_call(
        functools.partial(_spectral_cmul_kernel, cin=cin, nb=b),
        out_shape=jax.ShapeDtypeStruct((2 * b, cout, P), jnp.float32),
        grid=(P // pt,),
        in_specs=[
            pl.BlockSpec((2 * cin * b, pt), lambda j: (0, j)),
            pl.BlockSpec((2 * cin, cout, pt), lambda j: (0, 0, j)),
        ],
        out_specs=pl.BlockSpec((2 * b, cout, pt), lambda j: (0, 0, j)),
        compiler_params=_PARALLEL,
    )(x_pack, w_pack)


# -----------------------------------------------------------------------------
# Spectral conv / operator block / full forward (JAX glue around the kernels)
# -----------------------------------------------------------------------------
def spectral_conv3d(x, p, D1, D2, D3, M1, M2, M3):
    """x: (B, d1, d2, d3, Cin) channels-last.  Returns (B, D1, D2, D3, Cout)."""
    B = x.shape[0]
    Cin = x.shape[-1]
    Cout = p["pw_w"].shape[1]
    assert 2 * M1 <= D1 and 2 * M2 <= D2 and M3 <= D3 // 2 + 1, \
        "Fourier-mode corners would overlap / exceed the spectral grid"
    # TODO(synk): 3-D rfftn/irfftn have no Pallas TPU primitive; the FFTs, the
    # moveaxis transposes, the corner gather and the out_ft scatters stay in XLA.
    xt = jnp.moveaxis(x, -1, 1)                               # (B, Cin, d1, d2, d3)
    x_ft = jnp.fft.rfftn(xt, axes=(-3, -2, -1))               # (B, Cin, d1, d2, d3h)
    corners = jnp.stack(
        [x_ft[:, :, :M1, :M2, :M3],
         x_ft[:, :, -M1:, :M2, :M3],
         x_ft[:, :, :M1, -M2:, :M3],
         x_ft[:, :, -M1:, -M2:, :M3]], axis=2)                # (B, Cin, 4, M1, M2, M3)
    P = 4 * M1 * M2 * M3
    xc = corners.reshape(B, Cin, P)
    # pack re/im into ONE lane-dense (2*Cin*B, P) slab (single input DMA stream,
    # clean 2-D rows for the kernel's Cin MAC loop).
    xr = jnp.transpose(jnp.real(xc), (1, 0, 2)).reshape(Cin * B, P)
    xi = jnp.transpose(jnp.imag(xc), (1, 0, 2)).reshape(Cin * B, P)
    x_pack = jnp.concatenate([xr, xi], axis=0)                # (2*Cin*B, P)
    o_pack = pallas_spectral_cmul(x_pack, p["w_ri"], B, Cin, Cout, P)
    oc = jax.lax.complex(o_pack[:B], o_pack[B:]).reshape(B, Cout, 4, M1, M2, M3)
    D3h = D3 // 2 + 1
    out_ft = jnp.zeros((B, Cout, D1, D2, D3h), jnp.complex64)
    out_ft = out_ft.at[:, :, :M1, :M2, :M3].set(oc[:, :, 0])
    out_ft = out_ft.at[:, :, -M1:, :M2, :M3].set(oc[:, :, 1])
    out_ft = out_ft.at[:, :, :M1, -M2:, :M3].set(oc[:, :, 2])
    out_ft = out_ft.at[:, :, -M1:, -M2:, :M3].set(oc[:, :, 3])
    x1 = jnp.fft.irfftn(out_ft, s=(D1, D2, D3), axes=(-3, -2, -1))
    return jnp.moveaxis(x1, 1, -1)                            # back to channels-last


def operator_block(x, p, D1, D2, D3, M1, M2, M3):
    """x: (B, D1, D2, D3, Cin) channels-last.  Config keeps input res == output res."""
    B = x.shape[0]
    Cin = x.shape[-1]
    Cout = p["pw_w"].shape[1]
    x1 = spectral_conv3d(x, p, D1, D2, D3, M1, M2, M3)        # (B, D1, D2, D3, Cout)
    # pointwise 1x1 Conv3d + spectral add + GELU fused in one kernel.
    # Trilinear interpolation (align_corners=True) to the same resolution == identity.
    out = pallas_pw_add_gelu(x.reshape(-1, Cin), x1.reshape(-1, Cout),
                             p["pw_w"], p["pw_b"])
    return out.reshape(B, D1, D2, D3, Cout)


def get_grid(B, S1, S2, S3):
    g1 = jnp.broadcast_to(jnp.linspace(0.0, 2.0 * np.pi, S1).reshape(1, S1, 1, 1, 1),
                          (B, S1, S2, S3, 1))
    g2 = jnp.broadcast_to(jnp.linspace(0.0, 2.0 * np.pi, S2).reshape(1, 1, S2, 1, 1),
                          (B, S1, S2, S3, 1))
    g3 = jnp.broadcast_to(jnp.linspace(0.0, 1.0, S3).reshape(1, 1, 1, S3, 1),
                          (B, S1, S2, S3, 1))
    return jnp.concatenate(
        [jnp.sin(g1), jnp.sin(g2), jnp.cos(g1), jnp.cos(g2), g3], axis=-1
    ).astype(jnp.float32)


def fno3d_forward(x, params, *, padding0, list_D1, list_D2, list_D3,
                  list_M1, list_M2, list_M3):
    B, S1, S2, S3, _ = x.shape
    grid = get_grid(B, S1, S2, S3)
    x = jnp.concatenate([x, grid], axis=-1)                   # (B,S1,S2,S3,in_width)
    width = params["P1_w"].shape[1]

    # fused P0 -> GELU -> P1 -> GELU lifting (one kernel, hidden stays in VMEM)
    h = pallas_mlp2(x.reshape(-1, x.shape[-1]),
                    params["P0_w"], params["P0_b"],
                    params["P1_w"], params["P1_b"], gelu_out=True)
    h = h.reshape(B, S1, S2, S3, width)                       # channels-last throughout

    pad = int(padding0 * 0.1 * S3)                            # same rule as reference
    v = jnp.pad(h, ((0, 0), (0, 0), (0, 0), (0, pad), (0, 0)))

    for li in range(4):
        v = operator_block(v, params[f"L{li}"],
                           list_D1[li], list_D2[li], list_D3[li],
                           list_M1[li], list_M2[li], list_M3[li])

    vf = v
    if pad != 0:
        # NB: the reference removes 4x the padding it added; preserved verbatim.
        vf = vf[:, :, :, :-4 * pad, :]
    out_spatial = vf.shape[:-1]
    vf2 = vf.reshape(-1, width)

    # fused Q heads: one read of vf2, 192-wide hidden kept in VMEM, block-diagonal
    # second matmul zero-padded to 128 lane-dense output columns (unmasked stores).
    hw = params["Q1E_w"].shape[0]                             # 4*width
    w0 = jnp.concatenate([params["Q0E_w"], params["Q0N_w"], params["Q0Z_w"]], axis=1)
    b0 = jnp.concatenate([params["Q0E_b"], params["Q0N_b"], params["Q0Z_b"]], axis=0)
    OUT_PAD = 128
    w1 = jnp.zeros((3 * hw, OUT_PAD), jnp.float32)
    w1 = w1.at[0:hw, 0].set(params["Q1E_w"][:, 0])
    w1 = w1.at[hw:2 * hw, 1].set(params["Q1N_w"][:, 0])
    # NB: reference applies Q1E (not Q1Z) to the Z branch — preserved.
    w1 = w1.at[2 * hw:, 2].set(params["Q1E_w"][:, 0])
    b1 = jnp.zeros((OUT_PAD,), jnp.float32)
    b1 = b1.at[0].set(params["Q1E_b"][0]).at[1].set(params["Q1N_b"][0])
    b1 = b1.at[2].set(params["Q1E_b"][0])
    out_pad = pallas_mlp2(vf2, w0, b0, w1, b1, gelu_out=False)

    shp = out_spatial + (1,)
    return (out_pad[:, 0:1].reshape(shp),
            out_pad[:, 1:2].reshape(shp),
            out_pad[:, 2:3].reshape(shp))


# -----------------------------------------------------------------------------
# deterministic parameter construction
# -----------------------------------------------------------------------------
def _linear_params(key, fan_in, fan_out):
    k1, k2 = jax.random.split(key)
    bound = 1.0 / np.sqrt(fan_in)
    w = jax.random.uniform(k1, (fan_in, fan_out), jnp.float32, -bound, bound)
    b = jax.random.uniform(k2, (fan_out,), jnp.float32, -bound, bound)
    return w, b


def _block_params(key, cin, cout, M1, M2, M3):
    keys = jax.random.split(key, 9)
    scale = (1.0 / (2.0 * cin)) ** 0.5
    wr, wi = [], []
    for idx in range(4):
        wr.append(scale * jax.random.normal(keys[2 * idx], (cin, cout, M1, M2, M3), jnp.float32))
        wi.append(scale * jax.random.normal(keys[2 * idx + 1], (cin, cout, M1, M2, M3), jnp.float32))

    # pre-pack the 4 corner weights into the kernel layout:
    #   re and im concatenated on axis 0 -> (2*Cin, Cout, 4*M1*M2*M3)
    def pack(ws):
        return jnp.stack(ws, axis=2).reshape(cin, cout, 4 * M1 * M2 * M3)

    p = {"w_ri": jnp.concatenate([pack(wr), pack(wi)], axis=0)}
    p["pw_w"], p["pw_b"] = _linear_params(keys[8], cin, cout)
    return p


def init_params(key, in_width, width, list_dv, list_M1, list_M2, list_M3):
    ks = jax.random.split(key, 12)
    params = {}
    params["P0_w"], params["P0_b"] = _linear_params(ks[0], in_width, width // 2)
    params["P1_w"], params["P1_b"] = _linear_params(ks[1], width // 2, width)
    cins = [width, list_dv[0], list_dv[1], list_dv[2]]
    for li in range(4):
        params[f"L{li}"] = _block_params(ks[2 + li], cins[li], list_dv[li],
                                         list_M1[li], list_M2[li], list_M3[li])
    params["Q0E_w"], params["Q0E_b"] = _linear_params(ks[6], width, 4 * width)
    params["Q1E_w"], params["Q1E_b"] = _linear_params(ks[7], 4 * width, 1)
    params["Q0N_w"], params["Q0N_b"] = _linear_params(ks[8], width, 4 * width)
    params["Q1N_w"], params["Q1N_b"] = _linear_params(ks[9], 4 * width, 1)
    params["Q0Z_w"], params["Q0Z_b"] = _linear_params(ks[10], width, 4 * width)
    params["Q1Z_w"], params["Q1Z_b"] = _linear_params(ks[11], 4 * width, 1)  # unused (reference bug)
    return params


# -----------------------------------------------------------------------------
if __name__ == "__main__":
    # small configuration
    B, S1, S2, S3 = 2, 8, 8, 8
    C_raw = 3
    in_width = C_raw + 5          # raw field channels + 5 grid channels
    width = 16
    padding0 = 3                  # reference default
    pad = int(padding0 * 0.1 * S3)            # = 2
    D3p = S3 + pad                            # padded last spatial dim = 10
    list_dv = [width, width, width, width]
    list_D1 = [S1] * 4
    list_D2 = [S2] * 4
    list_D3 = [D3p] * 4
    list_M1 = [4] * 4
    list_M2 = [4] * 4
    list_M3 = [4] * 4             # <= D3p // 2 + 1

    key = jax.random.PRNGKey(0)
    kx, kp = jax.random.split(key)
    x = jax.random.normal(kx, (B, S1, S2, S3, C_raw), jnp.float32)
    params = init_params(kp, in_width, width, list_dv, list_M1, list_M2, list_M3)

    fwd = jax.jit(functools.partial(
        fno3d_forward, padding0=padding0,
        list_D1=list_D1, list_D2=list_D2, list_D3=list_D3,
        list_M1=list_M1, list_M2=list_M2, list_M3=list_M3))

    outE, outN, outZ = fwd(x, params)
    jax.block_until_ready((outE, outN, outZ))
    assert outE.shape == outN.shape == outZ.shape == (B, S1, S2, D3p - 4 * pad, 1)
    assert all(bool(jnp.all(jnp.isfinite(o))) for o in (outE, outN, outZ))
    print("KERNEL_OK")
</pallas_src>

<mosaic_0001>
module attributes {stable_mosaic.version = 11 : i64} {
  func.func @_mlp2_kernel(%arg0: i32, %arg1: memref<512x8xf32, #tpu.memory_space<vmem>>, %arg2: memref<8x8xbf16, #tpu.memory_space<vmem>>, %arg3: memref<1x8xf32, #tpu.memory_space<vmem>>, %arg4: memref<8x16xbf16, #tpu.memory_space<vmem>>, %arg5: memref<1x16xf32, #tpu.memory_space<vmem>>, %arg6: memref<512x16xf32, #tpu.memory_space<vmem>>) attributes {dimension_semantics = [#tpu.dimension_semantics<parallel>], iteration_bounds = array<i64: 2>, scalar_prefetch = 0 : i64, scratch_operands = 0 : i64, tpu.core_type = #tpu.core_type<tc>, window_params = [{transform_indices = @transform_0, window_bounds = array<i64: 512, 8>}, {pipeline_mode = #tpu.pipeline_mode<synchronous>, transform_indices = @transform_1, window_bounds = array<i64: 8, 8>}, {pipeline_mode = #tpu.pipeline_mode<synchronous>, transform_indices = @transform_2, window_bounds = array<i64: 1, 8>}, {pipeline_mode = #tpu.pipeline_mode<synchronous>, transform_indices = @transform_3, window_bounds = array<i64: 8, 16>}, {pipeline_mode = #tpu.pipeline_mode<synchronous>, transform_indices = @transform_4, window_bounds = array<i64: 1, 16>}, {transform_indices = @transform_5, window_bounds = array<i64: 512, 16>}]} {
    %c0 = arith.constant 0 : index
    %c0_0 = arith.constant 0 : index
    %0 = vector.load %arg1[%c0, %c0_0] : memref<512x8xf32, #tpu.memory_space<vmem>>, vector<512x8xf32>
    %1 = arith.truncf %0 : vector<512x8xf32> to vector<512x8xbf16>
    %c0_1 = arith.constant 0 : index
    %c0_2 = arith.constant 0 : index
    %2 = vector.load %arg2[%c0_1, %c0_2] : memref<8x8xbf16, #tpu.memory_space<vmem>>, vector<8x8xbf16>
    %cst = arith.constant dense<0.000000e+00> : vector<512x8xf32>
    %3 = tpu.matmul %1, %2, %cst {dimension_numbers = #tpu.dot_dimension_numbers<[1], [0], [0], [1], [0, 0, 1, 1], [], []>} : vector<512x8xbf16>, vector<8x8xbf16>, vector<512x8xf32> -> vector<512x8xf32>
    %c0_3 = arith.constant 0 : index
    %c0_4 = arith.constant 0 : index
    %4 = vector.load %arg3[%c0_3, %c0_4] : memref<1x8xf32, #tpu.memory_space<vmem>>, vector<1x8xf32>
    %5 = vector.broadcast %4 : vector<1x8xf32> to vector<512x8xf32>
    %6 = arith.addf %3, %5 : vector<512x8xf32>
    %cst_5 = arith.constant 5.000000e-01 : f32
    %7 = vector.broadcast %cst_5 : f32 to vector<512x8xf32>
    %8 = arith.mulf %7, %6 : vector<512x8xf32>
    %cst_6 = arith.constant 0.707106769 : f32
    %9 = vector.broadcast %cst_6 : f32 to vector<512x8xf32>
    %10 = arith.mulf %6, %9 : vector<512x8xf32>
    %11 = math.erf %10 : vector<512x8xf32>
    %cst_7 = arith.constant 1.000000e+00 : f32
    %12 = vector.broadcast %cst_7 : f32 to vector<512x8xf32>
    %13 = arith.addf %12, %11 : vector<512x8xf32>
    %14 = arith.mulf %8, %13 : vector<512x8xf32>
    %15 = arith.truncf %14 : vector<512x8xf32> to vector<512x8xbf16>
    %c0_8 = arith.constant 0 : index
    %c0_9 = arith.constant 0 : index
    %16 = vector.load %arg4[%c0_8, %c0_9] : memref<8x16xbf16, #tpu.memory_space<vmem>>, vector<8x16xbf16>
    %cst_10 = arith.constant dense<0.000000e+00> : vector<512x16xf32>
    %17 = tpu.matmul %15, %16, %cst_10 {dimension_numbers = #tpu.dot_dimension_numbers<[1], [0], [0], [1], [0, 0, 1, 1], [], []>} : vector<512x8xbf16>, vector<8x16xbf16>, vector<512x16xf32> -> vector<512x16xf32>
    %c0_11 = arith.constant 0 : index
    %c0_12 = arith.constant 0 : index
    %18 = vector.load %arg5[%c0_11, %c0_12] : memref<1x16xf32, #tpu.memory_space<vmem>>, vector<1x16xf32>
    %19 = vector.broadcast %18 : vector<1x16xf32> to vector<512x16xf32>
    %20 = arith.addf %17, %19 : vector<512x16xf32>
    %cst_13 = arith.constant 5.000000e-01 : f32
    %21 = vector.broadcast %cst_13 : f32 to vector<512x16xf32>
    %22 = arith.mulf %21, %20 : vector<512x16xf32>
    %cst_14 = arith.constant 0.707106769 : f32
    %23 = vector.broadcast %cst_14 : f32 to vector<512x16xf32>
    %24 = arith.mulf %20, %23 : vector<512x16xf32>
    %25 = math.erf %24 : vector<512x16xf32>
    %cst_15 = arith.constant 1.000000e+00 : f32
    %26 = vector.broadcast %cst_15 : f32 to vector<512x16xf32>
    %27 = arith.addf %26, %25 : vector<512x16xf32>
    %28 = arith.mulf %22, %27 : vector<512x16xf32>
    %c0_16 = arith.constant 0 : index
    %c0_17 = arith.constant 0 : index
    %29 = vector.load %arg6[%c0_16, %c0_17] : memref<512x16xf32, #tpu.memory_space<vmem>>, vector<512x16xf32>
    tpu.vector_store %arg6[%c0_16, %c0_17], %28 {strides = array<i32>} : memref<512x16xf32, #tpu.memory_space<vmem>>, vector<512x16xf32>,
    return
  }
  func.func @transform_0(%arg0: i32) -> (i32, i32) {
    %c0_i32 = arith.constant 0 : i32
    %c0_i32_0 = arith.constant 0 : i32
    return %arg0, %c0_i32 : i32, i32
  }
  func.func @transform_1(%arg0: i32) -> (i32, i32) {
    %c0_i32 = arith.constant 0 : i32
    %c0_i32_0 = arith.constant 0 : i32
    %c0_i32_1 = arith.constant 0 : i32
    return %c0_i32, %c0_i32_0 : i32, i32
  }
  func.func @transform_2(%arg0: i32) -> (i32, i32) {
    %c0_i32 = arith.constant 0 : i32
    %c0_i32_0 = arith.constant 0 : i32
    %c0_i32_1 = arith.constant 0 : i32
    return %c0_i32, %c0_i32_0 : i32, i32
  }
  func.func @transform_3(%arg0: i32) -> (i32, i32) {
    %c0_i32 = arith.constant 0 : i32
    %c0_i32_0 = arith.constant 0 : i32
    %c0_i32_1 = arith.constant 0 : i32
    return %c0_i32, %c0_i32_0 : i32, i32
  }
  func.func @transform_4(%arg0: i32) -> (i32, i32) {
    %c0_i32 = arith.constant 0 : i32
    %c0_i32_0 = arith.constant 0 : i32
    %c0_i32_1 = arith.constant 0 : i32
    return %c0_i32, %c0_i32_0 : i32, i32
  }
  func.func @transform_5(%arg0: i32) -> (i32, i32) {
    %c0_i32 = arith.constant 0 : i32
    %c0_i32_0 = arith.constant 0 : i32
    return %arg0, %c0_i32 : i32, i32
  }
}

module attributes {stable_mosaic.version = 11 : i64} {
  func.func @_spectral_cmul_kernel(%arg0: i32, %arg1: memref<64x128xf32, #tpu.memory_space<vmem>>, %arg2: memref<32x16x128xf32, #tpu.memory_space<vmem>>, %arg3: memref<4x16x128xf32, #tpu.memory_space<vmem>>) attributes {dimension_semantics = [#tpu.dimension_semantics<parallel>], iteration_bounds = array<i64: 2>, scalar_prefetch = 0 : i64, scratch_operands = 0 : i64, tpu.core_type = #tpu.core_type<tc>, window_params = [{transform_indices = @transform_0, window_bounds = array<i64: 64, 128>}, {transform_indices = @transform_1, window_bounds = array<i64: 32, 16, 128>}, {transform_indices = @transform_2, window_bounds = array<i64: 4, 16, 128>}]} {
    %cst = arith.constant 0.000000e+00 : f32
    %0 = vector.broadcast %cst : f32 to vector<16x128xf32>
    %cst_0 = arith.constant 0.000000e+00 : f32
    %1 = vector.broadcast %cst_0 : f32 to vector<16x128xf32>
    %c0 = arith.constant 0 : index
    %c0_1 = arith.constant 0 : index
    %2 = vector.load %arg1[%c0, %c0_1] : memref<64x128xf32, #tpu.memory_space<vmem>>, vector<1x128xf32>
    %c32 = arith.constant 32 : index
    %c0_2 = arith.constant 0 : index
    %3 = vector.load %arg1[%c32, %c0_2] : memref<64x128xf32, #tpu.memory_space<vmem>>, vector<1x128xf32>
    %c0_3 = arith.constant 0 : index
    %c0_4 = arith.constant 0 : index
    %c0_5 = arith.constant 0 : index
    %4 = vector.load %arg2[%c0_3, %c0_4, %c0_5] : memref<32x16x128xf32, #tpu.memory_space<vmem>>, vector<1x16x128xf32>
    %5 = vector.shape_cast %4 : vector<1x16x128xf32> to vector<16x128xf32>
    %c16 = arith.constant 16 : index
    %c0_6 = arith.constant 0 : index
    %c0_7 = arith.constant 0 : index
    %6 = vector.load %arg2[%c16, %c0_6, %c0_7] : memref<32x16x128xf32, #tpu.memory_space<vmem>>, vector<1x16x128xf32>
    %7 = vector.shape_cast %6 : vector<1x16x128xf32> to vector<16x128xf32>
    %8 = vector.broadcast %2 : vector<1x128xf32> to vector<16x128xf32>
    %9 = arith.mulf %8, %5 : vector<16x128xf32>
    %10 = vector.broadcast %3 : vector<1x128xf32> to vector<16x128xf32>
    %11 = arith.mulf %10, %7 : vector<16x128xf32>
    %12 = arith.subf %9, %11 : vector<16x128xf32>
    %13 = arith.addf %0, %12 : vector<16x128xf32>
    %14 = vector.broadcast %2 : vector<1x128xf32> to vector<16x128xf32>
    %15 = arith.mulf %14, %7 : vector<16x128xf32>
    %16 = vector.broadcast %3 : vector<1x128xf32> to vector<16x128xf32>
    %17 = arith.mulf %16, %5 : vector<16x128xf32>
    %18 = arith.addf %15, %17 : vector<16x128xf32>
    %19 = arith.addf %1, %18 : vector<16x128xf32>
    %c2 = arith.constant 2 : index
    %c0_8 = arith.constant 0 : index
    %20 = vector.load %arg1[%c2, %c0_8] : memref<64x128xf32, #tpu.memory_space<vmem>>, vector<1x128xf32>
    %c34 = arith.constant 34 : index
    %c0_9 = arith.constant 0 : index
    %21 = vector.load %arg1[%c34, %c0_9] : memref<64x128xf32, #tpu.memory_space<vmem>>, vector<1x128xf32>
    %c1 = arith.constant 1 : index
    %c0_10 = arith.constant 0 : index
    %c0_11 = arith.constant 0 : index
    %22 = vector.load %arg2[%c1, %c0_10, %c0_11] : memref<32x16x128xf32, #tpu.memory_space<vmem>>, vector<1x16x128xf32>
    %23 = vector.shape_cast %22 : vector<1x16x128xf32> to vector<16x128xf32>
    %c17 = arith.constant 17 : index
    %c0_12 = arith.constant 0 : index
    %c0_13 = arith.constant 0 : index
    %24 = vector.load %arg2[%c17, %c0_12, %c0_13] : memref<32x16x128xf32, #tpu.memory_space<vmem>>, vector<1x16x128xf32>
    %25 = vector.shape_cast %24 : vector<1x16x128xf32> to vector<16x128xf32>
    %26 = vector.broadcast %20 : vector<1x128xf32> to vector<16x128xf32>
    %27 = arith.mulf %26, %23 : vector<16x128xf32>
    %28 = vector.broadcast %21 : vector<1x128xf32> to vector<16x128xf32>
    %29 = arith.mulf %28, %25 : vector<16x128xf32>
    %30 = arith.subf %27, %29 : vector<16x128xf32>
    %31 = arith.addf %13, %30 : vector<16x128xf32>
    %32 = vector.broadcast %20 : vector<1x128xf32> to vector<16x128xf32>
    %33 = arith.mulf %32, %25 : vector<16x128xf32>
    %34 = vector.broadcast %21 : vector<1x128xf32> to vector<16x128xf32>
    %35 = arith.mulf %34, %23 : vector<16x128xf32>
    %36 = arith.addf %33, %35 : vector<16x128xf32>
    %37 = arith.addf %19, %36 : vector<16x128xf32>
    %c4 = arith.constant 4 : index
    %c0_14 = arith.constant 0 : index
    %38 = vector.load %arg1[%c4, %c0_14] : memref<64x128xf32, #tpu.memory_space<vmem>>, vector<1x128xf32>
    %c36 = arith.constant 36 : index
    %c0_15 = arith.constant 0 : index
    %39 = vector.load %arg1[%c36, %c0_15] : memref<64x128xf32, #tpu.memory_space<vmem>>, vector<1x128xf32>
    %c2_16 = arith.constant 2 : index
    %c0_17 = arith.constant 0 : index
    %c0_18 = arith.constant 0 : index
    %40 = vector.load %arg2[%c2_16, %c0_17, %c0_18] : memref<32x16x128xf32, #tpu.memory_space<vmem>>, vector<1x16x128xf32>
    %41 = vector.shape_cast %40 : vector<1x16x128xf32> to vector<16x128xf32>
    %c18 = arith.constant 18 : index
    %c0_19 = arith.constant 0 : index
    %c0_20 = arith.constant 0 : index
    %42 = vector.load %arg2[%c18, %c0_19, %c0_20] : memref<32x16x128xf32, #tpu.memory_space<vmem>>, vector<1x16x128xf32>
    %43 = vector.shape_cast %42 : vector<1x16x128xf32> to vector<16x128xf32>
    %44 = vector.broadcast %38 : vector<1x128xf32> to vector<16x128xf32>
    %45 = arith.mulf %44, %41 : vector<16x128xf32>
    %46 = vector.broadcast %39 : vector<1x128xf32> to vector<16x128xf32>
    %47 = arith.mulf %46, %43 : vector<16x128xf32>
    %48 = arith.subf %45, %47 : vector<16x128xf32>
    %49 = arith.addf %31, %48 : vector<16x128xf32>
    %50 = vector.broadcast %38 : vector<1x128xf32> to vector<16x128xf32>
    %51 = arith.mulf %50, %43 : vector<16x128xf32>
    %52 = vector.broadcast %39 : vector<1x128xf32> to vector<16x128xf32>
    %53 = arith.mulf %52, %41 : vector<16x128xf32>
    %54 = arith.addf %51, %53 : vector<16x128xf32>
    %55 = arith.addf %37, %54 : vector<16x128xf32>
    %c6 = arith.constant 6 : index
    %c0_21 = arith.constant 0 : index
    %56 = vector.load %arg1[%c6, %c0_21] : memref<64x128xf32, #tpu.memory_space<vmem>>, vector<1x128xf32>
    %c38 = arith.constant 38 : index
    %c0_22 = arith.constant 0 : index
    %57 = vector.load %arg1[%c38, %c0_22] : memref<64x128xf32, #tpu.memory_space<vmem>>, vector<1x128xf32>
    %c3 = arith.constant 3 : index
    %c0_23 = arith.constant 0 : index
    %c0_24 = arith.constant 0 : index
    %58 = vector.load %arg2[%c3, %c0_23, %c0_24] : memref<32x16x128xf32, #tpu.memory_space<vmem>>, vector<1x16x128xf32>
    %59 = vector.shape_cast %58 : vector<1x16x128xf32> to vector<16x128xf32>
    %c19 = arith.constant 19 : index
    %c0_25 = arith.constant 0 : index
    %c0_26 = arith.constant 0 : index
    %60 = vector.load %arg2[%c19, %c0_25, %c0_26] : memref<32x16x128xf32, #tpu.memory_space<vmem>>, vector<1x16x128xf32>
    %61 = vector.shape_cast %60 : vector<1x16x128xf32> to vector<16x128xf32>
    %62 = vector.broadcast %56 : vector<1x128xf32> to vector<16x128xf32>
    %63 = arith.mulf %62, %59 : vector<16x128xf32>
    %64 = vector.broadcast %57 : vector<1x128xf32> to vector<16x128xf32>
    %65 = arith.mulf %64, %61 : vector<16x128xf32>
    %66 = arith.subf %63, %65 : vector<16x128xf32>
    %67 = arith.addf %49, %66 : vector<16x128xf32>
    %68 = vector.broadcast %56 : vector<1x128xf32> to vector<16x128xf32>
    %69 = arith.mulf %68, %61 : vector<16x128xf32>
    %70 = vector.broadcast %57 : vector<1x128xf32> to vector<16x128xf32>
    %71 = arith.mulf %70, %59 : vector<16x128xf32>
    %72 = arith.addf %69, %71 : vector<16x128xf32>
    %73 = arith.addf %55, %72 : vector<16x128xf32>
    %c8 = arith.constant 8 : index
    %c0_27 = arith.constant 0 : index
    %74 = vector.load %arg1[%c8, %c0_27] : memref<64x128xf32, #tpu.memory_space<vmem>>, vector<1x128xf32>
    %c40 = arith.constant 40 : index
    %c0_28 = arith.constant 0 : index
    %75 = vector.load %arg1[%c40, %c0_28] : memref<64x128xf32, #tpu.memory_space<vmem>>, vector<1x128xf32>
    %c4_29 = arith.constant 4 : index
    %c0_30 = arith.constant 0 : index
    %c0_31 = arith.constant 0 : index
    %76 = vector.load %arg2[%c4_29, %c0_30, %c0_31] : memref<32x16x128xf32, #tpu.memory_space<vmem>>, vector<1x16x128xf32>
    %77 = vector.shape_cast %76 : vector<1x16x128xf32> to vector<16x128xf32>
    %c20 = arith.constant 20 : index
    %c0_32 = arith.constant 0 : index
    %c0_33 = arith.constant 0 : index
    %78 = vector.load %arg2[%c20, %c0_32, %c0_33] : memref<32x16x128xf32, #tpu.memory_space<vmem>>, vector<1x16x128xf32>
    %79 = vector.shape_cast %78 : vector<1x16x128xf32> to vector<16x128xf32>
    %80 = vector.broadcast %74 : vector<1x128xf32> to vector<16x128xf32>
    %81 = arith.mulf %80, %77 : vector<16x128xf32>
    %82 = vector.broadcast %75 : vector<1x128xf32> to vector<16x128xf32>
    %83 = arith.mulf %82, %79 : vector<16x128xf32>
    %84 = arith.subf %81, %83 : vector<16x128xf32>
    %85 = arith.addf %67, %84 : vector<16x128xf32>
    %86 = vector.broadcast %74 : vector<1x128xf32> to vector<16x128xf32>
    %87 = arith.mulf %86, %79 : vector<16x128xf32>
    %88 = vector.broadcast %75 : vector<1x128xf32> to vector<16x128xf32>
    %89 = arith.mulf %88, %77 : vector<16x128xf32>
    %90 = arith.addf %87, %89 : vector<16x128xf32>
    %91 = arith.addf %73, %90 : vector<16x128xf32>
    %c10 = arith.constant 10 : index
    %c0_34 = arith.constant 0 : index
    %92 = vector.load %arg1[%c10, %c0_34] : memref<64x128xf32, #tpu.memory_space<vmem>>, vector<1x128xf32>
    %c42 = arith.constant 42 : index
    %c0_35 = arith.constant 0 : index
    %93 = vector.load %arg1[%c42, %c0_35] : memref<64x128xf32, #tpu.memory_space<vmem>>, vector<1x128xf32>
    %c5 = arith.constant 5 : index
    %c0_36 = arith.constant 0 : index
    %c0_37 = arith.constant 0 : index
    %94 = vector.load %arg2[%c5, %c0_36, %c0_37] : memref<32x16x128xf32, #tpu.memory_space<vmem>>, vector<1x16x128xf32>
    %95 = vector.shape_cast %94 : vector<1x16x128xf32> to vector<16x128xf32>
    %c21 = arith.constant 21 : index
    %c0_38 = arith.constant 0 : index
    %c0_39 = arith.constant 0 : index
    %96 = vector.load %arg2[%c21, %c0_38, %c0_39] : memref<32x16x128xf32, #tpu.memory_space<vmem>>, vector<1x16x128xf32>
    %97 = vector.shape_cast %96 : vector<1x16x128xf32> to vector<16x128xf32>
    %98 = vector.broadcast %92 : vector<1x128xf32> to vector<16x128xf32>
    %99 = arith.mulf %98, %95 : vector<16x128xf32>
    %100 = vector.broadcast %93 : vector<1x128xf32> to vector<16x128xf32>
    %101 = arith.mulf %100, %97 : vector<16x128xf32>
    %102 = arith.subf %99, %101 : vector<16x128xf32>
    %103 = arith.addf %85, %102 : vector<16x128xf32>
    %104 = vector.broadcast %92 : vector<1x128xf32> to vector<16x128xf32>
    %105 = arith.mulf %104, %97 : vector<16x128xf32>
    %106 = vector.broadcast %93 : vector<1x128xf32> to vector<16x128xf32>
    %107 = arith.mulf %106, %95 : vector<16x128xf32>
    %108 = arith.addf %105, %107 : vector<16x128xf32>
    %109 = arith.addf %91, %108 : vector<16x128xf32>
    %c12 = arith.constant 12 : index
    %c0_40 = arith.constant 0 : index
    %110 = vector.load %arg1[%c12, %c0_40] : memref<64x128xf32, #tpu.memory_space<vmem>>, vector<1x128xf32>
    %c44 = arith.constant 44 : index
    %c0_41 = arith.constant 0 : index
    %111 = vector.load %arg1[%c44, %c0_41] : memref<64x128xf32, #tpu.memory_space<vmem>>, vector<1x128xf32>
    %c6_42 = arith.constant 6 : index
    %c0_43 = arith.constant 0 : index
    %c0_44 = arith.constant 0 : index
    %112 = vector.load %arg2[%c6_42, %c0_43, %c0_44] : memref<32x16x128xf32, #tpu.memory_space<vmem>>, vector<1x16x128xf32>
    %113 = vector.shape_cast %112 : vector<1x16x128xf32> to vector<16x128xf32>
    %c22 = arith.constant 22 : index
    %c0_45 = arith.constant 0 : index
    %c0_46 = arith.constant 0 : index
    %114 = vector.load %arg2[%c22, %c0_45, %c0_46] : memref<32x16x128xf32, #tpu.memory_space<vmem>>, vector<1x16x128xf32>
    %115 = vector.shape_cast %114 : vector<1x16x128xf32> to vector<16x128xf32>
    %116 = vector.broadcast %110 : vector<1x128xf32> to vector<16x128xf32>
    %117 = arith.mulf %116, %113 : vector<16x128xf32>
    %118 = vector.broadcast %111 : vector<1x128xf32> to vector<16x128xf32>
    %119 = arith.mulf %118, %115 : vector<16x128xf32>
    %120 = arith.subf %117, %119 : vector<16x128xf32>
    %121 = arith.addf %103, %120 : vector<16x128xf32>
    %122 = vector.broadcast %110 : vector<1x128xf32> to vector<16x128xf32>
    %123 = arith.mulf %122, %115 : vector<16x128xf32>
    %124 = vector.broadcast %111 : vector<1x128xf32> to vector<16x128xf32>
    %125 = arith.mulf %124, %113 : vector<16x128xf32>
    %126 = arith.addf %123, %125 : vector<16x128xf32>
    %127 = arith.addf %109, %126 : vector<16x128xf32>
    %c14 = arith.constant 14 : index
    %c0_47 = arith.constant 0 : index
    %128 = vector.load %arg1[%c14, %c0_47] : memref<64x128xf32, #tpu.memory_space<vmem>>, vector<1x128xf32>
    %c46 = arith.constant 46 : index
    %c0_48 = arith.constant 0 : index
    %129 = vector.load %arg1[%c46, %c0_48] : memref<64x128xf32, #tpu.memory_space<vmem>>, vector<1x128xf32>
    %c7 = arith.constant 7 : index
    %c0_49 = arith.constant 0 : index
    %c0_50 = arith.constant 0 : index
    %130 = vector.load %arg2[%c7, %c0_49, %c0_50] : memref<32x16x128xf32, #tpu.memory_space<vmem>>, vector<1x16x128xf32>
    %131 = vector.shape_cast %130 : vector<1x16x128xf32> to vector<16x128xf32>
    %c23 = arith.constant 23 : index
    %c0_51 = arith.constant 0 : index
    %c0_52 = arith.constant 0 : index
    %132 = vector.load %arg2[%c23, %c0_51, %c0_52] : memref<32x16x128xf32, #tpu.memory_space<vmem>>, vector<1x16x128xf32>
    %133 = vector.shape_cast %132 : vector<1x16x128xf32> to vector<16x128xf32>
    %134 = vector.broadcast %128 : vector<1x128xf32> to vector<16x128xf32>
    %135 = arith.mulf %134, %131 : vector<16x128xf32>
    %136 = vector.broadcast %129 : vector<1x128xf32> to vector<16x128xf32>
    %137 = arith.mulf %136, %133 : vector<16x128xf32>
    %138 = arith.subf %135, %137 : vector<16x128xf32>
    %139 = arith.addf %121, %138 : vector<16x128xf32>
    %140 = vector.broadcast %128 : vector<1x128xf32> to vector<16x128xf32>
    %141 = arith.mulf %140, %133 : vector<16x128xf32>
    %142 = vector.broadcast %129 : vector<1x128xf32> to vector<16x128xf32>
    %143 = arith.mulf %142, %131 : vector<16x128xf32>
    %144 = arith.addf %141, %143 : vector<16x128xf32>
    %145 = arith.addf %127, %144 : vector<16x128xf32>
    %c16_53 = arith.constant 16 : index
    %c0_54 = arith.constant 0 : index
    %146 = vector.load %arg1[%c16_53, %c0_54] : memref<64x128xf32, #tpu.memory_space<vmem>>, vector<1x128xf32>
    %c48 = arith.constant 48 : index
    %c0_55 = arith.constant 0 : index
    %147 = vector.load %arg1[%c48, %c0_55] : memref<64x128xf32, #tpu.memory_space<vmem>>, vector<1x128xf32>
    %c8_56 = arith.constant 8 : index
    %c0_57 = arith.constant 0 : index
    %c0_58 = arith.constant 0 : index
    %148 = vector.load %arg2[%c8_56, %c0_57, %c0_58] : memref<32x16x128xf32, #tpu.memory_space<vmem>>, vector<1x16x128xf32>
    %149 = vector.shape_cast %148 : vector<1x16x128xf32> to vector<16x128xf32>
    %c24 = arith.constant 24 : index
    %c0_59 = arith.constant 0 : index
    %c0_60 = arith.constant 0 : index
    %150 = vector.load %arg2[%c24, %c0_59, %c0_60] : memref<32x16x128xf32, #tpu.memory_space<vmem>>, vector<1x16x128xf32>
    %151 = vector.shape_cast %150 : vector<1x16x128xf32> to vector<16x128xf32>
    %152 = vector.broadcast %146 : vector<1x128xf32> to vector<16x128xf32>
    %153 = arith.mulf %152, %149 : vector<16x128xf32>
    %154 = vector.broadcast %147 : vector<1x128xf32> to vector<16x128xf32>
    %155 = arith.mulf %154, %151 : vector<16x128xf32>
    %156 = arith.subf %153, %155 : vector<16x128xf32>
    %157 = arith.addf %139, %156 : vector<16x128xf32>
    %158 = vector.broadcast %146 : vector<1x128xf32> to vector<16x128xf32>
    %159 = arith.mulf %158, %151 : vector<16x128xf32>
    %160 = vector.broadcast %147 : vector<1x128xf32> to vector<16x128xf32>
    %161 = arith.mulf %160, %149 : vector<16x128xf32>
    %162 = arith.addf %159, %161 : vector<16x128xf32>
    %163 = arith.addf %145, %162 : vector<16x128xf32>
    %c18_61 = arith.constant 18 : index
    %c0_62 = arith.constant 0 : index
    %164 = vector.load %arg1[%c18_61, %c0_62] : memref<64x128xf32, #tpu.memory_space<vmem>>, vector<1x128xf32>
    %c50 = arith.constant 50 : index
    %c0_63 = arith.constant 0 : index
    %165 = vector.load %arg1[%c50, %c0_63] : memref<64x128xf32, #tpu.memory_space<vmem>>, vector<1x128xf32>
    %c9 = arith.constant 9 : index
    %c0_64 = arith.constant 0 : index
    %c0_65 = arith.constant 0 : index
    %166 = vector.load %arg2[%c9, %c0_64, %c0_65] : memref<32x16x128xf32, #tpu.memory_space<vmem>>, vector<1x16x128xf32>
    %167 = vector.shape_cast %166 : vector<1x16x128xf32> to vector<16x128xf32>
    %c25 = arith.constant 25 : index
    %c0_66 = arith.constant 0 : index
    %c0_67 = arith.constant 0 : index
    %168 = vector.load %arg2[%c25, %c0_66, %c0_67] : memref<32x16x128xf32, #tpu.memory_space<vmem>>, vector<1x16x128xf32>
    %169 = vector.shape_cast %168 : vector<1x16x128xf32> to vector<16x128xf32>
    %170 = vector.broadcast %164 : vector<1x128xf32> to vector<16x128xf32>
    %171 = arith.mulf %170, %167 : vector<16x128xf32>
    %172 = vector.broadcast %165 : vector<1x128xf32> to vector<16x128xf32>
    %173 = arith.mulf %172, %169 : vector<16x128xf32>
    %174 = arith.subf %171, %173 : vector<16x128xf32>
    %175 = arith.addf %157, %174 : vector<16x128xf32>
    %176 = vector.broadcast %164 : vector<1x128xf32> to vector<16x128xf32>
    %177 = arith.mulf %176, %169 : vector<16x128xf32>
    %178 = vector.broadcast %165 : vector<1x128xf32> to vector<16x128xf32>
    %179 = arith.mulf %178, %167 : vector<16x128xf32>
    %180 = arith.addf %177, %179 : vector<16x128xf32>
    %181 = arith.addf %163, %180 : vector<16x128xf32>
    %c20_68 = arith.constant 20 : index
    %c0_69 = arith.constant 0 : index
    %182 = vector.load %arg1[%c20_68, %c0_69] : memref<64x128xf32, #tpu.memory_space<vmem>>, vector<1x128xf32>
    %c52 = arith.constant 52 : index
    %c0_70 = arith.constant 0 : index
    %183 = vector.load %arg1[%c52, %c0_70] : memref<64x128xf32, #tpu.memory_space<vmem>>, vector<1x128xf32>
    %c10_71 = arith.constant 10 : index
    %c0_72 = arith.constant 0 : index
    %c0_73 = arith.constant 0 : index
    %184 = vector.load %arg2[%c10_71, %c0_72, %c0_73] : memref<32x16x128xf32, #tpu.memory_space<vmem>>, vector<1x16x128xf32>
    %185 = vector.shape_cast %184 : vector<1x16x128xf32> to vector<16x128xf32>
    %c26 = arith.constant 26 : index
    %c0_74 = arith.constant 0 : index
    %c0_75 = arith.constant 0 : index
    %186 = vector.load %arg2[%c26, %c0_74, %c0_75] : memref<32x16x128xf32, #tpu.memory_space<vmem>>, vector<1x16x128xf32>
    %187 = vector.shape_cast %186 : vector<1x16x128xf32> to vector<16x128xf32>
    %188 = vector.broadcast %182 : vector<1x128xf32> to vector<16x128xf32>
    %189 = arith.mulf %188, %185 : vector<16x128xf32>
    %190 = vector.broadcast %183 : vector<1x128xf32> to vector<16x128xf32>
    %191 = arith.mulf %190, %187 : vector<16x128xf32>
    %192 = arith.subf %189, %191 : vector<16x128xf32>
    %193 = arith.addf %175, %192 : vector<16x128xf32>
    %194 = vector.broadcast %182 : vector<1x128xf32> to vector<16x128xf32>
    %195 = arith.mulf %194, %187 : vector<16x128xf32>
    %196 = vector.broadcast %183 : vector<1x128xf32> to vector<16x128xf32>
    %197 = arith.mulf %196, %185 : vector<16x128xf32>
    %198 = arith.addf %195, %197 : vector<16x128xf32>
    %199 = arith.addf %181, %198 : vector<16x128xf32>
    %c22_76 = arith.constant 22 : index
    %c0_77 = arith.constant 0 : index
    %200 = vector.load %arg1[%c22_76, %c0_77] : memref<64x128xf32, #tpu.memory_space<vmem>>, vector<1x128xf32>
    %c54 = arith.constant 54 : index
    %c0_78 = arith.constant 0 : index
    %201 = vector.load %arg1[%c54, %c0_78] : memref<64x128xf32, #tpu.memory_space<vmem>>, vector<1x128xf32>
    %c11 = arith.constant 11 : index
    %c0_79 = arith.constant 0 : index
    %c0_80 = arith.constant 0 : index
    %202 = vector.load %arg2[%c11, %c0_79, %c0_80] : memref<32x16x128xf32, #tpu.memory_space<vmem>>, vector<1x16x128xf32>
    %203 = vector.shape_cast %202 : vector<1x16x128xf32> to vector<16x128xf32>
    %c27 = arith.constant 27 : index
    %c0_81 = arith.constant 0 : index
    %c0_82 = arith.constant 0 : index
    %204 = vector.load %arg2[%c27, %c0_81, %c0_82] : memref<32x16x128xf32, #tpu.memory_space<vmem>>, vector<1x16x128xf32>
    %205 = vector.shape_cast %204 : vector<1x16x128xf32> to vector<16x128xf32>
    %206 = vector.broadcast %200 : vector<1x128xf32> to vector<16x128xf32>
    %207 = arith.mulf %206, %203 : vector<16x128xf32>
    %208 = vector.broadcast %201 : vector<1x128xf32> to vector<16x128xf32>
    %209 = arith.mulf %208, %205 : vector<16x128xf32>
    %210 = arith.subf %207, %209 : vector<16x128xf32>
    %211 = arith.addf %193, %210 : vector<16x128xf32>
    %212 = vector.broadcast %200 : vector<1x128xf32> to vector<16x128xf32>
    %213 = arith.mulf %212, %205 : vector<16x128xf32>
    %214 = vector.broadcast %201 : vector<1x128xf32> to vector<16x128xf32>
    %215 = arith.mulf %214, %203 : vector<16x128xf32>
    %216 = arith.addf %213, %215 : vector<16x128xf32>
    %217 = arith.addf %199, %216 : vector<16x128xf32>
    %c24_83 = arith.constant 24 : index
    %c0_84 = arith.constant 0 : index
    %218 = vector.load %arg1[%c24_83, %c0_84] : memref<64x128xf32, #tpu.memory_space<vmem>>, vector<1x128xf32>
    %c56 = arith.constant 56 : index
    %c0_85 = arith.constant 0 : index
    %219 = vector.load %arg1[%c56, %c0_85] : memref<64x128xf32, #tpu.memory_space<vmem>>, vector<1x128xf32>
    %c12_86 = arith.constant 12 : index
    %c0_87 = arith.constant 0 : index
    %c0_88 = arith.constant 0 : index
    %220 = vector.load %arg2[%c12_86, %c0_87, %c0_88] : memref<32x16x128xf32, #tpu.memory_space<vmem>>, vector<1x16x128xf32>
    %221 = vector.shape_cast %220 : vector<1x16x128xf32> to vector<16x128xf32>
    %c28 = arith.constant 28 : index
    %c0_89 = arith.constant 0 : index
    %c0_90 = arith.constant 0 : index
    %222 = vector.load %arg2[%c28, %c0_89, %c0_90] : memref<32x16x128xf32, #tpu.memory_space<vmem>>, vector<1x16x128xf32>
    %223 = vector.shape_cast %222 : vector<1x16x128xf32> to vector<16x128xf32>
    %224 = vector.broadcast %218 : vector<1x128xf32> to vector<16x128xf32>
    %225 = arith.mulf %224, %221 : vector<16x128xf32>
    %226 = vector.broadcast %219 : vector<1x128xf32> to vector<16x128xf32>
    %227 = arith.mulf %226, %223 : vector<16x128xf32>
    %228 = arith.subf %225, %227 : vector<16x128xf32>
    %229 = arith.addf %211, %228 : vector<16x128xf32>
    %230 = vector.broadcast %218 : vector<1x128xf32> to vector<16x128xf32>
    %231 = arith.mulf %230, %223 : vector<16x128xf32>
    %232 = vector.broadcast %219 : vector<1x128xf32> to vector<16x128xf32>
    %233 = arith.mulf %232, %221 : vector<16x128xf32>
    %234 = arith.addf %231, %233 : vector<16x128xf32>
    %235 = arith.addf %217, %234 : vector<16x128xf32>
    %c26_91 = arith.constant 26 : index
    %c0_92 = arith.constant 0 : index
    %236 = vector.load %arg1[%c26_91, %c0_92] : memref<64x128xf32, #tpu.memory_space<vmem>>, vector<1x128xf32>
    %c58 = arith.constant 58 : index
    %c0_93 = arith.constant 0 : index
    %237 = vector.load %arg1[%c58, %c0_93] : memref<64x128xf32, #tpu.memory_space<vmem>>, vector<1x128xf32>
    %c13 = arith.constant 13 : index
    %c0_94 = arith.constant 0 : index
    %c0_95 = arith.constant 0 : index
    %238 = vector.load %arg2[%c13, %c0_94, %c0_95] : memref<32x16x128xf32, #tpu.memory_space<vmem>>, vector<1x16x128xf32>
    %239 = vector.shape_cast %238 : vector<1x16x128xf32> to vector<16x128xf32>
    %c29 = arith.constant 29 : index
    %c0_96 = arith.constant 0 : index
    %c0_97 = arith.constant 0 : index
    %240 = vector.load %arg2[%c29, %c0_96, %c0_97] : memref<32x16x128xf32, #tpu.memory_space<vmem>>, vector<1x16x128xf32>
    %241 = vector.shape_cast %240 : vector<1x16x128xf32> to vector<16x128xf32>
    %242 = vector.broadcast %236 : vector<1x128xf32> to vector<16x128xf32>
    %243 = arith.mulf %242, %239 : vector<16x128xf32>
    %244 = vector.broadcast %237 : vector<1x128xf32> to vector<16x128xf32>
    %245 = arith.mulf %244, %241 : vector<16x128xf32>
    %246 = arith.subf %243, %245 : vector<16x128xf32>
    %247 = arith.addf %229, %246 : vector<16x128xf32>
    %248 = vector.broadcast %236 : vector<1x128xf32> to vector<16x128xf32>
    %249 = arith.mulf %248, %241 : vector<16x128xf32>
    %250 = vector.broadcast %237 : vector<1x128xf32> to vector<16x128xf32>
    %251 = arith.mulf %250, %239 : vector<16x128xf32>
    %252 = arith.addf %249, %251 : vector<16x128xf32>
    %253 = arith.addf %235, %252 : vector<16x128xf32>
    %c28_98 = arith.constant 28 : index
    %c0_99 = arith.constant 0 : index
    %254 = vector.load %arg1[%c28_98, %c0_99] : memref<64x128xf32, #tpu.memory_space<vmem>>, vector<1x128xf32>
    %c60 = arith.constant 60 : index
    %c0_100 = arith.constant 0 : index
    %255 = vector.load %arg1[%c60, %c0_100] : memref<64x128xf32, #tpu.memory_space<vmem>>, vector<1x128xf32>
    %c14_101 = arith.constant 14 : index
    %c0_102 = arith.constant 0 : index
    %c0_103 = arith.constant 0 : index
    %256 = vector.load %arg2[%c14_101, %c0_102, %c0_103] : memref<32x16x128xf32, #tpu.memory_space<vmem>>, vector<1x16x128xf32>
    %257 = vector.shape_cast %256 : vector<1x16x128xf32> to vector<16x128xf32>
    %c30 = arith.constant 30 : index
    %c0_104 = arith.constant 0 : index
    %c0_105 = arith.constant 0 : index
    %258 = vector.load %arg2[%c30, %c0_104, %c0_105] : memref<32x16x128xf32, #tpu.memory_space<vmem>>, vector<1x16x128xf32>
    %259 = vector.shape_cast %258 : vector<1x16x128xf32> to vector<16x128xf32>
    %260 = vector.broadcast %254 : vector<1x128xf32> to vector<16x128xf32>
    %261 = arith.mulf %260, %257 : vector<16x128xf32>
    %262 = vector.broadcast %255 : vector<1x128xf32> to vector<16x128xf32>
    %263 = arith.mulf %262, %259 : vector<16x128xf32>
    %264 = arith.subf %261, %263 : vector<16x128xf32>
    %265 = arith.addf %247, %264 : vector<16x128xf32>
    %266 = vector.broadcast %254 : vector<1x128xf32> to vector<16x128xf32>
    %267 = arith.mulf %266, %259 : vector<16x128xf32>
    %268 = vector.broadcast %255 : vector<1x128xf32> to vector<16x128xf32>
    %269 = arith.mulf %268, %257 : vector<16x128xf32>
    %270 = arith.addf %267, %269 : vector<16x128xf32>
    %271 = arith.addf %253, %270 : vector<16x128xf32>
    %c30_106 = arith.constant 30 : index
    %c0_107 = arith.constant 0 : index
    %272 = vector.load %arg1[%c30_106, %c0_107] : memref<64x128xf32, #tpu.memory_space<vmem>>, vector<1x128xf32>
    %c62 = arith.constant 62 : index
    %c0_108 = arith.constant 0 : index
    %273 = vector.load %arg1[%c62, %c0_108] : memref<64x128xf32, #tpu.memory_space<vmem>>, vector<1x128xf32>
    %c15 = arith.constant 15 : index
    %c0_109 = arith.constant 0 : index
    %c0_110 = arith.constant 0 : index
    %274 = vector.load %arg2[%c15, %c0_109, %c0_110] : memref<32x16x128xf32, #tpu.memory_space<vmem>>, vector<1x16x128xf32>
    %275 = vector.shape_cast %274 : vector<1x16x128xf32> to vector<16x128xf32>
    %c31 = arith.constant 31 : index
    %c0_111 = arith.constant 0 : index
    %c0_112 = arith.constant 0 : index
    %276 = vector.load %arg2[%c31, %c0_111, %c0_112] : memref<32x16x128xf32, #tpu.memory_space<vmem>>, vector<1x16x128xf32>
    %277 = vector.shape_cast %276 : vector<1x16x128xf32> to vector<16x128xf32>
    %278 = vector.broadcast %272 : vector<1x128xf32> to vector<16x128xf32>
    %279 = arith.mulf %278, %275 : vector<16x128xf32>
    %280 = vector.broadcast %273 : vector<1x128xf32> to vector<16x128xf32>
    %281 = arith.mulf %280, %277 : vector<16x128xf32>
    %282 = arith.subf %279, %281 : vector<16x128xf32>
    %283 = arith.addf %265, %282 : vector<16x128xf32>
    %284 = vector.broadcast %272 : vector<1x128xf32> to vector<16x128xf32>
    %285 = arith.mulf %284, %277 : vector<16x128xf32>
    %286 = vector.broadcast %273 : vector<1x128xf32> to vector<16x128xf32>
    %287 = arith.mulf %286, %275 : vector<16x128xf32>
    %288 = arith.addf %285, %287 : vector<16x128xf32>
    %289 = arith.addf %271, %288 : vector<16x128xf32>
    %c0_113 = arith.constant 0 : index
    %c0_114 = arith.constant 0 : index
    %c0_115 = arith.constant 0 : index
    %290 = vector.load %arg3[%c0_113, %c0_114, %c0_115] : memref<4x16x128xf32, #tpu.memory_space<vmem>>, vector<1x16x128xf32>
    %291 = vector.shape_cast %290 : vector<1x16x128xf32> to vector<16x128xf32>
    %292 = vector.shape_cast %283 : vector<16x128xf32> to vector<1x16x128xf32>
    tpu.vector_store %arg3[%c0_113, %c0_114, %c0_115], %292 {strides = array<i32>} : memref<4x16x128xf32, #tpu.memory_space<vmem>>, vector<1x16x128xf32>,
    %c2_116 = arith.constant 2 : index
    %c0_117 = arith.constant 0 : index
    %c0_118 = arith.constant 0 : index
    %293 = vector.load %arg3[%c2_116, %c0_117, %c0_118] : memref<4x16x128xf32, #tpu.memory_space<vmem>>, vector<1x16x128xf32>
    %294 = vector.shape_cast %293 : vector<1x16x128xf32> to vector<16x128xf32>
    %295 = vector.shape_cast %289 : vector<16x128xf32> to vector<1x16x128xf32>
    tpu.vector_store %arg3[%c2_116, %c0_117, %c0_118], %295 {strides = array<i32>} : memref<4x16x128xf32, #tpu.memory_space<vmem>>, vector<1x16x128xf32>,
    %cst_119 = arith.constant 0.000000e+00 : f32
    %296 = vector.broadcast %cst_119 : f32 to vector<16x128xf32>
    %cst_120 = arith.constant 0.000000e+00 : f32
    %297 = vector.broadcast %cst_120 : f32 to vector<16x128xf32>
    %c1_121 = arith.constant 1 : index
    %c0_122 = arith.constant 0 : index
    %298 = vector.load %arg1[%c1_121, %c0_122] : memref<64x128xf32, #tpu.memory_space<vmem>>, vector<1x128xf32>
    %c33 = arith.constant 33 : index
    %c0_123 = arith.constant 0 : index
    %299 = vector.load %arg1[%c33, %c0_123] : memref<64x128xf32, #tpu.memory_space<vmem>>, vector<1x128xf32>
    %c0_124 = arith.constant 0 : index
    %c0_125 = arith.constant 0 : index
    %c0_126 = arith.constant 0 : index
    %300 = vector.load %arg2[%c0_124, %c0_125, %c0_126] : memref<32x16x128xf32, #tpu.memory_space<vmem>>, vector<1x16x128xf32>
    %301 = vector.shape_cast %300 : vector<1x16x128xf32> to vector<16x128xf32>
    %c16_127 = arith.constant 16 : index
    %c0_128 = arith.constant 0 : index
    %c0_129 = arith.constant 0 : index
    %302 = vector.load %arg2[%c16_127, %c0_128, %c0_129] : memref<32x16x128xf32, #tpu.memory_space<vmem>>, vector<1x16x128xf32>
    %303 = vector.shape_cast %302 : vector<1x16x128xf32> to vector<16x128xf32>
    %304 = vector.broadcast %298 : vector<1x128xf32> to vector<16x128xf32>
    %305 = arith.mulf %304, %301 : vector<16x128xf32>
    %306 = vector.broadcast %299 : vector<1x128xf32> to vector<16x128xf32>
    %307 = arith.mulf %306, %303 : vector<16x128xf32>
    %308 = arith.subf %305, %307 : vector<16x128xf32>
    %309 = arith.addf %296, %308 : vector<16x128xf32>
    %310 = vector.broadcast %298 : vector<1x128xf32> to vector<16x128xf32>
    %311 = arith.mulf %310, %303 : vector<16x128xf32>
    %312 = vector.broadcast %299 : vector<1x128xf32> to vector<16x128xf32>
    %313 = arith.mulf %312, %301 : vector<16x128xf32>
    %314 = arith.addf %311, %313 : vector<16x128xf32>
    %315 = arith.addf %297, %314 : vector<16x128xf32>
    %c3_130 = arith.constant 3 : index
    %c0_131 = arith.constant 0 : index
    %316 = vector.load %arg1[%c3_130, %c0_131] : memref<64x128xf32, #tpu.memory_space<vmem>>, vector<1x128xf32>
    %c35 = arith.constant 35 : index
    %c0_132 = arith.constant 0 : index
    %317 = vector.load %arg1[%c35, %c0_132] : memref<64x128xf32, #tpu.memory_space<vmem>>, vector<1x128xf32>
    %c1_133 = arith.constant 1 : index
    %c0_134 = arith.constant 0 : index
    %c0_135 = arith.constant 0 : index
    %318 = vector.load %arg2[%c1_133, %c0_134, %c0_135] : memref<32x16x128xf32, #tpu.memory_space<vmem>>, vector<1x16x128xf32>
    %319 = vector.shape_cast %318 : vector<1x16x128xf32> to vector<16x128xf32>
    %c17_136 = arith.constant 17 : index
    %c0_137 = arith.constant 0 : index
    %c0_138 = arith.constant 0 : index
    %320 = vector.load %arg2[%c17_136, %c0_137, %c0_138] : memref<32x16x128xf32, #tpu.memory_space<vmem>>, vector<1x16x128xf32>
    %321 = vector.shape_cast %320 : vector<1x16x128xf32> to vector<16x128xf32>
    %322 = vector.broadcast %316 : vector<1x128xf32> to vector<16x128xf32>
    %323 = arith.mulf %322, %319 : vector<16x128xf32>
    %324 = vector.broadcast %317 : vector<1x128xf32> to vector<16x128xf32>
    %325 = arith.mulf %324, %321 : vector<16x128xf32>
    %326 = arith.subf %323, %325 : vector<16x128xf32>
    %327 = arith.addf %309, %326 : vector<16x128xf32>
    %328 = vector.broadcast %316 : vector<1x128xf32> to vector<16x128xf32>
    %329 = arith.mulf %328, %321 : vector<16x128xf32>
    %330 = vector.broadcast %317 : vector<1x128xf32> to vector<16x128xf32>
    %331 = arith.mulf %330, %319 : vector<16x128xf32>
    %332 = arith.addf %329, %331 : vector<16x128xf32>
    %333 = arith.addf %315, %332 : vector<16x128xf32>
    %c5_139 = arith.constant 5 : index
    %c0_140 = arith.constant 0 : index
    %334 = vector.load %arg1[%c5_139, %c0_140] : memref<64x128xf32, #tpu.memory_space<vmem>>, vector<1x128xf32>
    %c37 = arith.constant 37 : index
    %c0_141 = arith.constant 0 : index
    %335 = vector.load %arg1[%c37, %c0_141] : memref<64x128xf32, #tpu.memory_space<vmem>>, vector<1x128xf32>
    %c2_142 = arith.constant 2 : index
    %c0_143 = arith.constant 0 : index
    %c0_144 = arith.constant 0 : index
    %336 = vector.load %arg2[%c2_142, %c0_143, %c0_144] : memref<32x16x128xf32, #tpu.memory_space<vmem>>, vector<1x16x128xf32>
    %337 = vector.shape_cast %336 : vector<1x16x128xf32> to vector<16x128xf32>
    %c18_145 = arith.constant 18 : index
    %c0_146 = arith.constant 0 : index
    %c0_147 = arith.constant 0 : index
    %338 = vector.load %arg2[%c18_145, %c0_146, %c0_147] : memref<32x16x128xf32, #tpu.memory_space<vmem>>, vector<1x16x128xf32>
    %339 = vector.shape_cast %338 : vector<1x16x128xf32> to vector<16x128xf32>
    %340 = vector.broadcast %334 : vector<1x128xf32> to vector<16x128xf32>
    %341 = arith.mulf %340, %337 : vector<16x128xf32>
    %342 = vector.broadcast %335 : vector<1x128xf32> to vector<16x128xf32>
    %343 = arith.mulf %342, %339 : vector<16x128xf32>
    %344 = arith.subf %341, %343 : vector<16x128xf32>
    %345 = arith.addf %327, %344 : vector<16x128xf32>
    %346 = vector.broadcast %334 : vector<1x128xf32> to vector<16x128xf32>
    %347 = arith.mulf %346, %339 : vector<16x128xf32>
    %348 = vector.broadcast %335 : vector<1x128xf32> to vector<16x128xf32>
    %349 = arith.mulf %348, %337 : vector<16x128xf32>
    %350 = arith.addf %347, %349 : vector<16x128xf32>
    %351 = arith.addf %333, %350 : vector<16x128xf32>
    %c7_148 = arith.constant 7 : index
    %c0_149 = arith.constant 0 : index
    %352 = vector.load %arg1[%c7_148, %c0_149] : memref<64x128xf32, #tpu.memory_space<vmem>>, vector<1x128xf32>
    %c39 = arith.constant 39 : index
    %c0_150 = arith.constant 0 : index
    %353 = vector.load %arg1[%c39, %c0_150] : memref<64x128xf32, #tpu.memory_space<vmem>>, vector<1x128xf32>
    %c3_151 = arith.constant 3 : index
    %c0_152 = arith.constant 0 : index
    %c0_153 = arith.constant 0 : index
    %354 = vector.load %arg2[%c3_151, %c0_152, %c0_153] : memref<32x16x128xf32, #tpu.memory_space<vmem>>, vector<1x16x128xf32>
    %355 = vector.shape_cast %354 : vector<1x16x128xf32> to vector<16x128xf32>
    %c19_154 = arith.constant 19 : index
    %c0_155 = arith.constant 0 : index
    %c0_156 = arith.constant 0 : index
    %356 = vector.load %arg2[%c19_154, %c0_155, %c0_156] : memref<32x16x128xf32, #tpu.memory_space<vmem>>, vector<1x16x128xf32>
    %357 = vector.shape_cast %356 : vector<1x16x128xf32> to vector<16x128xf32>
    %358 = vector.broadcast %352 : vector<1x128xf32> to vector<16x128xf32>
    %359 = arith.mulf %358, %355 : vector<16x128xf32>
    %360 = vector.broadcast %353 : vector<1x128xf32> to vector<16x128xf32>
    %361 = arith.mulf %360, %357 : vector<16x128xf32>
    %362 = arith.subf %359, %361 : vector<16x128xf32>
    %363 = arith.addf %345, %362 : vector<16x128xf32>
    %364 = vector.broadcast %352 : vector<1x128xf32> to vector<16x128xf32>
    %365 = arith.mulf %364, %357 : vector<16x128xf32>
    %366 = vector.broadcast %353 : vector<1x128xf32> to vector<16x128xf32>
    %367 = arith.mulf %366, %355 : vector<16x128xf32>
    %368 = arith.addf %365, %367 : vector<16x128xf32>
    %369 = arith.addf %351, %368 : vector<16x128xf32>
    %c9_157 = arith.constant 9 : index
    %c0_158 = arith.constant 0 : index
    %370 = vector.load %arg1[%c9_157, %c0_158] : memref<64x128xf32, #tpu.memory_space<vmem>>, vector<1x128xf32>
    %c41 = arith.constant 41 : index
    %c0_159 = arith.constant 0 : index
    %371 = vector.load %arg1[%c41, %c0_159] : memref<64x128xf32, #tpu.memory_space<vmem>>, vector<1x128xf32>
    %c4_160 = arith.constant 4 : index
    %c0_161 = arith.constant 0 : index
    %c0_162 = arith.constant 0 : index
    %372 = vector.load %arg2[%c4_160, %c0_161, %c0_162] : memref<32x16x128xf32, #tpu.memory_space<vmem>>, vector<1x16x128xf32>
    %373 = vector.shape_cast %372 : vector<1x16x128xf32> to vector<16x128xf32>
    %c20_163 = arith.constant 20 : index
    %c0_164 = arith.constant 0 : index
    %c0_165 = arith.constant 0 : index
    %374 = vector.load %arg2[%c20_163, %c0_164, %c0_165] : memref<32x16x128xf32, #tpu.memory_space<vmem>>, vector<1x16x128xf32>
    %375 = vector.shape_cast %374 : vector<1x16x128xf32> to vector<16x128xf32>
    %376 = vector.broadcast %370 : vector<1x128xf32> to vector<16x128xf32>
    %377 = arith.mulf %376, %373 : vector<16x128xf32>
    %378 = vector.broadcast %371 : vector<1x128xf32> to vector<16x128xf32>
    %379 = arith.mulf %378, %375 : vector<16x128xf32>
    %380 = arith.subf %377, %379 : vector<16x128xf32>
    %381 = arith.addf %363, %380 : vector<16x128xf32>
    %382 = vector.broadcast %370 : vector<1x128xf32> to vector<16x128xf32>
    %383 = arith.mulf %382, %375 : vector<16x128xf32>
    %384 = vector.broadcast %371 : vector<1x128xf32> to vector<16x128xf32>
    %385 = arith.mulf %384, %373 : vector<16x128xf32>
    %386 = arith.addf %383, %385 : vector<16x128xf32>
    %387 = arith.addf %369, %386 : vector<16x128xf32>
    %c11_166 = arith.constant 11 : index
    %c0_167 = arith.constant 0 : index
    %388 = vector.load %arg1[%c11_166, %c0_167] : memref<64x128xf32, #tpu.memory_space<vmem>>, vector<1x128xf32>
    %c43 = arith.constant 43 : index
    %c0_168 = arith.constant 0 : index
    %389 = vector.load %arg1[%c43, %c0_168] : memref<64x128xf32, #tpu.memory_space<vmem>>, vector<1x128xf32>
    %c5_169 = arith.constant 5 : index
    %c0_170 = arith.constant 0 : index
    %c0_171 = arith.constant 0 : index
    %390 = vector.load %arg2[%c5_169, %c0_170, %c0_171] : memref<32x16x128xf32, #tpu.memory_space<vmem>>, vector<1x16x128xf32>
    %391 = vector.shape_cast %390 : vector<1x16x128xf32> to vector<16x128xf32>
    %c21_172 = arith.constant 21 : index
    %c0_173 = arith.constant 0 : index
    %c0_174 = arith.constant 0 : index
    %392 = vector.load %arg2[%c21_172, %c0_173, %c0_174] : memref<32x16x128xf32, #tpu.memory_space<vmem>>, vector<1x16x128xf32>
    %393 = vector.shape_cast %392 : vector<1x16x128xf32> to vector<16x128xf32>
    %394 = vector.broadcast %388 : vector<1x128xf32> to vector<16x128xf32>
    %395 = arith.mulf %394, %391 : vector<16x128xf32>
    %396 = vector.broadcast %389 : vector<1x128xf32> to vector<16x128xf32>
    %397 = arith.mulf %396, %393 : vector<16x128xf32>
    %398 = arith.subf %395, %397 : vector<16x128xf32>
    %399 = arith.addf %381, %398 : vector<16x128xf32>
    %400 = vector.broadcast %388 : vector<1x128xf32> to vector<16x128xf32>
    %401 = arith.mulf %400, %393 : vector<16x128xf32>
    %402 = vector.broadcast %389 : vector<1x128xf32> to vector<16x128xf32>
    %403 = arith.mulf %402, %391 : vector<16x128xf32>
    %404 = arith.addf %401, %403 : vector<16x128xf32>
    %405 = arith.addf %387, %404 : vector<16x128xf32>
    %c13_175 = arith.constant 13 : index
    %c0_176 = arith.constant 0 : index
    %406 = vector.load %arg1[%c13_175, %c0_176] : memref<64x128xf32, #tpu.memory_space<vmem>>, vector<1x128xf32>
    %c45 = arith.constant 45 : index
    %c0_177 = arith.constant 0 : index
    %407 = vector.load %arg1[%c45, %c0_177] : memref<64x128xf32, #tpu.memory_space<vmem>>, vector<1x128xf32>
    %c6_178 = arith.constant 6 : index
    %c0_179 = arith.constant 0 : index
    %c0_180 = arith.constant 0 : index
    %408 = vector.load %arg2[%c6_178, %c0_179, %c0_180] : memref<32x16x128xf32, #tpu.memory_space<vmem>>, vector<1x16x128xf32>
    %409 = vector.shape_cast %408 : vector<1x16x128xf32> to vector<16x128xf32>
    %c22_181 = arith.constant 22 : index
    %c0_182 = arith.constant 0 : index
    %c0_183 = arith.constant 0 : index
    %410 = vector.load %arg2[%c22_181, %c0_182, %c0_183] : memref<32x16x128xf32, #tpu.memory_space<vmem>>, vector<1x16x128xf32>
    %411 = vector.shape_cast %410 : vector<1x16x128xf32> to vector<16x128xf32>
    %412 = vector.broadcast %406 : vector<1x128xf32> to vector<16x128xf32>
    %413 = arith.mulf %412, %409 : vector<16x128xf32>
    %414 = vector.broadcast %407 : vector<1x128xf32> to vector<16x128xf32>
    %415 = arith.mulf %414, %411 : vector<16x128xf32>
    %416 = arith.subf %413, %415 : vector<16x128xf32>
    %417 = arith.addf %399, %416 : vector<16x128xf32>
    %418 = vector.broadcast %406 : vector<1x128xf32> to vector<16x128xf32>
    %419 = arith.mulf %418, %411 : vector<16x128xf32>
    %420 = vector.broadcast %407 : vector<1x128xf32> to vector<16x128xf32>
    %421 = arith.mulf %420, %409 : vector<16x128xf32>
    %422 = arith.addf %419, %421 : vector<16x128xf32>
    %423 = arith.addf %405, %422 : vector<16x128xf32>
    %c15_184 = arith.constant 15 : index
    %c0_185 = arith.constant 0 : index
    %424 = vector.load %arg1[%c15_184, %c0_185] : memref<64x128xf32, #tpu.memory_space<vmem>>, vector<1x128xf32>
    %c47 = arith.constant 47 : index
    %c0_186 = arith.constant 0 : index
    %425 = vector.load %arg1[%c47, %c0_186] : memref<64x128xf32, #tpu.memory_space<vmem>>, vector<1x128xf32>
    %c7_187 = arith.constant 7 : index
    %c0_188 = arith.constant 0 : index
    %c0_189 = arith.constant 0 : index
    %426 = vector.load %arg2[%c7_187, %c0_188, %c0_189] : memref<32x16x128xf32, #tpu.memory_space<vmem>>, vector<1x16x128xf32>
    %427 = vector.shape_cast %426 : vector<1x16x128xf32> to vector<16x128xf32>
    %c23_190 = arith.constant 23 : index
    %c0_191 = arith.constant 0 : index
    %c0_192 = arith.constant 0 : index
    %428 = vector.load %arg2[%c23_190, %c0_191, %c0_192] : memref<32x16x128xf32, #tpu.memory_space<vmem>>, vector<1x16x128xf32>
    %429 = vector.shape_cast %428 : vector<1x16x128xf32> to vector<16x128xf32>
    %430 = vector.broadcast %424 : vector<1x128xf32> to vector<16x128xf32>
    %431 = arith.mulf %430, %427 : vector<16x128xf32>
    %432 = vector.broadcast %425 : vector<1x128xf32> to vector<16x128xf32>
    %433 = arith.mulf %432, %429 : vector<16x128xf32>
    %434 = arith.subf %431, %433 : vector<16x128xf32>
    %435 = arith.addf %417, %434 : vector<16x128xf32>
    %436 = vector.broadcast %424 : vector<1x128xf32> to vector<16x128xf32>
    %437 = arith.mulf %436, %429 : vector<16x128xf32>
    %438 = vector.broadcast %425 : vector<1x128xf32> to vector<16x128xf32>
    %439 = arith.mulf %438, %427 : vector<16x128xf32>
    %440 = arith.addf %437, %439 : vector<16x128xf32>
    %441 = arith.addf %423, %440 : vector<16x128xf32>
    %c17_193 = arith.constant 17 : index
    %c0_194 = arith.constant 0 : index
    %442 = vector.load %arg1[%c17_193, %c0_194] : memref<64x128xf32, #tpu.memory_space<vmem>>, vector<1x128xf32>
    %c49 = arith.constant 49 : index
    %c0_195 = arith.constant 0 : index
    %443 = vector.load %arg1[%c49, %c0_195] : memref<64x128xf32, #tpu.memory_space<vmem>>, vector<1x128xf32>
    %c8_196 = arith.constant 8 : index
    %c0_197 = arith.constant 0 : index
    %c0_198 = arith.constant 0 : index
    %444 = vector.load %arg2[%c8_196, %c0_197, %c0_198] : memref<32x16x128xf32, #tpu.memory_space<vmem>>, vector<1x16x128xf32>
    %445 = vector.shape_cast %444 : vector<1x16x128xf32> to vector<16x128xf32>
    %c24_199 = arith.constant 24 : index
    %c0_200 = arith.constant 0 : index
    %c0_201 = arith.constant 0 : index
    %446 = vector.load %arg2[%c24_199, %c0_200, %c0_201] : memref<32x16x128xf32, #tpu.memory_space<vmem>>, vector<1x16x128xf32>
    %447 = vector.shape_cast %446 : vector<1x16x128xf32> to vector<16x128xf32>
    %448 = vector.broadcast %442 : vector<1x128xf32> to vector<16x128xf32>
    %449 = arith.mulf %448, %445 : vector<16x128xf32>
    %450 = vector.broadcast %443 : vector<1x128xf32> to vector<16x128xf32>
    %451 = arith.mulf %450, %447 : vector<16x128xf32>
    %452 = arith.subf %449, %451 : vector<16x128xf32>
    %453 = arith.addf %435, %452 : vector<16x128xf32>
    %454 = vector.broadcast %442 : vector<1x128xf32> to vector<16x128xf32>
    %455 = arith.mulf %454, %447 : vector<16x128xf32>
    %456 = vector.broadcast %443 : vector<1x128xf32> to vector<16x128xf32>
    %457 = arith.mulf %456, %445 : vector<16x128xf32>
    %458 = arith.addf %455, %457 : vector<16x128xf32>
    %459 = arith.addf %441, %458 : vector<16x128xf32>
    %c19_202 = arith.constant 19 : index
    %c0_203 = arith.constant 0 : index
    %460 = vector.load %arg1[%c19_202, %c0_203] : memref<64x128xf32, #tpu.memory_space<vmem>>, vector<1x128xf32>
    %c51 = arith.constant 51 : index
    %c0_204 = arith.constant 0 : index
    %461 = vector.load %arg1[%c51, %c0_204] : memref<64x128xf32, #tpu.memory_space<vmem>>, vector<1x128xf32>
    %c9_205 = arith.constant 9 : index
    %c0_206 = arith.constant 0 : index
    %c0_207 = arith.constant 0 : index
    %462 = vector.load %arg2[%c9_205, %c0_206, %c0_207] : memref<32x16x128xf32, #tpu.memory_space<vmem>>, vector<1x16x128xf32>
    %463 = vector.shape_cast %462 : vector<1x16x128xf32> to vector<16x128xf32>
    %c25_208 = arith.constant 25 : index
    %c0_209 = arith.constant 0 : index
    %c0_210 = arith.constant 0 : index
    %464 = vector.load %arg2[%c25_208, %c0_209, %c0_210] : memref<32x16x128xf32, #tpu.memory_space<vmem>>, vector<1x16x128xf32>
    %465 = vector.shape_cast %464 : vector<1x16x128xf32> to vector<16x128xf32>
    %466 = vector.broadcast %460 : vector<1x128xf32> to vector<16x128xf32>
    %467 = arith.mulf %466, %463 : vector<16x128xf32>
    %468 = vector.broadcast %461 : vector<1x128xf32> to vector<16x128xf32>
    %469 = arith.mulf %468, %465 : vector<16x128xf32>
    %470 = arith.subf %467, %469 : vector<16x128xf32>
    %471 = arith.addf %453, %470 : vector<16x128xf32>
    %472 = vector.broadcast %460 : vector<1x128xf32> to vector<16x128xf32>
    %473 = arith.mulf %472, %465 : vector<16x128xf32>
    %474 = vector.broadcast %461 : vector<1x128xf32> to vector<16x128xf32>
    %475 = arith.mulf %474, %463 : vector<16x128xf32>
    %476 = arith.addf %473, %475 : vector<16x128xf32>
    %477 = arith.addf %459, %476 : vector<16x128xf32>
    %c21_211 = arith.constant 21 : index
    %c0_212 = arith.constant 0 : index
    %478 = vector.load %arg1[%c21_211, %c0_212] : memref<64x128xf32, #tpu.memory_space<vmem>>, vector<1x128xf32>
    %c53 = arith.constant 53 : index
    %c0_213 = arith.constant 0 : index
    %479 = vector.load %arg1[%c53, %c0_213] : memref<64x128xf32, #tpu.memory_space<vmem>>, vector<1x128xf32>
    %c10_214 = arith.constant 10 : index
    %c0_215 = arith.constant 0 : index
    %c0_216 = arith.constant 0 : index
    %480 = vector.load %arg2[%c10_214, %c0_215, %c0_216] : memref<32x16x128xf32, #tpu.memory_space<vmem>>, vector<1x16x128xf32>
    %481 = vector.shape_cast %480 : vector<1x16x128xf32> to vector<16x128xf32>
    %c26_217 = arith.constant 26 : index
    %c0_218 = arith.constant 0 : index
    %c0_219 = arith.constant 0 : index
    %482 = vector.load %arg2[%c26_217, %c0_218, %c0_219] : memref<32x16x128xf32, #tpu.memory_space<vmem>>, vector<1x16x128xf32>
    %483 = vector.shape_cast %482 : vector<1x16x128xf32> to vector<16x128xf32>
    %484 = vector.broadcast %478 : vector<1x128xf32> to vector<16x128xf32>
    %485 = arith.mulf %484, %481 : vector<16x128xf32>
    %486 = vector.broadcast %479 : vector<1x128xf32> to vector<16x128xf32>
    %487 = arith.mulf %486, %483 : vector<16x128xf32>
    %488 = arith.subf %485, %487 : vector<16x128xf32>
    %489 = arith.addf %471, %488 : vector<16x128xf32>
    %490 = vector.broadcast %478 : vector<1x128xf32> to vector<16x128xf32>
    %491 = arith.mulf %490, %483 : vector<16x128xf32>
    %492 = vector.broadcast %479 : vector<1x128xf32> to vector<16x128xf32>
    %493 = arith.mulf %492, %481 : vector<16x128xf32>
    %494 = arith.addf %491, %493 : vector<16x128xf32>
    %495 = arith.addf %477, %494 : vector<16x128xf32>
    %c23_220 = arith.constant 23 : index
    %c0_221 = arith.constant 0 : index
    %496 = vector.load %arg1[%c23_220, %c0_221] : memref<64x128xf32, #tpu.memory_space<vmem>>, vector<1x128xf32>
    %c55 = arith.constant 55 : index
    %c0_222 = arith.constant 0 : index
    %497 = vector.load %arg1[%c55, %c0_222] : memref<64x128xf32, #tpu.memory_space<vmem>>, vector<1x128xf32>
    %c11_223 = arith.constant 11 : index
    %c0_224 = arith.constant 0 : index
    %c0_225 = arith.constant 0 : index
    %498 = vector.load %arg2[%c11_223, %c0_224, %c0_225] : memref<32x16x128xf32, #tpu.memory_space<vmem>>, vector<1x16x128xf32>
    %499 = vector.shape_cast %498 : vector<1x16x128xf32> to vector<16x128xf32>
    %c27_226 = arith.constant 27 : index
    %c0_227 = arith.constant 0 : index
    %c0_228 = arith.constant 0 : index
    %500 = vector.load %arg2[%c27_226, %c0_227, %c0_228] : memref<32x16x128xf32, #tpu.memory_space<vmem>>, vector<1x16x128xf32>
    %501 = vector.shape_cast %500 : vector<1x16x128xf32> to vector<16x128xf32>
    %502 = vector.broadcast %496 : vector<1x128xf32> to vector<16x128xf32>
    %503 = arith.mulf %502, %499 : vector<16x128xf32>
    %504 = vector.broadcast %497 : vector<1x128xf32> to vector<16x128xf32>
    %505 = arith.mulf %504, %501 : vector<16x128xf32>
    %506 = arith.subf %503, %505 : vector<16x128xf32>
    %507 = arith.addf %489, %506 : vector<16x128xf32>
    %508 = vector.broadcast %496 : vector<1x128xf32> to vector<16x128xf32>
    %509 = arith.mulf %508, %501 : vector<16x128xf32>
    %510 = vector.broadcast %497 : vector<1x128xf32> to vector<16x128xf32>
    %511 = arith.mulf %510, %499 : vector<16x128xf32>
    %512 = arith.addf %509, %511 : vector<16x128xf32>
    %513 = arith.addf %495, %512 : vector<16x128xf32>
    %c25_229 = arith.constant 25 : index
    %c0_230 = arith.constant 0 : index
    %514 = vector.load %arg1[%c25_229, %c0_230] : memref<64x128xf32, #tpu.memory_space<vmem>>, vector<1x128xf32>
    %c57 = arith.constant 57 : index
    %c0_231 = arith.constant 0 : index
    %515 = vector.load %arg1[%c57, %c0_231] : memref<64x128xf32, #tpu.memory_space<vmem>>, vector<1x128xf32>
    %c12_232 = arith.constant 12 : index
    %c0_233 = arith.constant 0 : index
    %c0_234 = arith.constant 0 : index
    %516 = vector.load %arg2[%c12_232, %c0_233, %c0_234] : memref<32x16x128xf32, #tpu.memory_space<vmem>>, vector<1x16x128xf32>
    %517 = vector.shape_cast %516 : vector<1x16x128xf32> to vector<16x128xf32>
    %c28_235 = arith.constant 28 : index
    %c0_236 = arith.constant 0 : index
    %c0_237 = arith.constant 0 : index
    %518 = vector.load %arg2[%c28_235, %c0_236, %c0_237] : memref<32x16x128xf32, #tpu.memory_space<vmem>>, vector<1x16x128xf32>
    %519 = vector.shape_cast %518 : vector<1x16x128xf32> to vector<16x128xf32>
    %520 = vector.broadcast %514 : vector<1x128xf32> to vector<16x128xf32>
    %521 = arith.mulf %520, %517 : vector<16x128xf32>
    %522 = vector.broadcast %515 : vector<1x128xf32> to vector<16x128xf32>
    %523 = arith.mulf %522, %519 : vector<16x128xf32>
    %524 = arith.subf %521, %523 : vector<16x128xf32>
    %525 = arith.addf %507, %524 : vector<16x128xf32>
    %526 = vector.broadcast %514 : vector<1x128xf32> to vector<16x128xf32>
    %527 = arith.mulf %526, %519 : vector<16x128xf32>
    %528 = vector.broadcast %515 : vector<1x128xf32> to vector<16x128xf32>
    %529 = arith.mulf %528, %517 : vector<16x128xf32>
    %530 = arith.addf %527, %529 : vector<16x128xf32>
    %531 = arith.addf %513, %530 : vector<16x128xf32>
    %c27_238 = arith.constant 27 : index
    %c0_239 = arith.constant 0 : index
    %532 = vector.load %arg1[%c27_238, %c0_239] : memref<64x128xf32, #tpu.memory_space<vmem>>, vector<1x128xf32>
    %c59 = arith.constant 59 : index
    %c0_240 = arith.constant 0 : index
    %533 = vector.load %arg1[%c59, %c0_240] : memref<64x128xf32, #tpu.memory_space<vmem>>, vector<1x128xf32>
    %c13_241 = arith.constant 13 : index
    %c0_242 = arith.constant 0 : index
    %c0_243 = arith.constant 0 : index
    %534 = vector.load %arg2[%c13_241, %c0_242, %c0_243] : memref<32x16x128xf32, #tpu.memory_space<vmem>>, vector<1x16x128xf32>
    %535 = vector.shape_cast %534 : vector<1x16x128xf32> to vector<16x128xf32>
    %c29_244 = arith.constant 29 : index
    %c0_245 = arith.constant 0 : index
    %c0_246 = arith.constant 0 : index
    %536 = vector.load %arg2[%c29_244, %c0_245, %c0_246] : memref<32x16x128xf32, #tpu.memory_space<vmem>>, vector<1x16x128xf32>
    %537 = vector.shape_cast %536 : vector<1x16x128xf32> to vector<16x128xf32>
    %538 = vector.broadcast %532 : vector<1x128xf32> to vector<16x128xf32>
    %539 = arith.mulf %538, %535 : vector<16x128xf32>
    %540 = vector.broadcast %533 : vector<1x128xf32> to vector<16x128xf32>
    %541 = arith.mulf %540, %537 : vector<16x128xf32>
    %542 = arith.subf %539, %541 : vector<16x128xf32>
    %543 = arith.addf %525, %542 : vector<16x128xf32>
    %544 = vector.broadcast %532 : vector<1x128xf32> to vector<16x128xf32>
    %545 = arith.mulf %544, %537 : vector<16x128xf32>
    %546 = vector.broadcast %533 : vector<1x128xf32> to vector<16x128xf32>
    %547 = arith.mulf %546, %535 : vector<16x128xf32>
    %548 = arith.addf %545, %547 : vector<16x128xf32>
    %549 = arith.addf %531, %548 : vector<16x128xf32>
    %c29_247 = arith.constant 29 : index
    %c0_248 = arith.constant 0 : index
    %550 = vector.load %arg1[%c29_247, %c0_248] : memref<64x128xf32, #tpu.memory_space<vmem>>, vector<1x128xf32>
    %c61 = arith.constant 61 : index
    %c0_249 = arith.constant 0 : index
    %551 = vector.load %arg1[%c61, %c0_249] : memref<64x128xf32, #tpu.memory_space<vmem>>, vector<1x128xf32>
    %c14_250 = arith.constant 14 : index
    %c0_251 = arith.constant 0 : index
    %c0_252 = arith.constant 0 : index
    %552 = vector.load %arg2[%c14_250, %c0_251, %c0_252] : memref<32x16x128xf32, #tpu.memory_space<vmem>>, vector<1x16x128xf32>
    %553 = vector.shape_cast %552 : vector<1x16x128xf32> to vector<16x128xf32>
    %c30_253 = arith.constant 30 : index
    %c0_254 = arith.constant 0 : index
    %c0_255 = arith.constant 0 : index
    %554 = vector.load %arg2[%c30_253, %c0_254, %c0_255] : memref<32x16x128xf32, #tpu.memory_space<vmem>>, vector<1x16x128xf32>
    %555 = vector.shape_cast %554 : vector<1x16x128xf32> to vector<16x128xf32>
    %556 = vector.broadcast %550 : vector<1x128xf32> to vector<16x128xf32>
    %557 = arith.mulf %556, %553 : vector<16x128xf32>
    %558 = vector.broadcast %551 : vector<1x128xf32> to vector<16x128xf32>
    %559 = arith.mulf %558, %555 : vector<16x128xf32>
    %560 = arith.subf %557, %559 : vector<16x128xf32>
    %561 = arith.addf %543, %560 : vector<16x128xf32>
    %562 = vector.broadcast %550 : vector<1x128xf32> to vector<16x128xf32>
    %563 = arith.mulf %562, %555 : vector<16x128xf32>
    %564 = vector.broadcast %551 : vector<1x128xf32> to vector<16x128xf32>
    %565 = arith.mulf %564, %553 : vector<16x128xf32>
    %566 = arith.addf %563, %565 : vector<16x128xf32>
    %567 = arith.addf %549, %566 : vector<16x128xf32>
    %c31_256 = arith.constant 31 : index
    %c0_257 = arith.constant 0 : index
    %568 = vector.load %arg1[%c31_256, %c0_257] : memref<64x128xf32, #tpu.memory_space<vmem>>, vector<1x128xf32>
    %c63 = arith.constant 63 : index
    %c0_258 = arith.constant 0 : index
    %569 = vector.load %arg1[%c63, %c0_258] : memref<64x128xf32, #tpu.memory_space<vmem>>, vector<1x128xf32>
    %c15_259 = arith.constant 15 : index
    %c0_260 = arith.constant 0 : index
    %c0_261 = arith.constant 0 : index
    %570 = vector.load %arg2[%c15_259, %c0_260, %c0_261] : memref<32x16x128xf32, #tpu.memory_space<vmem>>, vector<1x16x128xf32>
    %571 = vector.shape_cast %570 : vector<1x16x128xf32> to vector<16x128xf32>
    %c31_262 = arith.constant 31 : index
    %c0_263 = arith.constant 0 : index
    %c0_264 = arith.constant 0 : index
    %572 = vector.load %arg2[%c31_262, %c0_263, %c0_264] : memref<32x16x128xf32, #tpu.memory_space<vmem>>, vector<1x16x128xf32>
    %573 = vector.shape_cast %572 : vector<1x16x128xf32> to vector<16x128xf32>
    %574 = vector.broadcast %568 : vector<1x128xf32> to vector<16x128xf32>
    %575 = arith.mulf %574, %571 : vector<16x128xf32>
    %576 = vector.broadcast %569 : vector<1x128xf32> to vector<16x128xf32>
    %577 = arith.mulf %576, %573 : vector<16x128xf32>
    %578 = arith.subf %575, %577 : vector<16x128xf32>
    %579 = arith.addf %561, %578 : vector<16x128xf32>
    %580 = vector.broadcast %568 : vector<1x128xf32> to vector<16x128xf32>
    %581 = arith.mulf %580, %573 : vector<16x128xf32>
    %582 = vector.broadcast %569 : vector<1x128xf32> to vector<16x128xf32>
    %583 = arith.mulf %582, %571 : vector<16x128xf32>
    %584 = arith.addf %581, %583 : vector<16x128xf32>
    %585 = arith.addf %567, %584 : vector<16x128xf32>
    %c1_265 = arith.constant 1 : index
    %c0_266 = arith.constant 0 : index
    %c0_267 = arith.constant 0 : index
    %586 = vector.load %arg3[%c1_265, %c0_266, %c0_267] : memref<4x16x128xf32, #tpu.memory_space<vmem>>, vector<1x16x128xf32>
    %587 = vector.shape_cast %586 : vector<1x16x128xf32> to vector<16x128xf32>
    %588 = vector.shape_cast %579 : vector<16x128xf32> to vector<1x16x128xf32>
    tpu.vector_store %arg3[%c1_265, %c0_266, %c0_267], %588 {strides = array<i32>} : memref<4x16x128xf32, #tpu.memory_space<vmem>>, vector<1x16x128xf32>,
    %c3_268 = arith.constant 3 : index
    %c0_269 = arith.constant 0 : index
    %c0_270 = arith.constant 0 : index
    %589 = vector.load %arg3[%c3_268, %c0_269, %c0_270] : memref<4x16x128xf32, #tpu.memory_space<vmem>>, vector<1x16x128xf32>
    %590 = vector.shape_cast %589 : vector<1x16x128xf32> to vector<16x128xf32>
    %591 = vector.shape_cast %585 : vector<16x128xf32> to vector<1x16x128xf32>
    tpu.vector_store %arg3[%c3_268, %c0_269, %c0_270], %591 {strides = array<i32>} : memref<4x16x128xf32, #tpu.memory_space<vmem>>, vector<1x16x128xf32>,
    return
  }
  func.func @transform_0(%arg0: i32) -> (i32, i32) {
    %c0_i32 = arith.constant 0 : i32
    %c0_i32_0 = arith.constant 0 : i32
    return %c0_i32, %arg0 : i32, i32
  }
  func.func @transform_1(%arg0: i32) -> (i32, i32, i32) {
    %c0_i32 = arith.constant 0 : i32
    %c0_i32_0 = arith.constant 0 : i32
    %c0_i32_1 = arith.constant 0 : i32
    return %c0_i32, %c0_i32_0, %arg0 : i32, i32, i32
  }
  func.func @transform_2(%arg0: i32) -> (i32, i32, i32) {
    %c0_i32 = arith.constant 0 : i32
    %c0_i32_0 = arith.constant 0 : i32
    %c0_i32_1 = arith.constant 0 : i32
    return %c0_i32, %c0_i32_0, %arg0 : i32, i32, i32
  }
}

module attributes {stable_mosaic.version = 11 : i64} {
  func.func @_pw_add_gelu_kernel(%arg0: i32, %arg1: memref<640x16xf32, #tpu.memory_space<vmem>>, %arg2: memref<640x16xf32, #tpu.memory_space<vmem>>, %arg3: memref<16x16xbf16, #tpu.memory_space<vmem>>, %arg4: memref<1x16xf32, #tpu.memory_space<vmem>>, %arg5: memref<640x16xf32, #tpu.memory_space<vmem>>) attributes {dimension_semantics = [#tpu.dimension_semantics<parallel>], iteration_bounds = array<i64: 2>, scalar_prefetch = 0 : i64, scratch_operands = 0 : i64, tpu.core_type = #tpu.core_type<tc>, window_params = [{transform_indices = @transform_0, window_bounds = array<i64: 640, 16>}, {transform_indices = @transform_1, window_bounds = array<i64: 640, 16>}, {pipeline_mode = #tpu.pipeline_mode<synchronous>, transform_indices = @transform_2, window_bounds = array<i64: 16, 16>}, {pipeline_mode = #tpu.pipeline_mode<synchronous>, transform_indices = @transform_3, window_bounds = array<i64: 1, 16>}, {transform_indices = @transform_4, window_bounds = array<i64: 640, 16>}]} {
    %c0 = arith.constant 0 : index
    %c0_0 = arith.constant 0 : index
    %0 = vector.load %arg1[%c0, %c0_0] : memref<640x16xf32, #tpu.memory_space<vmem>>, vector<640x16xf32>
    %1 = arith.truncf %0 : vector<640x16xf32> to vector<640x16xbf16>
    %c0_1 = arith.constant 0 : index
    %c0_2 = arith.constant 0 : index
    %2 = vector.load %arg3[%c0_1, %c0_2] : memref<16x16xbf16, #tpu.memory_space<vmem>>, vector<16x16xbf16>
    %cst = arith.constant dense<0.000000e+00> : vector<640x16xf32>
    %3 = tpu.matmul %1, %2, %cst {dimension_numbers = #tpu.dot_dimension_numbers<[1], [0], [0], [1], [0, 0, 1, 1], [], []>} : vector<640x16xbf16>, vector<16x16xbf16>, vector<640x16xf32> -> vector<640x16xf32>
    %c0_3 = arith.constant 0 : index
    %c0_4 = arith.constant 0 : index
    %4 = vector.load %arg4[%c0_3, %c0_4] : memref<1x16xf32, #tpu.memory_space<vmem>>, vector<1x16xf32>
    %5 = vector.broadcast %4 : vector<1x16xf32> to vector<640x16xf32>
    %6 = arith.addf %3, %5 : vector<640x16xf32>
    %c0_5 = arith.constant 0 : index
    %c0_6 = arith.constant 0 : index
    %7 = vector.load %arg2[%c0_5, %c0_6] : memref<640x16xf32, #tpu.memory_space<vmem>>, vector<640x16xf32>
    %8 = arith.addf %6, %7 : vector<640x16xf32>
    %cst_7 = arith.constant 5.000000e-01 : f32
    %9 = vector.broadcast %cst_7 : f32 to vector<640x16xf32>
    %10 = arith.mulf %9, %8 : vector<640x16xf32>
    %cst_8 = arith.constant 0.707106769 : f32
    %11 = vector.broadcast %cst_8 : f32 to vector<640x16xf32>
    %12 = arith.mulf %8, %11 : vector<640x16xf32>
    %13 = math.erf %12 : vector<640x16xf32>
    %cst_9 = arith.constant 1.000000e+00 : f32
    %14 = vector.broadcast %cst_9 : f32 to vector<640x16xf32>
    %15 = arith.addf %14, %13 : vector<640x16xf32>
    %16 = arith.mulf %10, %15 : vector<640x16xf32>
    %c0_10 = arith.constant 0 : index
    %c0_11 = arith.constant 0 : index
    %17 = vector.load %arg5[%c0_10, %c0_11] : memref<640x16xf32, #tpu.memory_space<vmem>>, vector<640x16xf32>
    tpu.vector_store %arg5[%c0_10, %c0_11], %16 {strides = array<i32>} : memref<640x16xf32, #tpu.memory_space<vmem>>, vector<640x16xf32>,
    return
  }
  func.func @transform_0(%arg0: i32) -> (i32, i32) {
    %c0_i32 = arith.constant 0 : i32
    %c0_i32_0 = arith.constant 0 : i32
    return %arg0, %c0_i32 : i32, i32
  }
  func.func @transform_1(%arg0: i32) -> (i32, i32) {
    %c0_i32 = arith.constant 0 : i32
    %c0_i32_0 = arith.constant 0 : i32
    return %arg0, %c0_i32 : i32, i32
  }
  func.func @transform_2(%arg0: i32) -> (i32, i32) {
    %c0_i32 = arith.constant 0 : i32
    %c0_i32_0 = arith.constant 0 : i32
    %c0_i32_1 = arith.constant 0 : i32
    return %c0_i32, %c0_i32_0 : i32, i32
  }
  func.func @transform_3(%arg0: i32) -> (i32, i32) {
    %c0_i32 = arith.constant 0 : i32
    %c0_i32_0 = arith.constant 0 : i32
    %c0_i32_1 = arith.constant 0 : i32
    return %c0_i32, %c0_i32_0 : i32, i32
  }
  func.func @transform_4(%arg0: i32) -> (i32, i32) {
    %c0_i32 = arith.constant 0 : i32
    %c0_i32_0 = arith.constant 0 : i32
    return %arg0, %c0_i32 : i32, i32
  }
}

module attributes {stable_mosaic.version = 11 : i64} {
  func.func @_mlp2_kernel(%arg0: i32, %arg1: memref<128x16xf32, #tpu.memory_space<vmem>>, %arg2: memref<16x192xbf16, #tpu.memory_space<vmem>>, %arg3: memref<1x192xf32, #tpu.memory_space<vmem>>, %arg4: memref<192x128xbf16, #tpu.memory_space<vmem>>, %arg5: memref<1x128xf32, #tpu.memory_space<vmem>>, %arg6: memref<128x128xf32, #tpu.memory_space<vmem>>) attributes {dimension_semantics = [#tpu.dimension_semantics<parallel>], iteration_bounds = array<i64: 2>, scalar_prefetch = 0 : i64, scratch_operands = 0 : i64, tpu.core_type = #tpu.core_type<tc>, window_params = [{transform_indices = @transform_0, window_bounds = array<i64: 128, 16>}, {pipeline_mode = #tpu.pipeline_mode<synchronous>, transform_indices = @transform_1, window_bounds = array<i64: 16, 192>}, {pipeline_mode = #tpu.pipeline_mode<synchronous>, transform_indices = @transform_2, window_bounds = array<i64: 1, 192>}, {pipeline_mode = #tpu.pipeline_mode<synchronous>, transform_indices = @transform_3, window_bounds = array<i64: 192, 128>}, {pipeline_mode = #tpu.pipeline_mode<synchronous>, transform_indices = @transform_4, window_bounds = array<i64: 1, 128>}, {transform_indices = @transform_5, window_bounds = array<i64: 128, 128>}]} {
    %c0 = arith.constant 0 : index
    %c0_0 = arith.constant 0 : index
    %0 = vector.load %arg1[%c0, %c0_0] : memref<128x16xf32, #tpu.memory_space<vmem>>, vector<128x16xf32>
    %1 = arith.truncf %0 : vector<128x16xf32> to vector<128x16xbf16>
    %c0_1 = arith.constant 0 : index
    %c0_2 = arith.constant 0 : index
    %2 = vector.load %arg2[%c0_1, %c0_2] : memref<16x192xbf16, #tpu.memory_space<vmem>>, vector<16x192xbf16>
    %cst = arith.constant dense<0.000000e+00> : vector<128x192xf32>
    %3 = tpu.matmul %1, %2, %cst {dimension_numbers = #tpu.dot_dimension_numbers<[1], [0], [0], [1], [0, 0, 1, 1], [], []>} : vector<128x16xbf16>, vector<16x192xbf16>, vector<128x192xf32> -> vector<128x192xf32>
    %c0_3 = arith.constant 0 : index
    %c0_4 = arith.constant 0 : index
    %4 = vector.load %arg3[%c0_3, %c0_4] : memref<1x192xf32, #tpu.memory_space<vmem>>, vector<1x192xf32>
    %5 = vector.broadcast %4 : vector<1x192xf32> to vector<128x192xf32>
    %6 = arith.addf %3, %5 : vector<128x192xf32>
    %cst_5 = arith.constant 5.000000e-01 : f32
    %7 = vector.broadcast %cst_5 : f32 to vector<128x192xf32>
    %8 = arith.mulf %7, %6 : vector<128x192xf32>
    %cst_6 = arith.constant 0.707106769 : f32
    %9 = vector.broadcast %cst_6 : f32 to vector<128x192xf32>
    %10 = arith.mulf %6, %9 : vector<128x192xf32>
    %11 = math.erf %10 : vector<128x192xf32>
    %cst_7 = arith.constant 1.000000e+00 : f32
    %12 = vector.broadcast %cst_7 : f32 to vector<128x192xf32>
    %13 = arith.addf %12, %11 : vector<128x192xf32>
    %14 = arith.mulf %8, %13 : vector<128x192xf32>
    %15 = arith.truncf %14 : vector<128x192xf32> to vector<128x192xbf16>
    %c0_8 = arith.constant 0 : index
    %c0_9 = arith.constant 0 : index
    %16 = vector.load %arg4[%c0_8, %c0_9] : memref<192x128xbf16, #tpu.memory_space<vmem>>, vector<192x128xbf16>
    %cst_10 = arith.constant dense<0.000000e+00> : vector<128x128xf32>
    %17 = tpu.matmul %15, %16, %cst_10 {dimension_numbers = #tpu.dot_dimension_numbers<[1], [0], [0], [1], [0, 0, 1, 1], [], []>} : vector<128x192xbf16>, vector<192x128xbf16>, vector<128x128xf32> -> vector<128x128xf32>
    %c0_11 = arith.constant 0 : index
    %c0_12 = arith.constant 0 : index
    %18 = vector.load %arg5[%c0_11, %c0_12] : memref<1x128xf32, #tpu.memory_space<vmem>>, vector<1x128xf32>
    %19 = vector.broadcast %18 : vector<1x128xf32> to vector<128x128xf32>
    %20 = arith.addf %17, %19 : vector<128x128xf32>
    %c0_13 = arith.constant 0 : index
    %c0_14 = arith.constant 0 : index
    %21 = vector.load %arg6[%c0_13, %c0_14] : memref<128x128xf32, #tpu.memory_space<vmem>>, vector<128x128xf32>
    tpu.vector_store %arg6[%c0_13, %c0_14], %20 {strides = array<i32>} : memref<128x128xf32, #tpu.memory_space<vmem>>, vector<128x128xf32>,
    return
  }
  func.func @transform_0(%arg0: i32) -> (i32, i32) {
    %c0_i32 = arith.constant 0 : i32
    %c0_i32_0 = arith.constant 0 : i32
    return %arg0, %c0_i32 : i32, i32
  }
  func.func @transform_1(%arg0: i32) -> (i32, i32) {
    %c0_i32 = arith.constant 0 : i32
    %c0_i32_0 = arith.constant 0 : i32
    %c0_i32_1 = arith.constant 0 : i32
    return %c0_i32, %c0_i32_0 : i32, i32
  }
  func.func @transform_2(%arg0: i32) -> (i32, i32) {
    %c0_i32 = arith.constant 0 : i32
    %c0_i32_0 = arith.constant 0 : i32
    %c0_i32_1 = arith.constant 0 : i32
    return %c0_i32, %c0_i32_0 : i32, i32
  }
  func.func @transform_3(%arg0: i32) -> (i32, i32) {
    %c0_i32 = arith.constant 0 : i32
    %c0_i32_0 = arith.constant 0 : i32
    %c0_i32_1 = arith.constant 0 : i32
    return %c0_i32, %c0_i32_0 : i32, i32
  }
  func.func @transform_4(%arg0: i32) -> (i32, i32) {
    %c0_i32 = arith.constant 0 : i32
    %c0_i32_0 = arith.constant 0 : i32
    %c0_i32_1 = arith.constant 0 : i32
    return %c0_i32, %c0_i32_0 : i32, i32
  }
  func.func @transform_5(%arg0: i32) -> (i32, i32) {
    %c0_i32 = arith.constant 0 : i32
    %c0_i32_0 = arith.constant 0 : i32
    return %arg0, %c0_i32 : i32, i32
  }
}

</mosaic_0001>

<bundles_post_ra>
// kernel: fno3d_forward.10
= control target key start
LH: loop header
LB: loop body
LE: loop exit
PB: predicated region body
PF: predicated region fallthrough
CT: control target
= control target key end

     0   :  { %s2493_s18 = smov 0   ;;  %s3368_s0 = inlined_call_operand.vmem [shape: f32[1024,8], index: 0, kind: input, shape index: {}]   ;;  %s3369_s1 = inlined_call_operand.vmem [shape: bf16[8,8], index: 1, kind: input, shape index: {}]   ;;  %s3370_s2 = inlined_call_operand.vmem [shape: f32[1,8], index: 2, kind: input, shape index: {}]   ;;  %s3371_s3 = inlined_call_operand.vmem [shape: bf16[8,16], index: 3, kind: input, shape index: {}]   ;;  %s3372_s4 = inlined_call_operand.vmem [shape: f32[1,16], index: 4, kind: input, shape index: {}]   ;;  %s3373_s5 = inlined_call_operand.vmem [shape: f32[1024,16], index: 5, kind: output, shape index: {}]  }
   0x1 LB: > { %s1912_s19 = sadd.s32 4294967295, %s2461_s18   ;;  %p1916_p0 = scmp.ge.s32.totalorder %s2461_s18, 1  ;;  %s2461_s18 = sphi %s2493_s18, %s15_s18  }
   0x2   : > { %p188_p1 = scmp.lt.s32.totalorder %s2461_s18, 3 }
   0x4   : > { %p189_p2 = pnand %p1916_p0, %p188_p1 }
   0x5   : > { %s1917_s22 = sshll.u32 (!%p189_p2), %s1912_s19, 6 }
   0x6   : > { %192 = sbr.rel (%p189_p2) target bundleno = 585 (0x249), region = 40  ;;  %p217_p3 = scmp.lt.s32.totalorder (!%p189_p2), %s1917_s22, 127 }
   0xb   : > { %v325_v0 = vld [vmem:[%s3369_s1] sm:$0xf]  ;;  %vm430_vm0 = vcmask 1043456   ;;  %s3375_s22 = smov (!%p217_p3, %s1917_s22), 127  ;;  %vm333_vm1 = vcmask 64512   ;;  %vm1791_vm2 = vcmask 130048  }
   0xc   : > { %2187 = vmatprep.subr.msk.bf16.mxu0 %vm430_vm0, %v325_v0  ;;  %v432_v1 = vsel %vm430_vm0, %v325_v0, 0  ;;  %s1918_s23 = sshll.u32 %s3375_s22, 3 }
   0xd   : > { %2056 = vmatpush3.bf16.msra.mxu0 %v432_v1  ;;  %s2514_s26 = scalar_lea.vmem %s3368_s0, %s1918_s23  ;;  %s2968_s12 = scalar_lea.vmem %s3373_s5, %s1918_s23 }
   0xe   : > { %v229_v2 = vld [vmem:[%s2514_s26] sm:$0xff]  ;;  %v230_v3 = vld [vmem:[%s2514_s26 + $0x8] sm:$0xff]  ;;  %v231_v4 = vld [vmem:[%s2514_s26 + $0x10] sm:$0xff] }
   0xf   : > { %v293_v5 = vpack.c.bf16 %v230_v3, %v229_v2  ;;  %v232_v6 = vld [vmem:[%s2514_s26 + $0x18] sm:$0xff]  ;;  %v233_v7 = vld [vmem:[%s2514_s26 + $0x20] sm:$0xff]  ;;  %v234_v8 = vld [vmem:[%s2514_s26 + $0x28] sm:$0xff] }
  0x10   : > { %v294_v9 = vpack.c.bf16 %v232_v6, %v231_v4  ;;  %v295_v10 = vpack.c.bf16 %v234_v8, %v233_v7  ;;  %v235_v11 = vld [vmem:[%s2514_s26 + $0x30] sm:$0xff]  ;;  %v236_v12 = vld [vmem:[%s2514_s26 + $0x38] sm:$0xff]  ;;  %v237_v13 = vld [vmem:[%s2514_s26 + $0x40] sm:$0xff] }
  0x11   : > { %2057 = vmatprep.mubr.msk.bf16.mxu0 %vm333_vm1, %v293_v5  ;;  %v238_v14 = vld [vmem:[%s2514_s26 + $0x48] sm:$0xff]  ;;  %v296_v15 = vpack.c.bf16 %v236_v12, %v235_v11  ;;  %v239_v17 = vld [vmem:[%s2514_s26 + $0x50] sm:$0xff]  ;;  %v240_v18 = vld [vmem:[%s2514_s26 + $0x58] sm:$0xff] }
  0x12   : > { %2058 = vmatmul.mubr.msk.bf16.vlgmr.msra.gmra.mxu0 %vm333_vm1, %v294_v9  ;;  %v297_v16 = vpack.c.bf16 %v238_v14, %v237_v13  ;;  %v241_v19 = vld [vmem:[%s2514_s26 + $0x60] sm:$0xff]  ;;  %v242_v20 = vld [vmem:[%s2514_s26 + $0x68] sm:$0xff]  ;;  %v298_v21 = vpack.c.bf16 %v240_v18, %v239_v17  ;;  %v243_v23 = vld [vmem:[%s2514_s26 + $0x70] sm:$0xff] }
  0x13   : > { %2061 = vmatprep.mubr.msk.bf16.mxu0 %vm333_vm1, %v295_v10  ;;  %v299_v22 = vpack.c.bf16 %v242_v20, %v241_v19  ;;  %v244_v24 = vld [vmem:[%s2514_s26 + $0x78] sm:$0xff]  ;;  %v245_v25 = vld [vmem:[%s2514_s26 + $0x80] sm:$0xff]  ;;  %v246_v26 = vld [vmem:[%s2514_s26 + $0x88] sm:$0xff] }
  0x14   : > { %v300_v27 = vpack.c.bf16 %v244_v24, %v243_v23  ;;  %v301_v28 = vpack.c.bf16 %v246_v26, %v245_v25  ;;  %v247_v29 = vld [vmem:[%s2514_s26 + $0x90] sm:$0xff]  ;;  %v248_v30 = vld [vmem:[%s2514_s26 + $0x98] sm:$0xff]  ;;  %v249_v31 = vld [vmem:[%s2514_s26 + $0xa0] sm:$0xff] }
  0x15   : > { %v250_v32 = vld [vmem:[%s2514_s26 + $0xa8] sm:$0xff]  ;;  %v302_v33 = vpack.c.bf16 %v248_v30, %v247_v29  ;;  %v251_v35 = vld [vmem:[%s2514_s26 + $0xb0] sm:$0xff]  ;;  %v252_v36 = vld [vmem:[%s2514_s26 + $0xb8] sm:$0xff] }
  0x16   : > { %v303_v34 = vpack.c.bf16 %v250_v32, %v249_v31  ;;  %v253_v37 = vld [vmem:[%s2514_s26 + $0xc0] sm:$0xff]  ;;  %v254_v38 = vld [vmem:[%s2514_s26 + $0xc8] sm:$0xff]  ;;  %v304_v39 = vpack.c.bf16 %v252_v36, %v251_v35  ;;  %v255_v41 = vld [vmem:[%s2514_s26 + $0xd0] sm:$0xff] }
  0x17   : > { %v305_v40 = vpack.c.bf16 %v254_v38, %v253_v37  ;;  %v256_v42 = vld [vmem:[%s2514_s26 + $0xd8] sm:$0xff]  ;;  %v257_v43 = vld [vmem:[%s2514_s26 + $0xe0] sm:$0xff]  ;;  %v258_v44 = vld [vmem:[%s2514_s26 + $0xe8] sm:$0xff] }
  0x18   : > { %v306_v45 = vpack.c.bf16 %v256_v42, %v255_v41  ;;  %v307_v46 = vpack.c.bf16 %v258_v44, %v257_v43  ;;  %v259_v47 = vld [vmem:[%s2514_s26 + $0xf0] sm:$0xff]  ;;  %v260_v48 = vld [vmem:[%s2514_s26 + $0xf8] sm:$0xff]  ;;  %v261_v49 = vld [vmem:[%s2514_s26 + $0x100] sm:$0xff] }
  0x19   : > { %v262_v50 = vld [vmem:[%s2514_s26 + $0x108] sm:$0xff]  ;;  %v308_v51 = vpack.c.bf16 %v260_v48, %v259_v47  ;;  %v263_v53 = vld [vmem:[%s2514_s26 + $0x110] sm:$0xff]  ;;  %v264_v54 = vld [vmem:[%s2514_s26 + $0x118] sm:$0xff] }
  0x1a   : > { %2062 = vmatmul.mubr.msk.bf16.gmra.mxu0 %vm333_vm1, %v296_v15  ;;  %v309_v52 = vpack.c.bf16 %v262_v50, %v261_v49  ;;  %v265_v55 = vld [vmem:[%s2514_s26 + $0x120] sm:$0xff]  ;;  %v266_v56 = vld [vmem:[%s2514_s26 + $0x128] sm:$0xff]  ;;  %v310_v57 = vpack.c.bf16 %v264_v54, %v263_v53  ;;  %v267_v59 = vld [vmem:[%s2514_s26 + $0x130] sm:$0xff] }
  0x1b   : > { %2065 = vmatprep.mubr.msk.bf16.mxu0 %vm333_vm1, %v297_v16  ;;  %v311_v58 = vpack.c.bf16 %v266_v56, %v265_v55  ;;  %v268_v60 = vld [vmem:[%s2514_s26 + $0x138] sm:$0xff]  ;;  %v269_v61 = vld [vmem:[%s2514_s26 + $0x140] sm:$0xff]  ;;  %v270_v62 = vld [vmem:[%s2514_s26 + $0x148] sm:$0xff] }
  0x1c   : > { %v312_v63 = vpack.c.bf16 %v268_v60, %v267_v59  ;;  %v313_v0 = vpack.c.bf16 %v270_v62, %v269_v61  ;;  %v271_v1 = vld [vmem:[%s2514_s26 + $0x150] sm:$0xff]  ;;  %v272_v2 = vld [vmem:[%s2514_s26 + $0x158] sm:$0xff]  ;;  %v273_v3 = vld [vmem:[%s2514_s26 + $0x160] sm:$0xff] }
  0x1d   : > { %v274_v4 = vld [vmem:[%s2514_s26 + $0x168] sm:$0xff]  ;;  %v314_v5 = vpack.c.bf16 %v272_v2, %v271_v1  ;;  %v275_v7 = vld [vmem:[%s2514_s26 + $0x170] sm:$0xff]  ;;  %v276_v8 = vld [vmem:[%s2514_s26 + $0x178] sm:$0xff] }
  0x1e   : > { %v315_v6 = vpack.c.bf16 %v274_v4, %v273_v3  ;;  %v277_v9 = vld [vmem:[%s2514_s26 + $0x180] sm:$0xff]  ;;  %v278_v10 = vld [vmem:[%s2514_s26 + $0x188] sm:$0xff]  ;;  %v316_v11 = vpack.c.bf16 %v276_v8, %v275_v7  ;;  %v279_v13 = vld [vmem:[%s2514_s26 + $0x190] sm:$0xff] }
  0x1f   : > { %v317_v12 = vpack.c.bf16 %v278_v10, %v277_v9  ;;  %v280_v14 = vld [vmem:[%s2514_s26 + $0x198] sm:$0xff]  ;;  %v281_v15 = vld [vmem:[%s2514_s26 + $0x1a0] sm:$0xff]  ;;  %v282_v16 = vld [vmem:[%s2514_s26 + $0x1a8] sm:$0xff] }
  0x20   : > { %v318_v17 = vpack.c.bf16 %v280_v14, %v279_v13  ;;  %v1075_v18 = vld [vmem:[%s3371_s3] sm:$0xf]  ;;  %v319_v19 = vpack.c.bf16 %v282_v16, %v281_v15  ;;  %v286_v24 = vld [vmem:[%s2514_s26 + $0x1c8] sm:$0xff] }
  0x21   : > { %2188 = vmatprep.subr.msk.bf16.mxu1 %vm430_vm0, %v1075_v18  ;;  %v1180_v20 = vsel %vm430_vm0, %v1075_v18, 0  ;;  %v285_v23 = vld [vmem:[%s2514_s26 + $0x1c0] sm:$0xff]  ;;  %v290_v30 = vld [vmem:[%s2514_s26 + $0x1e8] sm:$0xff] }
  0x22   : > { %2066 = vmatmul.mubr.msk.bf16.gmra.mxu0 %vm333_vm1, %v298_v21  ;;  %2122 = vmatpush3.bf16.msra.mxu1 %v1180_v20  ;;  %v283_v21 = vld [vmem:[%s2514_s26 + $0x1b0] sm:$0xff]  ;;  %v321_v26 = vpack.c.bf16 %v286_v24, %v285_v23  ;;  %v289_v29 = vld [vmem:[%s2514_s26 + $0x1e0] sm:$0xff] }
  0x23   : > { %2069 = vmatprep.mubr.msk.bf16.mxu0 %vm333_vm1, %v299_v22  ;;  %v284_v22 = vld [vmem:[%s2514_s26 + $0x1b8] sm:$0xff]  ;;  %v323_v32 = vpack.c.bf16 %v290_v30, %v289_v29  ;;  %v2620_v36 = vld [vmem:[%s3370_s2] ss:$0 sm:$0xff] }
  0x24   : > { %v320_v25 = vpack.c.bf16 %v284_v22, %v283_v21 }
  0x2a   : > { %2070 = vmatmul.mubr.msk.bf16.gmra.mxu0 %vm333_vm1, %v300_v27  ;;  %v287_v27 = vld [vmem:[%s2514_s26 + $0x1d0] sm:$0xff] }
  0x2b   : > { %2073 = vmatprep.mubr.msk.bf16.mxu0 %vm333_vm1, %v301_v28  ;;  %v288_v28 = vld [vmem:[%s2514_s26 + $0x1d8] sm:$0xff] }
  0x2c   : > { %v322_v31 = vpack.c.bf16 %v288_v28, %v287_v27 }
  0x32   : > { %2074 = vmatmul.mubr.msk.bf16.gmra.mxu0 %vm333_vm1, %v302_v33  ;;  %v291_v33 = vld [vmem:[%s2514_s26 + $0x1f0] sm:$0xff] }
  0x33   : > { %2077 = vmatprep.mubr.msk.bf16.mxu0 %vm333_vm1, %v303_v34  ;;  %v292_v34 = vld [vmem:[%s2514_s26 + $0x1f8] sm:$0xff] }
  0x34   : > { %v324_v35 = vpack.c.bf16 %v292_v34, %v291_v33 }
  0x3a   : > { %2078 = vmatmul.mubr.msk.bf16.gmra.mxu0 %vm333_vm1, %v304_v39 }
  0x3b   : > { %2081 = vmatprep.mubr.msk.bf16.mxu0 %vm333_vm1, %v305_v40 }
  0x42   : > { %2082 = vmatmul.mubr.msk.bf16.gmra.mxu0 %vm333_vm1, %v306_v45 }
  0x43   : > { %2085 = vmatprep.mubr.msk.bf16.mxu0 %vm333_vm1, %v307_v46 }
  0x4a   : > { %2086 = vmatmul.mubr.msk.bf16.gmra.mxu0 %vm333_vm1, %v308_v51 }
  0x4b   : > { %2089 = vmatprep.mubr.msk.bf16.mxu0 %vm333_vm1, %v309_v52 }
  0x52   : > { %2090 = vmatmul.mubr.msk.bf16.gmra.mxu0 %vm333_vm1, %v310_v57 }
  0x53   : > { %2093 = vmatprep.mubr.msk.bf16.mxu0 %vm333_vm1, %v311_v58 }
  0x5a   : > { %2094 = vmatmul.mubr.msk.bf16.gmra.mxu0 %vm333_vm1, %v312_v63 }
  0x5b   : > { %2097 = vmatprep.mubr.msk.bf16.mxu0 %vm333_vm1, %v313_v0 }
  0x62   : > { %2098 = vmatmul.mubr.msk.bf16.gmra.mxu0 %vm333_vm1, %v314_v5 }
  0x63   : > { %2101 = vmatprep.mubr.msk.bf16.mxu0 %vm333_vm1, %v315_v6 }
  0x6a   : > { %2102 = vmatmul.mubr.msk.bf16.gmra.mxu0 %vm333_vm1, %v316_v11 }
  0x6b   : > { %2105 = vmatprep.mubr.msk.bf16.mxu0 %vm333_vm1, %v317_v12 }
  0x72   : > { %2106 = vmatmul.mubr.msk.bf16.gmra.mxu0 %vm333_vm1, %v318_v17 }
  0x73   : > { %2109 = vmatprep.mubr.msk.bf16.mxu0 %vm333_vm1, %v319_v19 }
  0x7a   : > { %2110 = vmatmul.mubr.msk.bf16.gmra.mxu0 %vm333_vm1, %v320_v25 }
  0x7b   : > { %2113 = vmatprep.mubr.msk.bf16.mxu0 %vm333_vm1, %v321_v26 }
  0x82   : > { %2114 = vmatmul.mubr.msk.bf16.gmra.mxu0 %vm333_vm1, %v322_v31 }
  0x83   : > { %2117 = vmatprep.mubr.msk.bf16.mxu0 %vm333_vm1, %v323_v32 }
  0x8a   : > { %2118 = vmatmul.mubr.msk.bf16.gmra.mxu0 %vm333_vm1, %v324_v35 }
  0xd2   : > { %v2059_v37 = vpop.f32.mrf.mxu0 }
  0xd3   : > { %v477_v38 = vadd.f32 %v2059_v37, %v2620_v36 }
  0xd4   : > { %v468_v39 = vpop.f32.mrf.mxu0 }
  0xd5   : > { %v789_v40 = vmul.f32 0.70710677, %v477_v38  ;;  %v469_v41 = vadd.f32 %v2620_v36, %v468_v39  ;;  %v725_v17 = vmul.f32 0.5, %v477_v38 }
  0xd6   : > { %v2060_v42 = vpop.f32.mrf.mxu0 }
  0xd7   : > { %v787_v43 = vmul.f32 0.70710677, %v469_v41  ;;  %v480_v44 = vadd.f32 %v2060_v42, %v2620_v36  ;;  %2197 = verf.f32 %v789_v40  ;;  %v723_v18 = vmul.f32 0.5, %v469_v41 }
  0xd8   : > { %v471_v45 = vpop.f32.mrf.mxu0 }
  0xd9   : > { %v790_v46 = vmul.f32 0.70710677, %v480_v44  ;;  %v472_v47 = vadd.f32 %v2620_v36, %v471_v45  ;;  %2199 = verf.f32 %v787_v43  ;;  %v726_v14 = vmul.f32 0.5, %v480_v44 }
  0xda   : > { %v2063_v48 = vpop.f32.mrf.mxu0 }
  0xdb   : > { %2201 = verf.f32 %v790_v46  ;;  %v788_v49 = vmul.f32 0.70710677, %v472_v47  ;;  %v2627_v50 = vadd.f32 %v2063_v48, %v2620_v36  ;;  %v724_v21 = vmul.f32 0.5, %v472_v47 }
  0xdc   : > { %v484_v51 = vpop.f32.mrf.mxu0 }
  0xdd   : > { %2203 = verf.f32 %v788_v49  ;;  %v2630_v52 = vadd.f32 %v2620_v36, %v484_v51  ;;  %v793_v53 = vmul.f32 0.70710677, %v2627_v50 }
  0xde   : > { %v2064_v54 = vpop.f32.mrf.mxu0 }
  0xdf   : > { %v791_v55 = vmul.f32 0.70710677, %v2630_v52  ;;  %v496_v56 = vadd.f32 %v2064_v54, %v2620_v36  ;;  %v727_v48 = vmul.f32 0.5, %v2630_v52  ;;  %v729_v54 = vmul.f32 0.5, %v2627_v50 }
  0xe0   : > { %v487_v57 = vpop.f32.mrf.mxu0 }
  0xe1   : > { %2205 = verf.f32 %v791_v55  ;;  %v794_v58 = vmul.f32 0.70710677, %v496_v56  ;;  %v488_v59 = vadd.f32 %v2620_v36, %v487_v57  ;;  %v730_v45 = vmul.f32 0.5, %v496_v56 }
  0xe2   : > { %2207 = verf.f32 %v793_v53  ;;  %v2067_v60 = vpop.f32.mrf.mxu0 }
  0xe3   : > { %2209 = verf.f32 %v794_v58  ;;  %v792_v61 = vmul.f32 0.70710677, %v488_v59  ;;  %v2637_v62 = vadd.f32 %v2067_v60, %v2620_v36  ;;  %v728_v49 = vmul.f32 0.5, %v488_v59 }
  0xe4   : > { %v500_v63 = vpop.f32.mrf.mxu0  ;;  %v2198_v1 = vpop.eup %2197 }
  0xe5   : > { %2211 = verf.f32 %v792_v61  ;;  %v797_v0 = vmul.f32 0.70710677, %v2637_v62  ;;  %v2641_v2 = vadd.f32 %v2620_v36, %v500_v63  ;;  %v917_v13 = vadd.f32 1.0, %v2198_v1 }
  0xe6   : > { %v2068_v3 = vpop.f32.mrf.mxu0  ;;  %v2200_v4 = vpop.eup %2199 }
  0xe7   : > { %v2644_v5 = vadd.f32 %v2068_v3, %v2620_v36  ;;  %v795_v7 = vmul.f32 0.70710677, %v2641_v2  ;;  %2213 = verf.f32 %v797_v0  ;;  %v915_v16 = vadd.f32 1.0, %v2200_v4 }
  0xe8   : > { %v2202_v6 = vpop.eup %2201  ;;  %v503_v8 = vpop.f32.mrf.mxu0  ;;  %v981_v27 = vmul.f32 %v917_v13, %v725_v17 }
  0xe9   : > { %v918_v9 = vadd.f32 1.0, %v2202_v6  ;;  %v798_v10 = vmul.f32 0.70710677, %v2644_v5  ;;  %v2649_v11 = vadd.f32 %v2620_v36, %v503_v8  ;;  %2215 = verf.f32 %v795_v7 }
  0xea   : > { %v2204_v12 = vpop.eup %2203  ;;  %v2071_v15 = vpop.f32.mrf.mxu0  ;;  %v979_v30 = vmul.f32 %v915_v16, %v723_v18  ;;  %v734_v16 = vmul.f32 0.5, %v2644_v5 }
  0xeb   : > { %2217 = verf.f32 %v798_v10  ;;  %v796_v19 = vmul.f32 0.70710677, %v2649_v11  ;;  %v982_v20 = vmul.f32 %v918_v9, %v726_v14  ;;  %v2653_v22 = vadd.f32 %v2071_v15, %v2620_v36 }
  0xec   : > { %v516_v23 = vpop.f32.mrf.mxu0  ;;  %v916_v24 = vadd.f32 1.0, %v2204_v12  ;;  %v731_v15 = vmul.f32 0.5, %v2641_v2 }
  0xed   : > { %2219 = verf.f32 %v796_v19  ;;  %v2656_v25 = vadd.f32 %v2620_v36, %v516_v23  ;;  %v801_v28 = vmul.f32 0.70710677, %v2653_v22  ;;  %v1044_v35 = vpack.c.bf16 %v982_v20, %v981_v27 }
  0xee   : > { %v2206_v26 = vpop.eup %2205  ;;  %v2072_v29 = vpop.f32.mrf.mxu0  ;;  %v980_v31 = vmul.f32 %v916_v24, %v724_v21  ;;  %v732_v19 = vmul.f32 0.5, %v2649_v11  ;;  %v733_v21 = vmul.f32 0.5, %v2637_v62 }
  0xef   : > { %v2208_v32 = vpop.eup %2207  ;;  %v799_v33 = vmul.f32 0.70710677, %v2656_v25  ;;  %v2661_v37 = vadd.f32 %v2072_v29, %v2620_v36  ;;  %v919_v40 = vadd.f32 1.0, %v2206_v26 }
  0xf0   : > { %v2210_v34 = vpop.eup %2209  ;;  %v519_v38 = vpop.f32.mrf.mxu0  ;;  %v1043_v39 = vpack.c.bf16 %v980_v31, %v979_v30  ;;  %v921_v44 = vadd.f32 1.0, %v2208_v32 }
  0xf1   : > { %v922_v41 = vadd.f32 1.0, %v2210_v34  ;;  %2221 = verf.f32 %v799_v33  ;;  %v2664_v42 = vadd.f32 %v2620_v36, %v519_v38  ;;  %v802_v46 = vmul.f32 0.70710677, %v2661_v37 }
  0xf2   : > { %v2212_v43 = vpop.eup %2211  ;;  %2223 = verf.f32 %v801_v28  ;;  %2123 = vmatprep.mubr.msk.bf16.mxu1 %vm333_vm1, %v1043_v39  ;;  %v2075_v47 = vpop.f32.mrf.mxu0  ;;  %v983_v58 = vmul.f32 %v919_v40, %v727_v48  ;;  %v985_v63 = vmul.f32 %v921_v44, %v729_v54  ;;  %v735_v34 = vmul.f32 0.5, %v2656_v25 }
  0xf3   : > { %v920_v51 = vadd.f32 1.0, %v2212_v43  ;;  %v800_v53 = vmul.f32 0.70710677, %v2664_v42  ;;  %2124 = vmatmul.mubr.msk.bf16.vlgmr.msra.gmra.mxu1 %vm333_vm1, %v1044_v35  ;;  %v986_v55 = vmul.f32 %v922_v41, %v730_v45  ;;  %2225 = verf.f32 %v802_v46 }
  0xf4   : > { %v2673_v56 = vadd.f32 %v2075_v47, %v2620_v36  ;;  %v532_v57 = vpop.f32.mrf.mxu0  ;;  %v2214_v61 = vpop.eup %2213  ;;  %v738_v35 = vmul.f32 0.5, %v2661_v37  ;;  %v736_v48 = vmul.f32 0.5, %v2664_v42  ;;  %v737_v54 = vmul.f32 0.5, %v2653_v22 }
  0xf5   : > { %v984_v60 = vmul.f32 %v920_v51, %v728_v49  ;;  %2227 = verf.f32 %v800_v53  ;;  %v2677_v59 = vadd.f32 %v2620_v36, %v532_v57  ;;  %v1046_v6 = vpack.c.bf16 %v986_v55, %v985_v63 }
  0xf6   : > { %v805_v52 = vmul.f32 0.70710677, %v2673_v56  ;;  %v2076_v0 = vpop.f32.mrf.mxu0  ;;  %v2216_v1 = vpop.eup %2215  ;;  %v925_v18 = vadd.f32 1.0, %v2214_v61 }
  0xf7   : > { %v1045_v3 = vpack.c.bf16 %v984_v60, %v983_v58  ;;  %v2680_v50 = vadd.f32 %v2076_v0, %v2620_v36  ;;  %v923_v7 = vadd.f32 1.0, %v2216_v1  ;;  %v803_v8 = vmul.f32 0.70710677, %v2677_v59 }
  0xf8   : > { %v2218_v4 = vpop.eup %2217  ;;  %v535_v9 = vpop.f32.mrf.mxu0  ;;  %2229 = verf.f32 %v805_v52  ;;  %v989_v32 = vmul.f32 %v925_v18, %v733_v21 }
  0xf9   : > { %v926_v10 = vadd.f32 1.0, %v2218_v4  ;;  %v806_v12 = vmul.f32 0.70710677, %v2680_v50  ;;  %v2685_v13 = vadd.f32 %v2620_v36, %v535_v9  ;;  %2127 = vmatprep.mubr.msk.bf16.mxu1 %vm333_vm1, %v1045_v3  ;;  %2231 = verf.f32 %v803_v8 }
  0xfa   : > { %v2220_v14 = vpop.eup %2219  ;;  %v2079_v17 = vpop.f32.mrf.mxu0  ;;  %v987_v2 = vmul.f32 %v923_v7, %v731_v15  ;;  %v742_v18 = vmul.f32 0.5, %v2680_v50 }
  0xfb   : > { %v924_v20 = vadd.f32 1.0, %v2220_v14  ;;  %2233 = verf.f32 %v806_v12  ;;  %2128 = vmatmul.mubr.msk.bf16.gmra.mxu1 %vm333_vm1, %v1046_v6  ;;  %v804_v23 = vmul.f32 0.70710677, %v2685_v13  ;;  %v2695_v24 = vadd.f32 %v2079_v17, %v2620_v36 }
  0xfc   : > { %v548_v26 = vpop.f32.mrf.mxu0  ;;  %v990_v27 = vmul.f32 %v926_v10, %v734_v16  ;;  %v740_v21 = vmul.f32 0.5, %v2685_v13 }
  0xfd   : > { %v988_v5 = vmul.f32 %v924_v20, %v732_v19  ;;  %v2698_v28 = vadd.f32 %v2620_v36, %v548_v26  ;;  %2235 = verf.f32 %v804_v23  ;;  %v809_v11 = vmul.f32 0.70710677, %v2695_v24 }
  0xfe   : > { %v2222_v29 = vpop.eup %2221  ;;  %v2080_v30 = vpop.f32.mrf.mxu0  ;;  %v1048_v41 = vpack.c.bf16 %v990_v27, %v989_v32  ;;  %v739_v20 = vmul.f32 0.5, %v2677_v59  ;;  %v741_v27 = vmul.f32 0.5, %v2673_v56 }
  0xff   : > { %v2224_v31 = vpop.eup %2223  ;;  %v1047_v62 = vpack.c.bf16 %v988_v5, %v987_v2  ;;  %v807_v33 = vmul.f32 0.70710677, %v2698_v28  ;;  %v2705_v38 = vadd.f32 %v2080_v30, %v2620_v36  ;;  %v927_v43 = vadd.f32 1.0, %v2222_v29 }
 0x100   : > { %v551_v39 = vpop.f32.mrf.mxu0  ;;  %v2226_v40 = vpop.eup %2225  ;;  %v929_v46 = vadd.f32 1.0, %v2224_v31  ;;  %v743_v56 = vmul.f32 0.5, %v2698_v28 }
 0x101   : > { %2237 = verf.f32 %v807_v33  ;;  %v2708_v44 = vadd.f32 %v2620_v36, %v551_v39  ;;  %2131 = vmatprep.mubr.msk.bf16.mxu1 %vm333_vm1, %v1047_v62  ;;  %v930_v47 = vadd.f32 1.0, %v2226_v40  ;;  %v810_v25 = vmul.f32 0.70710677, %v2705_v38 }
 0x102   : > { %v2228_v45 = vpop.eup %2227  ;;  %2239 = verf.f32 %v809_v11  ;;  %v2083_v37 = vpop.f32.mrf.mxu0  ;;  %v991_v58 = vmul.f32 %v927_v43, %v735_v34  ;;  %v993_v42 = vmul.f32 %v929_v46, %v737_v54 }
 0x103   : > { %v928_v49 = vadd.f32 1.0, %v2228_v45  ;;  %v808_v51 = vmul.f32 0.70710677, %v2708_v44  ;;  %v2715_v53 = vadd.f32 %v2083_v37, %v2620_v36  ;;  %2132 = vmatmul.mubr.msk.bf16.gmra.mxu1 %vm333_vm1, %v1048_v41  ;;  %v994_v55 = vmul.f32 %v930_v47, %v738_v35 }
 0x104   : > { %2241 = verf.f32 %v810_v25  ;;  %v564_v57 = vpop.f32.mrf.mxu0  ;;  %v746_v35 = vmul.f32 0.5, %v2705_v38  ;;  %v744_v28 = vmul.f32 0.5, %v2708_v44 }
 0x105   : > { %v992_v60 = vmul.f32 %v928_v49, %v736_v48  ;;  %2243 = verf.f32 %v808_v51  ;;  %v813_v61 = vmul.f32 0.70710677, %v2715_v53  ;;  %v2230_v63 = vpop.eup %2229  ;;  %v2721_v52 = vadd.f32 %v2620_v36, %v564_v57 }
 0x106   : > { %v2084_v0 = vpop.f32.mrf.mxu0  ;;  %v2232_v1 = vpop.eup %2231  ;;  %v1050_v6 = vpack.c.bf16 %v994_v55, %v993_v42  ;;  %v933_v17 = vadd.f32 1.0, %v2230_v63  ;;  %v745_v51 = vmul.f32 0.5, %v2695_v24 }
 0x107   : > { %v1049_v3 = vpack.c.bf16 %v992_v60, %v991_v58  ;;  %v2724_v4 = vadd.f32 %v2084_v0, %v2620_v36  ;;  %v811_v7 = vmul.f32 0.70710677, %v2721_v52  ;;  %2245 = verf.f32 %v813_v61 }
 0x108   : > { %v2234_v22 = vpop.eup %2233  ;;  %v567_v8 = vpop.f32.mrf.mxu0  ;;  %v931_v14 = vadd.f32 1.0, %v2232_v1  ;;  %v997_v13 = vmul.f32 %v933_v17, %v741_v27  ;;  %v747_v17 = vmul.f32 0.5, %v2721_v52 }
 0x109   : > { %v934_v9 = vadd.f32 1.0, %v2234_v22  ;;  %v814_v10 = vmul.f32 0.70710677, %v2724_v4  ;;  %v2729_v12 = vadd.f32 %v2620_v36, %v567_v8  ;;  %2135 = vmatprep.mubr.msk.bf16.mxu1 %vm333_vm1, %v1049_v3  ;;  %2247 = verf.f32 %v811_v7 }
 0x10a   : > { %v2087_v15 = vpop.f32.mrf.mxu0  ;;  %v2236_v16 = vpop.eup %2235  ;;  %v995_v11 = vmul.f32 %v931_v14, %v739_v20 }
 0x10b   : > { %2249 = verf.f32 %v814_v10  ;;  %v812_v19 = vmul.f32 0.70710677, %v2729_v12  ;;  %2136 = vmatmul.mubr.msk.bf16.gmra.mxu1 %vm333_vm1, %v1050_v6  ;;  %v932_v23 = vadd.f32 1.0, %v2236_v16  ;;  %v2738_v26 = vadd.f32 %v2087_v15, %v2620_v36 }
 0x10c   : > { %v580_v2 = vpop.f32.mrf.mxu0  ;;  %v998_v5 = vmul.f32 %v934_v9, %v742_v18  ;;  %v750_v18 = vmul.f32 0.5, %v2724_v4 }
 0x10d   : > { %2251 = verf.f32 %v812_v19  ;;  %v2742_v50 = vadd.f32 %v2620_v36, %v580_v2  ;;  %v996_v30 = vmul.f32 %v932_v23, %v740_v21  ;;  %v817_v31 = vmul.f32 0.70710677, %v2738_v26 }
 0x10e   : > { %v2238_v29 = vpop.eup %2237  ;;  %v2088_v59 = vpop.f32.mrf.mxu0  ;;  %v1052_v41 = vpack.c.bf16 %v998_v5, %v997_v13  ;;  %v748_v21 = vmul.f32 0.5, %v2729_v12  ;;  %v749_v2 = vmul.f32 0.5, %v2715_v53 }
 0x10f   : > { %v2240_v32 = vpop.eup %2239  ;;  %v815_v62 = vmul.f32 0.70710677, %v2742_v50  ;;  %v2747_v33 = vadd.f32 %v2088_v59, %v2620_v36  ;;  %v1051_v34 = vpack.c.bf16 %v996_v30, %v995_v11  ;;  %v935_v43 = vadd.f32 1.0, %v2238_v29 }
 0x110   : > { %v583_v39 = vpop.f32.mrf.mxu0  ;;  %2253 = verf.f32 %v817_v31  ;;  %v937_v47 = vadd.f32 1.0, %v2240_v32 }
 0x111   : > { %v2242_v40 = vpop.eup %2241  ;;  %v818_v45 = vmul.f32 0.70710677, %v2747_v33  ;;  %2255 = verf.f32 %v815_v62  ;;  %v2753_v37 = vadd.f32 %v2620_v36, %v583_v39  ;;  %2139 = vmatprep.mubr.msk.bf16.mxu1 %vm333_vm1, %v1051_v34  ;;  %v999_v58 = vmul.f32 %v935_v43, %v743_v56 }
 0x112   : > { %v2244_v46 = vpop.eup %2243  ;;  %v938_v25 = vadd.f32 1.0, %v2242_v40  ;;  %v2091_v48 = vpop.f32.mrf.mxu0  ;;  %v1001_v42 = vmul.f32 %v937_v47, %v745_v51  ;;  %v751_v51 = vmul.f32 0.5, %v2742_v50 }
 0x113   : > { %v936_v38 = vadd.f32 1.0, %v2244_v46  ;;  %2257 = verf.f32 %v818_v45  ;;  %v2758_v49 = vadd.f32 %v2091_v48, %v2620_v36  ;;  %2140 = vmatmul.mubr.msk.bf16.gmra.mxu1 %vm333_vm1, %v1052_v41  ;;  %v816_v55 = vmul.f32 0.70710677, %v2753_v37 }
 0x114   : > { %v1002_v54 = vmul.f32 %v938_v25, %v746_v35  ;;  %v596_v57 = vpop.f32.mrf.mxu0  ;;  %v2246_v63 = vpop.eup %2245  ;;  %v754_v45 = vmul.f32 0.5, %v2747_v33 }
 0x115   : > { %v1000_v60 = vmul.f32 %v936_v38, %v744_v28  ;;  %v821_v61 = vmul.f32 0.70710677, %v2758_v49  ;;  %2259 = verf.f32 %v816_v55  ;;  %v2765_v44 = vadd.f32 %v2620_v36, %v596_v57 }
 0x116   : > { %v2092_v0 = vpop.f32.mrf.mxu0  ;;  %v2248_v1 = vpop.eup %2247  ;;  %v1054_v6 = vpack.c.bf16 %v1002_v54, %v1001_v42  ;;  %v941_v20 = vadd.f32 1.0, %v2246_v63  ;;  %v752_v54 = vmul.f32 0.5, %v2753_v37 }
 0x117   : > { %v1053_v3 = vpack.c.bf16 %v1000_v60, %v999_v58  ;;  %v2768_v22 = vadd.f32 %v2092_v0, %v2620_v36  ;;  %2261 = verf.f32 %v821_v61  ;;  %v819_v7 = vmul.f32 0.70710677, %v2765_v44 }
 0x118   : > { %v2250_v24 = vpop.eup %2249  ;;  %v599_v8 = vpop.f32.mrf.mxu0  ;;  %v939_v9 = vadd.f32 1.0, %v2248_v1  ;;  %v1005_v32 = vmul.f32 %v941_v20, %v749_v2  ;;  %v753_v58 = vmul.f32 0.5, %v2738_v26 }
 0x119   : > { %v942_v10 = vadd.f32 1.0, %v2250_v24  ;;  %v822_v14 = vmul.f32 0.70710677, %v2768_v22  ;;  %v2773_v15 = vadd.f32 %v2620_v36, %v599_v8  ;;  %2143 = vmatprep.mubr.msk.bf16.mxu1 %vm333_vm1, %v1053_v3  ;;  %2263 = verf.f32 %v819_v7 }
 0x11a   : > { %v2252_v16 = vpop.eup %2251  ;;  %v2095_v19 = vpop.f32.mrf.mxu0  ;;  %v1003_v52 = vmul.f32 %v939_v9, %v747_v17 }
 0x11b   : > { %v940_v23 = vadd.f32 1.0, %v2252_v16  ;;  %2265 = verf.f32 %v822_v14  ;;  %2144 = vmatmul.mubr.msk.bf16.gmra.mxu1 %vm333_vm1, %v1054_v6  ;;  %v820_v27 = vmul.f32 0.70710677, %v2773_v15  ;;  %v2783_v5 = vadd.f32 %v2095_v19, %v2620_v36 }
 0x11c   : > { %v612_v29 = vpop.f32.mrf.mxu0  ;;  %v1006_v11 = vmul.f32 %v942_v10, %v750_v18  ;;  %v755_v14 = vmul.f32 0.5, %v2765_v44  ;;  %v756_v44 = vmul.f32 0.5, %v2773_v15 }
 0x11d   : > { %v1004_v4 = vmul.f32 %v940_v23, %v748_v21  ;;  %v2786_v30 = vadd.f32 %v2620_v36, %v612_v29  ;;  %v2254_v31 = vpop.eup %2253  ;;  %2267 = verf.f32 %v820_v27  ;;  %v825_v53 = vmul.f32 0.70710677, %v2783_v5 }
 0x11e   : > { %v2096_v12 = vpop.f32.mrf.mxu0  ;;  %v2256_v59 = vpop.eup %2255  ;;  %v1056_v39 = vpack.c.bf16 %v1006_v11, %v1005_v32  ;;  %v945_v48 = vadd.f32 1.0, %v2254_v31  ;;  %v758_v21 = vmul.f32 0.5, %v2768_v22 }
 0x11f   : > { %v1055_v13 = vpack.c.bf16 %v1004_v4, %v1003_v52  ;;  %v823_v62 = vmul.f32 0.70710677, %v2786_v30  ;;  %v2791_v56 = vadd.f32 %v2096_v12, %v2620_v36  ;;  %v943_v43 = vadd.f32 1.0, %v2256_v59 }
 0x120   : > { %v2258_v34 = vpop.eup %2257  ;;  %v615_v35 = vpop.f32.mrf.mxu0  ;;  %v1009_v50 = vmul.f32 %v945_v48, %v753_v58  ;;  %v757_v52 = vmul.f32 0.5, %v2758_v49 }
 0x121   : > { %v946_v40 = vadd.f32 1.0, %v2258_v34  ;;  %2269 = verf.f32 %v823_v62  ;;  %v2794_v41 = vadd.f32 %v2620_v36, %v615_v35  ;;  %2147 = vmatprep.mubr.msk.bf16.mxu1 %vm333_vm1, %v1055_v13  ;;  %v826_v46 = vmul.f32 0.70710677, %v2791_v56 }
 0x122   : > { %v2099_v47 = vpop.f32.mrf.mxu0  ;;  %v2260_v25 = vpop.eup %2259  ;;  %2271 = verf.f32 %v825_v53  ;;  %v1007_v61 = vmul.f32 %v943_v43, %v751_v51  ;;  %v759_v34 = vmul.f32 0.5, %v2786_v30 }
 0x123   : > { %v824_v28 = vmul.f32 0.70710677, %v2794_v41  ;;  %v2801_v38 = vadd.f32 %v2099_v47, %v2620_v36  ;;  %2148 = vmatmul.mubr.msk.bf16.gmra.mxu1 %vm333_vm1, %v1056_v39  ;;  %v944_v55 = vadd.f32 1.0, %v2260_v25  ;;  %2273 = verf.f32 %v826_v46 }
 0x124   : > { %v628_v33 = vpop.f32.mrf.mxu0  ;;  %v2262_v57 = vpop.eup %2261  ;;  %v1010_v60 = vmul.f32 %v946_v40, %v754_v45  ;;  %v762_v45 = vmul.f32 0.5, %v2791_v56  ;;  %v760_v48 = vmul.f32 0.5, %v2794_v41 }
 0x125   : > { %2275 = verf.f32 %v824_v28  ;;  %v1008_v63 = vmul.f32 %v944_v55, %v752_v54  ;;  %v829_v42 = vmul.f32 0.70710677, %v2801_v38  ;;  %v2809_v0 = vadd.f32 %v2620_v36, %v628_v33 }
 0x126   : > { %v2100_v1 = vpop.f32.mrf.mxu0  ;;  %v2264_v3 = vpop.eup %2263  ;;  %v1058_v8 = vpack.c.bf16 %v1010_v60, %v1009_v50  ;;  %v949_v20 = vadd.f32 1.0, %v2262_v57  ;;  %v761_v33 = vmul.f32 0.5, %v2783_v5 }
 0x127   : > { %v2812_v37 = vadd.f32 %v2100_v1, %v2620_v36  ;;  %v1057_v6 = vpack.c.bf16 %v1008_v63, %v1007_v61  ;;  %v827_v9 = vmul.f32 0.70710677, %v2809_v0  ;;  %v947_v16 = vadd.f32 1.0, %v2264_v3 }
 0x128   : > { %v2266_v24 = vpop.eup %2265  ;;  %v631_v7 = vpop.f32.mrf.mxu0  ;;  %2277 = verf.f32 %v829_v42  ;;  %v1013_v13 = vmul.f32 %v949_v20, %v757_v52 }
 0x129   : > { %v950_v26 = vadd.f32 1.0, %v2266_v24  ;;  %v830_v10 = vmul.f32 0.70710677, %v2812_v37  ;;  %v2818_v17 = vadd.f32 %v2620_v36, %v631_v7  ;;  %2151 = vmatprep.mubr.msk.bf16.mxu1 %vm333_vm1, %v1057_v6  ;;  %2279 = verf.f32 %v827_v9 }
 0x12a   : > { %v2103_v18 = vpop.f32.mrf.mxu0  ;;  %v2268_v19 = vpop.eup %2267  ;;  %v1011_v31 = vmul.f32 %v947_v16, %v755_v14 }
 0x12b   : > { %v2823_v23 = vadd.f32 %v2103_v18, %v2620_v36  ;;  %2152 = vmatmul.mubr.msk.bf16.gmra.mxu1 %vm333_vm1, %v1058_v8  ;;  %v948_v2 = vadd.f32 1.0, %v2268_v19  ;;  %2281 = verf.f32 %v830_v10  ;;  %v828_v27 = vmul.f32 0.70710677, %v2818_v17 }
 0x12c   : > { %v644_v29 = vpop.f32.mrf.mxu0  ;;  %v1014_v11 = vmul.f32 %v950_v26, %v758_v21  ;;  %v766_v21 = vmul.f32 0.5, %v2812_v37 }
 0x12d   : > { %v2830_v4 = vadd.f32 %v2620_v36, %v644_v29  ;;  %v1012_v12 = vmul.f32 %v948_v2, %v756_v44  ;;  %2283 = verf.f32 %v828_v27  ;;  %v833_v59 = vmul.f32 0.70710677, %v2823_v23 }
 0x12e   : > { %v2270_v22 = vpop.eup %2269  ;;  %v2104_v32 = vpop.f32.mrf.mxu0  ;;  %v1060_v43 = vpack.c.bf16 %v1014_v11, %v1013_v13  ;;  %v763_v2 = vmul.f32 0.5, %v2809_v0  ;;  %v764_v27 = vmul.f32 0.5, %v2818_v17 }
 0x12f   : > { %v831_v15 = vmul.f32 0.70710677, %v2830_v4  ;;  %v2272_v53 = vpop.eup %2271  ;;  %v1059_v62 = vpack.c.bf16 %v1012_v12, %v1011_v31  ;;  %v951_v35 = vadd.f32 1.0, %v2270_v22  ;;  %v2836_v49 = vadd.f32 %v2104_v32, %v2620_v36 }
 0x130   : > { %v647_v39 = vpop.f32.mrf.mxu0  ;;  %v2274_v40 = vpop.eup %2273  ;;  %v953_v51 = vadd.f32 1.0, %v2272_v53  ;;  %v765_v22 = vmul.f32 0.5, %v2801_v38 }
 0x131   : > { %2285 = verf.f32 %v831_v15  ;;  %v2840_v46 = vadd.f32 %v2620_v36, %v647_v39  ;;  %v954_v25 = vadd.f32 1.0, %v2274_v40  ;;  %v834_v30 = vmul.f32 0.70710677, %v2836_v49  ;;  %2155 = vmatprep.mubr.msk.bf16.mxu1 %vm333_vm1, %v1059_v62 }
 0x132   : > { %v2276_v47 = vpop.eup %2275  ;;  %2287 = verf.f32 %v833_v59  ;;  %v2107_v28 = vpop.f32.mrf.mxu0  ;;  %v1015_v57 = vmul.f32 %v951_v35, %v759_v34  ;;  %v1017_v3 = vmul.f32 %v953_v51, %v761_v33  ;;  %v767_v34 = vmul.f32 0.5, %v2830_v4 }
 0x133   : > { %v952_v54 = vadd.f32 1.0, %v2276_v47  ;;  %v832_v55 = vmul.f32 0.70710677, %v2840_v46  ;;  %v2847_v56 = vadd.f32 %v2107_v28, %v2620_v36  ;;  %2156 = vmatmul.mubr.msk.bf16.gmra.mxu1 %vm333_vm1, %v1060_v43  ;;  %2289 = verf.f32 %v834_v30 }
 0x134   : > { %v660_v41 = vpop.f32.mrf.mxu0  ;;  %v1018_v58 = vmul.f32 %v954_v25, %v762_v45  ;;  %v770_v38 = vmul.f32 0.5, %v2836_v49  ;;  %v768_v28 = vmul.f32 0.5, %v2840_v46  ;;  %v769_v33 = vmul.f32 0.5, %v2823_v23 }
 0x135   : > { %v1016_v60 = vmul.f32 %v952_v54, %v760_v48  ;;  %2291 = verf.f32 %v832_v55  ;;  %v837_v61 = vmul.f32 0.70710677, %v2847_v56  ;;  %v2853_v63 = vadd.f32 %v2620_v36, %v660_v41  ;;  %v2278_v1 = vpop.eup %2277 }
 0x136   : > { %v2108_v42 = vpop.f32.mrf.mxu0  ;;  %v2280_v6 = vpop.eup %2279  ;;  %v1062_v26 = vpack.c.bf16 %v1018_v58, %v1017_v3  ;;  %v957_v20 = vadd.f32 1.0, %v2278_v1 }
 0x137   : > { %v1061_v50 = vpack.c.bf16 %v1016_v60, %v1015_v57  ;;  %v2856_v24 = vadd.f32 %v2108_v42, %v2620_v36  ;;  %v835_v5 = vmul.f32 0.70710677, %v2853_v63  ;;  %2293 = verf.f32 %v837_v61 }
 0x138   : > { %v663_v7 = vpop.f32.mrf.mxu0  ;;  %v2282_v8 = vpop.eup %2281  ;;  %v955_v14 = vadd.f32 1.0, %v2280_v6  ;;  %v1021_v0 = vmul.f32 %v957_v20, %v765_v22  ;;  %v771_v20 = vmul.f32 0.5, %v2853_v63 }
 0x139   : > { %v838_v9 = vmul.f32 0.70710677, %v2856_v24  ;;  %v2861_v10 = vadd.f32 %v2620_v36, %v663_v7  ;;  %2159 = vmatprep.mubr.msk.bf16.mxu1 %vm333_vm1, %v1061_v50  ;;  %v958_v16 = vadd.f32 1.0, %v2282_v8  ;;  %2295 = verf.f32 %v835_v5 }
 0x13a   : > { %v2111_v18 = vpop.f32.mrf.mxu0  ;;  %v2284_v19 = vpop.eup %2283  ;;  %v1019_v59 = vmul.f32 %v955_v14, %v763_v2 }
 0x13b   : > { %2297 = verf.f32 %v838_v9  ;;  %v836_v44 = vmul.f32 0.70710677, %v2861_v10  ;;  %2160 = vmatmul.mubr.msk.bf16.gmra.mxu1 %vm333_vm1, %v1062_v26  ;;  %v956_v29 = vadd.f32 1.0, %v2284_v19  ;;  %v2870_v52 = vadd.f32 %v2111_v18, %v2620_v36 }
 0x13c   : > { %v676_v11 = vpop.f32.mrf.mxu0  ;;  %v1022_v31 = vmul.f32 %v958_v16, %v766_v21  ;;  %v774_v21 = vmul.f32 0.5, %v2856_v24 }
 0x13d   : > { %2299 = verf.f32 %v836_v44  ;;  %v2874_v37 = vadd.f32 %v2620_v36, %v676_v11  ;;  %v1020_v32 = vmul.f32 %v956_v29, %v764_v27  ;;  %v841_v17 = vmul.f32 0.70710677, %v2870_v52 }
 0x13e   : > { %v2286_v12 = vpop.eup %2285  ;;  %v2112_v13 = vpop.f32.mrf.mxu0  ;;  %v1064_v43 = vpack.c.bf16 %v1022_v31, %v1021_v0  ;;  %v772_v27 = vmul.f32 0.5, %v2861_v10  ;;  %v773_v11 = vmul.f32 0.5, %v2847_v56 }
 0x13f   : > { %v2288_v15 = vpop.eup %2287  ;;  %v839_v53 = vmul.f32 0.70710677, %v2874_v37  ;;  %v1063_v62 = vpack.c.bf16 %v1020_v32, %v1019_v59  ;;  %v2881_v35 = vadd.f32 %v2112_v13, %v2620_v36  ;;  %v959_v45 = vadd.f32 1.0, %v2286_v12 }
 0x140   : > { %v679_v39 = vpop.f32.mrf.mxu0  ;;  %v2290_v40 = vpop.eup %2289  ;;  %v961_v48 = vadd.f32 1.0, %v2288_v15 }
 0x141   : > { %2301 = verf.f32 %v839_v53  ;;  %v2884_v47 = vadd.f32 %v2620_v36, %v679_v39  ;;  %v962_v30 = vadd.f32 1.0, %v2290_v40  ;;  %v842_v4 = vmul.f32 0.70710677, %v2881_v35  ;;  %2163 = vmatprep.mubr.msk.bf16.mxu1 %vm333_vm1, %v1063_v62 }
 0x142   : > { %v2292_v25 = vpop.eup %2291  ;;  %v2115_v49 = vpop.f32.mrf.mxu0  ;;  %2303 = verf.f32 %v841_v17  ;;  %v1023_v46 = vmul.f32 %v959_v45, %v767_v34  ;;  %v1025_v61 = vmul.f32 %v961_v48, %v769_v33  ;;  %v775_v62 = vmul.f32 0.5, %v2874_v37  ;;  %v2453_v45 = vld [vmem:[%s3370_s2] ss:$0 sm:$0xff] }
 0x143   : > { %v960_v51 = vadd.f32 1.0, %v2292_v25  ;;  %v840_v54 = vmul.f32 0.70710677, %v2884_v47  ;;  %v2891_v55 = vadd.f32 %v2115_v49, %v2620_v36  ;;  %2164 = vmatmul.mubr.msk.bf16.gmra.mxu1 %vm333_vm1, %v1064_v43  ;;  %v1026_v57 = vmul.f32 %v962_v30, %v770_v38 }
 0x144   : > { %2305 = verf.f32 %v842_v4  ;;  %v692_v41 = vpop.f32.mrf.mxu0  ;;  %v2294_v60 = vpop.eup %2293  ;;  %v778_v30 = vmul.f32 0.5, %v2881_v35  ;;  %v776_v37 = vmul.f32 0.5, %v2884_v47 }
 0x145   : > { %v1024_v58 = vmul.f32 %v960_v51, %v768_v28  ;;  %2307 = verf.f32 %v840_v54  ;;  %v845_v42 = vmul.f32 0.70710677, %v2891_v55  ;;  %v2897_v1 = vadd.f32 %v2620_v36, %v692_v41 }
 0x146   : > { %v2116_v3 = vpop.f32.mrf.mxu0  ;;  %v2296_v50 = vpop.eup %2295  ;;  %v1066_v7 = vpack.c.bf16 %v1026_v57, %v1025_v61  ;;  %v965_v2 = vadd.f32 1.0, %v2294_v60  ;;  %v777_v54 = vmul.f32 0.5, %v2870_v52 }
 0x147   : > { %v1065_v6 = vpack.c.bf16 %v1024_v58, %v1023_v46  ;;  %v2900_v5 = vadd.f32 %v2116_v3, %v2620_v36  ;;  %v963_v8 = vadd.f32 1.0, %v2296_v50  ;;  %v843_v26 = vmul.f32 0.70710677, %v2897_v1 }
 0x148   : > { %v2298_v23 = vpop.eup %2297  ;;  %v695_v9 = vpop.f32.mrf.mxu0  ;;  %2309 = verf.f32 %v845_v42  ;;  %v1029_v15 = vmul.f32 %v965_v2, %v773_v11  ;;  %v779_v52 = vmul.f32 0.5, %v2897_v1 }
 0x149   : > { %v966_v14 = vadd.f32 1.0, %v2298_v23  ;;  %v846_v16 = vmul.f32 0.70710677, %v2900_v5  ;;  %v2905_v18 = vadd.f32 %v2620_v36, %v695_v9  ;;  %2167 = vmatprep.mubr.msk.bf16.mxu1 %vm333_vm1, %v1065_v6  ;;  %2311 = verf.f32 %v843_v26 }
 0x14a   : > { %v2300_v19 = vpop.eup %2299  ;;  %v2119_v44 = vpop.f32.mrf.mxu0  ;;  %v1027_v63 = vmul.f32 %v963_v8, %v771_v20  ;;  %v782_v23 = vmul.f32 0.5, %v2900_v5  ;;  %v781_v26 = vmul.f32 0.5, %v2891_v55 }
 0x14b   : > { %v964_v29 = vadd.f32 1.0, %v2300_v19  ;;  %2313 = verf.f32 %v846_v16  ;;  %2168 = vmatmul.mubr.msk.bf16.gmra.mxu1 %vm333_vm1, %v1066_v7  ;;  %v844_v22 = vmul.f32 0.70710677, %v2905_v18  ;;  %v2915_v31 = vadd.f32 %v2119_v44, %v2620_v36 }
 0x14c   : > { %v708_v12 = vpop.f32.mrf.mxu0  ;;  %v1030_v59 = vmul.f32 %v966_v14, %v774_v21  ;;  %v780_v7 = vmul.f32 0.5, %v2905_v18 }
 0x14d   : > { %v1028_v24 = vmul.f32 %v964_v29, %v772_v27  ;;  %v709_v32 = vadd.f32 %v2620_v36, %v708_v12  ;;  %2315 = verf.f32 %v844_v22  ;;  %v849_v17 = vmul.f32 0.70710677, %v2915_v31 }
 0x14e   : > { %v2302_v13 = vpop.eup %2301  ;;  %v2120_v10 = vpop.f32.mrf.mxu0  ;;  %v1068_v40 = vpack.c.bf16 %v1030_v59, %v1029_v15  ;;  %v785_v55 = vmul.f32 0.5, %v2915_v31 }
 0x14f   : > { %v1067_v0 = vpack.c.bf16 %v1028_v24, %v1027_v63  ;;  %v847_v53 = vmul.f32 0.70710677, %v709_v32  ;;  %v2304_v56 = vpop.eup %2303  ;;  %v720_v34 = vadd.f32 %v2120_v10, %v2620_v36  ;;  %v967_v43 = vadd.f32 1.0, %v2302_v13 }
 0x150   : > { %v711_v38 = vpop.f32.mrf.mxu0  ;;  %v969_v36 = vadd.f32 1.0, %v2304_v56  ;;  %v783_v11 = vmul.f32 0.5, %v709_v32  ;;  %v2943_v32 = vld [vmem:[%s3372_s4] ss:$0 sm:$0xff] }
 0x151   : > { %v2306_v39 = vpop.eup %2305  ;;  %2317 = verf.f32 %v847_v53  ;;  %v712_v25 = vadd.f32 %v2453_v45, %v711_v38  ;;  %2171 = vmatprep.mubr.msk.bf16.mxu1 %vm333_vm1, %v1067_v0  ;;  %v850_v4 = vmul.f32 0.70710677, %v720_v34  ;;  %v1031_v33 = vmul.f32 %v967_v43, %v775_v62 }
 0x152   : > { %v2308_v48 = vpop.eup %2307  ;;  %v970_v28 = vadd.f32 1.0, %v2306_v39  ;;  %2319 = verf.f32 %v849_v17  ;;  %v1033_v35 = vmul.f32 %v969_v36, %v777_v54  ;;  %v786_v18 = vmul.f32 0.5, %v720_v34 }
 0x153   : > { %v968_v49 = vadd.f32 1.0, %v2308_v48  ;;  %v848_v51 = vmul.f32 0.70710677, %v712_v25  ;;  %2172 = vmatmul.mubr.msk.bf16.gmra.mxu1 %vm333_vm1, %v1068_v40  ;;  %2321 = verf.f32 %v850_v4  ;;  %v784_v12 = vmul.f32 0.5, %v712_v25 }
 0x154   : > { %v1034_v57 = vmul.f32 %v970_v28, %v778_v30 }
 0x155   : > { %v1032_v41 = vmul.f32 %v968_v49, %v776_v37  ;;  %2323 = verf.f32 %v848_v51  ;;  %v2310_v46 = vpop.eup %2309 }
 0x156   : > { %v2312_v58 = vpop.eup %2311  ;;  %v1070_v47 = vpack.c.bf16 %v1034_v57, %v1033_v35  ;;  %v973_v6 = vadd.f32 1.0, %v2310_v46 }
 0x157   : > { %v1069_v60 = vpack.c.bf16 %v1032_v41, %v1031_v33  ;;  %v971_v3 = vadd.f32 1.0, %v2312_v58 }
 0x158   : > { %v2314_v61 = vpop.eup %2313  ;;  %v1037_v20 = vmul.f32 %v973_v6, %v781_v26 }
 0x159   : > { %v974_v42 = vadd.f32 1.0, %v2314_v61  ;;  %2175 = vmatprep.mubr.msk.bf16.mxu1 %vm333_vm1, %v1069_v60  ;;  %v1035_v16 = vmul.f32 %v971_v3, %v779_v52 }
 0x15a   : > { %v2316_v50 = vpop.eup %2315 }
 0x15b   : > { %2176 = vmatmul.mubr.msk.bf16.gmra.mxu1 %vm333_vm1, %v1070_v47  ;;  %v972_v8 = vadd.f32 1.0, %v2316_v50  ;;  %v1038_v9 = vmul.f32 %v974_v42, %v782_v23 }
 0x15d   : > { %v1036_v19 = vmul.f32 %v972_v8, %v780_v7  ;;  %v1072_v27 = vpack.c.bf16 %v1038_v9, %v1037_v20 }
 0x15e   : > { %v2318_v14 = vpop.eup %2317 }
 0x15f   : > { %v2320_v21 = vpop.eup %2319  ;;  %v1071_v44 = vpack.c.bf16 %v1036_v19, %v1035_v16  ;;  %v975_v29 = vadd.f32 1.0, %v2318_v14 }
 0x160   : > { %v2322_v2 = vpop.eup %2321  ;;  %v977_v1 = vadd.f32 1.0, %v2320_v21 }
 0x161   : > { %v978_v22 = vadd.f32 1.0, %v2322_v2  ;;  %2179 = vmatprep.mubr.msk.bf16.mxu1 %vm333_vm1, %v1071_v44  ;;  %v1039_v59 = vmul.f32 %v975_v29, %v783_v11 }
 0x162   : > { %v2324_v5 = vpop.eup %2323  ;;  %v1041_v10 = vmul.f32 %v977_v1, %v785_v55 }
 0x163   : > { %v976_v63 = vadd.f32 1.0, %v2324_v5  ;;  %2180 = vmatmul.mubr.msk.bf16.gmra.mxu1 %vm333_vm1, %v1072_v27  ;;  %v1042_v24 = vmul.f32 %v978_v22, %v786_v18 }
 0x165   : > { %v1040_v13 = vmul.f32 %v976_v63, %v784_v12  ;;  %v1074_v0 = vpack.c.bf16 %v1042_v24, %v1041_v10 }
 0x167   : > { %v1073_v15 = vpack.c.bf16 %v1040_v13, %v1039_v59 }
 0x169   : > { %2183 = vmatprep.mubr.msk.bf16.mxu1 %vm333_vm1, %v1073_v15 }
 0x16b   : > { %2184 = vmatmul.mubr.msk.bf16.gmra.mxu1 %vm333_vm1, %v1074_v0 }
 0x1b3   : > { %v2125_v17 = vpop.f32.mrf.mxu1 }
 0x1b4   : > { %v1225_v53 = vadd.f32 %v2125_v17, %v2943_v32 }
 0x1b5   : > { %v1216_v56 = vpop.f32.mrf.mxu1 }
 0x1b6   : > { %v1537_v31 = vmul.f32 0.70710677, %v1225_v53  ;;  %v1217_v62 = vadd.f32 %v2943_v32, %v1216_v56  ;;  %v1473_v61 = vmul.f32 0.5, %v1225_v53 }
 0x1b7   : > { %v2126_v34 = vpop.f32.mrf.mxu1 }
 0x1b8   : > { %2325 = verf.f32 %v1537_v31  ;;  %v1535_v38 = vmul.f32 0.70710677, %v1217_v62  ;;  %v1228_v39 = vadd.f32 %v2126_v34, %v2943_v32  ;;  %v1471_v50 = vmul.f32 0.5, %v1217_v62 }
 0x1b9   : > { %v1219_v40 = vpop.f32.mrf.mxu1 }
 0x1ba   : > { %2327 = verf.f32 %v1535_v38  ;;  %v1538_v43 = vmul.f32 0.70710677, %v1228_v39  ;;  %v1220_v45 = vadd.f32 %v2943_v32, %v1219_v40  ;;  %v1474_v19 = vmul.f32 0.5, %v1228_v39 }
 0x1bb   : > { %v2129_v25 = vpop.f32.mrf.mxu1 }
 0x1bc   : > { %2329 = verf.f32 %v1538_v43  ;;  %v1536_v48 = vmul.f32 0.70710677, %v1220_v45  ;;  %v1241_v30 = vadd.f32 %v2129_v25, %v2943_v32  ;;  %v1472_v2 = vmul.f32 0.5, %v1220_v45 }
 0x1bd   : > { %v1232_v28 = vpop.f32.mrf.mxu1 }
 0x1be   : > { %2331 = verf.f32 %v1536_v48  ;;  %v1541_v37 = vmul.f32 0.70710677, %v1241_v30  ;;  %v1233_v4 = vadd.f32 %v2943_v32, %v1232_v28  ;;  %v1477_v55 = vmul.f32 0.5, %v1241_v30 }
 0x1bf   : > { %v2130_v36 = vpop.f32.mrf.mxu1 }
 0x1c0   : > { %2333 = verf.f32 %v1541_v37  ;;  %v1539_v49 = vmul.f32 0.70710677, %v1233_v4  ;;  %v2952_v51 = vadd.f32 %v2130_v36, %v2943_v32  ;;  %v1475_v10 = vmul.f32 0.5, %v1233_v4 }
 0x1c1   : > { %v1235_v54 = vpop.f32.mrf.mxu1 }
 0x1c2   : > { %2335 = verf.f32 %v1539_v49  ;;  %v1542_v33 = vmul.f32 0.70710677, %v2952_v51  ;;  %v2956_v57 = vadd.f32 %v2943_v32, %v1235_v54  ;;  %v1478_v39 = vmul.f32 0.5, %v2952_v51 }
 0x1c3   : > { %v2133_v41 = vpop.f32.mrf.mxu1 }
 0x1c4   : > { %2337 = verf.f32 %v1542_v33  ;;  %v1540_v46 = vmul.f32 0.70710677, %v2956_v57  ;;  %v2960_v58 = vadd.f32 %v2133_v41, %v2943_v32  ;;  %v1476_v25 = vmul.f32 0.5, %v2956_v57 }
 0x1c5   : > { %v2326_v35 = vpop.eup %2325  ;;  %v1248_v60 = vpop.f32.mrf.mxu1 }
 0x1c6   : > { %v1665_v47 = vadd.f32 1.0, %v2326_v35  ;;  %2339 = verf.f32 %v1540_v46  ;;  %v1545_v42 = vmul.f32 0.70710677, %v2960_v58  ;;  %v2971_v6 = vadd.f32 %v2943_v32, %v1248_v60 }
 0x1c7   : > { %v2328_v3 = vpop.eup %2327  ;;  %v2134_v23 = vpop.f32.mrf.mxu1  ;;  %v1481_v33 = vmul.f32 0.5, %v2960_v58 }
 0x1c8   : > { %v1729_v52 = vmul.f32 %v1665_v47, %v1473_v61  ;;  %v1663_v7 = vadd.f32 1.0, %v2328_v3  ;;  %2341 = verf.f32 %v1545_v42  ;;  %v2974_v8 = vadd.f32 %v2134_v23, %v2943_v32 }
 0x1c9   : > { %v2330_v26 = vpop.eup %2329  ;;  %v1543_v9 = vmul.f32 0.70710677, %v2971_v6  ;;  %v1251_v14 = vpop.f32.mrf.mxu1  ;;  %v1479_v58 = vmul.f32 0.5, %v2971_v6 }
 0x1ca   : > { %1794 = vst.msk [vmem:[%s2968_s12 + $0x10] sm:$0xff] %vm1791_vm2, %v1729_v52  ;;  %v1727_v16 = vmul.f32 %v1663_v7, %v1471_v50  ;;  %v1666_v20 = vadd.f32 1.0, %v2330_v26  ;;  %v1546_v21 = vmul.f32 0.70710677, %v2974_v8  ;;  %v2981_v27 = vadd.f32 %v2943_v32, %v1251_v14 }
 0x1cb   : > { %v2332_v44 = vpop.eup %2331  ;;  %2343 = verf.f32 %v1543_v9  ;;  %v2137_v29 = vpop.f32.mrf.mxu1  ;;  %v1482_v52 = vmul.f32 0.5, %v2974_v8 }
 0x1cc   : > { %1792 = vst.msk [vmem:[%s2968_s12] sm:$0xff] %vm1791_vm2, %v1727_v16  ;;  %v1730_v5 = vmul.f32 %v1666_v20, %v1474_v19  ;;  %v1664_v11 = vadd.f32 1.0, %v2332_v44  ;;  %2345 = verf.f32 %v1546_v21  ;;  %v2986_v22 = vadd.f32 %v2137_v29, %v2943_v32 }
 0x1cd   : > { %v2334_v1 = vpop.eup %2333  ;;  %v1544_v18 = vmul.f32 0.70710677, %v2981_v27  ;;  %v1264_v12 = vpop.f32.mrf.mxu1  ;;  %v1480_v8 = vmul.f32 0.5, %v2981_v27 }
 0x1ce   : > { %1795 = vst.msk [vmem:[%s2968_s12 + $0x18] sm:$0xff] %vm1791_vm2, %v1730_v5  ;;  %v1728_v63 = vmul.f32 %v1664_v11, %v1472_v2  ;;  %v1669_v59 = vadd.f32 1.0, %v2334_v1  ;;  %v1549_v24 = vmul.f32 0.70710677, %v2986_v22  ;;  %v2993_v15 = vadd.f32 %v2943_v32, %v1264_v12 }
 0x1cf   : > { %v2336_v13 = vpop.eup %2335  ;;  %2347 = verf.f32 %v1544_v18  ;;  %v2138_v0 = vpop.f32.mrf.mxu1  ;;  %v1485_v5 = vmul.f32 0.5, %v2986_v22 }
 0x1d0   : > { %1793 = vst.msk [vmem:[%s2968_s12 + $0x8] sm:$0xff] %vm1791_vm2, %v1728_v63  ;;  %v1733_v17 = vmul.f32 %v1669_v59, %v1477_v55  ;;  %v1667_v53 = vadd.f32 1.0, %v2336_v13  ;;  %2349 = verf.f32 %v1549_v24  ;;  %v2998_v56 = vadd.f32 %v2138_v0, %v2943_v32 }
 0x1d1   : > { %v2338_v31 = vpop.eup %2337  ;;  %v1547_v62 = vmul.f32 0.70710677, %v2993_v15  ;;  %v1267_v34 = vpop.f32.mrf.mxu1  ;;  %v1483_v22 = vmul.f32 0.5, %v2993_v15 }
 0x1d2   : > { %1798 = vst.msk [vmem:[%s2968_s12 + $0x30] sm:$0xff] %vm1791_vm2, %v1733_v17  ;;  %v1731_v38 = vmul.f32 %v1667_v53, %v1475_v10  ;;  %v1670_v40 = vadd.f32 1.0, %v2338_v31  ;;  %v1550_v43 = vmul.f32 0.70710677, %v2998_v56  ;;  %v3007_v48 = vadd.f32 %v2943_v32, %v1267_v34 }
 0x1d3   : > { %v2340_v45 = vpop.eup %2339  ;;  %2351 = verf.f32 %v1547_v62  ;;  %v2141_v30 = vpop.f32.mrf.mxu1  ;;  %v1486_v17 = vmul.f32 0.5, %v2998_v56 }
 0x1d4   : > { %1796 = vst.msk [vmem:[%s2968_s12 + $0x20] sm:$0xff] %vm1791_vm2, %v1731_v38  ;;  %v1734_v28 = vmul.f32 %v1670_v40, %v1478_v39  ;;  %v1668_v37 = vadd.f32 1.0, %v2340_v45  ;;  %2353 = verf.f32 %v1550_v43  ;;  %v3012_v4 = vadd.f32 %v2141_v30, %v2943_v32 }
 0x1d5   : > { %v2342_v36 = vpop.eup %2341  ;;  %v1548_v49 = vmul.f32 0.70710677, %v3007_v48  ;;  %v1280_v51 = vpop.f32.mrf.mxu1  ;;  %v1484_v56 = vmul.f32 0.5, %v3007_v48 }
 0x1d6   : > { %1799 = vst.msk [vmem:[%s2968_s12 + $0x38] sm:$0xff] %vm1791_vm2, %v1734_v28  ;;  %v1732_v54 = vmul.f32 %v1668_v37, %v1476_v25  ;;  %v1673_v57 = vadd.f32 1.0, %v2342_v36  ;;  %v1553_v41 = vmul.f32 0.70710677, %v3012_v4  ;;  %v3020_v46 = vadd.f32 %v2943_v32, %v1280_v51 }
 0x1d7   : > { %2355 = verf.f32 %v1548_v49  ;;  %v2142_v35 = vpop.f32.mrf.mxu1  ;;  %v1489_v28 = vmul.f32 0.5, %v3012_v4 }
 0x1d8   : > { %v2344_v60 = vpop.eup %2343  ;;  %1797 = vst.msk [vmem:[%s2968_s12 + $0x28] sm:$0xff] %vm1791_vm2, %v1732_v54  ;;  %v1737_v61 = vmul.f32 %v1673_v57, %v1481_v33  ;;  %2357 = verf.f32 %v1553_v41  ;;  %v3025_v47 = vadd.f32 %v2142_v35, %v2943_v32  ;;  %v1551_v50 = vmul.f32 0.70710677, %v3020_v46 }
 0x1d9   : > { %v2346_v42 = vpop.eup %2345  ;;  %v1671_v3 = vadd.f32 1.0, %v2344_v60  ;;  %v1283_v23 = vpop.f32.mrf.mxu1  ;;  %v1487_v4 = vmul.f32 0.5, %v3020_v46 }
 0x1da   : > { %1802 = vst.msk [vmem:[%s2968_s12 + $0x50] sm:$0xff] %vm1791_vm2, %v1737_v61  ;;  %v1674_v7 = vadd.f32 1.0, %v2346_v42  ;;  %v1554_v26 = vmul.f32 0.70710677, %v3025_v47  ;;  %v3034_v9 = vadd.f32 %v2943_v32, %v1283_v23  ;;  %2359 = verf.f32 %v1551_v50 }
 0x1db   : > { %v1735_v14 = vmul.f32 %v1671_v3, %v1479_v58  ;;  %v2145_v16 = vpop.f32.mrf.mxu1  ;;  %v1490_v42 = vmul.f32 0.5, %v3025_v47 }
 0x1dc   : > { %v2348_v6 = vpop.eup %2347  ;;  %v1738_v19 = vmul.f32 %v1674_v7, %v1482_v52  ;;  %2361 = verf.f32 %v1554_v26  ;;  %v1552_v20 = vmul.f32 0.70710677, %v3034_v9  ;;  %v3041_v2 = vadd.f32 %v2145_v16, %v2943_v32 }
 0x1dd   : > { %v2350_v21 = vpop.eup %2349  ;;  %1800 = vst.msk [vmem:[%s2968_s12 + $0x40] sm:$0xff] %vm1791_vm2, %v1735_v14  ;;  %v1672_v44 = vadd.f32 1.0, %v2348_v6  ;;  %v1296_v29 = vpop.f32.mrf.mxu1  ;;  %v1488_v26 = vmul.f32 0.5, %v3034_v9 }
 0x1de   : > { %1803 = vst.msk [vmem:[%s2968_s12 + $0x58] sm:$0xff] %vm1791_vm2, %v1738_v19  ;;  %v1677_v11 = vadd.f32 1.0, %v2350_v21  ;;  %2363 = verf.f32 %v1552_v20  ;;  %v3047_v1 = vadd.f32 %v2943_v32, %v1296_v29  ;;  %v1557_v12 = vmul.f32 0.70710677, %v3041_v2 }
 0x1df   : > { %v1736_v18 = vmul.f32 %v1672_v44, %v1480_v8  ;;  %v2146_v27 = vpop.f32.mrf.mxu1  ;;  %v1493_v8 = vmul.f32 0.5, %v3041_v2 }
 0x1e0   : > { %v2352_v63 = vpop.eup %2351  ;;  %v1741_v55 = vmul.f32 %v1677_v11, %v1485_v5  ;;  %v1555_v59 = vmul.f32 0.70710677, %v3047_v1  ;;  %v3052_v24 = vadd.f32 %v2146_v27, %v2943_v32  ;;  %2365 = verf.f32 %v1557_v12 }
 0x1e1   : > { %v2354_v13 = vpop.eup %2353  ;;  %1801 = vst.msk [vmem:[%s2968_s12 + $0x48] sm:$0xff] %vm1791_vm2, %v1736_v18  ;;  %v1675_v10 = vadd.f32 1.0, %v2352_v63  ;;  %v1299_v0 = vpop.f32.mrf.mxu1  ;;  %v1491_v11 = vmul.f32 0.5, %v3047_v1 }
 0x1e2   : > { %1806 = vst.msk [vmem:[%s2968_s12 + $0x70] sm:$0xff] %vm1791_vm2, %v1741_v55  ;;  %v1678_v53 = vadd.f32 1.0, %v2354_v13  ;;  %2367 = verf.f32 %v1555_v59  ;;  %v1558_v31 = vmul.f32 0.70710677, %v3052_v24  ;;  %v3062_v34 = vadd.f32 %v2943_v32, %v1299_v0 }
 0x1e3   : > { %v1739_v62 = vmul.f32 %v1675_v10, %v1483_v22  ;;  %v2149_v38 = vpop.f32.mrf.mxu1  ;;  %v1494_v13 = vmul.f32 0.5, %v3052_v24 }
 0x1e4   : > { %v2356_v39 = vpop.eup %2355  ;;  %v1742_v15 = vmul.f32 %v1678_v53, %v1486_v17  ;;  %2369 = verf.f32 %v1558_v31  ;;  %v3065_v40 = vadd.f32 %v2149_v38, %v2943_v32  ;;  %v1556_v25 = vmul.f32 0.70710677, %v3062_v34 }
 0x1e5   : > { %v2358_v43 = vpop.eup %2357  ;;  %1804 = vst.msk [vmem:[%s2968_s12 + $0x60] sm:$0xff] %vm1791_vm2, %v1739_v62  ;;  %v1676_v45 = vadd.f32 1.0, %v2356_v39  ;;  %v1312_v30 = vpop.f32.mrf.mxu1  ;;  %v1492_v24 = vmul.f32 0.5, %v3062_v34 }
 0x1e6   : > { %1807 = vst.msk [vmem:[%s2968_s12 + $0x78] sm:$0xff] %vm1791_vm2, %v1742_v15  ;;  %v1681_v37 = vadd.f32 1.0, %v2358_v43  ;;  %v1561_v36 = vmul.f32 0.70710677, %v3065_v40  ;;  %v3076_v49 = vadd.f32 %v2943_v32, %v1312_v30  ;;  %2371 = verf.f32 %v1556_v25 }
 0x1e7   : > { %v1740_v51 = vmul.f32 %v1676_v45, %v1484_v56  ;;  %v2150_v54 = vpop.f32.mrf.mxu1  ;;  %v2360_v48 = vpop.eup %2359  ;;  %v1497_v43 = vmul.f32 0.5, %v3065_v40 }
 0x1e8   : > { %v1745_v33 = vmul.f32 %v1681_v37, %v1489_v28  ;;  %2373 = verf.f32 %v1561_v36  ;;  %v1559_v57 = vmul.f32 0.70710677, %v3076_v49  ;;  %v1679_v35 = vadd.f32 1.0, %v2360_v48 }
 0x1e9   : > { %v2362_v41 = vpop.eup %2361  ;;  %1805 = vst.msk [vmem:[%s2968_s12 + $0x68] sm:$0xff] %vm1791_vm2, %v1740_v51  ;;  %v3083_v60 = vadd.f32 %v2150_v54, %v2943_v32  ;;  %v1315_v61 = vpop.f32.mrf.mxu1  ;;  %v1495_v36 = vmul.f32 0.5, %v3076_v49 }
 0x1ea   : > { %1810 = vst.msk [vmem:[%s2968_s12 + $0x90] sm:$0xff] %vm1791_vm2, %v1745_v33  ;;  %v1682_v58 = vadd.f32 1.0, %v2362_v41  ;;  %2375 = verf.f32 %v1559_v57  ;;  %v3089_v3 = vadd.f32 %v2943_v32, %v1315_v61  ;;  %v1743_v23 = vmul.f32 %v1679_v35, %v1487_v4 }
 0x1eb   : > { %v2364_v50 = vpop.eup %2363  ;;  %v1562_v46 = vmul.f32 0.70710677, %v3083_v60  ;;  %v2153_v52 = vpop.f32.mrf.mxu1  ;;  %v1498_v49 = vmul.f32 0.5, %v3083_v60 }
 0x1ec   : > { %v1746_v7 = vmul.f32 %v1682_v58, %v1490_v42  ;;  %v1680_v14 = vadd.f32 1.0, %v2364_v50  ;;  %v1560_v16 = vmul.f32 0.70710677, %v3089_v3  ;;  %1808 = vst.msk [vmem:[%s2968_s12 + $0x80] sm:$0xff] %vm1791_vm2, %v1743_v23  ;;  %v3097_v47 = vadd.f32 %v2153_v52, %v2943_v32 }
 0x1ed   : > { %2377 = verf.f32 %v1562_v46  ;;  %v1328_v6 = vpop.f32.mrf.mxu1  ;;  %v2366_v19 = vpop.eup %2365  ;;  %v1496_v58 = vmul.f32 0.5, %v3089_v3 }
 0x1ee   : > { %1811 = vst.msk [vmem:[%s2968_s12 + $0x98] sm:$0xff] %vm1791_vm2, %v1746_v7  ;;  %v1744_v20 = vmul.f32 %v1680_v14, %v1488_v26  ;;  %2379 = verf.f32 %v1560_v16  ;;  %v3102_v21 = vadd.f32 %v2943_v32, %v1328_v6  ;;  %v1685_v44 = vadd.f32 1.0, %v2366_v19 }
 0x1ef   : > { %v2368_v9 = vpop.eup %2367  ;;  %v1565_v29 = vmul.f32 0.70710677, %v3097_v47  ;;  %v2154_v5 = vpop.f32.mrf.mxu1  ;;  %v1501_v3 = vmul.f32 0.5, %v3097_v47 }
 0x1f0   : > { %1809 = vst.msk [vmem:[%s2968_s12 + $0x88] sm:$0xff] %vm1791_vm2, %v1744_v20  ;;  %v1683_v18 = vadd.f32 1.0, %v2368_v9  ;;  %v1563_v12 = vmul.f32 0.70710677, %v3102_v21  ;;  %v3111_v27 = vadd.f32 %v2154_v5, %v2943_v32  ;;  %v1749_v55 = vmul.f32 %v1685_v44, %v1493_v8 }
 0x1f1   : > { %v2370_v63 = vpop.eup %2369  ;;  %2381 = verf.f32 %v1565_v29  ;;  %v1331_v2 = vpop.f32.mrf.mxu1  ;;  %v1499_v9 = vmul.f32 0.5, %v3102_v21 }
 0x1f2   : > { %v1747_v59 = vmul.f32 %v1683_v18, %v1491_v11  ;;  %v1686_v22 = vadd.f32 1.0, %v2370_v63  ;;  %2383 = verf.f32 %v1563_v12  ;;  %1814 = vst.msk [vmem:[%s2968_s12 + $0xb0] sm:$0xff] %vm1791_vm2, %v1749_v55  ;;  %v1566_v1 = vmul.f32 0.70710677, %v3111_v27 }
 0x1f3   : > { %v3118_v10 = vadd.f32 %v2943_v32, %v1331_v2  ;;  %v2157_v0 = vpop.f32.mrf.mxu1  ;;  %v2372_v17 = vpop.eup %2371  ;;  %v1502_v21 = vmul.f32 0.5, %v3111_v27 }
 0x1f4   : > { %1812 = vst.msk [vmem:[%s2968_s12 + $0xa0] sm:$0xff] %vm1791_vm2, %v1747_v59  ;;  %v1750_v53 = vmul.f32 %v1686_v22, %v1494_v13  ;;  %v3123_v31 = vadd.f32 %v2157_v0, %v2943_v32  ;;  %v1684_v38 = vadd.f32 1.0, %v2372_v17  ;;  %2385 = verf.f32 %v1566_v1 }
 0x1f5   : > { %v2374_v62 = vpop.eup %2373  ;;  %v1564_v39 = vmul.f32 0.70710677, %v3118_v10  ;;  %v1344_v15 = vpop.f32.mrf.mxu1  ;;  %v1500_v17 = vmul.f32 0.5, %v3118_v10 }
 0x1f6   : > { %1815 = vst.msk [vmem:[%s2968_s12 + $0xb8] sm:$0xff] %vm1791_vm2, %v1750_v53  ;;  %v1689_v56 = vadd.f32 1.0, %v2374_v62  ;;  %v1569_v45 = vmul.f32 0.70710677, %v3123_v31  ;;  %v3132_v25 = vadd.f32 %v2943_v32, %v1344_v15  ;;  %v1748_v28 = vmul.f32 %v1684_v38, %v1492_v24 }
 0x1f7   : > { %v2376_v30 = vpop.eup %2375  ;;  %2387 = verf.f32 %v1564_v39  ;;  %v2158_v34 = vpop.f32.mrf.mxu1  ;;  %v1505_v62 = vmul.f32 0.5, %v3123_v31 }
 0x1f8   : > { %v1753_v37 = vmul.f32 %v1689_v56, %v1497_v43  ;;  %v1687_v51 = vadd.f32 1.0, %v2376_v30  ;;  %2389 = verf.f32 %v1569_v45  ;;  %1813 = vst.msk [vmem:[%s2968_s12 + $0xa8] sm:$0xff] %vm1791_vm2, %v1748_v28  ;;  %v1567_v40 = vmul.f32 0.70710677, %v3132_v25 }
 0x1f9   : > { %v3139_v54 = vadd.f32 %v2158_v34, %v2943_v32  ;;  %v1347_v48 = vpop.f32.mrf.mxu1  ;;  %v1503_v31 = vmul.f32 0.5, %v3132_v25 }
 0x1fa   : > { %v2378_v33 = vpop.eup %2377  ;;  %1818 = vst.msk [vmem:[%s2968_s12 + $0xd0] sm:$0xff] %vm1791_vm2, %v1753_v37  ;;  %v1751_v57 = vmul.f32 %v1687_v51, %v1495_v36  ;;  %v3144_v41 = vadd.f32 %v2943_v32, %v1347_v48  ;;  %2391 = verf.f32 %v1567_v40 }
 0x1fb   : > { %v2380_v4 = vpop.eup %2379  ;;  %v1690_v35 = vadd.f32 1.0, %v2378_v33  ;;  %v1570_v61 = vmul.f32 0.70710677, %v3139_v54  ;;  %v2161_v42 = vpop.f32.mrf.mxu1  ;;  %v1506_v33 = vmul.f32 0.5, %v3139_v54 }
 0x1fc   : > { %1816 = vst.msk [vmem:[%s2968_s12 + $0xc0] sm:$0xff] %vm1791_vm2, %v1751_v57  ;;  %v1688_v50 = vadd.f32 1.0, %v2380_v4  ;;  %v1568_v23 = vmul.f32 0.70710677, %v3144_v41  ;;  %v3153_v46 = vadd.f32 %v2161_v42, %v2943_v32  ;;  %v1504_v4 = vmul.f32 0.5, %v3144_v41 }
 0x1fd   : > { %v1754_v52 = vmul.f32 %v1690_v35, %v1498_v49  ;;  %2393 = verf.f32 %v1570_v61  ;;  %v1360_v60 = vpop.f32.mrf.mxu1 }
 0x1fe   : > { %v2382_v7 = vpop.eup %2381  ;;  %v1752_v26 = vmul.f32 %v1688_v50, %v1496_v58  ;;  %2395 = verf.f32 %v1568_v23  ;;  %v1573_v14 = vmul.f32 0.70710677, %v3153_v46  ;;  %v3160_v19 = vadd.f32 %v2943_v32, %v1360_v60 }
 0x1ff   : > { %v2384_v16 = vpop.eup %2383  ;;  %1819 = vst.msk [vmem:[%s2968_s12 + $0xd8] sm:$0xff] %vm1791_vm2, %v1754_v52  ;;  %v1693_v6 = vadd.f32 1.0, %v2382_v7  ;;  %v2162_v20 = vpop.f32.mrf.mxu1  ;;  %v1509_v58 = vmul.f32 0.5, %v3153_v46 }
 0x200   : > { %1817 = vst.msk [vmem:[%s2968_s12 + $0xc8] sm:$0xff] %vm1791_vm2, %v1752_v26  ;;  %v1691_v8 = vadd.f32 1.0, %v2384_v16  ;;  %2397 = verf.f32 %v1573_v14  ;;  %v3166_v44 = vadd.f32 %v2162_v20, %v2943_v32  ;;  %v1571_v5 = vmul.f32 0.70710677, %v3160_v19 }
 0x201   : > { %v1757_v29 = vmul.f32 %v1693_v6, %v1501_v3  ;;  %v1363_v47 = vpop.f32.mrf.mxu1  ;;  %v2386_v11 = vpop.eup %2385  ;;  %v1507_v6 = vmul.f32 0.5, %v3160_v19 }
 0x202   : > { %v1755_v18 = vmul.f32 %v1691_v8, %v1499_v9  ;;  %v1574_v12 = vmul.f32 0.70710677, %v3166_v44  ;;  %v3171_v63 = vadd.f32 %v2943_v32, %v1363_v47  ;;  %v1694_v55 = vadd.f32 1.0, %v2386_v11 }
 0x203   : > { %1822 = vst.msk [vmem:[%s2968_s12 + $0xf0] sm:$0xff] %vm1791_vm2, %v1757_v29  ;;  %2399 = verf.f32 %v1571_v5  ;;  %v2165_v2 = vpop.f32.mrf.mxu1  ;;  %v1510_v8 = vmul.f32 0.5, %v3166_v44 }
 0x204   : > { %v2388_v59 = vpop.eup %2387  ;;  %1820 = vst.msk [vmem:[%s2968_s12 + $0xe0] sm:$0xff] %vm1791_vm2, %v1755_v18  ;;  %2401 = verf.f32 %v1574_v12  ;;  %v1572_v13 = vmul.f32 0.70710677, %v3171_v63  ;;  %v3180_v22 = vadd.f32 %v2165_v2, %v2943_v32  ;;  %v1758_v0 = vmul.f32 %v1694_v55, %v1502_v21 }
 0x205   : > { %v2390_v1 = vpop.eup %2389  ;;  %v1692_v53 = vadd.f32 1.0, %v2388_v59  ;;  %v1376_v27 = vpop.f32.mrf.mxu1  ;;  %v1508_v18 = vmul.f32 0.5, %v3171_v63 }
 0x206   : > { %v1697_v24 = vadd.f32 1.0, %v2390_v1  ;;  %2403 = verf.f32 %v1572_v13  ;;  %v1577_v38 = vmul.f32 0.70710677, %v3180_v22  ;;  %1823 = vst.msk [vmem:[%s2968_s12 + $0xf8] sm:$0xff] %vm1791_vm2, %v1758_v0  ;;  %v3188_v15 = vadd.f32 %v2943_v32, %v1376_v27 }
 0x207   : > { %v1756_v39 = vmul.f32 %v1692_v53, %v1500_v17  ;;  %v2166_v43 = vpop.f32.mrf.mxu1  ;;  %v2392_v56 = vpop.eup %2391  ;;  %v1513_v1 = vmul.f32 0.5, %v3180_v22 }
 0x208   : > { %v1761_v45 = vmul.f32 %v1697_v24, %v1505_v62  ;;  %2405 = verf.f32 %v1577_v38  ;;  %v3191_v10 = vadd.f32 %v2166_v43, %v2943_v32  ;;  %v1695_v30 = vadd.f32 1.0, %v2392_v56 }
 0x209   : > { %1821 = vst.msk [vmem:[%s2968_s12 + $0xe8] sm:$0xff] %vm1791_vm2, %v1756_v39  ;;  %v1575_v28 = vmul.f32 0.70710677, %v3188_v15  ;;  %v1379_v34 = vpop.f32.mrf.mxu1  ;;  %v1511_v22 = vmul.f32 0.5, %v3188_v15 }
 0x20a   : > { %v2394_v37 = vpop.eup %2393  ;;  %1826 = vst.msk [vmem:[%s2968_s12 + $0x110] sm:$0xff] %vm1791_vm2, %v1761_v45  ;;  %v1578_v36 = vmul.f32 0.70710677, %v3191_v10  ;;  %v3201_v51 = vadd.f32 %v2943_v32, %v1379_v34  ;;  %v1759_v48 = vmul.f32 %v1695_v30, %v1503_v31  ;;  %v1514_v31 = vmul.f32 0.5, %v3191_v10 }
 0x20b   : > { %v2396_v40 = vpop.eup %2395  ;;  %v1698_v57 = vadd.f32 1.0, %v2394_v37  ;;  %2407 = verf.f32 %v1575_v28  ;;  %v2169_v25 = vpop.f32.mrf.mxu1 }
 0x20c   : > { %v1696_v49 = vadd.f32 1.0, %v2396_v40  ;;  %2409 = verf.f32 %v1578_v36  ;;  %v1576_v35 = vmul.f32 0.70710677, %v3201_v51  ;;  %1824 = vst.msk [vmem:[%s2968_s12 + $0x100] sm:$0xff] %vm1791_vm2, %v1759_v48  ;;  %v3210_v50 = vadd.f32 %v2169_v25, %v2943_v32 }
 0x20d   : > { %v2398_v61 = vpop.eup %2397  ;;  %v1762_v42 = vmul.f32 %v1698_v57, %v1506_v33  ;;  %v1392_v54 = vpop.f32.mrf.mxu1  ;;  %v1512_v48 = vmul.f32 0.5, %v3201_v51 }
 0x20e   : > { %v1760_v23 = vmul.f32 %v1696_v49, %v1504_v4  ;;  %v1701_v52 = vadd.f32 1.0, %v2398_v61  ;;  %2411 = verf.f32 %v1576_v35  ;;  %v3213_v41 = vadd.f32 %v2943_v32, %v1392_v54 }
 0x20f   : > { %1827 = vst.msk [vmem:[%s2968_s12 + $0x118] sm:$0xff] %vm1791_vm2, %v1762_v42  ;;  %v1581_v60 = vmul.f32 0.70710677, %v3210_v50  ;;  %v2170_v7 = vpop.f32.mrf.mxu1  ;;  %v1517_v51 = vmul.f32 0.5, %v3210_v50 }
 0x210   : > { %v2400_v26 = vpop.eup %2399  ;;  %1825 = vst.msk [vmem:[%s2968_s12 + $0x108] sm:$0xff] %vm1791_vm2, %v1760_v23  ;;  %v1765_v46 = vmul.f32 %v1701_v52, %v1509_v58  ;;  %v1579_v14 = vmul.f32 0.70710677, %v3213_v41  ;;  %v3222_v16 = vadd.f32 %v2170_v7, %v2943_v32  ;;  %v1515_v23 = vmul.f32 0.5, %v3213_v41 }
 0x211   : > { %v2402_v3 = vpop.eup %2401  ;;  %v1699_v20 = vadd.f32 1.0, %v2400_v26  ;;  %2413 = verf.f32 %v1581_v60  ;;  %v1395_v9 = vpop.f32.mrf.mxu1 }
 0x212   : > { %1830 = vst.msk [vmem:[%s2968_s12 + $0x130] sm:$0xff] %vm1791_vm2, %v1765_v46  ;;  %v1702_v29 = vadd.f32 1.0, %v2402_v3  ;;  %2415 = verf.f32 %v1579_v14  ;;  %v1582_v5 = vmul.f32 0.70710677, %v3222_v16  ;;  %v3231_v12 = vadd.f32 %v2943_v32, %v1395_v9 }
 0x213   : > { %v2404_v47 = vpop.eup %2403  ;;  %v1763_v11 = vmul.f32 %v1699_v20, %v1507_v6  ;;  %v2173_v19 = vpop.f32.mrf.mxu1  ;;  %v1518_v3 = vmul.f32 0.5, %v3222_v16 }
 0x214   : > { %v1766_v21 = vmul.f32 %v1702_v29, %v1510_v8  ;;  %v1700_v55 = vadd.f32 1.0, %v2404_v47  ;;  %2417 = verf.f32 %v1582_v5  ;;  %v3234_v2 = vadd.f32 %v2173_v19, %v2943_v32 }
 0x215   : > { %v2406_v44 = vpop.eup %2405  ;;  %1828 = vst.msk [vmem:[%s2968_s12 + $0x120] sm:$0xff] %vm1791_vm2, %v1763_v11  ;;  %v1580_v59 = vmul.f32 0.70710677, %v3231_v12  ;;  %v1408_v13 = vpop.f32.mrf.mxu1  ;;  %v1516_v16 = vmul.f32 0.5, %v3231_v12 }
 0x216   : > { %1831 = vst.msk [vmem:[%s2968_s12 + $0x138] sm:$0xff] %vm1791_vm2, %v1766_v21  ;;  %v1764_v63 = vmul.f32 %v1700_v55, %v1508_v18  ;;  %v1705_v0 = vadd.f32 1.0, %v2406_v44  ;;  %v1585_v17 = vmul.f32 0.70710677, %v3234_v2  ;;  %v3244_v53 = vadd.f32 %v2943_v32, %v1408_v13 }
 0x217   : > { %2419 = verf.f32 %v1580_v59  ;;  %v2174_v27 = vpop.f32.mrf.mxu1  ;;  %v1521_v21 = vmul.f32 0.5, %v3234_v2 }
 0x218   : > { %v2408_v62 = vpop.eup %2407  ;;  %1829 = vst.msk [vmem:[%s2968_s12 + $0x128] sm:$0xff] %vm1791_vm2, %v1764_v63  ;;  %v1769_v24 = vmul.f32 %v1705_v0, %v1513_v1  ;;  %2421 = verf.f32 %v1585_v17  ;;  %v3249_v38 = vadd.f32 %v2174_v27, %v2943_v32  ;;  %v1583_v56 = vmul.f32 0.70710677, %v3244_v53 }
 0x219   : > { %v2410_v39 = vpop.eup %2409  ;;  %v1703_v43 = vadd.f32 1.0, %v2408_v62  ;;  %v1411_v45 = vpop.f32.mrf.mxu1  ;;  %v1519_v2 = vmul.f32 0.5, %v3244_v53 }
 0x21a   : > { %1834 = vst.msk [vmem:[%s2968_s12 + $0x150] sm:$0xff] %vm1791_vm2, %v1769_v24  ;;  %v1706_v30 = vadd.f32 1.0, %v2410_v39  ;;  %v1586_v28 = vmul.f32 0.70710677, %v3249_v38  ;;  %v3258_v34 = vadd.f32 %v2943_v32, %v1411_v45  ;;  %2423 = verf.f32 %v1583_v56 }
 0x21b   : > { %v2412_v37 = vpop.eup %2411  ;;  %v1767_v36 = vmul.f32 %v1703_v43, %v1511_v22  ;;  %v2177_v15 = vpop.f32.mrf.mxu1  ;;  %v1522_v39 = vmul.f32 0.5, %v3249_v38 }
 0x21c   : > { %v1770_v40 = vmul.f32 %v1706_v30, %v1514_v31  ;;  %v1704_v33 = vadd.f32 1.0, %v2412_v37  ;;  %2425 = verf.f32 %v1586_v28  ;;  %v1584_v10 = vmul.f32 0.70710677, %v3258_v34 }
 0x21d   : > { %1832 = vst.msk [vmem:[%s2968_s12 + $0x140] sm:$0xff] %vm1791_vm2, %v1767_v36  ;;  %v3265_v57 = vadd.f32 %v2177_v15, %v2943_v32  ;;  %v1424_v25 = vpop.f32.mrf.mxu1  ;;  %v1520_v38 = vmul.f32 0.5, %v3258_v34 }
 0x21e   : > { %v2414_v4 = vpop.eup %2413  ;;  %1835 = vst.msk [vmem:[%s2968_s12 + $0x158] sm:$0xff] %vm1791_vm2, %v1770_v40  ;;  %v1768_v49 = vmul.f32 %v1704_v33, %v1512_v48  ;;  %v3270_v35 = vadd.f32 %v2943_v32, %v1424_v25  ;;  %2427 = verf.f32 %v1584_v10 }
 0x21f   : > { %v2416_v61 = vpop.eup %2415  ;;  %v1709_v42 = vadd.f32 1.0, %v2414_v4  ;;  %v1589_v58 = vmul.f32 0.70710677, %v3265_v57  ;;  %v2178_v54 = vpop.f32.mrf.mxu1  ;;  %v1525_v4 = vmul.f32 0.5, %v3265_v57 }
 0x220   : > { %1833 = vst.msk [vmem:[%s2968_s12 + $0x148] sm:$0xff] %vm1791_vm2, %v1768_v49  ;;  %v1707_v52 = vadd.f32 1.0, %v2416_v61  ;;  %v1587_v60 = vmul.f32 0.70710677, %v3270_v35  ;;  %v3279_v7 = vadd.f32 %v2178_v54, %v2943_v32  ;;  %v1523_v34 = vmul.f32 0.5, %v3270_v35 }
 0x221   : > { %v2418_v26 = vpop.eup %2417  ;;  %v1773_v46 = vmul.f32 %v1709_v42, %v1517_v51  ;;  %2429 = verf.f32 %v1589_v58  ;;  %v1427_v50 = vpop.f32.mrf.mxu1 }
 0x222   : > { %v1771_v14 = vmul.f32 %v1707_v52, %v1515_v23  ;;  %v1710_v6 = vadd.f32 1.0, %v2418_v26  ;;  %2431 = verf.f32 %v1587_v60  ;;  %v1590_v41 = vmul.f32 0.70710677, %v3279_v7 }
 0x223   : > { %1838 = vst.msk [vmem:[%s2968_s12 + $0x170] sm:$0xff] %vm1791_vm2, %v1773_v46  ;;  %v3286_v20 = vadd.f32 %v2943_v32, %v1427_v50  ;;  %v2181_v9 = vpop.f32.mrf.mxu1  ;;  %v1526_v35 = vmul.f32 0.5, %v3279_v7 }
 0x224   : > { %v2420_v8 = vpop.eup %2419  ;;  %1836 = vst.msk [vmem:[%s2968_s12 + $0x160] sm:$0xff] %vm1791_vm2, %v1771_v14  ;;  %v1774_v29 = vmul.f32 %v1710_v6, %v1518_v3  ;;  %v3291_v5 = vadd.f32 %v2181_v9, %v2943_v32  ;;  %2433 = verf.f32 %v1590_v41 }
 0x225   : > { %v2422_v47 = vpop.eup %2421  ;;  %v1708_v11 = vadd.f32 1.0, %v2420_v8  ;;  %v1588_v18 = vmul.f32 0.70710677, %v3286_v20  ;;  %v1440_v19 = vpop.f32.mrf.mxu1  ;;  %v1524_v41 = vmul.f32 0.5, %v3286_v20 }
 0x226   : > { %1839 = vst.msk [vmem:[%s2968_s12 + $0x178] sm:$0xff] %vm1791_vm2, %v1774_v29  ;;  %v1713_v55 = vadd.f32 1.0, %v2422_v47  ;;  %v1593_v44 = vmul.f32 0.70710677, %v3291_v5  ;;  %v3300_v59 = vadd.f32 %v2943_v32, %v1440_v19  ;;  %v1529_v8 = vmul.f32 0.5, %v3291_v5 }
 0x227   : > { %v1772_v13 = vmul.f32 %v1708_v11, %v1516_v16  ;;  %2435 = verf.f32 %v1588_v18  ;;  %v2182_v12 = vpop.f32.mrf.mxu1  ;;  %v2424_v63 = vpop.eup %2423 }
 0x228   : > { %v1777_v1 = vmul.f32 %v1713_v55, %v1521_v21  ;;  %2437 = verf.f32 %v1593_v44  ;;  %v1591_v0 = vmul.f32 0.70710677, %v3300_v59  ;;  %v1711_v27 = vadd.f32 1.0, %v2424_v63 }
 0x229   : > { %v2426_v17 = vpop.eup %2425  ;;  %1837 = vst.msk [vmem:[%s2968_s12 + $0x168] sm:$0xff] %vm1791_vm2, %v1772_v13  ;;  %v3307_v62 = vadd.f32 %v2182_v12, %v2943_v32  ;;  %v1443_v24 = vpop.f32.mrf.mxu1  ;;  %v1527_v11 = vmul.f32 0.5, %v3300_v59 }
 0x22a   : > { %1842 = vst.msk [vmem:[%s2968_s12 + $0x190] sm:$0xff] %vm1791_vm2, %v1777_v1  ;;  %v1714_v22 = vadd.f32 1.0, %v2426_v17  ;;  %2439 = verf.f32 %v1591_v0  ;;  %v3313_v43 = vadd.f32 %v2943_v32, %v1443_v24  ;;  %v1775_v56 = vmul.f32 %v1711_v27, %v1519_v2 }
 0x22b   : > { %v1594_v45 = vmul.f32 0.70710677, %v3307_v62  ;;  %v2185_v53 = vpop.f32.mrf.mxu1  ;;  %v2428_v31 = vpop.eup %2427  ;;  %v1530_v21 = vmul.f32 0.5, %v3307_v62 }
 0x22c   : > { %v1778_v30 = vmul.f32 %v1714_v22, %v1522_v39  ;;  %v1592_v28 = vmul.f32 0.70710677, %v3313_v43  ;;  %v3318_v37 = vadd.f32 %v2185_v53, %v2943_v32  ;;  %1840 = vst.msk [vmem:[%s2968_s12 + $0x180] sm:$0xff] %vm1791_vm2, %v1775_v56  ;;  %v1712_v36 = vadd.f32 1.0, %v2428_v31 }
 0x22d   : > { %2441 = verf.f32 %v1594_v45  ;;  %v1456_v15 = vpop.f32.mrf.mxu1  ;;  %v1528_v44 = vmul.f32 0.5, %v3313_v43 }
 0x22e   : > { %v2430_v40 = vpop.eup %2429  ;;  %1843 = vst.msk [vmem:[%s2968_s12 + $0x198] sm:$0xff] %vm1791_vm2, %v1778_v30  ;;  %2443 = verf.f32 %v1592_v28  ;;  %v1597_v48 = vmul.f32 0.70710677, %v3318_v37  ;;  %v1457_v33 = vadd.f32 %v2943_v32, %v1456_v15  ;;  %v1776_v25 = vmul.f32 %v1712_v36, %v1520_v38  ;;  %v2454_v32 = vld [vmem:[%s3372_s4] ss:$0 sm:$0xff] }
 0x22f   : > { %v2432_v10 = vpop.eup %2431  ;;  %v1717_v49 = vadd.f32 1.0, %v2430_v40  ;;  %v2186_v61 = vpop.f32.mrf.mxu1  ;;  %v1533_v1 = vmul.f32 0.5, %v3318_v37 }
 0x230   : > { %v1715_v51 = vadd.f32 1.0, %v2432_v10  ;;  %2445 = verf.f32 %v1597_v48  ;;  %v1595_v42 = vmul.f32 0.70710677, %v1457_v33  ;;  %1841 = vst.msk [vmem:[%s2968_s12 + $0x188] sm:$0xff] %vm1791_vm2, %v1776_v25  ;;  %v1468_v54 = vadd.f32 %v2454_v32, %v2186_v61 }
 0x231   : > { %v1781_v58 = vmul.f32 %v1717_v49, %v1525_v4  ;;  %v1459_v23 = vpop.f32.mrf.mxu1  ;;  %v2434_v52 = vpop.eup %2433  ;;  %v1531_v27 = vmul.f32 0.5, %v1457_v33 }
 0x232   : > { %v1779_v57 = vmul.f32 %v1715_v51, %v1523_v34  ;;  %2447 = verf.f32 %v1595_v42  ;;  %v1460_v60 = vadd.f32 %v2454_v32, %v1459_v23  ;;  %v1718_v26 = vadd.f32 1.0, %v2434_v52 }
 0x233   : > { %1846 = vst.msk [vmem:[%s2968_s12 + $0x1b0] sm:$0xff] %vm1791_vm2, %v1781_v58  ;;  %v1598_v46 = vmul.f32 0.70710677, %v1468_v54  ;;  %v1534_v43 = vmul.f32 0.5, %v1468_v54 }
 0x234   : > { %v2436_v50 = vpop.eup %2435  ;;  %1844 = vst.msk [vmem:[%s2968_s12 + $0x1a0] sm:$0xff] %vm1791_vm2, %v1779_v57  ;;  %v1596_v14 = vmul.f32 0.70710677, %v1460_v60  ;;  %v1782_v6 = vmul.f32 %v1718_v26, %v1526_v35  ;;  %v1532_v45 = vmul.f32 0.5, %v1460_v60 }
 0x235   : > { %v2438_v3 = vpop.eup %2437  ;;  %v1716_v9 = vadd.f32 1.0, %v2436_v50  ;;  %2449 = verf.f32 %v1598_v46 }
 0x236   : > { %v1721_v29 = vadd.f32 1.0, %v2438_v3  ;;  %2451 = verf.f32 %v1596_v14  ;;  %1847 = vst.msk [vmem:[%s2968_s12 + $0x1b8] sm:$0xff] %vm1791_vm2, %v1782_v6 }
 0x237   : > { %v2440_v7 = vpop.eup %2439  ;;  %v1780_v47 = vmul.f32 %v1716_v9, %v1524_v41 }
 0x238   : > { %v1785_v16 = vmul.f32 %v1721_v29, %v1529_v8  ;;  %v1719_v18 = vadd.f32 1.0, %v2440_v7 }
 0x239   : > { %1845 = vst.msk [vmem:[%s2968_s12 + $0x1a8] sm:$0xff] %vm1791_vm2, %v1780_v47 }
 0x23a   : > { %v2442_v19 = vpop.eup %2441  ;;  %1850 = vst.msk [vmem:[%s2968_s12 + $0x1d0] sm:$0xff] %vm1791_vm2, %v1785_v16  ;;  %v1783_v20 = vmul.f32 %v1719_v18, %v1527_v11 }
 0x23b   : > { %v2444_v5 = vpop.eup %2443  ;;  %v1722_v55 = vadd.f32 1.0, %v2442_v19 }
 0x23c   : > { %1848 = vst.msk [vmem:[%s2968_s12 + $0x1c0] sm:$0xff] %vm1791_vm2, %v1783_v20  ;;  %v1720_v13 = vadd.f32 1.0, %v2444_v5 }
 0x23d   : > { %v2446_v59 = vpop.eup %2445  ;;  %v1786_v12 = vmul.f32 %v1722_v55, %v1530_v21 }
 0x23e   : > { %v1784_v63 = vmul.f32 %v1720_v13, %v1528_v44  ;;  %v1725_v0 = vadd.f32 1.0, %v2446_v59 }
 0x23f   : > { %v2448_v17 = vpop.eup %2447  ;;  %1851 = vst.msk [vmem:[%s2968_s12 + $0x1d8] sm:$0xff] %vm1791_vm2, %v1786_v12 }
 0x240   : > { %1849 = vst.msk [vmem:[%s2968_s12 + $0x1c8] sm:$0xff] %vm1791_vm2, %v1784_v63  ;;  %v1789_v2 = vmul.f32 %v1725_v0, %v1533_v1  ;;  %v1723_v62 = vadd.f32 1.0, %v2448_v17 }
 0x242   : > { %v2450_v24 = vpop.eup %2449  ;;  %1854 = vst.msk [vmem:[%s2968_s12 + $0x1f0] sm:$0xff] %vm1791_vm2, %v1789_v2  ;;  %v1787_v39 = vmul.f32 %v1723_v62, %v1531_v27 }
 0x243   : > { %v2452_v22 = vpop.eup %2451  ;;  %v1726_v56 = vadd.f32 1.0, %v2450_v24 }
 0x244   : > { %1852 = vst.msk [vmem:[%s2968_s12 + $0x1e0] sm:$0xff] %vm1791_vm2, %v1787_v39  ;;  %v1724_v53 = vadd.f32 1.0, %v2452_v22 }
 0x245   : > { %v1790_v31 = vmul.f32 %v1726_v56, %v1534_v43 }
 0x246   : > { %v1788_v30 = vmul.f32 %v1724_v53, %v1532_v45 }
 0x247   : > { %1855 = vst.msk [vmem:[%s2968_s12 + $0x1f8] sm:$0xff] %vm1791_vm2, %v1790_v31 }
 0x248   : > { %1853 = vst.msk [vmem:[%s2968_s12 + $0x1e8] sm:$0xff] %vm1791_vm2, %v1788_v30 }
 0x249 PF: > { %s15_s18 = sadd.s32 1, %s2461_s18  }
 0x24a   : > { %p12_p4 = scmp.ge.s32.totalorder %s15_s18, 4  }
 0x24c   :  { %14 = sbr.rel (!%p12_p4) target bundleno = 1 (0x1), region = 70 }

// kernel: fno3d_forward.11
= control target key start
LH: loop header
LB: loop body
LE: loop exit
PB: predicated region body
PF: predicated region fallthrough
CT: control target
= control target key end

     0   :  { %s1927_s9 = smov 0   ;;  %s1929_s10 = smov 0   ;;  %s2670_s0 = inlined_call_operand.vmem [shape: f32[64,256], index: 0, kind: input, shape index: {}]   ;;  %s2671_s1 = inlined_call_operand.vmem [shape: f32[32,16,256], index: 1, kind: input, shape index: {}]   ;;  %s2672_s2 = inlined_call_operand.vmem [shape: f32[4,16,256], index: 2, kind: output, shape index: {}]  }
   0x1   :  { %s1931_s11 = smov 0  }
   0x2 LB: > { %s1654_s12 = sadd.s32 4294967295, %s1910_s11   ;;  %s1944_s13 = sadd.s32 1, %s1910_s11   ;;  %s1910_s11 = sphi %s1931_s11, %s2793_s11   ;;  %s1906_s10 = sphi %s1929_s10, %s2792_s10   ;;  %s1902_s9 = sphi %s1927_s9, %s2791_s9  }
   0x3   : > { %s16_s14 = ssub.s32 %s1910_s11, %s1944_s13  ;;  %s19_s15 = sadd.s32 1, %s1906_s10 }
   0x4   : > { %p17_p0 = scmp.eq.s32.totalorder %s16_s14, 0  ;;  %p26_p1 = scmp.ne.s32.totalorder %s1906_s10, %s1902_s9 }
   0x5   : > { %p27_p2 = scmp.eq.s32.totalorder %s1910_s11, 0  ;;  %p82_p3 = scmp.eq.s32.totalorder %s1654_s12, 1 }
   0x6   : > { %s1955_s16 = scalar_select %p17_p0, %s1906_s10, %s19_s15  }
   0x7   : > { %p1957_p4 = por %p27_p2, %p26_p1  ;;  %p1961_p5 = por %p82_p3, %p26_p1 }
   0x8   : > { %p1657_p6 = scmp.ge.s32.totalorder %s1910_s11, 2 }
   0xa   : > { %104 = sbr.rel (%p1657_p6) target bundleno = 59 (0x3b), region = 16 }
   0xf   : > { %107 = sbr.rel (!%p1957_p4) target bundleno = 23 (0x17), region = 20  ;;  %s109_s19 = sand.u32 (%p1957_p4), 1, %s1906_s10  }
  0x10   : > { %s1659_s20 = sshll.u32 (%p1957_p4), %s1910_s11, 3  ;;  %s1658_s21 = sshll.u32 (%p1957_p4), %s109_s19, 6 }
  0x11   : > { %s113_s24 = scalar_lea.vmem (%p1957_p4), %s2670_s0, %s1659_s20  ;;  %s111_s25 = scalar_lea.vmem (%p1957_p4), [#allocation2], %s1658_s21 }
  0x12   : > { %v156_v0 = vld [vmem:[%s113_s24] sm:$0xff] (%p1957_p4)  ;;  %v158_v1 = vld [vmem:[%s113_s24 + $0x10] sm:$0xff] (%p1957_p4) }
  0x13   : > { %v160_v2 = vld [vmem:[%s113_s24 + $0x20] sm:$0xff] (%p1957_p4)  ;;  %157 = vst [vmem:[%s111_s25] sm:$0xff] (%p1957_p4), %v156_v0  ;;  %159 = vst [vmem:[%s111_s25 + $0x8] sm:$0xff] (%p1957_p4), %v158_v1  ;;  %v162_v3 = vld [vmem:[%s113_s24 + $0x30] sm:$0xff] (%p1957_p4) }
  0x14   : > { %161 = vst [vmem:[%s111_s25 + $0x10] sm:$0xff] %v160_v2  ;;  %v164_v4 = vld [vmem:[%s113_s24 + $0x40] sm:$0xff]  ;;  %v166_v5 = vld [vmem:[%s113_s24 + $0x50] sm:$0xff]  ;;  %163 = vst [vmem:[%s111_s25 + $0x18] sm:$0xff] %v162_v3 }
  0x15   : > { %165 = vst [vmem:[%s111_s25 + $0x20] sm:$0xff] %v164_v4  ;;  %167 = vst [vmem:[%s111_s25 + $0x28] sm:$0xff] %v166_v5  ;;  %v168_v6 = vld [vmem:[%s113_s24 + $0x60] sm:$0xff]  ;;  %v170_v7 = vld [vmem:[%s113_s24 + $0x70] sm:$0xff] }
  0x16   : > { %169 = vst [vmem:[%s111_s25 + $0x30] sm:$0xff] %v168_v6  ;;  %171 = vst [vmem:[%s111_s25 + $0x38] sm:$0xff] %v170_v7 }
  0x17 PF: > { %177 = sbr.rel (!%p1957_p4) target bundleno = 59 (0x3b), region = 58  ;;  %s179_s26 = sand.u32 (%p1957_p4), 1, %s1906_s10  }
  0x18   : > { %s1661_s27 = sshll.u32 (%p1957_p4), %s1910_s11, 3  ;;  %s1660_s28 = sshll.u32 (%p1957_p4), %s179_s26, 9 }
  0x19   : > { %s1980_s3 = scalar_lea.vmem (%p1957_p4), %s2671_s1, %s1661_s27  ;;  %s1985_s4 = scalar_lea.vmem (%p1957_p4), [#allocation3], %s1660_s28 }
  0x1a   : > { %v338_v8 = vld [vmem:[%s1980_s3] sm:$0xff] (%p1957_p4)  ;;  %v340_v9 = vld [vmem:[%s1980_s3 + $0x10] sm:$0xff] (%p1957_p4) }
  0x1b   : > { %v342_v10 = vld [vmem:[%s1980_s3 + $0x20] sm:$0xff] (%p1957_p4)  ;;  %339 = vst [vmem:[%s1985_s4] sm:$0xff] (%p1957_p4), %v338_v8  ;;  %341 = vst [vmem:[%s1985_s4 + $0x8] sm:$0xff] (%p1957_p4), %v340_v9  ;;  %v344_v11 = vld [vmem:[%s1980_s3 + $0x30] sm:$0xff] (%p1957_p4) }
  0x1c   : > { %343 = vst [vmem:[%s1985_s4 + $0x10] sm:$0xff] %v342_v10  ;;  %v346_v12 = vld [vmem:[%s1980_s3 + $0x40] sm:$0xff]  ;;  %v348_v13 = vld [vmem:[%s1980_s3 + $0x50] sm:$0xff]  ;;  %345 = vst [vmem:[%s1985_s4 + $0x18] sm:$0xff] %v344_v11 }
  0x1d   : > { %347 = vst [vmem:[%s1985_s4 + $0x20] sm:$0xff] %v346_v12  ;;  %349 = vst [vmem:[%s1985_s4 + $0x28] sm:$0xff] %v348_v13  ;;  %v350_v14 = vld [vmem:[%s1980_s3 + $0x60] sm:$0xff]  ;;  %v352_v15 = vld [vmem:[%s1980_s3 + $0x70] sm:$0xff] }
  0x1e   : > { %v354_v16 = vld [vmem:[%s1980_s3 + $0x80] sm:$0xff]  ;;  %351 = vst [vmem:[%s1985_s4 + $0x30] sm:$0xff] %v350_v14  ;;  %353 = vst [vmem:[%s1985_s4 + $0x38] sm:$0xff] %v352_v15  ;;  %v356_v17 = vld [vmem:[%s1980_s3 + $0x90] sm:$0xff] }
  0x1f   : > { %355 = vst [vmem:[%s1985_s4 + $0x40] sm:$0xff] %v354_v16  ;;  %v358_v18 = vld [vmem:[%s1980_s3 + $0xa0] sm:$0xff]  ;;  %v360_v19 = vld [vmem:[%s1980_s3 + $0xb0] sm:$0xff]  ;;  %357 = vst [vmem:[%s1985_s4 + $0x48] sm:$0xff] %v356_v17 }
  0x20   : > { %359 = vst [vmem:[%s1985_s4 + $0x50] sm:$0xff] %v358_v18  ;;  %361 = vst [vmem:[%s1985_s4 + $0x58] sm:$0xff] %v360_v19  ;;  %v362_v20 = vld [vmem:[%s1980_s3 + $0xc0] sm:$0xff]  ;;  %v364_v21 = vld [vmem:[%s1980_s3 + $0xd0] sm:$0xff] }
  0x21   : > { %v366_v22 = vld [vmem:[%s1980_s3 + $0xe0] sm:$0xff]  ;;  %363 = vst [vmem:[%s1985_s4 + $0x60] sm:$0xff] %v362_v20  ;;  %365 = vst [vmem:[%s1985_s4 + $0x68] sm:$0xff] %v364_v21  ;;  %v368_v23 = vld [vmem:[%s1980_s3 + $0xf0] sm:$0xff] }
  0x22   : > { %367 = vst [vmem:[%s1985_s4 + $0x70] sm:$0xff] %v366_v22  ;;  %v370_v24 = vld [vmem:[%s1980_s3 + $0x100] sm:$0xff]  ;;  %v372_v25 = vld [vmem:[%s1980_s3 + $0x110] sm:$0xff]  ;;  %369 = vst [vmem:[%s1985_s4 + $0x78] sm:$0xff] %v368_v23 }
  0x23   : > { %371 = vst [vmem:[%s1985_s4 + $0x80] sm:$0xff] %v370_v24  ;;  %373 = vst [vmem:[%s1985_s4 + $0x88] sm:$0xff] %v372_v25  ;;  %v374_v26 = vld [vmem:[%s1980_s3 + $0x120] sm:$0xff]  ;;  %v376_v27 = vld [vmem:[%s1980_s3 + $0x130] sm:$0xff] }
  0x24   : > { %v378_v28 = vld [vmem:[%s1980_s3 + $0x140] sm:$0xff]  ;;  %375 = vst [vmem:[%s1985_s4 + $0x90] sm:$0xff] %v374_v26  ;;  %377 = vst [vmem:[%s1985_s4 + $0x98] sm:$0xff] %v376_v27  ;;  %v380_v29 = vld [vmem:[%s1980_s3 + $0x150] sm:$0xff] }
  0x25   : > { %379 = vst [vmem:[%s1985_s4 + $0xa0] sm:$0xff] %v378_v28  ;;  %v382_v30 = vld [vmem:[%s1980_s3 + $0x160] sm:$0xff]  ;;  %v384_v31 = vld [vmem:[%s1980_s3 + $0x170] sm:$0xff]  ;;  %381 = vst [vmem:[%s1985_s4 + $0xa8] sm:$0xff] %v380_v29 }
  0x26   : > { %383 = vst [vmem:[%s1985_s4 + $0xb0] sm:$0xff] %v382_v30  ;;  %385 = vst [vmem:[%s1985_s4 + $0xb8] sm:$0xff] %v384_v31  ;;  %v386_v32 = vld [vmem:[%s1980_s3 + $0x180] sm:$0xff]  ;;  %v388_v33 = vld [vmem:[%s1980_s3 + $0x190] sm:$0xff] }
  0x27   : > { %v390_v34 = vld [vmem:[%s1980_s3 + $0x1a0] sm:$0xff]  ;;  %387 = vst [vmem:[%s1985_s4 + $0xc0] sm:$0xff] %v386_v32  ;;  %389 = vst [vmem:[%s1985_s4 + $0xc8] sm:$0xff] %v388_v33  ;;  %v392_v35 = vld [vmem:[%s1980_s3 + $0x1b0] sm:$0xff] }
  0x28   : > { %391 = vst [vmem:[%s1985_s4 + $0xd0] sm:$0xff] %v390_v34  ;;  %v394_v36 = vld [vmem:[%s1980_s3 + $0x1c0] sm:$0xff]  ;;  %v396_v37 = vld [vmem:[%s1980_s3 + $0x1d0] sm:$0xff]  ;;  %393 = vst [vmem:[%s1985_s4 + $0xd8] sm:$0xff] %v392_v35 }
  0x29   : > { %395 = vst [vmem:[%s1985_s4 + $0xe0] sm:$0xff] %v394_v36  ;;  %397 = vst [vmem:[%s1985_s4 + $0xe8] sm:$0xff] %v396_v37  ;;  %v398_v38 = vld [vmem:[%s1980_s3 + $0x1e0] sm:$0xff]  ;;  %v400_v39 = vld [vmem:[%s1980_s3 + $0x1f0] sm:$0xff] }
  0x2a   : > { %v402_v40 = vld [vmem:[%s1980_s3 + $0x200] sm:$0xff]  ;;  %399 = vst [vmem:[%s1985_s4 + $0xf0] sm:$0xff] %v398_v38  ;;  %401 = vst [vmem:[%s1985_s4 + $0xf8] sm:$0xff] %v400_v39  ;;  %v404_v41 = vld [vmem:[%s1980_s3 + $0x210] sm:$0xff] }
  0x2b   : > { %403 = vst [vmem:[%s1985_s4 + $0x100] sm:$0xff] %v402_v40  ;;  %v406_v42 = vld [vmem:[%s1980_s3 + $0x220] sm:$0xff]  ;;  %v408_v43 = vld [vmem:[%s1980_s3 + $0x230] sm:$0xff]  ;;  %405 = vst [vmem:[%s1985_s4 + $0x108] sm:$0xff] %v404_v41 }
  0x2c   : > { %407 = vst [vmem:[%s1985_s4 + $0x110] sm:$0xff] %v406_v42  ;;  %409 = vst [vmem:[%s1985_s4 + $0x118] sm:$0xff] %v408_v43  ;;  %v410_v44 = vld [vmem:[%s1980_s3 + $0x240] sm:$0xff]  ;;  %v412_v45 = vld [vmem:[%s1980_s3 + $0x250] sm:$0xff] }
  0x2d   : > { %v414_v46 = vld [vmem:[%s1980_s3 + $0x260] sm:$0xff]  ;;  %411 = vst [vmem:[%s1985_s4 + $0x120] sm:$0xff] %v410_v44  ;;  %413 = vst [vmem:[%s1985_s4 + $0x128] sm:$0xff] %v412_v45  ;;  %v416_v47 = vld [vmem:[%s1980_s3 + $0x270] sm:$0xff] }
  0x2e   : > { %415 = vst [vmem:[%s1985_s4 + $0x130] sm:$0xff] %v414_v46  ;;  %v418_v48 = vld [vmem:[%s1980_s3 + $0x280] sm:$0xff]  ;;  %v420_v49 = vld [vmem:[%s1980_s3 + $0x290] sm:$0xff]  ;;  %417 = vst [vmem:[%s1985_s4 + $0x138] sm:$0xff] %v416_v47 }
  0x2f   : > { %419 = vst [vmem:[%s1985_s4 + $0x140] sm:$0xff] %v418_v48  ;;  %421 = vst [vmem:[%s1985_s4 + $0x148] sm:$0xff] %v420_v49  ;;  %v422_v50 = vld [vmem:[%s1980_s3 + $0x2a0] sm:$0xff]  ;;  %v424_v51 = vld [vmem:[%s1980_s3 + $0x2b0] sm:$0xff] }
  0x30   : > { %v426_v52 = vld [vmem:[%s1980_s3 + $0x2c0] sm:$0xff]  ;;  %423 = vst [vmem:[%s1985_s4 + $0x150] sm:$0xff] %v422_v50  ;;  %425 = vst [vmem:[%s1985_s4 + $0x158] sm:$0xff] %v424_v51  ;;  %v428_v53 = vld [vmem:[%s1980_s3 + $0x2d0] sm:$0xff] }
  0x31   : > { %427 = vst [vmem:[%s1985_s4 + $0x160] sm:$0xff] %v426_v52  ;;  %v430_v54 = vld [vmem:[%s1980_s3 + $0x2e0] sm:$0xff]  ;;  %v432_v55 = vld [vmem:[%s1980_s3 + $0x2f0] sm:$0xff]  ;;  %429 = vst [vmem:[%s1985_s4 + $0x168] sm:$0xff] %v428_v53 }
  0x32   : > { %431 = vst [vmem:[%s1985_s4 + $0x170] sm:$0xff] %v430_v54  ;;  %433 = vst [vmem:[%s1985_s4 + $0x178] sm:$0xff] %v432_v55  ;;  %v434_v56 = vld [vmem:[%s1980_s3 + $0x300] sm:$0xff]  ;;  %v436_v57 = vld [vmem:[%s1980_s3 + $0x310] sm:$0xff] }
  0x33   : > { %v438_v58 = vld [vmem:[%s1980_s3 + $0x320] sm:$0xff]  ;;  %435 = vst [vmem:[%s1985_s4 + $0x180] sm:$0xff] %v434_v56  ;;  %437 = vst [vmem:[%s1985_s4 + $0x188] sm:$0xff] %v436_v57  ;;  %v440_v59 = vld [vmem:[%s1980_s3 + $0x330] sm:$0xff] }
  0x34   : > { %439 = vst [vmem:[%s1985_s4 + $0x190] sm:$0xff] %v438_v58  ;;  %v442_v60 = vld [vmem:[%s1980_s3 + $0x340] sm:$0xff]  ;;  %v444_v61 = vld [vmem:[%s1980_s3 + $0x350] sm:$0xff]  ;;  %441 = vst [vmem:[%s1985_s4 + $0x198] sm:$0xff] %v440_v59 }
  0x35   : > { %443 = vst [vmem:[%s1985_s4 + $0x1a0] sm:$0xff] %v442_v60  ;;  %445 = vst [vmem:[%s1985_s4 + $0x1a8] sm:$0xff] %v444_v61  ;;  %v446_v62 = vld [vmem:[%s1980_s3 + $0x360] sm:$0xff]  ;;  %v448_v63 = vld [vmem:[%s1980_s3 + $0x370] sm:$0xff] }
  0x36   : > { %v450_v0 = vld [vmem:[%s1980_s3 + $0x380] sm:$0xff]  ;;  %447 = vst [vmem:[%s1985_s4 + $0x1b0] sm:$0xff] %v446_v62  ;;  %449 = vst [vmem:[%s1985_s4 + $0x1b8] sm:$0xff] %v448_v63  ;;  %v452_v1 = vld [vmem:[%s1980_s3 + $0x390] sm:$0xff] }
  0x37   : > { %451 = vst [vmem:[%s1985_s4 + $0x1c0] sm:$0xff] %v450_v0  ;;  %v454_v2 = vld [vmem:[%s1980_s3 + $0x3a0] sm:$0xff]  ;;  %v456_v3 = vld [vmem:[%s1980_s3 + $0x3b0] sm:$0xff]  ;;  %453 = vst [vmem:[%s1985_s4 + $0x1c8] sm:$0xff] %v452_v1 }
  0x38   : > { %455 = vst [vmem:[%s1985_s4 + $0x1d0] sm:$0xff] %v454_v2  ;;  %457 = vst [vmem:[%s1985_s4 + $0x1d8] sm:$0xff] %v456_v3  ;;  %v458_v4 = vld [vmem:[%s1980_s3 + $0x3c0] sm:$0xff]  ;;  %v460_v5 = vld [vmem:[%s1980_s3 + $0x3d0] sm:$0xff] }
  0x39   : > { %v462_v6 = vld [vmem:[%s1980_s3 + $0x3e0] sm:$0xff]  ;;  %459 = vst [vmem:[%s1985_s4 + $0x1e0] sm:$0xff] %v458_v4  ;;  %461 = vst [vmem:[%s1985_s4 + $0x1e8] sm:$0xff] %v460_v5  ;;  %v464_v7 = vld [vmem:[%s1980_s3 + $0x3f0] sm:$0xff] }
  0x3a   : > { %463 = vst [vmem:[%s1985_s4 + $0x1f0] sm:$0xff] %v462_v6  ;;  %465 = vst [vmem:[%s1985_s4 + $0x1f8] sm:$0xff] %v464_v7 }
  0x3b PF: > { %p1662_p7 = scmp.ge.s32.totalorder %s1910_s11, 1  ;;  %p470_p8 = scmp.lt.s32.totalorder %s1910_s11, 3 }
  0x3d   : > { %p471_p9 = pnand %p1662_p7, %p470_p8 }
  0x3f   : > { %474 = sbr.rel (%p471_p9) target bundleno = 211 (0xd3), region = 96 }
  0x44   : > { %s477_s5 = sand.u32 1, %s1902_s9   ;;  %s1861_s15 = sshll.u32 (%p1961_p5), %s1654_s12, 3 }
  0x45   : > { %s2115_s6 = sshll.u32 %s477_s5, 6  ;;  %s1664_s7 = sshll.u32 %s477_s5, 9 }
  0x46   : > { %s2118_s8 = scalar_lea.vmem [#allocation2], %s2115_s6  ;;  %s2122_s14 = scalar_lea.vmem [#allocation3], %s1664_s7 }
  0x47   : > { %v1668_v8 = vld [vmem:[%s2118_s8] ss:$0 sm:$0xff]  ;;  %v2128_v11 = vld [vmem:[%s2122_s14 + $0x8] sm:$0xff]  ;;  %v1674_v20 = vld [vmem:[%s2118_s8 + $0x2] ss:$0 sm:$0xff]  ;;  %s2483_s9 = scalar_lea.vmem [#allocation4], %s2115_s6  ;;  %s1518_s20 = scalar_lea.vmem (%p1961_p5), %s2672_s2, %s1861_s15 }
  0x48   : > { %v1669_v9 = vld [vmem:[%s2118_s8 + $0x20] ss:$0 sm:$0xff]  ;;  %v2134_v13 = vld [vmem:[%s2122_s14 + $0x108] sm:$0xff]  ;;  %v520_v16 = vmul.f32 %v1668_v8, %v2128_v11  ;;  %v1675_v21 = vld [vmem:[%s2118_s8 + $0x22] ss:$0 sm:$0xff] }
  0x49   : > { %v2125_v10 = vld [vmem:[%s2122_s14] sm:$0xff]  ;;  %v526_v18 = vmul.f32 %v1669_v9, %v2134_v13  ;;  %v2145_v22 = vld [vmem:[%s2122_s14 + $0x10] sm:$0xff]  ;;  %v532_v23 = vmul.f32 %v1668_v8, %v2134_v13  ;;  %v534_v24 = vmul.f32 %v1669_v9, %v2128_v11  ;;  %v2150_v25 = vld [vmem:[%s2122_s14 + $0x18] sm:$0xff] }
  0x4a   : > { %v2131_v12 = vld [vmem:[%s2122_s14 + $0x100] sm:$0xff]  ;;  %v519_v14 = vmul.f32 %v1668_v8, %v2125_v10  ;;  %v533_v15 = vmul.f32 %v1669_v9, %v2125_v10  ;;  %v2153_v26 = vld [vmem:[%s2122_s14 + $0x110] sm:$0xff]  ;;  %v2156_v27 = vld [vmem:[%s2122_s14 + $0x118] sm:$0xff]  ;;  %v551_v28 = vmul.f32 %v1674_v20, %v2145_v22  ;;  %v565_v29 = vmul.f32 %v1675_v21, %v2145_v22 }
  0x4b   : > { %v525_v17 = vmul.f32 %v1669_v9, %v2131_v12  ;;  %v531_v19 = vmul.f32 %v1668_v8, %v2131_v12  ;;  %v528_v31 = vsub.f32 %v520_v16, %v526_v18  ;;  %v552_v33 = vmul.f32 %v1674_v20, %v2150_v25  ;;  %v1680_v34 = vld [vmem:[%s2118_s8 + $0x4] ss:$0 sm:$0xff]  ;;  %v2170_v41 = vld [vmem:[%s2122_s14 + $0x28] sm:$0xff]  ;;  %v1686_v52 = vld [vmem:[%s2118_s8 + $0x6] ss:$0 sm:$0xff] }
  0x4c   : > { %v1681_v35 = vld [vmem:[%s2118_s8 + $0x24] ss:$0 sm:$0xff]  ;;  %v536_v37 = vadd.f32 %v534_v24, %v532_v23  ;;  %v557_v38 = vmul.f32 %v1675_v21, %v2153_v26  ;;  %v558_v39 = vmul.f32 %v1675_v21, %v2156_v27  ;;  %v563_v40 = vmul.f32 %v1674_v20, %v2153_v26  ;;  %v2176_v43 = vld [vmem:[%s2122_s14 + $0x128] sm:$0xff]  ;;  %v1687_v53 = vld [vmem:[%s2118_s8 + $0x26] ss:$0 sm:$0xff] }
  0x4d   : > { %v527_v30 = vsub.f32 %v519_v14, %v525_v17  ;;  %v535_v32 = vadd.f32 %v533_v15, %v531_v19  ;;  %v2164_v36 = vld [vmem:[%s2122_s14 + $0x20] sm:$0xff]  ;;  %v564_v44 = vmul.f32 %v1674_v20, %v2156_v27  ;;  %v566_v45 = vmul.f32 %v1675_v21, %v2150_v25  ;;  %v2189_v58 = vld [vmem:[%s2122_s14 + $0x30] sm:$0xff]  ;;  %v2192_v59 = vld [vmem:[%s2122_s14 + $0x38] sm:$0xff] }
  0x4e   : > { %v2173_v42 = vld [vmem:[%s2122_s14 + $0x120] sm:$0xff]  ;;  %v583_v46 = vmul.f32 %v1680_v34, %v2164_v36  ;;  %v584_v47 = vmul.f32 %v1680_v34, %v2170_v41  ;;  %v559_v48 = vsub.f32 %v551_v28, %v557_v38  ;;  %v560_v49 = vsub.f32 %v552_v33, %v558_v39  ;;  %v2195_v60 = vld [vmem:[%s2122_s14 + $0x130] sm:$0xff]  ;;  %v2198_v1 = vld [vmem:[%s2122_s14 + $0x138] sm:$0xff] }
  0x4f   : > { %v567_v50 = vadd.f32 %v565_v29, %v563_v40  ;;  %v589_v51 = vmul.f32 %v1681_v35, %v2173_v42  ;;  %v568_v54 = vadd.f32 %v566_v45, %v564_v44  ;;  %v590_v55 = vmul.f32 %v1681_v35, %v2176_v43  ;;  %v1692_v18 = vld [vmem:[%s2118_s8 + $0x8] ss:$0 sm:$0xff]  ;;  %v2208_v19 = vld [vmem:[%s2122_s14 + $0x40] sm:$0xff]  ;;  %v1698_v44 = vld [vmem:[%s2118_s8 + $0xa] ss:$0 sm:$0xff] }
  0x50   : > { %v595_v56 = vmul.f32 %v1680_v34, %v2173_v42  ;;  %v596_v57 = vmul.f32 %v1680_v34, %v2176_v43  ;;  %v561_v61 = vadd.f32 %v559_v48, %v527_v30  ;;  %v562_v62 = vadd.f32 %v560_v49, %v528_v31  ;;  %v2211_v20 = vld [vmem:[%s2122_s14 + $0x48] sm:$0xff]  ;;  %v2218_v30 = vld [vmem:[%s2122_s14 + $0x140] sm:$0xff] }
  0x51   : > { %v569_v63 = vadd.f32 %v567_v50, %v535_v32  ;;  %v591_v0 = vsub.f32 %v583_v46, %v589_v51  ;;  %v570_v2 = vadd.f32 %v568_v54, %v536_v37  ;;  %v592_v3 = vsub.f32 %v584_v47, %v590_v55  ;;  %v1693_v29 = vld [vmem:[%s2118_s8 + $0x28] ss:$0 sm:$0xff]  ;;  %v1699_v45 = vld [vmem:[%s2118_s8 + $0x2a] ss:$0 sm:$0xff]  ;;  %v2231_v50 = vld [vmem:[%s2122_s14 + $0x50] sm:$0xff] }
  0x52   : > { %v597_v4 = vmul.f32 %v1681_v35, %v2164_v36  ;;  %v598_v5 = vmul.f32 %v1681_v35, %v2170_v41  ;;  %v615_v7 = vmul.f32 %v1686_v52, %v2189_v58  ;;  %v616_v8 = vmul.f32 %v1686_v52, %v2192_v59  ;;  %v2221_v31 = vld [vmem:[%s2122_s14 + $0x148] sm:$0xff]  ;;  %v2234_v51 = vld [vmem:[%s2122_s14 + $0x58] sm:$0xff] }
  0x53   : > { %v593_v6 = vadd.f32 %v591_v0, %v561_v61  ;;  %v621_v9 = vmul.f32 %v1687_v53, %v2195_v60  ;;  %v594_v14 = vadd.f32 %v592_v3, %v562_v62  ;;  %v622_v17 = vmul.f32 %v1687_v53, %v2198_v1 }
  0x54   : > { %v599_v15 = vadd.f32 %v597_v4, %v595_v56  ;;  %v600_v16 = vadd.f32 %v598_v5, %v596_v57  ;;  %v627_v23 = vmul.f32 %v1686_v52, %v2195_v60  ;;  %v628_v24 = vmul.f32 %v1686_v52, %v2198_v1  ;;  %v2237_v52 = vld [vmem:[%s2122_s14 + $0x150] sm:$0xff]  ;;  %v2243_v57 = vld [vmem:[%s2122_s14 + $0x158] sm:$0xff] }
  0x55   : > { %v623_v21 = vsub.f32 %v615_v7, %v621_v9  ;;  %v629_v28 = vmul.f32 %v1687_v53, %v2189_v58  ;;  %v624_v34 = vsub.f32 %v616_v8, %v622_v17  ;;  %v630_v35 = vmul.f32 %v1687_v53, %v2192_v59  ;;  %v1705_v7 = vld [vmem:[%s2118_s8 + $0x2c] ss:$0 sm:$0xff] }
  0x56   : > { %v601_v32 = vadd.f32 %v599_v15, %v569_v63  ;;  %v602_v33 = vadd.f32 %v600_v16, %v570_v2  ;;  %v647_v39 = vmul.f32 %v1692_v18, %v2208_v19  ;;  %v648_v40 = vmul.f32 %v1692_v18, %v2211_v20  ;;  %v2253_v16 = vld [vmem:[%s2122_s14 + $0x60] sm:$0xff]  ;;  %v2256_v17 = vld [vmem:[%s2122_s14 + $0x68] sm:$0xff] }
  0x57   : > { %v625_v37 = vadd.f32 %v623_v21, %v593_v6  ;;  %v631_v38 = vadd.f32 %v629_v28, %v627_v23  ;;  %v626_v46 = vadd.f32 %v624_v34, %v594_v14  ;;  %v632_v47 = vadd.f32 %v630_v35, %v628_v24  ;;  %v1704_v6 = vld [vmem:[%s2118_s8 + $0xc] ss:$0 sm:$0xff] }
  0x58   : > { %v653_v48 = vmul.f32 %v1693_v29, %v2218_v30  ;;  %v654_v49 = vmul.f32 %v1693_v29, %v2221_v31  ;;  %v659_v54 = vmul.f32 %v1692_v18, %v2218_v30  ;;  %v660_v55 = vmul.f32 %v1692_v18, %v2221_v31  ;;  %v2259_v18 = vld [vmem:[%s2122_s14 + $0x160] sm:$0xff] }
  0x59   : > { %v633_v53 = vadd.f32 %v631_v38, %v601_v32  ;;  %v661_v56 = vmul.f32 %v1693_v29, %v2208_v19  ;;  %v634_v61 = vadd.f32 %v632_v47, %v602_v33  ;;  %v662_v0 = vmul.f32 %v1693_v29, %v2211_v20  ;;  %v2264_v29 = vld [vmem:[%s2122_s14 + $0x168] sm:$0xff] }
  0x5a   : > { %v655_v62 = vsub.f32 %v647_v39, %v653_v48  ;;  %v656_v63 = vsub.f32 %v648_v40, %v654_v49  ;;  %v679_v3 = vmul.f32 %v1698_v44, %v2231_v50  ;;  %v680_v4 = vmul.f32 %v1698_v44, %v2234_v51  ;;  %v1710_v49 = vld [vmem:[%s2118_s8 + $0xe] ss:$0 sm:$0xff] }
  0x5b   : > { %v663_v2 = vadd.f32 %v661_v56, %v659_v54  ;;  %v685_v5 = vmul.f32 %v1699_v45, %v2237_v52  ;;  %v664_v14 = vadd.f32 %v662_v0, %v660_v55  ;;  %v686_v15 = vmul.f32 %v1699_v45, %v2243_v57  ;;  %v2277_v54 = vld [vmem:[%s2122_s14 + $0x78] sm:$0xff] }
  0x5c   : > { %v657_v8 = vadd.f32 %v655_v62, %v625_v37  ;;  %v658_v9 = vadd.f32 %v656_v63, %v626_v46  ;;  %v691_v24 = vmul.f32 %v1698_v44, %v2237_v52  ;;  %v692_v28 = vmul.f32 %v1698_v44, %v2243_v57  ;;  %v1711_v62 = vld [vmem:[%s2118_s8 + $0x2e] ss:$0 sm:$0xff]  ;;  %v2284_v63 = vld [vmem:[%s2122_s14 + $0x170] sm:$0xff]  ;;  %v2287_v0 = vld [vmem:[%s2122_s14 + $0x178] sm:$0xff] }
  0x5d   : > { %v665_v21 = vadd.f32 %v663_v2, %v633_v53  ;;  %v687_v23 = vsub.f32 %v679_v3, %v685_v5  ;;  %v666_v32 = vadd.f32 %v664_v14, %v634_v61  ;;  %v688_v33 = vsub.f32 %v680_v4, %v686_v15  ;;  %v2274_v53 = vld [vmem:[%s2122_s14 + $0x70] sm:$0xff]  ;;  %2733 = vst [vmem:[#allocation5_spill] sm:$0xff] %v2287_v0 }
  0x5e   : > { %v693_v34 = vmul.f32 %v1699_v45, %v2231_v50  ;;  %v694_v35 = vmul.f32 %v1699_v45, %v2234_v51  ;;  %v711_v38 = vmul.f32 %v1704_v6, %v2253_v16  ;;  %v712_v39 = vmul.f32 %v1704_v6, %v2256_v17  ;;  %v1716_v15 = vld [vmem:[%s2118_s8 + $0x10] ss:$0 sm:$0xff] }
  0x5f   : > { %v689_v37 = vadd.f32 %v687_v23, %v657_v8  ;;  %v717_v40 = vmul.f32 %v1705_v7, %v2259_v18  ;;  %v690_v44 = vadd.f32 %v688_v33, %v658_v9  ;;  %v718_v48 = vmul.f32 %v1705_v7, %v2264_v29  ;;  %v1717_v23 = vld [vmem:[%s2118_s8 + $0x30] ss:$0 sm:$0xff] }
  0x60   : > { %v695_v46 = vadd.f32 %v693_v34, %v691_v24  ;;  %v696_v47 = vadd.f32 %v694_v35, %v692_v28  ;;  %v723_v55 = vmul.f32 %v1704_v6, %v2259_v18  ;;  %v724_v56 = vmul.f32 %v1704_v6, %v2264_v29  ;;  %v2297_v34 = vld [vmem:[%s2122_s14 + $0x80] sm:$0xff] }
  0x61   : > { %v719_v45 = vsub.f32 %v711_v38, %v717_v40  ;;  %v725_v61 = vmul.f32 %v1705_v7, %v2253_v16  ;;  %v720_v4 = vsub.f32 %v712_v39, %v718_v48  ;;  %v726_v5 = vmul.f32 %v1705_v7, %v2256_v17  ;;  %2734 = vst [vmem:[#allocation6_spill] sm:$0xff] %v2297_v34  ;;  %v2303_v7 = vld [vmem:[%s2122_s14 + $0x180] sm:$0xff]  ;;  %v2309_v40 = vld [vmem:[%s2122_s14 + $0x188] sm:$0xff] }
  0x62   : > { %v697_v2 = vadd.f32 %v695_v46, %v665_v21  ;;  %v698_v3 = vadd.f32 %v696_v47, %v666_v32  ;;  %v743_v6 = vmul.f32 %v1710_v49, %v2274_v53  ;;  %v744_v14 = vmul.f32 %v1710_v49, %v2277_v54  ;;  %v2300_v32 = vld [vmem:[%s2122_s14 + $0x88] sm:$0xff]  ;;  %2736 = vst [vmem:[#allocation8_spill] sm:$0xff] %v2303_v7 }
  0x63   : > { %v721_v8 = vadd.f32 %v719_v45, %v689_v37  ;;  %v727_v9 = vadd.f32 %v725_v61, %v723_v55  ;;  %v722_v24 = vadd.f32 %v720_v4, %v690_v44  ;;  %v728_v28 = vadd.f32 %v726_v5, %v724_v56  ;;  %2735 = vst [vmem:[#allocation7_spill] sm:$0xff] %v2300_v32  ;;  %v1722_v61 = vld [vmem:[%s2118_s8 + $0x12] ss:$0 sm:$0xff] }
  0x64   : > { %v749_v33 = vmul.f32 %v1711_v62, %v2284_v63  ;;  %v750_v21 = vmul.f32 %v1711_v62, %v2287_v0  ;;  %v755_v37 = vmul.f32 %v1710_v49, %v2284_v63  ;;  %v756_v38 = vmul.f32 %v1710_v49, %v2287_v0  ;;  %2737 = vst [vmem:[#allocation9_spill] sm:$0xff] %v2309_v40 }
  0x65   : > { %v729_v35 = vadd.f32 %v727_v9, %v697_v2  ;;  %v757_v39 = vmul.f32 %v1711_v62, %v2274_v53  ;;  %v730_v44 = vadd.f32 %v728_v28, %v698_v3  ;;  %v758_v48 = vmul.f32 %v1711_v62, %v2277_v54  ;;  %v1723_v2 = vld [vmem:[%s2118_s8 + $0x32] ss:$0 sm:$0xff] }
  0x66   : > { %v751_v46 = vsub.f32 %v743_v6, %v749_v33  ;;  %v752_v47 = vsub.f32 %v744_v14, %v750_v21  ;;  %v775_v55 = vmul.f32 %v1716_v15, %v2297_v34  ;;  %v776_v56 = vmul.f32 %v1716_v15, %v2300_v32  ;;  %v2319_v28 = vld [vmem:[%s2122_s14 + $0x90] sm:$0xff]  ;;  %v2322_v6 = vld [vmem:[%s2122_s14 + $0x98] sm:$0xff] }
  0x67   : > { %v759_v45 = vadd.f32 %v757_v39, %v755_v37  ;;  %v781_v49 = vmul.f32 %v1717_v23, %v2303_v7  ;;  %v760_v9 = vadd.f32 %v758_v48, %v756_v38  ;;  %v782_v3 = vmul.f32 %v1717_v23, %v2309_v40  ;;  %2738 = vst [vmem:[#allocation10_spill] sm:$0xff] %v2319_v28  ;;  %v2325_v62 = vld [vmem:[%s2122_s14 + $0x190] sm:$0xff] }
  0x68   : > { %v753_v4 = vadd.f32 %v751_v46, %v721_v8  ;;  %v754_v5 = vadd.f32 %v752_v47, %v722_v24  ;;  %2739 = vst [vmem:[#allocation11_spill] sm:$0xff] %v2322_v6  ;;  %2740 = vst [vmem:[#allocation12_spill] sm:$0xff] %v2325_v62  ;;  %v787_v21 = vmul.f32 %v1716_v15, %v2303_v7  ;;  %v2330_v8 = vld [vmem:[%s2122_s14 + $0x198] sm:$0xff]  ;;  %v1729_v7 = vld [vmem:[%s2118_s8 + $0x34] ss:$0 sm:$0xff] }
  0x69   : > { %v761_v14 = vadd.f32 %v759_v45, %v729_v35  ;;  %v783_v33 = vsub.f32 %v775_v55, %v781_v49  ;;  %v788_v37 = vmul.f32 %v1716_v15, %v2309_v40  ;;  %2741 = vst [vmem:[#allocation13_spill] sm:$0xff] %v2330_v8  ;;  %v762_v24 = vadd.f32 %v760_v9, %v730_v44  ;;  %v2340_v9 = vld [vmem:[%s2122_s14 + $0xa0] sm:$0xff] }
  0x6a   : > { %v784_v38 = vsub.f32 %v776_v56, %v782_v3  ;;  %v789_v39 = vmul.f32 %v1717_v23, %v2297_v34  ;;  %v790_v46 = vmul.f32 %v1717_v23, %v2300_v32  ;;  %v807_v35 = vmul.f32 %v1722_v61, %v2319_v28  ;;  %v1728_v56 = vld [vmem:[%s2118_s8 + $0x14] ss:$0 sm:$0xff]  ;;  %2742 = vst [vmem:[#allocation14_spill] sm:$0xff] %v2340_v9  ;;  %v2343_v3 = vld [vmem:[%s2122_s14 + $0xa8] sm:$0xff] }
  0x6b   : > { %v785_v47 = vadd.f32 %v783_v33, %v753_v4  ;;  %v808_v48 = vmul.f32 %v1722_v61, %v2322_v6  ;;  %v813_v45 = vmul.f32 %v1723_v2, %v2325_v62  ;;  %v814_v44 = vmul.f32 %v1723_v2, %v2330_v8  ;;  %2743 = vst [vmem:[#allocation15_spill] sm:$0xff] %v2343_v3 }
  0x6c   : > { %v786_v15 = vadd.f32 %v784_v38, %v754_v5  ;;  %v791_v55 = vadd.f32 %v789_v39, %v787_v21  ;;  %v792_v49 = vadd.f32 %v790_v46, %v788_v37  ;;  %v819_v4 = vmul.f32 %v1722_v61, %v2325_v62  ;;  %v2350_v5 = vld [vmem:[%s2122_s14 + $0x1a0] sm:$0xff]  ;;  %v2353_v21 = vld [vmem:[%s2122_s14 + $0x1a8] sm:$0xff]  ;;  %v1734_v62 = vld [vmem:[%s2118_s8 + $0x16] ss:$0 sm:$0xff] }
  0x6d   : > { %v815_v23 = vsub.f32 %v807_v35, %v813_v45  ;;  %v820_v33 = vmul.f32 %v1722_v61, %v2330_v8  ;;  %v821_v40 = vmul.f32 %v1723_v2, %v2319_v28  ;;  %2744 = vst [vmem:[#allocation16_spill] sm:$0xff] %v2350_v5  ;;  %2745 = vst [vmem:[#allocation17_spill] sm:$0xff] %v2353_v21  ;;  %v1735_v28 = vld [vmem:[%s2118_s8 + $0x36] ss:$0 sm:$0xff] }
  0x6e   : > { %v793_v37 = vadd.f32 %v791_v55, %v761_v14  ;;  %v794_v38 = vadd.f32 %v792_v49, %v762_v24  ;;  %v816_v39 = vsub.f32 %v808_v48, %v814_v44  ;;  %v822_v46 = vmul.f32 %v1723_v2, %v2322_v6  ;;  %v2363_v55 = vld [vmem:[%s2122_s14 + $0xb0] sm:$0xff]  ;;  %v2366_v24 = vld [vmem:[%s2122_s14 + $0xb8] sm:$0xff] }
  0x6f   : > { %v817_v35 = vadd.f32 %v815_v23, %v785_v47  ;;  %v823_v45 = vadd.f32 %v821_v40, %v819_v4  ;;  %v839_v61 = vmul.f32 %v1728_v56, %v2340_v9  ;;  %v840_v8 = vmul.f32 %v1728_v56, %v2343_v3  ;;  %2746 = vst [vmem:[#allocation18_spill] sm:$0xff] %v2363_v55  ;;  %v2369_v40 = vld [vmem:[%s2122_s14 + $0x1b0] sm:$0xff]  ;;  %v2375_v49 = vld [vmem:[%s2122_s14 + $0x1b8] sm:$0xff] }
  0x70   : > { %v818_v32 = vadd.f32 %v816_v39, %v786_v15  ;;  %v824_v34 = vadd.f32 %v822_v46, %v820_v33  ;;  %v845_v0 = vmul.f32 %v1729_v7, %v2350_v5  ;;  %v846_v14 = vmul.f32 %v1729_v7, %v2353_v21  ;;  %2747 = vst [vmem:[#allocation19_spill] sm:$0xff] %v2366_v24 }
  0x71   : > { %2748 = vst [vmem:[#allocation20_spill] sm:$0xff] %v2369_v40  ;;  %v825_v2 = vadd.f32 %v823_v45, %v793_v37  ;;  %v851_v47 = vmul.f32 %v1728_v56, %v2350_v5  ;;  %v852_v48 = vmul.f32 %v1728_v56, %v2353_v21  ;;  %v853_v15 = vmul.f32 %v1729_v7, %v2340_v9  ;;  %v1740_v45 = vld [vmem:[%s2118_s8 + $0x18] ss:$0 sm:$0xff] }
  0x72   : > { %2749 = vst [vmem:[#allocation21_spill] sm:$0xff] %v2375_v49  ;;  %v826_v44 = vadd.f32 %v824_v34, %v794_v38  ;;  %v847_v23 = vsub.f32 %v839_v61, %v845_v0  ;;  %v848_v4 = vsub.f32 %v840_v8, %v846_v14  ;;  %v854_v33 = vmul.f32 %v1729_v7, %v2343_v3  ;;  %v1741_v21 = vld [vmem:[%s2118_s8 + $0x38] ss:$0 sm:$0xff]  ;;  %v2385_v38 = vld [vmem:[%s2122_s14 + $0xc0] sm:$0xff]  ;;  %v2388_v0 = vld [vmem:[%s2122_s14 + $0xc8] sm:$0xff] }
  0x73   : > { %v855_v39 = vadd.f32 %v853_v15, %v851_v47  ;;  %v871_v46 = vmul.f32 %v1734_v62, %v2363_v55  ;;  %v872_v37 = vmul.f32 %v1734_v62, %v2366_v24  ;;  %v877_v56 = vmul.f32 %v1735_v28, %v2369_v40  ;;  %2750 = vst [vmem:[#allocation22_spill] sm:$0xff] %v2385_v38  ;;  %v2391_v7 = vld [vmem:[%s2122_s14 + $0x1c0] sm:$0xff] }
  0x74   : > { %v849_v5 = vadd.f32 %v847_v23, %v817_v35  ;;  %v850_v9 = vadd.f32 %v848_v4, %v818_v32  ;;  %v856_v6 = vadd.f32 %v854_v33, %v852_v48  ;;  %v878_v34 = vmul.f32 %v1735_v28, %v2375_v49  ;;  %2751 = vst [vmem:[#allocation23_spill] sm:$0xff] %v2388_v0  ;;  %v2396_v35 = vld [vmem:[%s2122_s14 + $0x1c8] sm:$0xff] }
  0x75   : > { %2752 = vst [vmem:[#allocation24_spill] sm:$0xff] %v2391_v7  ;;  %v857_v8 = vadd.f32 %v855_v39, %v825_v2  ;;  %v879_v61 = vsub.f32 %v871_v46, %v877_v56  ;;  %v883_v14 = vmul.f32 %v1734_v62, %v2369_v40  ;;  %v884_v47 = vmul.f32 %v1734_v62, %v2375_v49  ;;  %v1747_v40 = vld [vmem:[%s2118_s8 + $0x3a] ss:$0 sm:$0xff] }
  0x76   : > { %2753 = vst [vmem:[#allocation25_spill] sm:$0xff] %v2396_v35  ;;  %v858_v32 = vadd.f32 %v856_v6, %v826_v44  ;;  %v880_v48 = vsub.f32 %v872_v37, %v878_v34  ;;  %v885_v15 = vmul.f32 %v1735_v28, %v2363_v55  ;;  %v886_v23 = vmul.f32 %v1735_v28, %v2366_v24  ;;  %v1746_v44 = vld [vmem:[%s2118_s8 + $0x1a] ss:$0 sm:$0xff]  ;;  %v2406_v37 = vld [vmem:[%s2122_s14 + $0xd0] sm:$0xff] }
  0x77   : > { %v881_v4 = vadd.f32 %v879_v61, %v849_v5  ;;  %v903_v2 = vmul.f32 %v1740_v45, %v2385_v38  ;;  %v904_v33 = vmul.f32 %v1740_v45, %v2388_v0  ;;  %v909_v39 = vmul.f32 %v1741_v21, %v2391_v7  ;;  %2754 = vst [vmem:[#allocation26_spill] sm:$0xff] %v2406_v37  ;;  %v2409_v34 = vld [vmem:[%s2122_s14 + $0xd8] sm:$0xff] }
  0x78   : > { %v882_v62 = vadd.f32 %v880_v48, %v850_v9  ;;  %v887_v46 = vadd.f32 %v885_v15, %v883_v14  ;;  %v888_v56 = vadd.f32 %v886_v23, %v884_v47  ;;  %v910_v6 = vmul.f32 %v1741_v21, %v2396_v35  ;;  %v2416_v9 = vld [vmem:[%s2122_s14 + $0x1d0] sm:$0xff]  ;;  %v2419_v14 = vld [vmem:[%s2122_s14 + $0x1d8] sm:$0xff] }
  0x79   : > { %v911_v28 = vsub.f32 %v903_v2, %v909_v39  ;;  %v915_v5 = vmul.f32 %v1740_v45, %v2391_v7  ;;  %v916_v61 = vmul.f32 %v1740_v45, %v2396_v35  ;;  %v917_v49 = vmul.f32 %v1741_v21, %v2385_v38  ;;  %2755 = vst [vmem:[#allocation27_spill] sm:$0xff] %v2416_v9  ;;  %v1752_v7 = vld [vmem:[%s2118_s8 + $0x1c] ss:$0 sm:$0xff] }
  0x7a   : > { %2756 = vst [vmem:[#allocation28_spill] sm:$0xff] %v2419_v14  ;;  %v889_v47 = vadd.f32 %v887_v46, %v857_v8  ;;  %v890_v48 = vadd.f32 %v888_v56, %v858_v32  ;;  %v912_v15 = vsub.f32 %v904_v33, %v910_v6  ;;  %v918_v23 = vmul.f32 %v1741_v21, %v2388_v0  ;;  %v1753_v38 = vld [vmem:[%s2118_s8 + $0x3c] ss:$0 sm:$0xff]  ;;  %v2429_v46 = vld [vmem:[%s2122_s14 + $0xe0] sm:$0xff]  ;;  %v2432_v32 = vld [vmem:[%s2122_s14 + $0xe8] sm:$0xff] }
  0x7b   : > { %v913_v2 = vadd.f32 %v911_v28, %v881_v4  ;;  %v919_v39 = vadd.f32 %v917_v49, %v915_v5  ;;  %v935_v45 = vmul.f32 %v1746_v44, %v2406_v37  ;;  %v936_v35 = vmul.f32 %v1746_v44, %v2409_v34  ;;  %2757 = vst [vmem:[#allocation29_spill] sm:$0xff] %v2432_v32  ;;  %v2435_v21 = vld [vmem:[%s2122_s14 + $0x1e0] sm:$0xff]  ;;  %v2441_v56 = vld [vmem:[%s2122_s14 + $0x1e8] sm:$0xff] }
  0x7c   : > { %v914_v24 = vadd.f32 %v912_v15, %v882_v62  ;;  %v920_v55 = vadd.f32 %v918_v23, %v916_v61  ;;  %v941_v3 = vmul.f32 %v1747_v40, %v2416_v9  ;;  %v942_v8 = vmul.f32 %v1747_v40, %v2419_v14  ;;  %2758 = vst [vmem:[#allocation30_spill] sm:$0xff] %v2435_v21 }
  0x7d   : > { %v921_v49 = vadd.f32 %v919_v39, %v889_v47  ;;  %v947_v4 = vmul.f32 %v1746_v44, %v2416_v9  ;;  %v948_v33 = vmul.f32 %v1746_v44, %v2419_v14  ;;  %v949_v62 = vmul.f32 %v1747_v40, %v2406_v37  ;;  %2759 = vst [vmem:[#allocation31_spill] sm:$0xff] %v2441_v56  ;;  %v1758_v39 = vld [vmem:[%s2118_s8 + $0x1e] ss:$0 sm:$0xff] }
  0x7e   : > { %v922_v6 = vadd.f32 %v920_v55, %v890_v48  ;;  %v943_v28 = vsub.f32 %v935_v45, %v941_v3  ;;  %v944_v5 = vsub.f32 %v936_v35, %v942_v8  ;;  %v950_v61 = vmul.f32 %v1747_v40, %v2409_v34  ;;  %v1759_v14 = vld [vmem:[%s2118_s8 + $0x3e] ss:$0 sm:$0xff]  ;;  %v2451_v48 = vld [vmem:[%s2122_s14 + $0xf0] sm:$0xff] }
  0x7f   : > { %v951_v15 = vadd.f32 %v949_v62, %v947_v4  ;;  %v967_v23 = vmul.f32 %v1752_v7, %v2429_v46  ;;  %v968_v47 = vmul.f32 %v1752_v7, %v2432_v32  ;;  %v973_v44 = vmul.f32 %v1753_v38, %v2435_v21  ;;  %v2454_v3 = vld [vmem:[%s2122_s14 + $0xf8] sm:$0xff]  ;;  %v2457_v40 = vld [vmem:[%s2122_s14 + $0x1f0] sm:$0xff] }
  0x80   : > { %v945_v9 = vadd.f32 %v943_v28, %v913_v2  ;;  %v946_v37 = vadd.f32 %v944_v5, %v914_v24  ;;  %v952_v0 = vadd.f32 %v950_v61, %v948_v33  ;;  %v974_v55 = vmul.f32 %v1753_v38, %v2441_v56  ;;  %2760 = vst [vmem:[#allocation32_spill] sm:$0xff] %v2457_v40  ;;  %v2462_v62 = vld [vmem:[%s2122_s14 + $0x1f8] sm:$0xff] }
  0x81   : > { %v953_v35 = vadd.f32 %v951_v15, %v921_v49  ;;  %v975_v45 = vsub.f32 %v967_v23, %v973_v44  ;;  %v979_v8 = vmul.f32 %v1752_v7, %v2435_v21  ;;  %v980_v4 = vmul.f32 %v1752_v7, %v2441_v56  ;;  %2761 = vst [vmem:[#allocation33_spill] sm:$0xff] %v2462_v62  ;;  %v1764_v56 = vld [vmem:[%s2118_s8 + $0x1] ss:$0 sm:$0xff] }
  0x82   : > { %v954_v2 = vadd.f32 %v952_v0, %v922_v6  ;;  %v976_v24 = vsub.f32 %v968_v47, %v974_v55  ;;  %v981_v33 = vmul.f32 %v1753_v38, %v2429_v46  ;;  %v982_v28 = vmul.f32 %v1753_v38, %v2432_v32 }
  0x83   : > { %v977_v5 = vadd.f32 %v975_v45, %v945_v9  ;;  %v999_v61 = vmul.f32 %v1758_v39, %v2451_v48  ;;  %v1000_v49 = vmul.f32 %v1758_v39, %v2454_v3  ;;  %v1005_v15 = vmul.f32 %v1759_v14, %v2457_v40  ;;  %v1765_v9 = vld [vmem:[%s2118_s8 + $0x21] ss:$0 sm:$0xff] }
  0x84   : > { %v978_v23 = vadd.f32 %v976_v24, %v946_v37  ;;  %v983_v44 = vadd.f32 %v981_v33, %v979_v8  ;;  %v984_v21 = vadd.f32 %v982_v28, %v980_v4  ;;  %v1006_v7 = vmul.f32 %v1759_v14, %v2462_v62 }
  0x85   : > { %v1007_v0 = vsub.f32 %v999_v61, %v1005_v15  ;;  %v1011_v6 = vmul.f32 %v1758_v39, %v2457_v40  ;;  %v1012_v47 = vmul.f32 %v1758_v39, %v2462_v62  ;;  %v1013_v38 = vmul.f32 %v1759_v14, %v2451_v48  ;;  %v1770_v62 = vld [vmem:[%s2118_s8 + $0x3] ss:$0 sm:$0xff] }
  0x86   : > { %v985_v55 = vadd.f32 %v983_v44, %v953_v35  ;;  %v986_v45 = vadd.f32 %v984_v21, %v954_v2  ;;  %v1008_v32 = vsub.f32 %v1000_v49, %v1006_v7  ;;  %v1014_v37 = vmul.f32 %v1759_v14, %v2454_v3  ;;  %v1771_v40 = vld [vmem:[%s2118_s8 + $0x23] ss:$0 sm:$0xff]  ;;  %v1776_v44 = vld [vmem:[%s2118_s8 + $0x5] ss:$0 sm:$0xff] }
  0x87   : > { %v1009_v8 = vadd.f32 %v1007_v0, %v977_v5  ;;  %v1015_v4 = vadd.f32 %v1013_v38, %v1011_v6  ;;  %v1034_v24 = vmul.f32 %v1764_v56, %v2125_v10  ;;  %v1035_v33 = vmul.f32 %v1764_v56, %v2128_v11 }
  0x88   : > { %v1010_v28 = vadd.f32 %v1008_v32, %v978_v23  ;;  %v1016_v61 = vadd.f32 %v1014_v37, %v1012_v47  ;;  %v1040_v39 = vmul.f32 %v1765_v9, %v2131_v12  ;;  %v1041_v15 = vmul.f32 %v1765_v9, %v2134_v13 }
  0x89   : > { %v1017_v35 = vadd.f32 %v1015_v4, %v985_v55  ;;  %1019 = vst [vmem:[%s2483_s9] sm:$0xff] %v1009_v8  ;;  %v1046_v14 = vmul.f32 %v1764_v56, %v2131_v12  ;;  %v1047_v32 = vmul.f32 %v1764_v56, %v2134_v13  ;;  %v1048_v21 = vmul.f32 %v1765_v9, %v2125_v10  ;;  %v1777_v12 = vld [vmem:[%s2118_s8 + $0x25] ss:$0 sm:$0xff] }
  0x8a   : > { %v1018_v2 = vadd.f32 %v1016_v61, %v986_v45  ;;  %1020 = vst [vmem:[%s2483_s9 + $0x8] sm:$0xff] %v1010_v28  ;;  %v1042_v5 = vsub.f32 %v1034_v24, %v1040_v39  ;;  %v1043_v49 = vsub.f32 %v1035_v33, %v1041_v15  ;;  %v1049_v23 = vmul.f32 %v1765_v9, %v2128_v11 }
  0x8b   : > { %1760 = vst [vmem:[%s2483_s9 + $0x20] sm:$0xff] %v1017_v35  ;;  %v1050_v7 = vadd.f32 %v1048_v21, %v1046_v14  ;;  %v1064_v0 = vmul.f32 %v1770_v62, %v2145_v22  ;;  %v1065_v6 = vmul.f32 %v1770_v62, %v2150_v25  ;;  %v1070_v47 = vmul.f32 %v1771_v40, %v2153_v26 }
  0x8c   : > { %1761 = vst [vmem:[%s2483_s9 + $0x28] sm:$0xff] %v1018_v2  ;;  %v1051_v13 = vadd.f32 %v1049_v23, %v1047_v32  ;;  %v1071_v10 = vmul.f32 %v1771_v40, %v2156_v27  ;;  %v1076_v56 = vmul.f32 %v1770_v62, %v2153_v26  ;;  %v1077_v38 = vmul.f32 %v1770_v62, %v2156_v27  ;;  %v1782_v62 = vld [vmem:[%s2118_s8 + $0x7] ss:$0 sm:$0xff] }
  0x8d   : > { %v1072_v11 = vsub.f32 %v1064_v0, %v1070_v47  ;;  %v1078_v9 = vmul.f32 %v1771_v40, %v2145_v22  ;;  %v1079_v55 = vmul.f32 %v1771_v40, %v2150_v25  ;;  %v1094_v45 = vmul.f32 %v1776_v44, %v2164_v36  ;;  %v1783_v40 = vld [vmem:[%s2118_s8 + $0x27] ss:$0 sm:$0xff]  ;;  %v1789_v47 = vld [vmem:[%s2118_s8 + $0x29] ss:$0 sm:$0xff] }
  0x8e   : > { %v1073_v37 = vsub.f32 %v1065_v6, %v1071_v10  ;;  %v1095_v8 = vmul.f32 %v1776_v44, %v2170_v41  ;;  %v1100_v4 = vmul.f32 %v1777_v12, %v2173_v42  ;;  %v1101_v24 = vmul.f32 %v1777_v12, %v2176_v43 }
  0x8f   : > { %v1074_v33 = vadd.f32 %v1072_v11, %v1042_v5  ;;  %v1080_v28 = vadd.f32 %v1078_v9, %v1076_v56  ;;  %v1081_v26 = vadd.f32 %v1079_v55, %v1077_v38  ;;  %v1106_v27 = vmul.f32 %v1776_v44, %v2173_v42 }
  0x90   : > { %v1075_v61 = vadd.f32 %v1073_v37, %v1043_v49  ;;  %v1102_v22 = vsub.f32 %v1094_v45, %v1100_v4  ;;  %v1103_v39 = vsub.f32 %v1095_v8, %v1101_v24  ;;  %v1107_v25 = vmul.f32 %v1776_v44, %v2176_v43  ;;  %v1788_v44 = vld [vmem:[%s2118_s8 + $0x9] ss:$0 sm:$0xff]  ;;  %v1794_v37 = vld [vmem:[%s2118_s8 + $0xb] ss:$0 sm:$0xff] }
  0x91   : > { %v1082_v15 = vadd.f32 %v1080_v28, %v1050_v7  ;;  %v1083_v35 = vadd.f32 %v1081_v26, %v1051_v13  ;;  %v1108_v14 = vmul.f32 %v1777_v12, %v2164_v36  ;;  %v1109_v32 = vmul.f32 %v1777_v12, %v2170_v41  ;;  %v1795_v8 = vld [vmem:[%s2118_s8 + $0x2b] ss:$0 sm:$0xff] }
  0x92   : > { %v1104_v21 = vadd.f32 %v1102_v22, %v1074_v33  ;;  %v1105_v2 = vadd.f32 %v1103_v39, %v1075_v61  ;;  %v1124_v5 = vmul.f32 %v1782_v62, %v2189_v58  ;;  %v1125_v42 = vmul.f32 %v1782_v62, %v2192_v59 }
  0x93   : > { %v1110_v49 = vadd.f32 %v1108_v14, %v1106_v27  ;;  %v1111_v23 = vadd.f32 %v1109_v32, %v1107_v25  ;;  %v1130_v0 = vmul.f32 %v1783_v40, %v2195_v60  ;;  %v1131_v43 = vmul.f32 %v1783_v40, %v2198_v1 }
  0x94   : > { %v1136_v7 = vmul.f32 %v1782_v62, %v2195_v60  ;;  %v1137_v6 = vmul.f32 %v1782_v62, %v2198_v1  ;;  %v1138_v36 = vmul.f32 %v1783_v40, %v2189_v58  ;;  %v1139_v41 = vmul.f32 %v1783_v40, %v2192_v59 }
  0x95   : > { %v1112_v12 = vadd.f32 %v1110_v49, %v1082_v15  ;;  %v1113_v13 = vadd.f32 %v1111_v23, %v1083_v35  ;;  %v1132_v10 = vsub.f32 %v1124_v5, %v1130_v0  ;;  %v1133_v56 = vsub.f32 %v1125_v42, %v1131_v43 }
  0x96   : > { %v1140_v38 = vadd.f32 %v1138_v36, %v1136_v7  ;;  %v1141_v11 = vadd.f32 %v1139_v41, %v1137_v6  ;;  %v1154_v9 = vmul.f32 %v1788_v44, %v2208_v19  ;;  %v1155_v55 = vmul.f32 %v1788_v44, %v2211_v20  ;;  %v1806_v36 = vld [vmem:[%s2118_s8 + $0xf] ss:$0 sm:$0xff] }
  0x97   : > { %v1134_v60 = vadd.f32 %v1132_v10, %v1104_v21  ;;  %v1135_v45 = vadd.f32 %v1133_v56, %v1105_v2  ;;  %v1160_v1 = vmul.f32 %v1789_v47, %v2218_v30  ;;  %v1161_v58 = vmul.f32 %v1789_v47, %v2221_v31  ;;  %v1801_v21 = vld [vmem:[%s2118_s8 + $0x2d] ss:$0 sm:$0xff] }
  0x98   : > { %v1142_v59 = vadd.f32 %v1140_v38, %v1112_v12  ;;  %v1143_v4 = vadd.f32 %v1141_v11, %v1113_v13  ;;  %v1166_v24 = vmul.f32 %v1788_v44, %v2218_v30  ;;  %v1167_v33 = vmul.f32 %v1788_v44, %v2221_v31  ;;  %v1800_v31 = vld [vmem:[%s2118_s8 + $0xd] ss:$0 sm:$0xff]  ;;  %v1807_v12 = vld [vmem:[%s2118_s8 + $0x2f] ss:$0 sm:$0xff] }
  0x99   : > { %v1162_v28 = vsub.f32 %v1154_v9, %v1160_v1  ;;  %v1163_v26 = vsub.f32 %v1155_v55, %v1161_v58  ;;  %v1168_v27 = vmul.f32 %v1789_v47, %v2208_v19  ;;  %v1169_v62 = vmul.f32 %v1789_v47, %v2211_v20  ;;  %v2762_v1 = vld [vmem:[#allocation5_spill] sm:$0xff]  ;;  %v1812_v58 = vld [vmem:[%s2118_s8 + $0x11] ss:$0 sm:$0xff] }
  0x9a   : > { %v1184_v61 = vmul.f32 %v1794_v37, %v2231_v50  ;;  %v1185_v22 = vmul.f32 %v1794_v37, %v2234_v51  ;;  %v1190_v39 = vmul.f32 %v1795_v8, %v2237_v52  ;;  %v1191_v25 = vmul.f32 %v1795_v8, %v2243_v57 }
  0x9b   : > { %v1164_v40 = vadd.f32 %v1162_v28, %v1134_v60  ;;  %v1165_v15 = vadd.f32 %v1163_v26, %v1135_v45  ;;  %v1170_v30 = vadd.f32 %v1168_v27, %v1166_v24  ;;  %v1171_v35 = vadd.f32 %v1169_v62, %v1167_v33  ;;  %v2763_v27 = vld [vmem:[#allocation6_spill] sm:$0xff] }
  0x9c   : > { %v1192_v14 = vsub.f32 %v1184_v61, %v1190_v39  ;;  %v1193_v32 = vsub.f32 %v1185_v22, %v1191_v25  ;;  %v1196_v19 = vmul.f32 %v1794_v37, %v2237_v52  ;;  %v1197_v20 = vmul.f32 %v1794_v37, %v2243_v57  ;;  %v1813_v37 = vld [vmem:[%s2118_s8 + $0x31] ss:$0 sm:$0xff]  ;;  %v2765_v39 = vld [vmem:[#allocation8_spill] sm:$0xff] }
  0x9d   : > { %v1172_v2 = vadd.f32 %v1170_v30, %v1142_v59  ;;  %v1173_v5 = vadd.f32 %v1171_v35, %v1143_v4  ;;  %v1198_v42 = vmul.f32 %v1795_v8, %v2231_v50  ;;  %v1199_v49 = vmul.f32 %v1795_v8, %v2234_v51  ;;  %v2764_v61 = vld [vmem:[#allocation7_spill] sm:$0xff] }
  0x9e   : > { %v1194_v23 = vadd.f32 %v1192_v14, %v1164_v40  ;;  %v1195_v0 = vadd.f32 %v1193_v32, %v1165_v15  ;;  %v1214_v43 = vmul.f32 %v1800_v31, %v2253_v16  ;;  %v1215_v44 = vmul.f32 %v1800_v31, %v2256_v17  ;;  %v2766_v40 = vld [vmem:[#allocation9_spill] sm:$0xff]  ;;  %v1818_v14 = vld [vmem:[%s2118_s8 + $0x13] ss:$0 sm:$0xff] }
  0x9f   : > { %v1200_v7 = vadd.f32 %v1198_v42, %v1196_v19  ;;  %v1201_v6 = vadd.f32 %v1199_v49, %v1197_v20  ;;  %v1220_v52 = vmul.f32 %v1801_v21, %v2259_v18  ;;  %v1221_v57 = vmul.f32 %v1801_v21, %v2264_v29  ;;  %v1819_v20 = vld [vmem:[%s2118_s8 + $0x33] ss:$0 sm:$0xff] }
  0xa0   : > { %v1226_v41 = vmul.f32 %v1800_v31, %v2259_v18  ;;  %v1227_v47 = vmul.f32 %v1800_v31, %v2264_v29  ;;  %v1228_v50 = vmul.f32 %v1801_v21, %v2253_v16  ;;  %v1229_v51 = vmul.f32 %v1801_v21, %v2256_v17 }
  0xa1   : > { %v1202_v13 = vadd.f32 %v1200_v7, %v1172_v2  ;;  %v1203_v10 = vadd.f32 %v1201_v6, %v1173_v5  ;;  %v1222_v56 = vsub.f32 %v1214_v43, %v1220_v52  ;;  %v1223_v38 = vsub.f32 %v1215_v44, %v1221_v57  ;;  %v2768_v44 = vld [vmem:[#allocation11_spill] sm:$0xff]  ;;  %v2769_v57 = vld [vmem:[#allocation12_spill] sm:$0xff] }
  0xa2   : > { %v1230_v11 = vadd.f32 %v1228_v50, %v1226_v41  ;;  %v1231_v9 = vadd.f32 %v1229_v51, %v1227_v47  ;;  %v1244_v55 = vmul.f32 %v1806_v36, %v2274_v53  ;;  %v1245_v60 = vmul.f32 %v1806_v36, %v2277_v54  ;;  %v2770_v41 = vld [vmem:[#allocation13_spill] sm:$0xff]  ;;  %v1824_v50 = vld [vmem:[%s2118_s8 + $0x15] ss:$0 sm:$0xff] }
  0xa3   : > { %v1224_v18 = vadd.f32 %v1222_v56, %v1194_v23  ;;  %v1225_v45 = vadd.f32 %v1223_v38, %v1195_v0  ;;  %v1250_v29 = vmul.f32 %v1807_v12, %v2284_v63  ;;  %v1251_v16 = vmul.f32 %v1807_v12, %v2762_v1  ;;  %v2767_v0 = vld [vmem:[#allocation10_spill] sm:$0xff]  ;;  %v1825_v56 = vld [vmem:[%s2118_s8 + $0x35] ss:$0 sm:$0xff] }
  0xa4   : > { %v1232_v17 = vadd.f32 %v1230_v11, %v1202_v13  ;;  %v1233_v8 = vadd.f32 %v1231_v9, %v1203_v10  ;;  %v1256_v59 = vmul.f32 %v1806_v36, %v2284_v63  ;;  %v1257_v4 = vmul.f32 %v1806_v36, %v2762_v1  ;;  %v2772_v1 = vld [vmem:[#allocation15_spill] sm:$0xff] }
  0xa5   : > { %v1252_v24 = vsub.f32 %v1244_v55, %v1250_v29  ;;  %v1253_v33 = vsub.f32 %v1245_v60, %v1251_v16  ;;  %v1258_v28 = vmul.f32 %v1807_v12, %v2274_v53  ;;  %v1259_v26 = vmul.f32 %v1807_v12, %v2277_v54 }
  0xa6   : > { %v1274_v62 = vmul.f32 %v1812_v58, %v2763_v27  ;;  %v1275_v22 = vmul.f32 %v1812_v58, %v2764_v61  ;;  %v1280_v25 = vmul.f32 %v1813_v37, %v2765_v39  ;;  %v1281_v15 = vmul.f32 %v1813_v37, %v2766_v40 }
  0xa7   : > { %v1254_v30 = vadd.f32 %v1252_v24, %v1224_v18  ;;  %v1255_v35 = vadd.f32 %v1253_v33, %v1225_v45  ;;  %v1260_v63 = vadd.f32 %v1258_v28, %v1256_v59  ;;  %v1261_v31 = vadd.f32 %v1259_v26, %v1257_v4  ;;  %v2771_v45 = vld [vmem:[#allocation14_spill] sm:$0xff]  ;;  %v2774_v59 = vld [vmem:[#allocation17_spill] sm:$0xff]  ;;  %v1830_v24 = vld [vmem:[%s2118_s8 + $0x17] ss:$0 sm:$0xff] }
  0xa8   : > { %v1282_v32 = vsub.f32 %v1274_v62, %v1280_v25  ;;  %v1283_v19 = vsub.f32 %v1275_v22, %v1281_v15  ;;  %v1286_v53 = vmul.f32 %v1812_v58, %v2765_v39  ;;  %v1287_v54 = vmul.f32 %v1812_v58, %v2766_v40  ;;  %v1831_v33 = vld [vmem:[%s2118_s8 + $0x37] ss:$0 sm:$0xff]  ;;  %v2775_v40 = vld [vmem:[#allocation18_spill] sm:$0xff] }
  0xa9   : > { %v1262_v21 = vadd.f32 %v1260_v63, %v1232_v17  ;;  %v1263_v2 = vadd.f32 %v1261_v31, %v1233_v8  ;;  %v1288_v5 = vmul.f32 %v1813_v37, %v2763_v27  ;;  %v1289_v42 = vmul.f32 %v1813_v37, %v2764_v61  ;;  %v2773_v17 = vld [vmem:[#allocation16_spill] sm:$0xff] }
  0xaa   : > { %v1284_v49 = vadd.f32 %v1282_v32, %v1254_v30  ;;  %v1285_v23 = vadd.f32 %v1283_v19, %v1255_v35  ;;  %v1304_v43 = vmul.f32 %v1818_v14, %v2767_v0  ;;  %v1305_v7 = vmul.f32 %v1818_v14, %v2768_v44  ;;  %v2776_v30 = vld [vmem:[#allocation19_spill] sm:$0xff]  ;;  %v2777_v63 = vld [vmem:[#allocation20_spill] sm:$0xff] }
  0xab   : > { %v1290_v6 = vadd.f32 %v1288_v5, %v1286_v53  ;;  %v1291_v52 = vadd.f32 %v1289_v42, %v1287_v54  ;;  %v1310_v36 = vmul.f32 %v1819_v20, %v2769_v57  ;;  %v1311_v47 = vmul.f32 %v1819_v20, %v2770_v41 }
  0xac   : > { %v1316_v51 = vmul.f32 %v1818_v14, %v2769_v57  ;;  %v1317_v12 = vmul.f32 %v1818_v14, %v2770_v41  ;;  %v1318_v13 = vmul.f32 %v1819_v20, %v2767_v0  ;;  %v1319_v10 = vmul.f32 %v1819_v20, %v2768_v44  ;;  %v2778_v14 = vld [vmem:[#allocation21_spill] sm:$0xff]  ;;  %v2779_v57 = vld [vmem:[#allocation22_spill] sm:$0xff]  ;;  %v2780_v41 = vld [vmem:[#allocation23_spill] sm:$0xff] }
  0xad   : > { %v1292_v38 = vadd.f32 %v1290_v6, %v1262_v21  ;;  %v1293_v11 = vadd.f32 %v1291_v52, %v1263_v2  ;;  %v1312_v9 = vsub.f32 %v1304_v43, %v1310_v36  ;;  %v1313_v55 = vsub.f32 %v1305_v7, %v1311_v47  ;;  %v1836_v21 = vld [vmem:[%s2118_s8 + $0x19] ss:$0 sm:$0xff] }
  0xae   : > { %v1320_v60 = vadd.f32 %v1318_v13, %v1316_v51  ;;  %v1321_v18 = vadd.f32 %v1319_v10, %v1317_v12  ;;  %v1334_v29 = vmul.f32 %v1824_v50, %v2771_v45  ;;  %v1335_v16 = vmul.f32 %v1824_v50, %v2772_v1  ;;  %v2781_v12 = vld [vmem:[#allocation24_spill] sm:$0xff]  ;;  %v2782_v10 = vld [vmem:[#allocation25_spill] sm:$0xff] }
  0xaf   : > { %v1314_v58 = vadd.f32 %v1312_v9, %v1284_v49  ;;  %v1315_v37 = vadd.f32 %v1313_v55, %v1285_v23  ;;  %v1340_v8 = vmul.f32 %v1825_v56, %v2773_v17  ;;  %v1341_v4 = vmul.f32 %v1825_v56, %v2774_v59  ;;  %v1837_v23 = vld [vmem:[%s2118_s8 + $0x39] ss:$0 sm:$0xff] }
  0xb0   : > { %v1322_v28 = vadd.f32 %v1320_v60, %v1292_v38  ;;  %v1323_v26 = vadd.f32 %v1321_v18, %v1293_v11  ;;  %v1346_v27 = vmul.f32 %v1824_v50, %v2773_v17  ;;  %v1347_v62 = vmul.f32 %v1824_v50, %v2774_v59  ;;  %v1842_v38 = vld [vmem:[%s2118_s8 + $0x1b] ss:$0 sm:$0xff]  ;;  %v2783_v17 = vld [vmem:[#allocation26_spill] sm:$0xff] }
  0xb1   : > { %v1342_v61 = vsub.f32 %v1334_v29, %v1340_v8  ;;  %v1343_v22 = vsub.f32 %v1335_v16, %v1341_v4  ;;  %v1348_v39 = vmul.f32 %v1825_v56, %v2771_v45  ;;  %v1349_v25 = vmul.f32 %v1825_v56, %v2772_v1  ;;  %v1843_v18 = vld [vmem:[%s2118_s8 + $0x3b] ss:$0 sm:$0xff] }
  0xb2   : > { %v1364_v15 = vmul.f32 %v1830_v24, %v2775_v40  ;;  %v1365_v35 = vmul.f32 %v1830_v24, %v2776_v30  ;;  %v1370_v31 = vmul.f32 %v1831_v33, %v2777_v63  ;;  %v1371_v32 = vmul.f32 %v1831_v33, %v2778_v14 }
  0xb3   : > { %v1344_v19 = vadd.f32 %v1342_v61, %v1314_v58  ;;  %v1345_v53 = vadd.f32 %v1343_v22, %v1315_v37  ;;  %v1350_v54 = vadd.f32 %v1348_v39, %v1346_v27  ;;  %v1351_v20 = vadd.f32 %v1349_v25, %v1347_v62  ;;  %v1848_v62 = vld [vmem:[%s2118_s8 + $0x1d] ss:$0 sm:$0xff] }
  0xb4   : > { %v1372_v2 = vsub.f32 %v1364_v15, %v1370_v31  ;;  %v1373_v5 = vsub.f32 %v1365_v35, %v1371_v32  ;;  %v1376_v42 = vmul.f32 %v1830_v24, %v2777_v63  ;;  %v1377_v49 = vmul.f32 %v1830_v24, %v2778_v14  ;;  %v1849_v61 = vld [vmem:[%s2118_s8 + $0x3d] ss:$0 sm:$0xff]  ;;  %v2786_v14 = vld [vmem:[#allocation29_spill] sm:$0xff] }
  0xb5   : > { %v1352_v0 = vadd.f32 %v1350_v54, %v1322_v28  ;;  %v1353_v43 = vadd.f32 %v1351_v20, %v1323_v26  ;;  %v1378_v44 = vmul.f32 %v1831_v33, %v2775_v40  ;;  %v1379_v7 = vmul.f32 %v1831_v33, %v2776_v30  ;;  %v2784_v33 = vld [vmem:[#allocation27_spill] sm:$0xff]  ;;  %v2785_v26 = vld [vmem:[#allocation28_spill] sm:$0xff] }
  0xb6   : > { %v1374_v6 = vadd.f32 %v1372_v2, %v1344_v19  ;;  %v1375_v52 = vadd.f32 %v1373_v5, %v1345_v53  ;;  %v1394_v36 = vmul.f32 %v1836_v21, %v2779_v57  ;;  %v1395_v47 = vmul.f32 %v1836_v21, %v2780_v41  ;;  %v2787_v19 = vld [vmem:[#allocation30_spill] sm:$0xff]  ;;  %v2788_v54 = vld [vmem:[#allocation31_spill] sm:$0xff] }
  0xb7   : > { %v1380_v50 = vadd.f32 %v1378_v44, %v1376_v42  ;;  %v1381_v51 = vadd.f32 %v1379_v7, %v1377_v49  ;;  %v1400_v13 = vmul.f32 %v1837_v23, %v2781_v12  ;;  %v1401_v56 = vmul.f32 %v1837_v23, %v2782_v10  ;;  %v1854_v49 = vld [vmem:[%s2118_s8 + $0x1f] ss:$0 sm:$0xff] }
  0xb8   : > { %v1406_v11 = vmul.f32 %v1836_v21, %v2781_v12  ;;  %v1407_v9 = vmul.f32 %v1836_v21, %v2782_v10  ;;  %v1408_v55 = vmul.f32 %v1837_v23, %v2779_v57  ;;  %v1409_v60 = vmul.f32 %v1837_v23, %v2780_v41 }
  0xb9   : > { %v1382_v45 = vadd.f32 %v1380_v50, %v1352_v0  ;;  %v1383_v29 = vadd.f32 %v1381_v51, %v1353_v43  ;;  %v1402_v1 = vsub.f32 %v1394_v36, %v1400_v13  ;;  %v1403_v16 = vsub.f32 %v1395_v47, %v1401_v56  ;;  %v2789_v13 = vld [vmem:[#allocation32_spill] sm:$0xff]  ;;  %v2790_v56 = vld [vmem:[#allocation33_spill] sm:$0xff] }
  0xba   : > { %v1410_v58 = vadd.f32 %v1408_v55, %v1406_v11  ;;  %v1411_v37 = vadd.f32 %v1409_v60, %v1407_v9  ;;  %v1424_v8 = vmul.f32 %v1842_v38, %v2783_v17  ;;  %v1425_v59 = vmul.f32 %v1842_v38, %v2409_v34 }
  0xbb   : > { %v1404_v4 = vadd.f32 %v1402_v1, %v1374_v6  ;;  %v1405_v24 = vadd.f32 %v1403_v16, %v1375_v52  ;;  %v1430_v28 = vmul.f32 %v1843_v18, %v2784_v33  ;;  %v1431_v27 = vmul.f32 %v1843_v18, %v2785_v26 }
  0xbc   : > { %v1412_v22 = vadd.f32 %v1410_v58, %v1382_v45  ;;  %v1413_v39 = vadd.f32 %v1411_v37, %v1383_v29  ;;  %v1436_v25 = vmul.f32 %v1842_v38, %v2784_v33  ;;  %v1437_v40 = vmul.f32 %v1842_v38, %v2785_v26  ;;  %v1571_v33 = vld [vmem:[%s2483_s9 + $0x28] sm:$0xff] (%p1961_p5) }
  0xbd   : > { %v1432_v15 = vsub.f32 %v1424_v8, %v1430_v28  ;;  %v1433_v30 = vsub.f32 %v1425_v59, %v1431_v27  ;;  %v1438_v35 = vmul.f32 %v1843_v18, %v2783_v17  ;;  %v1439_v63 = vmul.f32 %v1843_v18, %v2409_v34  ;;  %v1855_v34 = vld [vmem:[%s2118_s8 + $0x3f] ss:$0 sm:$0xff]  ;;  %1572 = vst [vmem:[%s1518_s20 + $0x50] sm:$0xff] (%p1961_p5), %v1571_v33 }
  0xbe   : > { %v1454_v31 = vmul.f32 %v1848_v62, %v2429_v46  ;;  %v1455_v32 = vmul.f32 %v1848_v62, %v2786_v14  ;;  %v1460_v53 = vmul.f32 %v1849_v61, %v2787_v19  ;;  %v1461_v20 = vmul.f32 %v1849_v61, %v2788_v54 }
  0xbf   : > { %v1434_v21 = vadd.f32 %v1432_v15, %v1404_v4  ;;  %v1435_v2 = vadd.f32 %v1433_v30, %v1405_v24  ;;  %v1440_v5 = vadd.f32 %v1438_v35, %v1436_v25  ;;  %v1441_v42 = vadd.f32 %v1439_v63, %v1437_v40  ;;  %v1569_v24 = vld [vmem:[%s2483_s9 + $0x20] sm:$0xff] (%p1961_p5) }
  0xc0   : > { %v1462_v23 = vsub.f32 %v1454_v31, %v1460_v53  ;;  %v1463_v0 = vsub.f32 %v1455_v32, %v1461_v20  ;;  %v1466_v43 = vmul.f32 %v1848_v62, %v2787_v19  ;;  %v1467_v44 = vmul.f32 %v1848_v62, %v2788_v54  ;;  %1570 = vst [vmem:[%s1518_s20 + $0x40] sm:$0xff] (%p1961_p5), %v1569_v24 }
  0xc1   : > { %v1442_v7 = vadd.f32 %v1440_v5, %v1412_v22  ;;  %v1443_v6 = vadd.f32 %v1441_v42, %v1413_v39  ;;  %v1468_v52 = vmul.f32 %v1849_v61, %v2429_v46  ;;  %v1469_v57 = vmul.f32 %v1849_v61, %v2786_v14 }
  0xc2   : > { %v1464_v36 = vadd.f32 %v1462_v23, %v1434_v21  ;;  %v1465_v41 = vadd.f32 %v1463_v0, %v1435_v2  ;;  %v1484_v47 = vmul.f32 %v1854_v49, %v2451_v48  ;;  %v1485_v50 = vmul.f32 %v1854_v49, %v2454_v3 }
  0xc3   : > { %v1470_v51 = vadd.f32 %v1468_v52, %v1466_v43  ;;  %v1471_v12 = vadd.f32 %v1469_v57, %v1467_v44  ;;  %v1490_v10 = vmul.f32 %v1855_v34, %v2789_v13  ;;  %v1491_v38 = vmul.f32 %v1855_v34, %v2790_v56 }
  0xc4   : > { %v1496_v11 = vmul.f32 %v1854_v49, %v2789_v13  ;;  %v1497_v46 = vmul.f32 %v1854_v49, %v2790_v56  ;;  %v1498_v9 = vmul.f32 %v1855_v34, %v2451_v48  ;;  %v1499_v55 = vmul.f32 %v1855_v34, %v2454_v3  ;;  %v1561_v48 = vld [vmem:[%s2483_s9] sm:$0xff] (%p1961_p5)  ;;  %v1563_v3 = vld [vmem:[%s2483_s9 + $0x8] sm:$0xff] (%p1961_p5) }
  0xc5   : > { %v1472_v60 = vadd.f32 %v1470_v51, %v1442_v7  ;;  %v1473_v18 = vadd.f32 %v1471_v12, %v1443_v6  ;;  %v1492_v45 = vsub.f32 %v1484_v47, %v1490_v10  ;;  %v1493_v29 = vsub.f32 %v1485_v50, %v1491_v38  ;;  %1562 = vst [vmem:[%s1518_s20] sm:$0xff] (%p1961_p5), %v1561_v48 }
  0xc6   : > { %v1500_v1 = vadd.f32 %v1498_v9, %v1496_v11  ;;  %v1501_v16 = vadd.f32 %v1499_v55, %v1497_v46  ;;  %1516 = sbr.rel (!%p1961_p5) target bundleno = 211 (0xd3), region = 108  ;;  %1564 = vst [vmem:[%s1518_s20 + $0x10] sm:$0xff] (%p1961_p5), %v1563_v3 }
  0xc7   : > { %v1494_v58 = vadd.f32 %v1492_v45, %v1464_v36  ;;  %v1495_v37 = vadd.f32 %v1493_v29, %v1465_v41 }
  0xc8   : > { %v1502_v17 = vadd.f32 %v1500_v1, %v1472_v60  ;;  %v1503_v8 = vadd.f32 %v1501_v16, %v1473_v18 }
  0xc9   : > { %1856 = vst [vmem:[%s2483_s9 + $0x10] sm:$0xff] %v1494_v58  ;;  %1857 = vst [vmem:[%s2483_s9 + $0x18] sm:$0xff] %v1495_v37 }
  0xca   : > { %1858 = vst [vmem:[%s2483_s9 + $0x30] sm:$0xff] %v1502_v17  ;;  %1859 = vst [vmem:[%s2483_s9 + $0x38] sm:$0xff] %v1503_v8 }
  0xd0   : > { %v1565_v59 = vld [vmem:[%s2483_s9 + $0x10] sm:$0xff]  ;;  %v1567_v4 = vld [vmem:[%s2483_s9 + $0x18] sm:$0xff] }
  0xd1   : > { %1566 = vst [vmem:[%s1518_s20 + $0x20] sm:$0xff] %v1565_v59  ;;  %1568 = vst [vmem:[%s1518_s20 + $0x30] sm:$0xff] %v1567_v4  ;;  %v1573_v28 = vld [vmem:[%s2483_s9 + $0x30] sm:$0xff]  ;;  %v1575_v26 = vld [vmem:[%s2483_s9 + $0x38] sm:$0xff] }
  0xd2   : > { %1574 = vst [vmem:[%s1518_s20 + $0x60] sm:$0xff] %v1573_v28  ;;  %1576 = vst [vmem:[%s1518_s20 + $0x70] sm:$0xff] %v1575_v26 }
  0xd3 PF: > { %p9_p10 = scmp.ge.s32.totalorder %s1944_s13, 4   ;;  %s2791_s9 = smov %s1906_s10 }
  0xd4   : > { %s2792_s10 = smov %s1955_s16  ;;  %s2793_s11 = smov %s1944_s13 }
  0xd5   :  { %11 = sbr.rel (!%p9_p10) target bundleno = 2 (0x2), region = 219 }

// kernel: reverse.8
= control target key start
LH: loop header
LB: loop body
LE: loop exit
PB: predicated region body
PF: predicated region fallthrough
CT: control target
= control target key end

     0   :  { %s776_s0 = inlined_call_operand.vmem [shape: f32[2,16,8,8,4], index: 0, kind: input, shape index: {}]   ;;  %s777_s1 = inlined_call_operand.vmem [shape: f32[2,16,8,8,4], index: 1, kind: output, shape index: {}]  }
   0x1   :  { %v256_v0 = vld [vmem:[%s776_s0 + $0xc0] sm:$0xff]  ;;  %v270_v8 = vld [vmem:[%s776_s0 + $0xc8] sm:$0xff]  ;;  %v286_v16 = vld [vmem:[%s776_s0 + $0xd0] sm:$0xff] }
   0x2   :  { %v257_v1 = vld [vmem:[%s776_s0 + $0x1c0] sm:$0xff]  ;;  %4 = vst [vmem:[%s777_s1] sm:$0xff] %v256_v0  ;;  %271 = vst [vmem:[%s777_s1 + $0x8] sm:$0xff] %v270_v8  ;;  %v272_v9 = vld [vmem:[%s776_s0 + $0x1c8] sm:$0xff] }
   0x3   :  { %v259_v2 = vld [vmem:[%s776_s0 + $0x80] sm:$0xff]  ;;  %258 = vst [vmem:[%s777_s1 + $0x100] sm:$0xff] %v257_v1  ;;  %v274_v10 = vld [vmem:[%s776_s0 + $0x88] sm:$0xff]  ;;  %273 = vst [vmem:[%s777_s1 + $0x108] sm:$0xff] %v272_v9 }
   0x4   :  { %260 = vst [vmem:[%s777_s1 + $0x40] sm:$0xff] %v259_v2  ;;  %v261_v3 = vld [vmem:[%s776_s0 + $0x180] sm:$0xff]  ;;  %v276_v11 = vld [vmem:[%s776_s0 + $0x188] sm:$0xff]  ;;  %275 = vst [vmem:[%s777_s1 + $0x48] sm:$0xff] %v274_v10 }
   0x5   :  { %v263_v4 = vld [vmem:[%s776_s0 + $0x40] sm:$0xff]  ;;  %262 = vst [vmem:[%s777_s1 + $0x140] sm:$0xff] %v261_v3  ;;  %277 = vst [vmem:[%s777_s1 + $0x148] sm:$0xff] %v276_v11  ;;  %v278_v12 = vld [vmem:[%s776_s0 + $0x48] sm:$0xff] }
   0x6   :  { %v265_v5 = vld [vmem:[%s776_s0 + $0x140] sm:$0xff]  ;;  %264 = vst [vmem:[%s777_s1 + $0x80] sm:$0xff] %v263_v4  ;;  %v280_v13 = vld [vmem:[%s776_s0 + $0x148] sm:$0xff]  ;;  %279 = vst [vmem:[%s777_s1 + $0x88] sm:$0xff] %v278_v12 }
   0x7   :  { %266 = vst [vmem:[%s777_s1 + $0x180] sm:$0xff] %v265_v5  ;;  %v25_v6 = vld [vmem:[%s776_s0] sm:$0xff]  ;;  %v282_v14 = vld [vmem:[%s776_s0 + $0x8] sm:$0xff]  ;;  %281 = vst [vmem:[%s777_s1 + $0x188] sm:$0xff] %v280_v13 }
   0x8   :  { %v268_v7 = vld [vmem:[%s776_s0 + $0x100] sm:$0xff]  ;;  %267 = vst [vmem:[%s777_s1 + $0xc0] sm:$0xff] %v25_v6  ;;  %283 = vst [vmem:[%s777_s1 + $0xc8] sm:$0xff] %v282_v14  ;;  %v284_v15 = vld [vmem:[%s776_s0 + $0x108] sm:$0xff] }
   0x9   :  { %269 = vst [vmem:[%s777_s1 + $0x1c0] sm:$0xff] %v268_v7  ;;  %v288_v17 = vld [vmem:[%s776_s0 + $0x1d0] sm:$0xff]  ;;  %285 = vst [vmem:[%s777_s1 + $0x1c8] sm:$0xff] %v284_v15  ;;  %v302_v24 = vld [vmem:[%s776_s0 + $0xd8] sm:$0xff] }
   0xa   :  { %287 = vst [vmem:[%s777_s1 + $0x10] sm:$0xff] %v286_v16  ;;  %289 = vst [vmem:[%s777_s1 + $0x110] sm:$0xff] %v288_v17  ;;  %v290_v18 = vld [vmem:[%s776_s0 + $0x90] sm:$0xff]  ;;  %v304_v25 = vld [vmem:[%s776_s0 + $0x1d8] sm:$0xff] }
   0xb   :  { %v292_v19 = vld [vmem:[%s776_s0 + $0x190] sm:$0xff]  ;;  %291 = vst [vmem:[%s777_s1 + $0x50] sm:$0xff] %v290_v18  ;;  %v306_v26 = vld [vmem:[%s776_s0 + $0x98] sm:$0xff]  ;;  %303 = vst [vmem:[%s777_s1 + $0x18] sm:$0xff] %v302_v24 }
   0xc   :  { %v294_v20 = vld [vmem:[%s776_s0 + $0x50] sm:$0xff]  ;;  %293 = vst [vmem:[%s777_s1 + $0x150] sm:$0xff] %v292_v19  ;;  %305 = vst [vmem:[%s777_s1 + $0x118] sm:$0xff] %v304_v25  ;;  %v308_v27 = vld [vmem:[%s776_s0 + $0x198] sm:$0xff] }
   0xd   :  { %295 = vst [vmem:[%s777_s1 + $0x90] sm:$0xff] %v294_v20  ;;  %v296_v21 = vld [vmem:[%s776_s0 + $0x150] sm:$0xff]  ;;  %307 = vst [vmem:[%s777_s1 + $0x58] sm:$0xff] %v306_v26  ;;  %v310_v28 = vld [vmem:[%s776_s0 + $0x58] sm:$0xff] }
   0xe   :  { %v298_v22 = vld [vmem:[%s776_s0 + $0x10] sm:$0xff]  ;;  %297 = vst [vmem:[%s777_s1 + $0x190] sm:$0xff] %v296_v21  ;;  %v312_v29 = vld [vmem:[%s776_s0 + $0x158] sm:$0xff]  ;;  %309 = vst [vmem:[%s777_s1 + $0x158] sm:$0xff] %v308_v27 }
   0xf   :  { %v300_v23 = vld [vmem:[%s776_s0 + $0x110] sm:$0xff]  ;;  %299 = vst [vmem:[%s777_s1 + $0xd0] sm:$0xff] %v298_v22  ;;  %311 = vst [vmem:[%s777_s1 + $0x98] sm:$0xff] %v310_v28  ;;  %v314_v30 = vld [vmem:[%s776_s0 + $0x18] sm:$0xff] }
  0x10   :  { %301 = vst [vmem:[%s777_s1 + $0x1d0] sm:$0xff] %v300_v23  ;;  %313 = vst [vmem:[%s777_s1 + $0x198] sm:$0xff] %v312_v29  ;;  %v316_v31 = vld [vmem:[%s776_s0 + $0x118] sm:$0xff]  ;;  %v318_v32 = vld [vmem:[%s776_s0 + $0xe0] sm:$0xff] }
  0x11   :  { %315 = vst [vmem:[%s777_s1 + $0xd8] sm:$0xff] %v314_v30  ;;  %317 = vst [vmem:[%s777_s1 + $0x1d8] sm:$0xff] %v316_v31  ;;  %v320_v33 = vld [vmem:[%s776_s0 + $0x1e0] sm:$0xff]  ;;  %v334_v40 = vld [vmem:[%s776_s0 + $0xe8] sm:$0xff] }
  0x12   :  { %319 = vst [vmem:[%s777_s1 + $0x20] sm:$0xff] %v318_v32  ;;  %v322_v34 = vld [vmem:[%s776_s0 + $0xa0] sm:$0xff]  ;;  %321 = vst [vmem:[%s777_s1 + $0x120] sm:$0xff] %v320_v33  ;;  %v336_v41 = vld [vmem:[%s776_s0 + $0x1e8] sm:$0xff] }
  0x13   :  { %v324_v35 = vld [vmem:[%s776_s0 + $0x1a0] sm:$0xff]  ;;  %323 = vst [vmem:[%s777_s1 + $0x60] sm:$0xff] %v322_v34  ;;  %335 = vst [vmem:[%s777_s1 + $0x28] sm:$0xff] %v334_v40  ;;  %v338_v42 = vld [vmem:[%s776_s0 + $0xa8] sm:$0xff] }
  0x14   :  { %325 = vst [vmem:[%s777_s1 + $0x160] sm:$0xff] %v324_v35  ;;  %v326_v36 = vld [vmem:[%s776_s0 + $0x60] sm:$0xff]  ;;  %337 = vst [vmem:[%s777_s1 + $0x128] sm:$0xff] %v336_v41  ;;  %v340_v43 = vld [vmem:[%s776_s0 + $0x1a8] sm:$0xff] }
  0x15   :  { %v328_v37 = vld [vmem:[%s776_s0 + $0x160] sm:$0xff]  ;;  %327 = vst [vmem:[%s777_s1 + $0xa0] sm:$0xff] %v326_v36  ;;  %v342_v44 = vld [vmem:[%s776_s0 + $0x68] sm:$0xff]  ;;  %339 = vst [vmem:[%s777_s1 + $0x68] sm:$0xff] %v338_v42 }
  0x16   :  { %v330_v38 = vld [vmem:[%s776_s0 + $0x20] sm:$0xff]  ;;  %329 = vst [vmem:[%s777_s1 + $0x1a0] sm:$0xff] %v328_v37  ;;  %341 = vst [vmem:[%s777_s1 + $0x168] sm:$0xff] %v340_v43  ;;  %v344_v45 = vld [vmem:[%s776_s0 + $0x168] sm:$0xff] }
  0x17   :  { %331 = vst [vmem:[%s777_s1 + $0xe0] sm:$0xff] %v330_v38  ;;  %v332_v39 = vld [vmem:[%s776_s0 + $0x120] sm:$0xff]  ;;  %343 = vst [vmem:[%s777_s1 + $0xa8] sm:$0xff] %v342_v44  ;;  %v346_v46 = vld [vmem:[%s776_s0 + $0x28] sm:$0xff] }
  0x18   :  { %333 = vst [vmem:[%s777_s1 + $0x1e0] sm:$0xff] %v332_v39  ;;  %v348_v47 = vld [vmem:[%s776_s0 + $0x128] sm:$0xff]  ;;  %345 = vst [vmem:[%s777_s1 + $0x1a8] sm:$0xff] %v344_v45  ;;  %v350_v48 = vld [vmem:[%s776_s0 + $0xf0] sm:$0xff] }
  0x19   :  { %347 = vst [vmem:[%s777_s1 + $0xe8] sm:$0xff] %v346_v46  ;;  %349 = vst [vmem:[%s777_s1 + $0x1e8] sm:$0xff] %v348_v47  ;;  %v352_v49 = vld [vmem:[%s776_s0 + $0x1f0] sm:$0xff]  ;;  %v366_v56 = vld [vmem:[%s776_s0 + $0xf8] sm:$0xff] }
  0x1a   :  { %v354_v50 = vld [vmem:[%s776_s0 + $0xb0] sm:$0xff]  ;;  %351 = vst [vmem:[%s777_s1 + $0x30] sm:$0xff] %v350_v48  ;;  %353 = vst [vmem:[%s777_s1 + $0x130] sm:$0xff] %v352_v49  ;;  %v368_v57 = vld [vmem:[%s776_s0 + $0x1f8] sm:$0xff] }
  0x1b   :  { %355 = vst [vmem:[%s777_s1 + $0x70] sm:$0xff] %v354_v50  ;;  %v356_v51 = vld [vmem:[%s776_s0 + $0x1b0] sm:$0xff]  ;;  %367 = vst [vmem:[%s777_s1 + $0x38] sm:$0xff] %v366_v56  ;;  %v370_v58 = vld [vmem:[%s776_s0 + $0xb8] sm:$0xff] }
  0x1c   :  { %v358_v52 = vld [vmem:[%s776_s0 + $0x70] sm:$0xff]  ;;  %357 = vst [vmem:[%s777_s1 + $0x170] sm:$0xff] %v356_v51  ;;  %v372_v59 = vld [vmem:[%s776_s0 + $0x1b8] sm:$0xff]  ;;  %369 = vst [vmem:[%s777_s1 + $0x138] sm:$0xff] %v368_v57 }
  0x1d   :  { %v360_v53 = vld [vmem:[%s776_s0 + $0x170] sm:$0xff]  ;;  %359 = vst [vmem:[%s777_s1 + $0xb0] sm:$0xff] %v358_v52  ;;  %371 = vst [vmem:[%s777_s1 + $0x78] sm:$0xff] %v370_v58  ;;  %v374_v60 = vld [vmem:[%s776_s0 + $0x78] sm:$0xff] }
  0x1e   :  { %361 = vst [vmem:[%s777_s1 + $0x1b0] sm:$0xff] %v360_v53  ;;  %v362_v54 = vld [vmem:[%s776_s0 + $0x30] sm:$0xff]  ;;  %373 = vst [vmem:[%s777_s1 + $0x178] sm:$0xff] %v372_v59  ;;  %v376_v61 = vld [vmem:[%s776_s0 + $0x178] sm:$0xff] }
  0x1f   :  { %v364_v55 = vld [vmem:[%s776_s0 + $0x130] sm:$0xff]  ;;  %363 = vst [vmem:[%s777_s1 + $0xf0] sm:$0xff] %v362_v54  ;;  %v378_v62 = vld [vmem:[%s776_s0 + $0x38] sm:$0xff]  ;;  %375 = vst [vmem:[%s777_s1 + $0xb8] sm:$0xff] %v374_v60 }
  0x20   :  { %365 = vst [vmem:[%s777_s1 + $0x1f0] sm:$0xff] %v364_v55  ;;  %377 = vst [vmem:[%s777_s1 + $0x1b8] sm:$0xff] %v376_v61  ;;  %v380_v63 = vld [vmem:[%s776_s0 + $0x138] sm:$0xff] }
  0x21   :  { %379 = vst [vmem:[%s777_s1 + $0xf8] sm:$0xff] %v378_v62  ;;  %381 = vst [vmem:[%s777_s1 + $0x1f8] sm:$0xff] %v380_v63 }

// kernel: fno3d_forward.12
= control target key start
LH: loop header
LB: loop body
LE: loop exit
PB: predicated region body
PF: predicated region fallthrough
CT: control target
= control target key end

     0   :  { %s1921_s15 = smov 0   ;;  %s2801_s0 = inlined_call_operand.vmem [shape: f32[1280,16], index: 0, kind: input, shape index: {}]   ;;  %s2802_s1 = inlined_call_operand.vmem [shape: f32[1280,16], index: 1, kind: input, shape index: {}]   ;;  %s2803_s2 = inlined_call_operand.vmem [shape: bf16[16,16], index: 2, kind: input, shape index: {}]   ;;  %s2804_s3 = inlined_call_operand.vmem [shape: f32[1,16], index: 3, kind: input, shape index: {}]   ;;  %s2805_s4 = inlined_call_operand.vmem [shape: f32[1280,16], index: 4, kind: output, shape index: {}]  }
   0x1 LB: > { %s1541_s16 = sadd.s32 4294967295, %s1894_s15   ;;  %p1545_p0 = scmp.ge.s32.totalorder %s1894_s15, 1  ;;  %s1894_s15 = sphi %s1921_s15, %s14_s15  }
   0x2   : > { %p174_p1 = scmp.lt.s32.totalorder %s1894_s15, 3 }
   0x4   : > { %p175_p2 = pnand %p1545_p0, %p174_p1 }
   0x5   : > { %s205_s19 = smul.u32 (!%p175_p2), 80, %s1541_s16 }
   0x6   : > { %178 = sbr.rel (%p175_p2) target bundleno = 366 (0x16e), region = 36 }
   0x7   : > { %p206_p3 = scmp.lt.s32.totalorder (!%p175_p2), %s205_s19, 159 }
   0xb   : > { %v1726_v0 = vld [vmem:[%s2803_s2] sm:$0xff]   ;;  %s2807_s19 = smov (!%p206_p3, %s205_s19), 159  ;;  %vm359_vm0 = vcmask 130048  }
   0xc   : > { %1634 = vmatprep.subr.bf16.mxu0 %v1726_v0  ;;  %1716 = vmatprep.subr.bf16.mxu1 %v1726_v0  ;;  %s1932_s20 = sshll.u32 %s2807_s19, 3 }
   0xd   : > { %1635 = vmatpush3.bf16.msra.mxu0 %v1726_v0  ;;  %1717 = vmatpush3.bf16.msra.mxu1 %v1726_v0  ;;  %s1938_s23 = scalar_lea.vmem %s2801_s0, %s1932_s20  ;;  %s2064_s26 = scalar_lea.vmem %s2802_s1, %s1932_s20 }
   0xe   : > { %v224_v1 = vld [vmem:[%s1938_s23] sm:$0xff]  ;;  %v225_v2 = vld [vmem:[%s1938_s23 + $0x8] sm:$0xff]  ;;  %v226_v6 = vld [vmem:[%s1938_s23 + $0x10] sm:$0xff]  ;;  %s2141_s5 = scalar_lea.vmem %s2805_s4, %s1932_s20 }
   0xf   : > { %v264_v3 = vld [vmem:[%s1938_s23 + $0x140] sm:$0xff]  ;;  %v304_v4 = vpack.c.bf16 %v225_v2, %v224_v1  ;;  %v265_v5 = vld [vmem:[%s1938_s23 + $0x148] sm:$0xff]  ;;  %v227_v7 = vld [vmem:[%s1938_s23 + $0x18] sm:$0xff] }
  0x10   : > { %v324_v8 = vpack.c.bf16 %v265_v5, %v264_v3  ;;  %v305_v9 = vpack.c.bf16 %v227_v7, %v226_v6  ;;  %v266_v10 = vld [vmem:[%s1938_s23 + $0x150] sm:$0xff]  ;;  %v267_v11 = vld [vmem:[%s1938_s23 + $0x158] sm:$0xff]  ;;  %v228_v12 = vld [vmem:[%s1938_s23 + $0x20] sm:$0xff] }
  0x11   : > { %1636 = vmatprep.mubr.msk.bf16.mxu0 %vm359_vm0, %v304_v4  ;;  %v325_v13 = vpack.c.bf16 %v267_v11, %v266_v10  ;;  %v229_v14 = vld [vmem:[%s1938_s23 + $0x28] sm:$0xff]  ;;  %v268_v15 = vld [vmem:[%s1938_s23 + $0x160] sm:$0xff]  ;;  %v230_v19 = vld [vmem:[%s1938_s23 + $0x30] sm:$0xff] }
  0x12   : > { %v269_v16 = vld [vmem:[%s1938_s23 + $0x168] sm:$0xff]  ;;  %1676 = vmatprep.mubr.msk.bf16.mxu1 %vm359_vm0, %v324_v8  ;;  %1637 = vmatmul.mubr.msk.bf16.vlgmr.msra.gmra.mxu0 %vm359_vm0, %v305_v9  ;;  %v306_v17 = vpack.c.bf16 %v229_v14, %v228_v12  ;;  %v231_v20 = vld [vmem:[%s1938_s23 + $0x38] sm:$0xff]  ;;  %v270_v21 = vld [vmem:[%s1938_s23 + $0x170] sm:$0xff] }
  0x13   : > { %v326_v18 = vpack.c.bf16 %v269_v16, %v268_v15  ;;  %1677 = vmatmul.mubr.msk.bf16.vlgmr.msra.gmra.mxu1 %vm359_vm0, %v325_v13  ;;  %v271_v22 = vld [vmem:[%s1938_s23 + $0x178] sm:$0xff]  ;;  %v232_v23 = vld [vmem:[%s1938_s23 + $0x40] sm:$0xff]  ;;  %v233_v24 = vld [vmem:[%s1938_s23 + $0x48] sm:$0xff]  ;;  %v307_v27 = vpack.c.bf16 %v231_v20, %v230_v19 }
  0x14   : > { %1640 = vmatprep.mubr.msk.bf16.mxu0 %vm359_vm0, %v306_v17  ;;  %v272_v25 = vld [vmem:[%s1938_s23 + $0x180] sm:$0xff]  ;;  %v273_v26 = vld [vmem:[%s1938_s23 + $0x188] sm:$0xff]  ;;  %v327_v28 = vpack.c.bf16 %v271_v22, %v270_v21  ;;  %v308_v29 = vpack.c.bf16 %v233_v24, %v232_v23  ;;  %v234_v31 = vld [vmem:[%s1938_s23 + $0x50] sm:$0xff] }
  0x15   : > { %1680 = vmatprep.mubr.msk.bf16.mxu1 %vm359_vm0, %v326_v18  ;;  %v328_v30 = vpack.c.bf16 %v273_v26, %v272_v25  ;;  %v235_v32 = vld [vmem:[%s1938_s23 + $0x58] sm:$0xff]  ;;  %v274_v33 = vld [vmem:[%s1938_s23 + $0x190] sm:$0xff]  ;;  %v236_v35 = vld [vmem:[%s1938_s23 + $0x60] sm:$0xff] }
  0x16   : > { %v275_v34 = vld [vmem:[%s1938_s23 + $0x198] sm:$0xff]  ;;  %v237_v36 = vld [vmem:[%s1938_s23 + $0x68] sm:$0xff]  ;;  %v276_v37 = vld [vmem:[%s1938_s23 + $0x1a0] sm:$0xff]  ;;  %v309_v39 = vpack.c.bf16 %v235_v32, %v234_v31 }
  0x17   : > { %v277_v38 = vld [vmem:[%s1938_s23 + $0x1a8] sm:$0xff]  ;;  %v329_v40 = vpack.c.bf16 %v275_v34, %v274_v33  ;;  %v310_v41 = vpack.c.bf16 %v237_v36, %v236_v35  ;;  %v238_v43 = vld [vmem:[%s1938_s23 + $0x70] sm:$0xff]  ;;  %v239_v44 = vld [vmem:[%s1938_s23 + $0x78] sm:$0xff] }
  0x18   : > { %v330_v42 = vpack.c.bf16 %v277_v38, %v276_v37  ;;  %v278_v45 = vld [vmem:[%s1938_s23 + $0x1b0] sm:$0xff]  ;;  %v279_v46 = vld [vmem:[%s1938_s23 + $0x1b8] sm:$0xff]  ;;  %v240_v47 = vld [vmem:[%s1938_s23 + $0x80] sm:$0xff]  ;;  %v311_v51 = vpack.c.bf16 %v239_v44, %v238_v43 }
  0x19   : > { %v241_v48 = vld [vmem:[%s1938_s23 + $0x88] sm:$0xff]  ;;  %v280_v49 = vld [vmem:[%s1938_s23 + $0x1c0] sm:$0xff]  ;;  %v331_v52 = vpack.c.bf16 %v279_v46, %v278_v45  ;;  %v242_v55 = vld [vmem:[%s1938_s23 + $0x90] sm:$0xff] }
  0x1a   : > { %1641 = vmatmul.mubr.msk.bf16.gmra.mxu0 %vm359_vm0, %v307_v27  ;;  %v281_v50 = vld [vmem:[%s1938_s23 + $0x1c8] sm:$0xff]  ;;  %v312_v53 = vpack.c.bf16 %v241_v48, %v240_v47  ;;  %v243_v56 = vld [vmem:[%s1938_s23 + $0x98] sm:$0xff]  ;;  %v282_v57 = vld [vmem:[%s1938_s23 + $0x1d0] sm:$0xff] }
  0x1b   : > { %1681 = vmatmul.mubr.msk.bf16.gmra.mxu1 %vm359_vm0, %v327_v28  ;;  %1644 = vmatprep.mubr.msk.bf16.mxu0 %vm359_vm0, %v308_v29  ;;  %v332_v54 = vpack.c.bf16 %v281_v50, %v280_v49  ;;  %v283_v58 = vld [vmem:[%s1938_s23 + $0x1d8] sm:$0xff]  ;;  %v244_v59 = vld [vmem:[%s1938_s23 + $0xa0] sm:$0xff]  ;;  %v245_v60 = vld [vmem:[%s1938_s23 + $0xa8] sm:$0xff]  ;;  %v313_v63 = vpack.c.bf16 %v243_v56, %v242_v55 }
  0x1c   : > { %1684 = vmatprep.mubr.msk.bf16.mxu1 %vm359_vm0, %v328_v30  ;;  %v284_v61 = vld [vmem:[%s1938_s23 + $0x1e0] sm:$0xff]  ;;  %v285_v62 = vld [vmem:[%s1938_s23 + $0x1e8] sm:$0xff]  ;;  %v333_v0 = vpack.c.bf16 %v283_v58, %v282_v57  ;;  %v314_v1 = vpack.c.bf16 %v245_v60, %v244_v59  ;;  %v246_v3 = vld [vmem:[%s1938_s23 + $0xb0] sm:$0xff] }
  0x1d   : > { %v334_v2 = vpack.c.bf16 %v285_v62, %v284_v61  ;;  %v247_v4 = vld [vmem:[%s1938_s23 + $0xb8] sm:$0xff]  ;;  %v286_v5 = vld [vmem:[%s1938_s23 + $0x1f0] sm:$0xff]  ;;  %v248_v7 = vld [vmem:[%s1938_s23 + $0xc0] sm:$0xff] }
  0x1e   : > { %v287_v6 = vld [vmem:[%s1938_s23 + $0x1f8] sm:$0xff]  ;;  %v249_v8 = vld [vmem:[%s1938_s23 + $0xc8] sm:$0xff]  ;;  %v288_v9 = vld [vmem:[%s1938_s23 + $0x200] sm:$0xff]  ;;  %v315_v11 = vpack.c.bf16 %v247_v4, %v246_v3 }
  0x1f   : > { %v289_v10 = vld [vmem:[%s1938_s23 + $0x208] sm:$0xff]  ;;  %v335_v12 = vpack.c.bf16 %v287_v6, %v286_v5  ;;  %v316_v13 = vpack.c.bf16 %v249_v8, %v248_v7  ;;  %v250_v15 = vld [vmem:[%s1938_s23 + $0xd0] sm:$0xff]  ;;  %v251_v16 = vld [vmem:[%s1938_s23 + $0xd8] sm:$0xff] }
  0x20   : > { %v336_v14 = vpack.c.bf16 %v289_v10, %v288_v9  ;;  %v290_v17 = vld [vmem:[%s1938_s23 + $0x210] sm:$0xff]  ;;  %v291_v18 = vld [vmem:[%s1938_s23 + $0x218] sm:$0xff]  ;;  %v252_v19 = vld [vmem:[%s1938_s23 + $0xe0] sm:$0xff]  ;;  %v317_v23 = vpack.c.bf16 %v251_v16, %v250_v15 }
  0x21   : > { %v253_v20 = vld [vmem:[%s1938_s23 + $0xe8] sm:$0xff]  ;;  %v292_v21 = vld [vmem:[%s1938_s23 + $0x220] sm:$0xff]  ;;  %v337_v24 = vpack.c.bf16 %v291_v18, %v290_v17  ;;  %v254_v27 = vld [vmem:[%s1938_s23 + $0xf0] sm:$0xff] }
  0x22   : > { %1645 = vmatmul.mubr.msk.bf16.gmra.mxu0 %vm359_vm0, %v309_v39  ;;  %v293_v22 = vld [vmem:[%s1938_s23 + $0x228] sm:$0xff]  ;;  %v318_v25 = vpack.c.bf16 %v253_v20, %v252_v19  ;;  %v255_v28 = vld [vmem:[%s1938_s23 + $0xf8] sm:$0xff]  ;;  %v294_v29 = vld [vmem:[%s1938_s23 + $0x230] sm:$0xff] }
  0x23   : > { %1685 = vmatmul.mubr.msk.bf16.gmra.mxu1 %vm359_vm0, %v329_v40  ;;  %1648 = vmatprep.mubr.msk.bf16.mxu0 %vm359_vm0, %v310_v41  ;;  %v338_v26 = vpack.c.bf16 %v293_v22, %v292_v21  ;;  %v295_v30 = vld [vmem:[%s1938_s23 + $0x238] sm:$0xff]  ;;  %v256_v31 = vld [vmem:[%s1938_s23 + $0x100] sm:$0xff]  ;;  %v257_v32 = vld [vmem:[%s1938_s23 + $0x108] sm:$0xff]  ;;  %v319_v35 = vpack.c.bf16 %v255_v28, %v254_v27 }
  0x24   : > { %1688 = vmatprep.mubr.msk.bf16.mxu1 %vm359_vm0, %v330_v42  ;;  %v296_v33 = vld [vmem:[%s1938_s23 + $0x240] sm:$0xff]  ;;  %v297_v34 = vld [vmem:[%s1938_s23 + $0x248] sm:$0xff]  ;;  %v339_v36 = vpack.c.bf16 %v295_v30, %v294_v29  ;;  %v320_v37 = vpack.c.bf16 %v257_v32, %v256_v31  ;;  %v258_v39 = vld [vmem:[%s1938_s23 + $0x110] sm:$0xff] }
  0x25   : > { %v340_v38 = vpack.c.bf16 %v297_v34, %v296_v33  ;;  %v259_v40 = vld [vmem:[%s1938_s23 + $0x118] sm:$0xff]  ;;  %v298_v41 = vld [vmem:[%s1938_s23 + $0x250] sm:$0xff]  ;;  %v260_v43 = vld [vmem:[%s1938_s23 + $0x120] sm:$0xff] }
  0x26   : > { %v299_v42 = vld [vmem:[%s1938_s23 + $0x258] sm:$0xff]  ;;  %v261_v44 = vld [vmem:[%s1938_s23 + $0x128] sm:$0xff]  ;;  %v300_v45 = vld [vmem:[%s1938_s23 + $0x260] sm:$0xff]  ;;  %v321_v47 = vpack.c.bf16 %v259_v40, %v258_v39 }
  0x27   : > { %v301_v46 = vld [vmem:[%s1938_s23 + $0x268] sm:$0xff]  ;;  %v341_v48 = vpack.c.bf16 %v299_v42, %v298_v41  ;;  %v322_v49 = vpack.c.bf16 %v261_v44, %v260_v43  ;;  %v2069_v57 = vld [vmem:[%s2804_s3] ss:$0 sm:$0xff]  ;;  %v835_v59 = vld [vmem:[%s2064_s26 + $0x10] sm:$0xff] }
  0x28   : > { %v342_v50 = vpack.c.bf16 %v301_v46, %v300_v45  ;;  %v875_v62 = vld [vmem:[%s2064_s26 + $0x150] sm:$0xff]  ;;  %v873_v5 = vld [vmem:[%s2064_s26 + $0x140] sm:$0xff]  ;;  %v836_v9 = vld [vmem:[%s2064_s26 + $0x18] sm:$0xff] }
  0x29   : > { %v874_v28 = vld [vmem:[%s2064_s26 + $0x148] sm:$0xff]  ;;  %v839_v32 = vld [vmem:[%s2064_s26 + $0x30] sm:$0xff]  ;;  %v877_v40 = vld [vmem:[%s2064_s26 + $0x160] sm:$0xff] }
  0x2a   : > { %1649 = vmatmul.mubr.msk.bf16.gmra.mxu0 %vm359_vm0, %v311_v51  ;;  %v262_v51 = vld [vmem:[%s1938_s23 + $0x130] sm:$0xff] }
  0x2b   : > { %1689 = vmatmul.mubr.msk.bf16.gmra.mxu1 %vm359_vm0, %v331_v52  ;;  %1652 = vmatprep.mubr.msk.bf16.mxu0 %vm359_vm0, %v312_v53  ;;  %v263_v52 = vld [vmem:[%s1938_s23 + $0x138] sm:$0xff]  ;;  %v302_v53 = vld [vmem:[%s1938_s23 + $0x270] sm:$0xff] }
  0x2c   : > { %1692 = vmatprep.mubr.msk.bf16.mxu1 %vm359_vm0, %v332_v54  ;;  %v303_v54 = vld [vmem:[%s1938_s23 + $0x278] sm:$0xff]  ;;  %v323_v55 = vpack.c.bf16 %v263_v52, %v262_v51  ;;  %v879_v33 = vld [vmem:[%s2064_s26 + $0x170] sm:$0xff] }
  0x2d   : > { %v343_v56 = vpack.c.bf16 %v303_v54, %v302_v53 }
  0x32   : > { %1653 = vmatmul.mubr.msk.bf16.gmra.mxu0 %vm359_vm0, %v313_v63 }
  0x33   : > { %1693 = vmatmul.mubr.msk.bf16.gmra.mxu1 %vm359_vm0, %v333_v0  ;;  %1656 = vmatprep.mubr.msk.bf16.mxu0 %vm359_vm0, %v314_v1  ;;  %v833_v1 = vld [vmem:[%s2064_s26] sm:$0xff] }
  0x34   : > { %1696 = vmatprep.mubr.msk.bf16.mxu1 %vm359_vm0, %v334_v2 }
  0x3a   : > { %1657 = vmatmul.mubr.msk.bf16.gmra.mxu0 %vm359_vm0, %v315_v11 }
  0x3b   : > { %1697 = vmatmul.mubr.msk.bf16.gmra.mxu1 %vm359_vm0, %v335_v12  ;;  %1660 = vmatprep.mubr.msk.bf16.mxu0 %vm359_vm0, %v316_v13 }
  0x3c   : > { %1700 = vmatprep.mubr.msk.bf16.mxu1 %vm359_vm0, %v336_v14  ;;  %v876_v14 = vld [vmem:[%s2064_s26 + $0x158] sm:$0xff] }
  0x42   : > { %1661 = vmatmul.mubr.msk.bf16.gmra.mxu0 %vm359_vm0, %v317_v23 }
  0x43   : > { %1701 = vmatmul.mubr.msk.bf16.gmra.mxu1 %vm359_vm0, %v337_v24  ;;  %1664 = vmatprep.mubr.msk.bf16.mxu0 %vm359_vm0, %v318_v25  ;;  %v834_v24 = vld [vmem:[%s2064_s26 + $0x8] sm:$0xff] }
  0x44   : > { %1704 = vmatprep.mubr.msk.bf16.mxu1 %vm359_vm0, %v338_v26 }
  0x4a   : > { %1665 = vmatmul.mubr.msk.bf16.gmra.mxu0 %vm359_vm0, %v319_v35 }
  0x4b   : > { %1705 = vmatmul.mubr.msk.bf16.gmra.mxu1 %vm359_vm0, %v339_v36  ;;  %1668 = vmatprep.mubr.msk.bf16.mxu0 %vm359_vm0, %v320_v37 }
  0x4c   : > { %1708 = vmatprep.mubr.msk.bf16.mxu1 %vm359_vm0, %v340_v38  ;;  %v837_v38 = vld [vmem:[%s2064_s26 + $0x20] sm:$0xff] }
  0x52   : > { %1669 = vmatmul.mubr.msk.bf16.gmra.mxu0 %vm359_vm0, %v321_v47 }
  0x53   : > { %1709 = vmatmul.mubr.msk.bf16.gmra.mxu1 %vm359_vm0, %v341_v48  ;;  %1672 = vmatprep.mubr.msk.bf16.mxu0 %vm359_vm0, %v322_v49 }
  0x54   : > { %1712 = vmatprep.mubr.msk.bf16.mxu1 %vm359_vm0, %v342_v50 }
  0x5a   : > { %1673 = vmatmul.mubr.msk.bf16.gmra.mxu0 %vm359_vm0, %v323_v55 }
  0x5b   : > { %1713 = vmatmul.mubr.msk.bf16.gmra.mxu1 %vm359_vm0, %v343_v56 }
  0xd2   : > { %v1638_v58 = vpop.f32.mrf.mxu0 }
  0xd3   : > { %v523_v60 = vadd.f32 %v1638_v58, %v2069_v57  ;;  %v1678_v61 = vpop.f32.mrf.mxu1 }
  0xd4   : > { %v683_v63 = vadd.f32 %v1678_v61, %v2069_v57  ;;  %v514_v0 = vpop.f32.mrf.mxu0  ;;  %v840_v61 = vld [vmem:[%s2064_s26 + $0x38] sm:$0xff] }
  0xd5   : > { %v915_v2 = vadd.f32 %v835_v59, %v523_v60  ;;  %v515_v3 = vadd.f32 %v2069_v57, %v514_v0  ;;  %v674_v4 = vpop.f32.mrf.mxu1 }
  0xd6   : > { %v955_v6 = vadd.f32 %v875_v62, %v683_v63  ;;  %v675_v7 = vadd.f32 %v2069_v57, %v674_v4  ;;  %v1639_v8 = vpop.f32.mrf.mxu0 }
  0xd7   : > { %v1075_v10 = vmul.f32 0.70710677, %v915_v2  ;;  %v913_v11 = vadd.f32 %v833_v1, %v515_v3  ;;  %v526_v12 = vadd.f32 %v1639_v8, %v2069_v57  ;;  %v1679_v13 = vpop.f32.mrf.mxu1  ;;  %v995_v53 = vmul.f32 0.5, %v915_v2  ;;  %v880_v2 = vld [vmem:[%s2064_s26 + $0x178] sm:$0xff]  ;;  %v838_v3 = vld [vmem:[%s2064_s26 + $0x28] sm:$0xff] }
  0xd8   : > { %v1115_v15 = vmul.f32 0.70710677, %v955_v6  ;;  %v953_v16 = vadd.f32 %v873_v5, %v675_v7  ;;  %v686_v17 = vadd.f32 %v1679_v13, %v2069_v57  ;;  %v517_v18 = vpop.f32.mrf.mxu0  ;;  %v1035_v54 = vmul.f32 0.5, %v955_v6  ;;  %v878_v8 = vld [vmem:[%s2064_s26 + $0x168] sm:$0xff]  ;;  %v843_v13 = vld [vmem:[%s2064_s26 + $0x50] sm:$0xff] }
  0xd9   : > { %1727 = verf.f32 %v1075_v10  ;;  %v1073_v19 = vmul.f32 0.70710677, %v913_v11  ;;  %v916_v20 = vadd.f32 %v836_v9, %v526_v12  ;;  %v677_v21 = vpop.f32.mrf.mxu1  ;;  %v518_v27 = vadd.f32 %v2069_v57, %v517_v18 }
  0xda   : > { %1729 = verf.f32 %v1115_v15  ;;  %v1113_v22 = vmul.f32 0.70710677, %v953_v16  ;;  %v2083_v23 = vadd.f32 %v876_v14, %v686_v17  ;;  %v1642_v25 = vpop.f32.mrf.mxu0  ;;  %v678_v31 = vadd.f32 %v2069_v57, %v677_v21 }
  0xdb   : > { %1731 = verf.f32 %v1073_v19  ;;  %v1076_v26 = vmul.f32 0.70710677, %v916_v20  ;;  %v1682_v29 = vpop.f32.mrf.mxu1  ;;  %v914_v35 = vadd.f32 %v834_v24, %v518_v27  ;;  %v539_v36 = vadd.f32 %v1642_v25, %v2069_v57 }
  0xdc   : > { %1733 = verf.f32 %v1113_v22  ;;  %v1116_v30 = vmul.f32 0.70710677, %v2083_v23  ;;  %v530_v34 = vpop.f32.mrf.mxu0  ;;  %v699_v37 = vadd.f32 %v1682_v29, %v2069_v57  ;;  %v2096_v41 = vadd.f32 %v874_v28, %v678_v31 }
  0xdd   : > { %1735 = verf.f32 %v1076_v26  ;;  %v690_v39 = vpop.f32.mrf.mxu1  ;;  %v531_v42 = vadd.f32 %v2069_v57, %v530_v34  ;;  %v1074_v45 = vmul.f32 0.70710677, %v914_v35  ;;  %v2100_v46 = vadd.f32 %v839_v32, %v539_v36 }
  0xde   : > { %1737 = verf.f32 %v1116_v30  ;;  %v691_v43 = vadd.f32 %v2069_v57, %v690_v39  ;;  %v1643_v44 = vpop.f32.mrf.mxu0  ;;  %v2102_v47 = vadd.f32 %v879_v33, %v699_v37  ;;  %v1114_v49 = vmul.f32 0.70710677, %v2096_v41 }
  0xdf   : > { %v1683_v48 = vpop.f32.mrf.mxu1  ;;  %v2105_v50 = vadd.f32 %v837_v38, %v531_v42  ;;  %1739 = verf.f32 %v1074_v45  ;;  %v1079_v55 = vmul.f32 0.70710677, %v2100_v46  ;;  %v993_v58 = vmul.f32 0.5, %v913_v11  ;;  %v883_v42 = vld [vmem:[%s2064_s26 + $0x190] sm:$0xff] }
  0xe0   : > { %v2107_v51 = vadd.f32 %v877_v40, %v691_v43  ;;  %v533_v52 = vpop.f32.mrf.mxu0  ;;  %1741 = verf.f32 %v1114_v49  ;;  %v1119_v59 = vmul.f32 0.70710677, %v2102_v47  ;;  %v1033_v63 = vmul.f32 0.5, %v953_v16 }
  0xe1   : > { %v693_v56 = vpop.f32.mrf.mxu1  ;;  %v1077_v60 = vmul.f32 0.70710677, %v2105_v50  ;;  %1743 = verf.f32 %v1079_v55  ;;  %v542_v1 = vadd.f32 %v1643_v44, %v2069_v57  ;;  %v702_v5 = vadd.f32 %v1683_v48, %v2069_v57 }
  0xe2   : > { %v1646_v62 = vpop.f32.mrf.mxu0  ;;  %v1117_v0 = vmul.f32 0.70710677, %v2107_v51  ;;  %1745 = verf.f32 %v1119_v59  ;;  %v534_v6 = vadd.f32 %v2069_v57, %v533_v52  ;;  %v694_v7 = vadd.f32 %v2069_v57, %v693_v56  ;;  %v841_v56 = vld [vmem:[%s2064_s26 + $0x40] sm:$0xff] }
  0xe3   : > { %v1686_v4 = vpop.f32.mrf.mxu1  ;;  %v996_v10 = vmul.f32 0.5, %v916_v20  ;;  %1747 = verf.f32 %v1077_v60  ;;  %v2121_v11 = vadd.f32 %v840_v61, %v542_v1  ;;  %v555_v12 = vadd.f32 %v1646_v62, %v2069_v57  ;;  %v881_v62 = vld [vmem:[%s2064_s26 + $0x180] sm:$0xff] }
  0xe4   : > { %v546_v9 = vpop.f32.mrf.mxu0  ;;  %v1036_v16 = vmul.f32 0.5, %v2083_v23  ;;  %1749 = verf.f32 %v1117_v0  ;;  %v2126_v17 = vadd.f32 %v880_v2, %v702_v5  ;;  %v2128_v18 = vadd.f32 %v838_v3, %v534_v6  ;;  %v844_v0 = vld [vmem:[%s2064_s26 + $0x58] sm:$0xff] }
  0xe5   : > { %v706_v14 = vpop.f32.mrf.mxu1  ;;  %v2130_v20 = vmul.f32 0.5, %v914_v35  ;;  %v1080_v24 = vmul.f32 0.70710677, %v2121_v11  ;;  %v2133_v25 = vadd.f32 %v878_v8, %v694_v7  ;;  %v2144_v29 = vadd.f32 %v843_v13, %v555_v12 }
  0xe6   : > { %v1728_v15 = vpop.eup %1727  ;;  %v1647_v19 = vpop.f32.mrf.mxu0  ;;  %v1120_v28 = vmul.f32 0.70710677, %v2126_v17  ;;  %v715_v30 = vadd.f32 %v1686_v4, %v2069_v57  ;;  %v1078_v35 = vmul.f32 0.70710677, %v2128_v18  ;;  %v1034_v40 = vmul.f32 0.5, %v2096_v41 }
  0xe7   : > { %v1730_v21 = vpop.eup %1729  ;;  %v1235_v22 = vadd.f32 1.0, %v1728_v15  ;;  %v2135_v26 = vpop.f32.mrf.mxu1  ;;  %1751 = verf.f32 %v1080_v24  ;;  %v1118_v49 = vmul.f32 0.70710677, %v2133_v25  ;;  %v1083_v55 = vmul.f32 0.70710677, %v2144_v29 }
  0xe8   : > { %v1732_v27 = vpop.eup %1731  ;;  %v1275_v23 = vadd.f32 1.0, %v1730_v21  ;;  %v2147_v31 = vpop.f32.mrf.mxu0  ;;  %1753 = verf.f32 %v1120_v28  ;;  %v2170_v60 = vadd.f32 %v883_v42, %v715_v30  ;;  %v547_v61 = vadd.f32 %v2069_v57, %v546_v9 }
  0xe9   : > { %v1734_v32 = vpop.eup %1733  ;;  %v1315_v33 = vmul.f32 %v1235_v22, %v995_v53  ;;  %v1233_v34 = vadd.f32 1.0, %v1732_v27  ;;  %v2150_v36 = vpop.f32.mrf.mxu1  ;;  %1755 = verf.f32 %v1078_v35  ;;  %v707_v2 = vadd.f32 %v2069_v57, %v706_v14 }
  0xea   : > { %v1736_v37 = vpop.eup %1735  ;;  %v1355_v38 = vmul.f32 %v1275_v23, %v1035_v54  ;;  %v1273_v39 = vadd.f32 1.0, %v1734_v32  ;;  %v2154_v43 = vpop.f32.mrf.mxu0  ;;  %v999_v54 = vmul.f32 0.5, %v2100_v46  ;;  %1757 = verf.f32 %v1118_v49  ;;  %v884_v32 = vld [vmem:[%s2064_s26 + $0x198] sm:$0xff] }
  0xeb   : > { %v1738_v44 = vpop.eup %1737  ;;  %1395 = vst.msk [vmem:[%s2141_s5 + $0x10] sm:$0xff] %vm359_vm0, %v1315_v33  ;;  %v1313_v45 = vmul.f32 %v1233_v34, %v993_v58  ;;  %v1236_v48 = vadd.f32 1.0, %v1736_v37  ;;  %v2159_v52 = vpop.f32.mrf.mxu1  ;;  %1759 = verf.f32 %v1083_v55  ;;  %v558_v3 = vadd.f32 %v1647_v19, %v2069_v57 }
  0xec   : > { %1435 = vst.msk [vmem:[%s2141_s5 + $0x150] sm:$0xff] %vm359_vm0, %v1355_v38  ;;  %v1353_v41 = vmul.f32 %v1273_v39, %v1033_v63  ;;  %v1276_v53 = vadd.f32 1.0, %v1738_v44  ;;  %v2166_v59 = vpop.f32.mrf.mxu0  ;;  %v1740_v46 = vpop.eup %1739  ;;  %v1039_v7 = vmul.f32 0.5, %v2102_v47  ;;  %v1123_v8 = vmul.f32 0.70710677, %v2170_v60 }
  0xed   : > { %1393 = vst.msk [vmem:[%s2141_s5] sm:$0xff] %vm359_vm0, %v1313_v45  ;;  %v1316_v58 = vmul.f32 %v1236_v48, %v996_v10  ;;  %v2175_v63 = vpop.f32.mrf.mxu1  ;;  %v1742_v5 = vpop.eup %1741  ;;  %v1234_v6 = vadd.f32 1.0, %v1740_v46  ;;  %v2187_v9 = vadd.f32 %v841_v56, %v547_v61  ;;  %v997_v14 = vmul.f32 0.5, %v2105_v50  ;;  %v882_v45 = vld [vmem:[%s2064_s26 + $0x188] sm:$0xff]  ;;  %v847_v48 = vld [vmem:[%s2064_s26 + $0x70] sm:$0xff] }
  0xee   : > { %1433 = vst.msk [vmem:[%s2141_s5 + $0x140] sm:$0xff] %vm359_vm0, %v1353_v41  ;;  %v1356_v1 = vmul.f32 %v1276_v53, %v1036_v16  ;;  %v2181_v4 = vpop.f32.mrf.mxu0  ;;  %v1744_v12 = vpop.eup %1743  ;;  %v1274_v13 = vadd.f32 1.0, %v1742_v5  ;;  %v2194_v15 = vadd.f32 %v881_v62, %v707_v2  ;;  %v2196_v16 = vadd.f32 %v844_v0, %v558_v3 }
  0xef   : > { %1396 = vst.msk [vmem:[%s2141_s5 + $0x18] sm:$0xff] %vm359_vm0, %v1316_v58  ;;  %v2189_v10 = vpop.f32.mrf.mxu1  ;;  %v1746_v19 = vpop.eup %1745  ;;  %v1314_v47 = vmul.f32 %v1234_v6, %v2130_v20  ;;  %v1239_v21 = vadd.f32 1.0, %v1744_v12  ;;  %1761 = verf.f32 %v1123_v8  ;;  %v718_v22 = vadd.f32 %v2135_v26, %v2069_v57  ;;  %v887_v6 = vld [vmem:[%s2064_s26 + $0x1b0] sm:$0xff] }
  0xf0   : > { %1436 = vst.msk [vmem:[%s2141_s5 + $0x158] sm:$0xff] %vm359_vm0, %v1356_v1  ;;  %v2201_v24 = vpop.f32.mrf.mxu0  ;;  %v1748_v27 = vpop.eup %1747  ;;  %v1354_v23 = vmul.f32 %v1274_v13, %v1034_v40  ;;  %v1279_v28 = vadd.f32 1.0, %v1746_v19  ;;  %v1037_v50 = vmul.f32 0.5, %v2107_v51  ;;  %v1081_v30 = vmul.f32 0.70710677, %v2187_v9  ;;  %v842_v40 = vld [vmem:[%s2064_s26 + $0x48] sm:$0xff] }
  0xf1   : > { %v1750_v33 = vpop.eup %1749  ;;  %1394 = vst.msk [vmem:[%s2141_s5 + $0x8] sm:$0xff] %vm359_vm0, %v1314_v47  ;;  %v1319_v20 = vmul.f32 %v1239_v21, %v999_v54  ;;  %v1237_v34 = vadd.f32 1.0, %v1748_v27  ;;  %v1000_v26 = vmul.f32 0.5, %v2121_v11  ;;  %v1121_v35 = vmul.f32 0.70710677, %v2194_v15  ;;  %v2210_v37 = vpop.f32.mrf.mxu1 }
  0xf2   : > { %1434 = vst.msk [vmem:[%s2141_s5 + $0x148] sm:$0xff] %vm359_vm0, %v1354_v23  ;;  %v1359_v51 = vmul.f32 %v1279_v28, %v1039_v7  ;;  %v1277_v38 = vadd.f32 1.0, %v1750_v33  ;;  %1763 = verf.f32 %v1081_v30  ;;  %v1084_v39 = vmul.f32 0.70710677, %v2196_v16  ;;  %v2224_v49 = vpop.f32.mrf.mxu0  ;;  %v885_v30 = vld [vmem:[%s2064_s26 + $0x1a0] sm:$0xff] }
  0xf3   : > { %1399 = vst.msk [vmem:[%s2141_s5 + $0x30] sm:$0xff] %vm359_vm0, %v1319_v20  ;;  %v1317_v42 = vmul.f32 %v1237_v34, %v997_v14  ;;  %1765 = verf.f32 %v1121_v35  ;;  %v2218_v44 = vadd.f32 %v884_v32, %v718_v22  ;;  %v550_v11 = vadd.f32 %v2069_v57, %v2147_v31  ;;  %v2238_v0 = vpop.f32.mrf.mxu1  ;;  %v848_v32 = vld [vmem:[%s2064_s26 + $0x78] sm:$0xff] }
  0xf4   : > { %v1752_v41 = vpop.eup %1751  ;;  %1439 = vst.msk [vmem:[%s2141_s5 + $0x170] sm:$0xff] %vm359_vm0, %v1359_v51  ;;  %v1357_v53 = vmul.f32 %v1277_v38, %v1037_v50  ;;  %1767 = verf.f32 %v1084_v39  ;;  %v710_v54 = vadd.f32 %v2069_v57, %v2150_v36  ;;  %v571_v55 = vadd.f32 %v2154_v43, %v2069_v57  ;;  %v2250_v7 = vpop.f32.mrf.mxu0  ;;  %v845_v50 = vld [vmem:[%s2064_s26 + $0x60] sm:$0xff] }
  0xf5   : > { %v1754_v56 = vpop.eup %1753  ;;  %1397 = vst.msk [vmem:[%s2141_s5 + $0x20] sm:$0xff] %vm359_vm0, %v1317_v42  ;;  %v1240_v31 = vadd.f32 1.0, %v1752_v41  ;;  %v1040_v58 = vmul.f32 0.5, %v2126_v17  ;;  %v1124_v61 = vmul.f32 0.70710677, %v2218_v44  ;;  %v2236_v62 = vadd.f32 %v842_v40, %v550_v11  ;;  %v2259_v27 = vpop.f32.mrf.mxu1  ;;  %v888_v42 = vld [vmem:[%s2064_s26 + $0x1b8] sm:$0xff] }
  0xf6   : > { %v1756_v46 = vpop.eup %1755  ;;  %1437 = vst.msk [vmem:[%s2141_s5 + $0x160] sm:$0xff] %vm359_vm0, %v1357_v53  ;;  %v1280_v36 = vadd.f32 1.0, %v1754_v56  ;;  %v2242_v1 = vadd.f32 %v882_v45, %v710_v54  ;;  %v2244_v43 = vadd.f32 %v847_v48, %v571_v55  ;;  %v731_v2 = vadd.f32 %v2159_v52, %v2069_v57  ;;  %v2276_v34 = vpop.f32.mrf.mxu0  ;;  %v846_v45 = vld [vmem:[%s2064_s26 + $0x68] sm:$0xff] }
  0xf7   : > { %v1320_v3 = vmul.f32 %v1240_v31, %v1000_v26  ;;  %v998_v17 = vmul.f32 0.5, %v2128_v18  ;;  %v1238_v5 = vadd.f32 1.0, %v1756_v46  ;;  %1769 = verf.f32 %v1124_v61  ;;  %v1758_v8 = vpop.eup %1757  ;;  %v2288_v40 = vpop.f32.mrf.mxu1  ;;  %v886_v31 = vld [vmem:[%s2064_s26 + $0x1a8] sm:$0xff] }
  0xf8   : > { %v1360_v12 = vmul.f32 %v1280_v36, %v1040_v58  ;;  %v1038_v13 = vmul.f32 0.5, %v2133_v25  ;;  %v1082_v14 = vmul.f32 0.70710677, %v2236_v62  ;;  %v1122_v52 = vmul.f32 0.70710677, %v2242_v1  ;;  %v1760_v19 = vpop.eup %1759  ;;  %v2304_v58 = vpop.f32.mrf.mxu0 }
  0xf9   : > { %1400 = vst.msk [vmem:[%s2141_s5 + $0x38] sm:$0xff] %vm359_vm0, %v1320_v3  ;;  %v1318_v18 = vmul.f32 %v1238_v5, %v998_v17  ;;  %v1278_v47 = vadd.f32 1.0, %v1758_v8  ;;  %v1003_v21 = vmul.f32 0.5, %v2144_v29  ;;  %v1087_v22 = vmul.f32 0.70710677, %v2244_v43  ;;  %v2315_v3 = vpop.f32.mrf.mxu1 }
  0xfa   : > { %1440 = vst.msk [vmem:[%s2141_s5 + $0x178] sm:$0xff] %vm359_vm0, %v1360_v12  ;;  %v1243_v25 = vadd.f32 1.0, %v1760_v19  ;;  %1771 = verf.f32 %v1082_v14  ;;  %v2263_v23 = vadd.f32 %v887_v6, %v731_v2  ;;  %v563_v28 = vadd.f32 %v2069_v57, %v2166_v59 }
  0xfb   : > { %1398 = vst.msk [vmem:[%s2141_s5 + $0x28] sm:$0xff] %vm359_vm0, %v1318_v18  ;;  %v1358_v29 = vmul.f32 %v1278_v47, %v1038_v13  ;;  %1773 = verf.f32 %v1122_v52  ;;  %v723_v33 = vadd.f32 %v2069_v57, %v2175_v63  ;;  %v574_v20 = vadd.f32 %v2181_v4, %v2069_v57  ;;  %v2321_v13 = vpop.f32.mrf.mxu0 }
  0xfc   : > { %v1762_v26 = vpop.eup %1761  ;;  %v1323_v59 = vmul.f32 %v1243_v25, %v1003_v21  ;;  %v1043_v35 = vmul.f32 0.5, %v2170_v60  ;;  %1775 = verf.f32 %v1087_v22  ;;  %v1127_v51 = vmul.f32 0.70710677, %v2263_v23 }
  0xfd   : > { %1438 = vst.msk [vmem:[%s2141_s5 + $0x168] sm:$0xff] %vm359_vm0, %v1358_v29  ;;  %v1283_v38 = vadd.f32 1.0, %v1762_v26  ;;  %v2282_v39 = vadd.f32 %v845_v50, %v563_v28  ;;  %v2284_v63 = vadd.f32 %v885_v30, %v723_v33  ;;  %v2286_v4 = vadd.f32 %v848_v32, %v574_v20  ;;  %v891_v28 = vld [vmem:[%s2064_s26 + $0x1d0] sm:$0xff]  ;;  %v849_v50 = vld [vmem:[%s2064_s26 + $0x80] sm:$0xff]  ;;  %v2336_v30 = vpop.f32.mrf.mxu1  ;;  %v852_v33 = vld [vmem:[%s2064_s26 + $0x98] sm:$0xff] }
  0xfe   : > { %1403 = vst.msk [vmem:[%s2141_s5 + $0x50] sm:$0xff] %vm359_vm0, %v1323_v59  ;;  %1777 = verf.f32 %v1127_v51  ;;  %v734_v60 = vadd.f32 %v2189_v10, %v2069_v57  ;;  %v566_v11 = vadd.f32 %v2069_v57, %v2201_v24  ;;  %v726_v48 = vadd.f32 %v2069_v57, %v2210_v37  ;;  %v889_v29 = vld [vmem:[%s2064_s26 + $0x1c0] sm:$0xff] }
  0xff   : > { %v1764_v41 = vpop.eup %1763  ;;  %v1363_v53 = vmul.f32 %v1283_v38, %v1043_v35  ;;  %v1001_v54 = vmul.f32 0.5, %v2187_v9  ;;  %v1041_v55 = vmul.f32 0.5, %v2194_v15  ;;  %v1085_v56 = vmul.f32 0.70710677, %v2282_v39  ;;  %v2352_v35 = vpop.f32.mrf.mxu0 }
 0x100   : > { %v1766_v10 = vpop.eup %1765  ;;  %v1241_v61 = vadd.f32 1.0, %v1764_v41  ;;  %v1004_v24 = vmul.f32 0.5, %v2196_v16  ;;  %v1125_v46 = vmul.f32 0.70710677, %v2284_v63  ;;  %v1088_v36 = vmul.f32 0.70710677, %v2286_v4 }
 0x101   : > { %v1768_v37 = vpop.eup %1767  ;;  %1443 = vst.msk [vmem:[%s2141_s5 + $0x190] sm:$0xff] %vm359_vm0, %v1363_v53  ;;  %v1281_v9 = vadd.f32 1.0, %v1766_v10  ;;  %1779 = verf.f32 %v1085_v56  ;;  %v2311_v15 = vadd.f32 %v888_v42, %v734_v60  ;;  %v2313_v2 = vadd.f32 %v846_v45, %v566_v11 }
 0x102   : > { %v1321_v17 = vmul.f32 %v1241_v61, %v1001_v54  ;;  %v1244_v16 = vadd.f32 1.0, %v1768_v37  ;;  %1781 = verf.f32 %v1125_v46  ;;  %v2317_v5 = vadd.f32 %v886_v31, %v726_v48  ;;  %v2366_v48 = vpop.f32.mrf.mxu1  ;;  %v2372_v61 = vpop.f32.mrf.mxu0 }
 0x103   : > { %v1361_v6 = vmul.f32 %v1281_v9, %v1041_v55  ;;  %v1044_v8 = vmul.f32 0.5, %v2218_v44  ;;  %1783 = verf.f32 %v1088_v36  ;;  %v1128_v12 = vmul.f32 0.70710677, %v2311_v15  ;;  %v851_v44 = vld [vmem:[%s2064_s26 + $0x90] sm:$0xff] }
 0x104   : > { %v1770_v14 = vpop.eup %1769  ;;  %1401 = vst.msk [vmem:[%s2141_s5 + $0x40] sm:$0xff] %vm359_vm0, %v1321_v17  ;;  %v1324_v52 = vmul.f32 %v1244_v16, %v1004_v24  ;;  %v1002_v19 = vmul.f32 0.5, %v2236_v62  ;;  %v1042_v18 = vmul.f32 0.5, %v2242_v1  ;;  %v1086_v47 = vmul.f32 0.70710677, %v2313_v2  ;;  %v850_v17 = vld [vmem:[%s2064_s26 + $0x88] sm:$0xff]  ;;  %v2384_v16 = vpop.f32.mrf.mxu1 }
 0x105   : > { %1441 = vst.msk [vmem:[%s2141_s5 + $0x180] sm:$0xff] %vm359_vm0, %v1361_v6  ;;  %v1284_v21 = vadd.f32 1.0, %v1770_v14  ;;  %1785 = verf.f32 %v1128_v12  ;;  %v1126_v22 = vmul.f32 0.70710677, %v2317_v5  ;;  %v587_v25 = vadd.f32 %v2224_v49, %v2069_v57  ;;  %v890_v14 = vld [vmem:[%s2064_s26 + $0x1c8] sm:$0xff] }
 0x106   : > { %1404 = vst.msk [vmem:[%s2141_s5 + $0x58] sm:$0xff] %vm359_vm0, %v1324_v52  ;;  %1787 = verf.f32 %v1086_v47  ;;  %v747_v62 = vadd.f32 %v2238_v0, %v2069_v57  ;;  %v579_v1 = vadd.f32 %v2069_v57, %v2250_v7  ;;  %v739_v32 = vadd.f32 %v2069_v57, %v2259_v27  ;;  %v855_v52 = vld [vmem:[%s2064_s26 + $0xb0] sm:$0xff] }
 0x107   : > { %v1772_v49 = vpop.eup %1771  ;;  %v1364_v20 = vmul.f32 %v1284_v21, %v1044_v8  ;;  %1789 = verf.f32 %v1126_v22  ;;  %v2348_v26 = vadd.f32 %v851_v44, %v587_v25  ;;  %v590_v59 = vadd.f32 %v2276_v34, %v2069_v57  ;;  %v2399_v21 = vpop.f32.mrf.mxu0 }
 0x108   : > { %v1774_v0 = vpop.eup %1773  ;;  %v1242_v51 = vadd.f32 1.0, %v1772_v49  ;;  %v1007_v7 = vmul.f32 0.5, %v2244_v43  ;;  %v2355_v38 = vadd.f32 %v891_v28, %v747_v62  ;;  %v2357_v60 = vadd.f32 %v849_v50, %v579_v1 }
 0x109   : > { %v1776_v27 = vpop.eup %1775  ;;  %1444 = vst.msk [vmem:[%s2141_s5 + $0x198] sm:$0xff] %vm359_vm0, %v1364_v20  ;;  %v1282_v42 = vadd.f32 1.0, %v1774_v0  ;;  %v1091_v11 = vmul.f32 0.70710677, %v2348_v26  ;;  %v2362_v45 = vadd.f32 %v889_v29, %v739_v32  ;;  %v2364_v34 = vadd.f32 %v852_v33, %v590_v59 }
 0x10a   : > { %v1322_v41 = vmul.f32 %v1242_v51, %v1002_v19  ;;  %v1247_v43 = vadd.f32 1.0, %v1776_v27  ;;  %v1047_v53 = vmul.f32 0.5, %v2263_v23  ;;  %v1131_v54 = vmul.f32 0.70710677, %v2355_v38  ;;  %v892_v23 = vld [vmem:[%s2064_s26 + $0x1d8] sm:$0xff]  ;;  %v2422_v27 = vpop.f32.mrf.mxu0 }
 0x10b   : > { %v1778_v55 = vpop.eup %1777  ;;  %v1362_v56 = vmul.f32 %v1282_v42, %v1042_v18  ;;  %v1005_v31 = vmul.f32 0.5, %v2282_v39  ;;  %1791 = verf.f32 %v1091_v11  ;;  %v1089_v10 = vmul.f32 0.70710677, %v2357_v60 }
 0x10c   : > { %1402 = vst.msk [vmem:[%s2141_s5 + $0x48] sm:$0xff] %vm359_vm0, %v1322_v41  ;;  %v1327_v24 = vmul.f32 %v1247_v43, %v1007_v7  ;;  %v1287_v46 = vadd.f32 1.0, %v1778_v55  ;;  %v1045_v36 = vmul.f32 0.5, %v2284_v63  ;;  %1793 = verf.f32 %v1131_v54  ;;  %v895_v7 = vld [vmem:[%s2064_s26 + $0x1f0] sm:$0xff] }
 0x10d   : > { %1442 = vst.msk [vmem:[%s2141_s5 + $0x188] sm:$0xff] %vm359_vm0, %v1362_v56  ;;  %v1008_v39 = vmul.f32 0.5, %v2286_v4  ;;  %1795 = verf.f32 %v1089_v10  ;;  %v1129_v37 = vmul.f32 0.70710677, %v2362_v45  ;;  %v1092_v9 = vmul.f32 0.70710677, %v2364_v34 }
 0x10e   : > { %v1780_v6 = vpop.eup %1779  ;;  %1407 = vst.msk [vmem:[%s2141_s5 + $0x70] sm:$0xff] %vm359_vm0, %v1327_v24  ;;  %v1367_v63 = vmul.f32 %v1287_v46, %v1047_v53  ;;  %v750_v8 = vadd.f32 %v2288_v40, %v2069_v57  ;;  %v582_v12 = vadd.f32 %v2069_v57, %v2304_v58  ;;  %v742_v4 = vadd.f32 %v2069_v57, %v2315_v3  ;;  %v853_v53 = vld [vmem:[%s2064_s26 + $0xa0] sm:$0xff]  ;;  %v856_v10 = vld [vmem:[%s2064_s26 + $0xb8] sm:$0xff] }
 0x10f   : > { %v1782_v19 = vpop.eup %1781  ;;  %v1245_v18 = vadd.f32 1.0, %v1780_v6  ;;  %v1048_v47 = vmul.f32 0.5, %v2311_v15  ;;  %1797 = verf.f32 %v1129_v37  ;;  %v603_v44 = vadd.f32 %v2321_v13, %v2069_v57  ;;  %v2411_v13 = vpop.f32.mrf.mxu1 }
 0x110   : > { %v1784_v22 = vpop.eup %1783  ;;  %1447 = vst.msk [vmem:[%s2141_s5 + $0x1b0] sm:$0xff] %vm359_vm0, %v1367_v63  ;;  %v1285_v40 = vadd.f32 1.0, %v1782_v19  ;;  %1799 = verf.f32 %v1092_v9  ;;  %v2403_v58 = vadd.f32 %v892_v23, %v750_v8  ;;  %v2405_v3 = vadd.f32 %v850_v17, %v582_v12  ;;  %v610_v23 = vpop.f32.mrf.mxu0 }
 0x111   : > { %v1325_v25 = vmul.f32 %v1245_v18, %v1005_v31  ;;  %v1248_v28 = vadd.f32 1.0, %v1784_v22  ;;  %v2407_v15 = vadd.f32 %v890_v14, %v742_v4  ;;  %v2409_v50 = vadd.f32 %v855_v52, %v603_v44  ;;  %v2432_v54 = vpop.f32.mrf.mxu1  ;;  %v893_v31 = vld [vmem:[%s2064_s26 + $0x1e0] sm:$0xff]  ;;  %v896_v14 = vld [vmem:[%s2064_s26 + $0x1f8] sm:$0xff] }
 0x112   : > { %v1786_v62 = vpop.eup %1785  ;;  %v1365_v1 = vmul.f32 %v1285_v40, %v1045_v36  ;;  %v1006_v32 = vmul.f32 0.5, %v2313_v2  ;;  %v1132_v29 = vmul.f32 0.70710677, %v2403_v58  ;;  %v763_v33 = vadd.f32 %v2336_v30, %v2069_v57  ;;  %v2470_v22 = vpop.f32.mrf.mxu0 }
 0x113   : > { %v1788_v49 = vpop.eup %1787  ;;  %1405 = vst.msk [vmem:[%s2141_s5 + $0x60] sm:$0xff] %vm359_vm0, %v1325_v25  ;;  %v1328_v20 = vmul.f32 %v1248_v28, %v1008_v39  ;;  %v1288_v59 = vadd.f32 1.0, %v1786_v62  ;;  %v1046_v0 = vmul.f32 0.5, %v2317_v5  ;;  %v1090_v51 = vmul.f32 0.70710677, %v2405_v3  ;;  %v2461_v12 = vpop.f32.mrf.mxu1 }
 0x114   : > { %v1790_v2 = vpop.eup %1789  ;;  %1445 = vst.msk [vmem:[%s2141_s5 + $0x1a0] sm:$0xff] %vm359_vm0, %v1365_v1  ;;  %v1246_v42 = vadd.f32 1.0, %v1788_v49  ;;  %v1011_v30 = vmul.f32 0.5, %v2348_v26  ;;  %1801 = verf.f32 %v1132_v29  ;;  %v1130_v11 = vmul.f32 0.70710677, %v2407_v15  ;;  %v894_v29 = vld [vmem:[%s2064_s26 + $0x1e8] sm:$0xff] }
 0x115   : > { %1408 = vst.msk [vmem:[%s2141_s5 + $0x78] sm:$0xff] %vm359_vm0, %v1328_v20  ;;  %v1368_v5 = vmul.f32 %v1288_v59, %v1048_v47  ;;  %v1286_v41 = vadd.f32 1.0, %v1790_v2  ;;  %1803 = verf.f32 %v1090_v51  ;;  %v1095_v43 = vmul.f32 0.70710677, %v2409_v50  ;;  %v859_v59 = vld [vmem:[%s2064_s26 + $0xd0] sm:$0xff] }
 0x116   : > { %v1326_v55 = vmul.f32 %v1246_v42, %v1006_v32  ;;  %1805 = verf.f32 %v1130_v11  ;;  %v2434_v56 = vadd.f32 %v895_v7, %v763_v33  ;;  %v595_v26 = vadd.f32 %v2069_v57, %v2352_v35  ;;  %v1703_v33 = vpop.f32.mrf.mxu1  ;;  %v613_v42 = vpop.f32.mrf.mxu0 }
 0x117   : > { %1448 = vst.msk [vmem:[%s2141_s5 + $0x1b8] sm:$0xff] %vm359_vm0, %v1368_v5  ;;  %v1366_v24 = vmul.f32 %v1286_v41, %v1046_v0  ;;  %1807 = verf.f32 %v1095_v43  ;;  %v755_v46 = vadd.f32 %v2069_v57, %v2366_v48  ;;  %v606_v36 = vadd.f32 %v2372_v61, %v2069_v57  ;;  %v899_v41 = vld [vmem:[%s2064_s26 + $0x210] sm:$0xff] }
 0x118   : > { %v1792_v39 = vpop.eup %1791  ;;  %1406 = vst.msk [vmem:[%s2141_s5 + $0x68] sm:$0xff] %vm359_vm0, %v1326_v55  ;;  %v1051_v35 = vmul.f32 0.5, %v2355_v38  ;;  %v1009_v37 = vmul.f32 0.5, %v2357_v60  ;;  %v1135_v9 = vmul.f32 0.70710677, %v2434_v56  ;;  %v2451_v17 = vadd.f32 %v853_v53, %v595_v26  ;;  %v857_v55 = vld [vmem:[%s2064_s26 + $0xc0] sm:$0xff]  ;;  %v773_v26 = vpop.f32.mrf.mxu1 }
 0x119   : > { %v1794_v6 = vpop.eup %1793  ;;  %1446 = vst.msk [vmem:[%s2141_s5 + $0x1a8] sm:$0xff] %vm359_vm0, %v1366_v24  ;;  %v1251_v48 = vadd.f32 1.0, %v1792_v39  ;;  %v2455_v63 = vadd.f32 %v893_v31, %v755_v46  ;;  %v2457_v61 = vadd.f32 %v856_v10, %v606_v36  ;;  %v766_v8 = vadd.f32 %v2384_v16, %v2069_v57  ;;  %v854_v16 = vld [vmem:[%s2064_s26 + $0xa8] sm:$0xff] }
 0x11a   : > { %v1796_v38 = vpop.eup %1795  ;;  %v1291_v60 = vadd.f32 1.0, %v1794_v6  ;;  %1809 = verf.f32 %v1135_v9  ;;  %v1093_v4 = vmul.f32 0.70710677, %v2451_v17  ;;  %v598_v52 = vadd.f32 %v2069_v57, %v2399_v21 }
 0x11b   : > { %v1331_v19 = vmul.f32 %v1251_v48, %v1011_v30  ;;  %v1249_v18 = vadd.f32 1.0, %v1796_v38  ;;  %v1049_v47 = vmul.f32 0.5, %v2362_v45  ;;  %v1133_v44 = vmul.f32 0.70710677, %v2455_v63  ;;  %v860_v38 = vld [vmem:[%s2064_s26 + $0xd8] sm:$0xff] }
 0x11c   : > { %v1798_v40 = vpop.eup %1797  ;;  %v1371_v25 = vmul.f32 %v1291_v60, %v1051_v35  ;;  %v1012_v28 = vmul.f32 0.5, %v2364_v34  ;;  %1811 = verf.f32 %v1093_v4  ;;  %v1096_v21 = vmul.f32 0.70710677, %v2457_v61  ;;  %v2520_v60 = vpop.f32.mrf.mxu1 }
 0x11d   : > { %v1800_v62 = vpop.eup %1799  ;;  %1411 = vst.msk [vmem:[%s2141_s5 + $0x90] sm:$0xff] %vm359_vm0, %v1331_v19  ;;  %v1329_v1 = vmul.f32 %v1249_v18, %v1009_v37  ;;  %v1289_v45 = vadd.f32 1.0, %v1798_v40  ;;  %1813 = verf.f32 %v1133_v44  ;;  %v2476_v32 = vadd.f32 %v896_v14, %v766_v8  ;;  %v900_v18 = vld [vmem:[%s2064_s26 + $0x218] sm:$0xff]  ;;  %v2533_v44 = vld [vmem:[%s2804_s3] ss:$0 sm:$0xff] }
 0x11e   : > { %1451 = vst.msk [vmem:[%s2141_s5 + $0x1d0] sm:$0xff] %vm359_vm0, %v1371_v25  ;;  %v1252_v49 = vadd.f32 1.0, %v1800_v62  ;;  %1815 = verf.f32 %v1096_v21  ;;  %v2481_v34 = vadd.f32 %v854_v16, %v598_v52  ;;  %v758_v20 = vadd.f32 %v2069_v57, %v2411_v13  ;;  %v858_v25 = vld [vmem:[%s2064_s26 + $0xc8] sm:$0xff] }
 0x11f   : > { %1409 = vst.msk [vmem:[%s2141_s5 + $0x80] sm:$0xff] %vm359_vm0, %v1329_v1  ;;  %v1369_v0 = vmul.f32 %v1289_v45, %v1049_v47  ;;  %v1052_v51 = vmul.f32 0.5, %v2403_v58  ;;  %v1136_v7 = vmul.f32 0.70710677, %v2476_v32  ;;  %v619_v2 = vadd.f32 %v2422_v27, %v2069_v57  ;;  %v898_v45 = vld [vmem:[%s2064_s26 + $0x208] sm:$0xff] }
 0x120   : > { %v1332_v30 = vmul.f32 %v1252_v49, %v1012_v28  ;;  %v1010_v11 = vmul.f32 0.5, %v2405_v3  ;;  %v1094_v5 = vmul.f32 0.70710677, %v2481_v34  ;;  %v2494_v13 = vadd.f32 %v894_v29, %v758_v20  ;;  %v786_v49 = vpop.f32.mrf.mxu1 }
 0x121   : > { %v1802_v43 = vpop.eup %1801  ;;  %1449 = vst.msk [vmem:[%s2141_s5 + $0x1c0] sm:$0xff] %vm359_vm0, %v1369_v0  ;;  %1817 = verf.f32 %v1136_v7  ;;  %v2499_v58 = vadd.f32 %v859_v59, %v619_v2  ;;  %v779_v53 = vadd.f32 %v2432_v54, %v2069_v57  ;;  %v611_v27 = vadd.f32 %v2069_v57, %v610_v23  ;;  %v2513_v23 = vpop.f32.mrf.mxu0 }
 0x122   : > { %v1804_v31 = vpop.eup %1803  ;;  %1412 = vst.msk [vmem:[%s2141_s5 + $0x98] sm:$0xff] %vm359_vm0, %v1332_v30  ;;  %v1292_v3 = vadd.f32 1.0, %v1802_v43  ;;  %v1050_v10 = vmul.f32 0.5, %v2407_v15  ;;  %1819 = verf.f32 %v1094_v5  ;;  %v1134_v24 = vmul.f32 0.70710677, %v2494_v13 }
 0x123   : > { %v1806_v46 = vpop.eup %1805  ;;  %v1250_v36 = vadd.f32 1.0, %v1804_v31  ;;  %v1015_v39 = vmul.f32 0.5, %v2409_v50  ;;  %v1099_v57 = vmul.f32 0.70710677, %v2499_v58  ;;  %v2511_v54 = vadd.f32 %v899_v41, %v779_v53  ;;  %v897_v50 = vld [vmem:[%s2064_s26 + $0x200] sm:$0xff]  ;;  %v626_v28 = vpop.f32.mrf.mxu0 }
 0x124   : > { %v1808_v35 = vpop.eup %1807  ;;  %v1372_v37 = vmul.f32 %v1292_v3, %v1052_v51  ;;  %v1290_v15 = vadd.f32 1.0, %v1806_v46  ;;  %1821 = verf.f32 %v1134_v24  ;;  %v2515_v9 = vadd.f32 %v857_v55, %v611_v27  ;;  %v2569_v31 = vpop.f32.mrf.mxu1  ;;  %v863_v46 = vld [vmem:[%s2064_s26 + $0xf0] sm:$0xff] }
 0x125   : > { %v1330_v6 = vmul.f32 %v1250_v36, %v1010_v11  ;;  %v1255_v48 = vadd.f32 1.0, %v1808_v35  ;;  %v1055_v8 = vmul.f32 0.5, %v2434_v56  ;;  %1823 = verf.f32 %v1099_v57  ;;  %v2561_v41 = vpop.f32.mrf.mxu0  ;;  %v903_v35 = vld [vmem:[%s2064_s26 + $0x230] sm:$0xff] }
 0x126   : > { %1452 = vst.msk [vmem:[%s2141_s5 + $0x1d8] sm:$0xff] %vm359_vm0, %v1372_v37  ;;  %v1370_v4 = vmul.f32 %v1290_v15, %v1050_v10  ;;  %v1013_v14 = vmul.f32 0.5, %v2451_v17  ;;  %v1139_v52 = vmul.f32 0.70710677, %v2511_v54  ;;  %v1097_v19 = vmul.f32 0.70710677, %v2515_v9 }
 0x127   : > { %v1810_v47 = vpop.eup %1809  ;;  %1410 = vst.msk [vmem:[%s2141_s5 + $0x88] sm:$0xff] %vm359_vm0, %v1330_v6  ;;  %v1335_v56 = vmul.f32 %v1255_v48, %v1015_v39  ;;  %v771_v16 = vadd.f32 %v2533_v44, %v2461_v12  ;;  %v622_v17 = vadd.f32 %v2533_v44, %v2470_v22  ;;  %v782_v40 = vadd.f32 %v2533_v44, %v1703_v33  ;;  %v861_v37 = vld [vmem:[%s2064_s26 + $0xe0] sm:$0xff]  ;;  %v629_v15 = vpop.f32.mrf.mxu0 }
 0x128   : > { %1450 = vst.msk [vmem:[%s2141_s5 + $0x1c8] sm:$0xff] %vm359_vm0, %v1370_v4  ;;  %v1295_v21 = vadd.f32 1.0, %v1810_v47  ;;  %1825 = verf.f32 %v1139_v52  ;;  %v614_v62 = vadd.f32 %v2533_v44, %v613_v42  ;;  %v774_v1 = vadd.f32 %v2533_v44, %v773_v26 }
 0x129   : > { %v1812_v29 = vpop.eup %1811  ;;  %1415 = vst.msk [vmem:[%s2141_s5 + $0xb0] sm:$0xff] %vm359_vm0, %v1335_v56  ;;  %1827 = verf.f32 %v1097_v19  ;;  %v2548_v12 = vadd.f32 %v897_v50, %v771_v16  ;;  %v2550_v22 = vadd.f32 %v860_v38, %v622_v17  ;;  %v2552_v33 = vadd.f32 %v900_v18, %v782_v40 }
 0x12a   : > { %v1814_v20 = vpop.eup %1813  ;;  %v1375_v59 = vmul.f32 %v1295_v21, %v1055_v8  ;;  %v1253_v0 = vadd.f32 1.0, %v1812_v29  ;;  %v1053_v51 = vmul.f32 0.5, %v2455_v63  ;;  %v2555_v7 = vadd.f32 %v858_v25, %v614_v62  ;;  %v901_v8 = vld [vmem:[%s2064_s26 + $0x220] sm:$0xff]  ;;  %v1670_v25 = vpop.f32.mrf.mxu0 }
 0x12b   : > { %v1816_v2 = vpop.eup %1815  ;;  %v1293_v42 = vadd.f32 1.0, %v1814_v20  ;;  %v1016_v30 = vmul.f32 0.5, %v2457_v61  ;;  %v1137_v11 = vmul.f32 0.70710677, %v2548_v12  ;;  %v2559_v5 = vadd.f32 %v898_v45, %v774_v1  ;;  %v864_v20 = vld [vmem:[%s2064_s26 + $0xf8] sm:$0xff] }
 0x12c   : > { %1455 = vst.msk [vmem:[%s2141_s5 + $0x1f0] sm:$0xff] %vm359_vm0, %v1375_v59  ;;  %v1333_v43 = vmul.f32 %v1253_v0, %v1013_v14  ;;  %v1256_v53 = vadd.f32 1.0, %v1816_v2  ;;  %v1056_v63 = vmul.f32 0.5, %v2476_v32  ;;  %v1100_v27 = vmul.f32 0.70710677, %v2550_v22  ;;  %v789_v14 = vpop.f32.mrf.mxu1  ;;  %v904_v2 = vld [vmem:[%s2064_s26 + $0x238] sm:$0xff] }
 0x12d   : > { %v1373_v55 = vmul.f32 %v1293_v42, %v1053_v51  ;;  %v1014_v26 = vmul.f32 0.5, %v2481_v34  ;;  %1829 = verf.f32 %v1137_v11  ;;  %v1140_v61 = vmul.f32 0.70710677, %v2552_v33  ;;  %v862_v42 = vld [vmem:[%s2064_s26 + $0xe8] sm:$0xff] }
 0x12e   : > { %v1818_v3 = vpop.eup %1817  ;;  %1413 = vst.msk [vmem:[%s2141_s5 + $0xa0] sm:$0xff] %vm359_vm0, %v1333_v43  ;;  %v1336_v10 = vmul.f32 %v1256_v53, %v1016_v30  ;;  %v1054_v24 = vmul.f32 0.5, %v2494_v13  ;;  %1831 = verf.f32 %v1100_v27  ;;  %v1098_v32 = vmul.f32 0.70710677, %v2555_v7  ;;  %v1710_v59 = vpop.f32.mrf.mxu1  ;;  %v902_v43 = vld [vmem:[%s2064_s26 + $0x228] sm:$0xff] }
 0x12f   : > { %v1820_v34 = vpop.eup %1819  ;;  %1453 = vst.msk [vmem:[%s2141_s5 + $0x1e0] sm:$0xff] %vm359_vm0, %v1373_v55  ;;  %v1296_v36 = vadd.f32 1.0, %v1818_v3  ;;  %1833 = verf.f32 %v1140_v61  ;;  %v1138_v39 = vmul.f32 0.70710677, %v2559_v5  ;;  %v635_v57 = vadd.f32 %v2533_v44, %v2513_v23  ;;  %v642_v53 = vpop.f32.mrf.mxu0 }
 0x130   : > { %1416 = vst.msk [vmem:[%s2141_s5 + $0xb8] sm:$0xff] %vm359_vm0, %v1336_v10  ;;  %v1254_v13 = vadd.f32 1.0, %v1820_v34  ;;  %1835 = verf.f32 %v1098_v32  ;;  %v795_v6 = vadd.f32 %v2533_v44, %v2520_v60  ;;  %v627_v48 = vadd.f32 %v2533_v44, %v626_v28 }
 0x131   : > { %v1822_v50 = vpop.eup %1821  ;;  %v1376_v38 = vmul.f32 %v1296_v36, %v1056_v63  ;;  %1837 = verf.f32 %v1138_v39  ;;  %v2589_v4 = vadd.f32 %v863_v46, %v635_v57  ;;  %v787_v23 = vadd.f32 %v2533_v44, %v786_v49 }
 0x132   : > { %v1824_v52 = vpop.eup %1823  ;;  %v1334_v19 = vmul.f32 %v1254_v13, %v1014_v26  ;;  %v1294_v18 = vadd.f32 1.0, %v1822_v50  ;;  %v2592_v47 = vadd.f32 %v903_v35, %v795_v6  ;;  %v2594_v56 = vadd.f32 %v861_v37, %v627_v48  ;;  %v867_v35 = vld [vmem:[%s2064_s26 + $0x110] sm:$0xff] }
 0x133   : > { %1456 = vst.msk [vmem:[%s2141_s5 + $0x1f8] sm:$0xff] %vm359_vm0, %v1376_v38  ;;  %v1019_v60 = vmul.f32 0.5, %v2499_v58  ;;  %v1259_v16 = vadd.f32 1.0, %v1824_v52  ;;  %v1103_v17 = vmul.f32 0.70710677, %v2589_v4  ;;  %v2600_v40 = vadd.f32 %v901_v8, %v787_v23  ;;  %v907_v8 = vld [vmem:[%s2064_s26 + $0x250] sm:$0xff] }
 0x134   : > { %1414 = vst.msk [vmem:[%s2141_s5 + $0xa8] sm:$0xff] %vm359_vm0, %v1334_v19  ;;  %v1374_v28 = vmul.f32 %v1294_v18, %v1054_v24  ;;  %v1059_v21 = vmul.f32 0.5, %v2511_v54  ;;  %v1017_v62 = vmul.f32 0.5, %v2515_v9  ;;  %v1143_v1 = vmul.f32 0.70710677, %v2592_v47 }
 0x135   : > { %v1826_v58 = vpop.eup %1825  ;;  %v1339_v45 = vmul.f32 %v1259_v16, %v1019_v60  ;;  %v1057_v29 = vmul.f32 0.5, %v2548_v12  ;;  %1839 = verf.f32 %v1103_v17  ;;  %v1101_v49 = vmul.f32 0.70710677, %v2594_v56 }
 0x136   : > { %v1828_v0 = vpop.eup %1827  ;;  %1454 = vst.msk [vmem:[%s2141_s5 + $0x1e8] sm:$0xff] %vm359_vm0, %v1374_v28  ;;  %v1299_v54 = vadd.f32 1.0, %v1826_v58  ;;  %1841 = verf.f32 %v1143_v1  ;;  %v1141_v9 = vmul.f32 0.70710677, %v2600_v40  ;;  %v638_v51 = vadd.f32 %v2533_v44, %v2561_v41 }
 0x137   : > { %1419 = vst.msk [vmem:[%s2141_s5 + $0xd0] sm:$0xff] %vm359_vm0, %v1339_v45  ;;  %v1257_v12 = vadd.f32 1.0, %v1828_v0  ;;  %1843 = verf.f32 %v1101_v49  ;;  %v798_v30 = vadd.f32 %v2533_v44, %v2569_v31  ;;  %v630_v11 = vadd.f32 %v2533_v44, %v629_v15  ;;  %v802_v31 = vpop.f32.mrf.mxu1  ;;  %v1671_v15 = vpop.f32.mrf.mxu0  ;;  %v905_v45 = vld [vmem:[%s2064_s26 + $0x240] sm:$0xff]  ;;  %v868_v0 = vld [vmem:[%s2064_s26 + $0x118] sm:$0xff] }
 0x138   : > { %v1379_v63 = vmul.f32 %v1299_v54, %v1059_v21  ;;  %1845 = verf.f32 %v1141_v9  ;;  %v2623_v27 = vadd.f32 %v864_v20, %v638_v51  ;;  %v790_v41 = vadd.f32 %v2533_v44, %v789_v14 }
 0x139   : > { %v1337_v55 = vmul.f32 %v1257_v12, %v1017_v62  ;;  %v1020_v26 = vmul.f32 0.5, %v2550_v22  ;;  %v2627_v61 = vadd.f32 %v904_v2, %v798_v30  ;;  %v2629_v3 = vadd.f32 %v862_v42, %v630_v11  ;;  %v1711_v14 = vpop.f32.mrf.mxu1  ;;  %v645_v28 = vpop.f32.mrf.mxu0 }
 0x13a   : > { %v1830_v10 = vpop.eup %1829  ;;  %1459 = vst.msk [vmem:[%s2141_s5 + $0x210] sm:$0xff] %vm359_vm0, %v1379_v63  ;;  %v1060_v24 = vmul.f32 0.5, %v2552_v33  ;;  %v1104_v32 = vmul.f32 0.70710677, %v2623_v27  ;;  %v2635_v46 = vadd.f32 %v902_v43, %v790_v41  ;;  %v651_v34 = vadd.f32 %v2533_v44, %v1670_v25  ;;  %v865_v25 = vld [vmem:[%s2064_s26 + $0x100] sm:$0xff]  ;;  %v908_v41 = vld [vmem:[%s2064_s26 + $0x258] sm:$0xff] }
 0x13b   : > { %v1832_v36 = vpop.eup %1831  ;;  %1417 = vst.msk [vmem:[%s2141_s5 + $0xc0] sm:$0xff] %vm359_vm0, %v1337_v55  ;;  %v1297_v22 = vadd.f32 1.0, %v1830_v10  ;;  %v1018_v39 = vmul.f32 0.5, %v2555_v7  ;;  %v1144_v57 = vmul.f32 0.70710677, %v2627_v61  ;;  %v811_v37 = vadd.f32 %v2533_v44, %v1710_v59  ;;  %v805_v54 = vpop.f32.mrf.mxu1 }
 0x13c   : > { %v1834_v33 = vpop.eup %1833  ;;  %v1260_v13 = vadd.f32 1.0, %v1832_v36  ;;  %v1058_v6 = vmul.f32 0.5, %v2559_v5  ;;  %1847 = verf.f32 %v1104_v32  ;;  %v1102_v48 = vmul.f32 0.70710677, %v2629_v3  ;;  %v1674_v11 = vpop.f32.mrf.mxu0 }
 0x13d   : > { %v1836_v50 = vpop.eup %1835  ;;  %v1377_v38 = vmul.f32 %v1297_v22, %v1057_v29  ;;  %v1300_v23 = vadd.f32 1.0, %v1834_v33  ;;  %1849 = verf.f32 %v1144_v57  ;;  %v1142_v7 = vmul.f32 0.70710677, %v2635_v46  ;;  %v1714_v36 = vpop.f32.mrf.mxu1 }
 0x13e   : > { %v1838_v52 = vpop.eup %1837  ;;  %v1340_v19 = vmul.f32 %v1260_v13, %v1020_v26  ;;  %v1258_v18 = vadd.f32 1.0, %v1836_v50  ;;  %1851 = verf.f32 %v1102_v48  ;;  %v2648_v5 = vadd.f32 %v867_v35, %v651_v34  ;;  %v866_v34 = vld [vmem:[%s2064_s26 + $0x108] sm:$0xff]  ;;  %v658_v33 = vpop.f32.mrf.mxu0  ;;  %v911_v50 = vld [vmem:[%s2064_s26 + $0x270] sm:$0xff] }
 0x13f   : > { %1457 = vst.msk [vmem:[%s2141_s5 + $0x200] sm:$0xff] %vm359_vm0, %v1377_v38  ;;  %v1380_v60 = vmul.f32 %v1300_v23, %v1060_v24  ;;  %v1298_v16 = vadd.f32 1.0, %v1838_v52  ;;  %1853 = verf.f32 %v1142_v7  ;;  %v2652_v17 = vadd.f32 %v907_v8, %v811_v37  ;;  %v871_v8 = vld [vmem:[%s2064_s26 + $0x130] sm:$0xff]  ;;  %v818_v52 = vpop.f32.mrf.mxu1 }
 0x140   : > { %1420 = vst.msk [vmem:[%s2141_s5 + $0xd8] sm:$0xff] %vm359_vm0, %v1340_v19  ;;  %v1338_v21 = vmul.f32 %v1258_v18, %v1018_v39  ;;  %v1023_v62 = vmul.f32 0.5, %v2589_v4  ;;  %v1107_v1 = vmul.f32 0.70710677, %v2648_v5  ;;  %v643_v58 = vadd.f32 %v2533_v44, %v642_v53 }
 0x141   : > { %1460 = vst.msk [vmem:[%s2141_s5 + $0x218] sm:$0xff] %vm359_vm0, %v1380_v60  ;;  %v1378_v29 = vmul.f32 %v1298_v16, %v1058_v6  ;;  %v1063_v49 = vmul.f32 0.5, %v2592_v47  ;;  %v1147_v20 = vmul.f32 0.70710677, %v2652_v17  ;;  %v803_v59 = vadd.f32 %v2533_v44, %v802_v31 }
 0x142   : > { %v1840_v9 = vpop.eup %1839  ;;  %1418 = vst.msk [vmem:[%s2141_s5 + $0xc8] sm:$0xff] %vm359_vm0, %v1338_v21  ;;  %v1021_v4 = vmul.f32 0.5, %v2594_v56  ;;  %1855 = verf.f32 %v1107_v1  ;;  %v2670_v51 = vadd.f32 %v865_v25, %v643_v58  ;;  %v654_v2 = vadd.f32 %v2533_v44, %v1671_v15  ;;  %v1675_v1 = vpop.f32.mrf.mxu0 }
 0x143   : > { %v1842_v42 = vpop.eup %1841  ;;  %1458 = vst.msk [vmem:[%s2141_s5 + $0x208] sm:$0xff] %vm359_vm0, %v1378_v29  ;;  %v1263_v47 = vadd.f32 1.0, %v1840_v9  ;;  %1857 = verf.f32 %v1147_v20  ;;  %v2675_v12 = vadd.f32 %v905_v45, %v803_v59  ;;  %v814_v30 = vadd.f32 %v2533_v44, %v1711_v14  ;;  %v1715_v9 = vpop.f32.mrf.mxu1 }
 0x144   : > { %v1844_v43 = vpop.eup %1843  ;;  %v1303_v53 = vadd.f32 1.0, %v1842_v42  ;;  %v1105_v56 = vmul.f32 0.70710677, %v2670_v51  ;;  %v2679_v63 = vadd.f32 %v868_v0, %v654_v2  ;;  %v646_v55 = vadd.f32 %v2533_v44, %v645_v28 }
 0x145   : > { %v1846_v26 = vpop.eup %1845  ;;  %v1343_v31 = vmul.f32 %v1263_v47, %v1023_v62  ;;  %v1261_v10 = vadd.f32 1.0, %v1844_v43  ;;  %v1061_v24 = vmul.f32 0.5, %v2600_v40  ;;  %v1145_v32 = vmul.f32 0.70710677, %v2675_v12  ;;  %v906_v40 = vld [vmem:[%s2064_s26 + $0x248] sm:$0xff]  ;;  %v909_v47 = vld [vmem:[%s2064_s26 + $0x260] sm:$0xff] }
 0x146   : > { %v1383_v22 = vmul.f32 %v1303_v53, %v1063_v49  ;;  %v1301_v39 = vadd.f32 1.0, %v1846_v26  ;;  %v1024_v57 = vmul.f32 0.5, %v2623_v27  ;;  %1859 = verf.f32 %v1105_v56  ;;  %v872_v53 = vld [vmem:[%s2064_s26 + $0x138] sm:$0xff] }
 0x147   : > { %1423 = vst.msk [vmem:[%s2141_s5 + $0xf0] sm:$0xff] %vm359_vm0, %v1343_v31  ;;  %v1341_v35 = vmul.f32 %v1261_v10, %v1021_v4  ;;  %1861 = verf.f32 %v1145_v32  ;;  %v1108_v37 = vmul.f32 0.70710677, %v2679_v63  ;;  %v2690_v15 = vadd.f32 %v908_v41, %v814_v30  ;;  %v912_v56 = vld [vmem:[%s2064_s26 + $0x278] sm:$0xff]  ;;  %v661_v41 = vpop.f32.mrf.mxu0 }
 0x148   : > { %1463 = vst.msk [vmem:[%s2141_s5 + $0x230] sm:$0xff] %vm359_vm0, %v1383_v22  ;;  %v1381_v13 = vmul.f32 %v1301_v39, %v1061_v24  ;;  %v2695_v6 = vadd.f32 %v866_v34, %v646_v55  ;;  %v806_v27 = vadd.f32 %v2533_v44, %v805_v54  ;;  %v667_v48 = vadd.f32 %v2533_v44, %v1674_v11  ;;  %v869_v54 = vld [vmem:[%s2064_s26 + $0x120] sm:$0xff] }
 0x149   : > { %v1848_v38 = vpop.eup %1847  ;;  %1421 = vst.msk [vmem:[%s2141_s5 + $0xe0] sm:$0xff] %vm359_vm0, %v1341_v35  ;;  %v1064_v23 = vmul.f32 0.5, %v2627_v61  ;;  %1863 = verf.f32 %v1108_v37  ;;  %v1148_v7 = vmul.f32 0.70710677, %v2690_v15  ;;  %v827_v14 = vadd.f32 %v2533_v44, %v1714_v36 }
 0x14a   : > { %v1850_v19 = vpop.eup %1849  ;;  %1461 = vst.msk [vmem:[%s2141_s5 + $0x220] sm:$0xff] %vm359_vm0, %v1381_v13  ;;  %v1264_v18 = vadd.f32 1.0, %v1848_v38  ;;  %v1022_v60 = vmul.f32 0.5, %v2629_v3  ;;  %v1106_v16 = vmul.f32 0.70710677, %v2695_v6  ;;  %v2710_v25 = vadd.f32 %v906_v40, %v806_v27  ;;  %v870_v40 = vld [vmem:[%s2064_s26 + $0x128] sm:$0xff] }
 0x14b   : > { %v1852_v28 = vpop.eup %1851  ;;  %v1304_v21 = vadd.f32 1.0, %v1850_v19  ;;  %1865 = verf.f32 %v1148_v7  ;;  %v2712_v61 = vadd.f32 %v871_v8, %v667_v48  ;;  %v2714_v62 = vadd.f32 %v911_v50, %v827_v14  ;;  %v910_v14 = vld [vmem:[%s2064_s26 + $0x268] sm:$0xff] }
 0x14c   : > { %v1854_v58 = vpop.eup %1853  ;;  %v1344_v45 = vmul.f32 %v1264_v18, %v1024_v57  ;;  %v1262_v29 = vadd.f32 1.0, %v1852_v28  ;;  %v1062_v3 = vmul.f32 0.5, %v2635_v46  ;;  %1867 = verf.f32 %v1106_v16 }
 0x14d   : > { %v1384_v49 = vmul.f32 %v1304_v21, %v1064_v23  ;;  %v1302_v20 = vadd.f32 1.0, %v1854_v58  ;;  %v1027_v59 = vmul.f32 0.5, %v2648_v5  ;;  %v1146_v0 = vmul.f32 0.70710677, %v2710_v25 }
 0x14e   : > { %1424 = vst.msk [vmem:[%s2141_s5 + $0xf8] sm:$0xff] %vm359_vm0, %v1344_v45  ;;  %v1342_v4 = vmul.f32 %v1262_v29, %v1022_v60  ;;  %v1067_v2 = vmul.f32 0.5, %v2652_v17  ;;  %v1111_v42 = vmul.f32 0.70710677, %v2712_v61  ;;  %v1151_v46 = vmul.f32 0.70710677, %v2714_v62 }
 0x14f   : > { %v1856_v30 = vpop.eup %1855  ;;  %1464 = vst.msk [vmem:[%s2141_s5 + $0x238] sm:$0xff] %vm359_vm0, %v1384_v49  ;;  %v1382_v5 = vmul.f32 %v1302_v20, %v1062_v3  ;;  %1869 = verf.f32 %v1146_v0  ;;  %v659_v11 = vadd.f32 %v2533_v44, %v658_v33  ;;  %v819_v43 = vadd.f32 %v2533_v44, %v818_v52  ;;  %v821_v33 = vpop.f32.mrf.mxu1 }
 0x150   : > { %v1858_v55 = vpop.eup %1857  ;;  %1422 = vst.msk [vmem:[%s2141_s5 + $0xe8] sm:$0xff] %vm359_vm0, %v1342_v4  ;;  %v1267_v17 = vadd.f32 1.0, %v1856_v30  ;;  %1871 = verf.f32 %v1111_v42  ;;  %v670_v26 = vadd.f32 %v2533_v44, %v1675_v1  ;;  %v830_v31 = vadd.f32 %v2533_v44, %v1715_v9 }
 0x151   : > { %1462 = vst.msk [vmem:[%s2141_s5 + $0x228] sm:$0xff] %vm359_vm0, %v1382_v5  ;;  %v1307_v10 = vadd.f32 1.0, %v1858_v55  ;;  %1873 = verf.f32 %v1151_v46  ;;  %v2738_v24 = vadd.f32 %v869_v54, %v659_v11  ;;  %v2740_v32 = vadd.f32 %v909_v47, %v819_v43 }
 0x152   : > { %v1347_v34 = vmul.f32 %v1267_v17, %v1027_v59  ;;  %v2742_v36 = vadd.f32 %v872_v53, %v670_v26  ;;  %v2744_v22 = vadd.f32 %v912_v56, %v830_v31  ;;  %v662_v39 = vadd.f32 %v2533_v44, %v661_v41 }
 0x153   : > { %v1860_v57 = vpop.eup %1859  ;;  %v1387_v35 = vmul.f32 %v1307_v10, %v1067_v2  ;;  %v1109_v37 = vmul.f32 0.70710677, %v2738_v24  ;;  %v1025_v27 = vmul.f32 0.5, %v2670_v51  ;;  %v1149_v8 = vmul.f32 0.70710677, %v2740_v32 }
 0x154   : > { %v1862_v13 = vpop.eup %1861  ;;  %1427 = vst.msk [vmem:[%s2141_s5 + $0x110] sm:$0xff] %vm359_vm0, %v1347_v34  ;;  %v1265_v48 = vadd.f32 1.0, %v1860_v57  ;;  %v1112_v50 = vmul.f32 0.70710677, %v2742_v36  ;;  %v1065_v38 = vmul.f32 0.5, %v2675_v12  ;;  %v950_v51 = vadd.f32 %v870_v40, %v662_v39 }
 0x155   : > { %1467 = vst.msk [vmem:[%s2141_s5 + $0x250] sm:$0xff] %vm359_vm0, %v1387_v35  ;;  %v1305_v23 = vadd.f32 1.0, %v1862_v13  ;;  %1875 = verf.f32 %v1109_v37  ;;  %v1152_v7 = vmul.f32 0.70710677, %v2744_v22  ;;  %v822_v18 = vadd.f32 %v2533_v44, %v821_v33 }
 0x156   : > { %v1864_v52 = vpop.eup %1863  ;;  %v1345_v19 = vmul.f32 %v1265_v48, %v1025_v27  ;;  %1877 = verf.f32 %v1149_v8  ;;  %v1028_v16 = vmul.f32 0.5, %v2679_v63  ;;  %v1110_v12 = vmul.f32 0.70710677, %v950_v51 }
 0x157   : > { %v1385_v60 = vmul.f32 %v1305_v23, %v1065_v38  ;;  %v1268_v28 = vadd.f32 1.0, %v1864_v52  ;;  %1879 = verf.f32 %v1112_v50  ;;  %v990_v1 = vadd.f32 %v910_v14, %v822_v18 }
 0x158   : > { %v1866_v21 = vpop.eup %1865  ;;  %1425 = vst.msk [vmem:[%s2141_s5 + $0x100] sm:$0xff] %vm359_vm0, %v1345_v19  ;;  %1881 = verf.f32 %v1152_v7  ;;  %v1068_v29 = vmul.f32 0.5, %v2690_v15  ;;  %v1026_v63 = vmul.f32 0.5, %v2695_v6  ;;  %v1066_v15 = vmul.f32 0.5, %v2710_v25 }
 0x159   : > { %v1868_v58 = vpop.eup %1867  ;;  %1465 = vst.msk [vmem:[%s2141_s5 + $0x240] sm:$0xff] %vm359_vm0, %v1385_v60  ;;  %v1348_v45 = vmul.f32 %v1268_v28, %v1028_v16  ;;  %v1308_v44 = vadd.f32 1.0, %v1866_v21  ;;  %1883 = verf.f32 %v1110_v12  ;;  %v1150_v49 = vmul.f32 0.70710677, %v990_v1 }
 0x15a   : > { %v1266_v3 = vadd.f32 1.0, %v1868_v58  ;;  %v1031_v6 = vmul.f32 0.5, %v2712_v61  ;;  %v1071_v46 = vmul.f32 0.5, %v2714_v62  ;;  %v1029_v43 = vmul.f32 0.5, %v2738_v24 }
 0x15b   : > { %1428 = vst.msk [vmem:[%s2141_s5 + $0x118] sm:$0xff] %vm359_vm0, %v1348_v45  ;;  %v1388_v20 = vmul.f32 %v1308_v44, %v1068_v29  ;;  %1885 = verf.f32 %v1150_v49  ;;  %v1069_v56 = vmul.f32 0.5, %v2740_v32  ;;  %v1032_v17 = vmul.f32 0.5, %v2742_v36 }
 0x15c   : > { %v1870_v59 = vpop.eup %1869  ;;  %v1346_v0 = vmul.f32 %v1266_v3, %v1026_v63  ;;  %v1072_v10 = vmul.f32 0.5, %v2744_v22  ;;  %v1030_v57 = vmul.f32 0.5, %v950_v51  ;;  %v1070_v40 = vmul.f32 0.5, %v990_v1 }
 0x15d   : > { %v1872_v54 = vpop.eup %1871  ;;  %1468 = vst.msk [vmem:[%s2141_s5 + $0x258] sm:$0xff] %vm359_vm0, %v1388_v20  ;;  %v1306_v9 = vadd.f32 1.0, %v1870_v59 }
 0x15e   : > { %v1874_v4 = vpop.eup %1873  ;;  %1426 = vst.msk [vmem:[%s2141_s5 + $0x108] sm:$0xff] %vm359_vm0, %v1346_v0  ;;  %v1271_v2 = vadd.f32 1.0, %v1872_v54 }
 0x15f   : > { %v1386_v42 = vmul.f32 %v1306_v9, %v1066_v15  ;;  %v1311_v47 = vadd.f32 1.0, %v1874_v4 }
 0x160   : > { %v1351_v30 = vmul.f32 %v1271_v2, %v1031_v6 }
 0x161   : > { %1466 = vst.msk [vmem:[%s2141_s5 + $0x248] sm:$0xff] %vm359_vm0, %v1386_v42  ;;  %v1391_v5 = vmul.f32 %v1311_v47, %v1071_v46 }
 0x162   : > { %v1876_v11 = vpop.eup %1875  ;;  %1431 = vst.msk [vmem:[%s2141_s5 + $0x130] sm:$0xff] %vm359_vm0, %v1351_v30 }
 0x163   : > { %v1878_v25 = vpop.eup %1877  ;;  %1471 = vst.msk [vmem:[%s2141_s5 + $0x270] sm:$0xff] %vm359_vm0, %v1391_v5  ;;  %v1269_v61 = vadd.f32 1.0, %v1876_v11 }
 0x164   : > { %v1880_v53 = vpop.eup %1879  ;;  %v1309_v62 = vadd.f32 1.0, %v1878_v25 }
 0x165   : > { %v1882_v41 = vpop.eup %1881  ;;  %v1349_v55 = vmul.f32 %v1269_v61, %v1029_v43  ;;  %v1272_v26 = vadd.f32 1.0, %v1880_v53 }
 0x166   : > { %v1389_v31 = vmul.f32 %v1309_v62, %v1069_v56  ;;  %v1312_v34 = vadd.f32 1.0, %v1882_v41  ;;  %v1884_v39 = vpop.eup %1883 }
 0x167   : > { %1429 = vst.msk [vmem:[%s2141_s5 + $0x120] sm:$0xff] %vm359_vm0, %v1349_v55  ;;  %v1352_v24 = vmul.f32 %v1272_v26, %v1032_v17  ;;  %v1270_v35 = vadd.f32 1.0, %v1884_v39 }
 0x168   : > { %1469 = vst.msk [vmem:[%s2141_s5 + $0x260] sm:$0xff] %vm359_vm0, %v1389_v31  ;;  %v1392_v32 = vmul.f32 %v1312_v34, %v1072_v10  ;;  %v1886_v37 = vpop.eup %1885 }
 0x169   : > { %1432 = vst.msk [vmem:[%s2141_s5 + $0x138] sm:$0xff] %vm359_vm0, %v1352_v24  ;;  %v1350_v36 = vmul.f32 %v1270_v35, %v1030_v57  ;;  %v1310_v33 = vadd.f32 1.0, %v1886_v37 }
 0x16a   : > { %1472 = vst.msk [vmem:[%s2141_s5 + $0x278] sm:$0xff] %vm359_vm0, %v1392_v32 }
 0x16b   : > { %1430 = vst.msk [vmem:[%s2141_s5 + $0x128] sm:$0xff] %vm359_vm0, %v1350_v36  ;;  %v1390_v22 = vmul.f32 %v1310_v33, %v1070_v40 }
 0x16d   : > { %1470 = vst.msk [vmem:[%s2141_s5 + $0x268] sm:$0xff] %vm359_vm0, %v1390_v22 }
 0x16e PF: > { %s14_s15 = sadd.s32 1, %s1894_s15  }
 0x16f   : > { %p11_p4 = scmp.ge.s32.totalorder %s14_s15, 4  }
 0x171   :  { %13 = sbr.rel (!%p11_p4) target bundleno = 1 (0x1), region = 69 }

// kernel: fno3d_forward.19
= control target key start
LH: loop header
LB: loop body
LE: loop exit
PB: predicated region body
PF: predicated region fallthrough
CT: control target
= control target key end

     0   :  { %s1081_s18 = smov 0   ;;  %s1387_s0 = inlined_call_operand.vmem [shape: f32[256,16], index: 0, kind: input, shape index: {}]   ;;  %s1388_s1 = inlined_call_operand.vmem [shape: bf16[16,192], index: 1, kind: input, shape index: {}]   ;;  %s1389_s2 = inlined_call_operand.vmem [shape: f32[1,192], index: 2, kind: input, shape index: {}]   ;;  %s1390_s3 = inlined_call_operand.vmem [shape: bf16[192,128], index: 3, kind: input, shape index: {}]   ;;  %s1391_s4 = inlined_call_operand.vmem [shape: f32[1,128], index: 4, kind: input, shape index: {}]   ;;  %s1392_s5 = inlined_call_operand.vmem [shape: f32[256,128], index: 5, kind: output, shape index: {}]  }
   0x1 LB: > { %s888_s19 = sadd.s32 4294967295, %s1048_s18   ;;  %p892_p0 = scmp.ge.s32.totalorder %s1048_s18, 1  ;;  %s1048_s18 = sphi %s1081_s18, %s15_s18  }
   0x2   : > { %p188_p1 = scmp.lt.s32.totalorder %s1048_s18, 3 }
   0x4   : > { %p189_p2 = pnand %p892_p0, %p188_p1 }
   0x5   : > { %s893_s22 = sshll.u32 (!%p189_p2), %s888_s19, 4 }
   0x6   : > { %192 = sbr.rel (%p189_p2) target bundleno = 499 (0x1f3), region = 40  ;;  %p217_p3 = scmp.lt.s32.totalorder (!%p189_p2), %s893_s22, 31 }
   0xb   : > { %v963_v0 = vld [vmem:[%s1388_s1 + $0x4] ss:$8 sps:$4 sm:$0xff]   ;;  %v965_v1 = vld [vmem:[%s1388_s1] ss:$8 sps:$4 sm:$0xff]   ;;  %v1050_v2 = vmov 0   ;;  %v966_v3 = vld [vmem:[%s1390_s3 + $0x38] sm:$0xff]   ;;  %v257_v39 = vlaneseq }
   0xc   : > { %334 = vmatprep.mubr.bf16.mxu0 %v1050_v2  ;;  %930 = vmatprep.subr.bf16.mxu1 %v1050_v2  ;;  %s1394_s22 = smov (!%p217_p3, %s893_s22), 31  ;;  %v967_v4 = vld [vmem:[%s1390_s3 + $0x30] sm:$0xff]   ;;  %vm277_vm0 = vcmask 130048   ;;  %v968_v8 = vld [vmem:[%s1390_s3 + $0x28] sm:$0xff]   ;;  %v969_v11 = vld [vmem:[%s1390_s3 + $0x20] sm:$0xff]   ;;  %vm694_vm1 = vcmask 523264  }
   0xd   : > { %316 = vmatprep.subr.bf16.mxu0 %v963_v0  ;;  %942 = vmatpush1.bf16.msra.mxu1 %v966_v3  ;;  %s894_s27 = sshll.u32 %s1394_s22, 3  ;;  %v970_v31 = vld [vmem:[%s1390_s3 + $0x18] sm:$0xff]   ;;  %v971_v32 = vld [vmem:[%s1390_s3 + $0x10] sm:$0xff]   ;;  %v972_v33 = vld [vmem:[%s1390_s3 + $0x8] sm:$0xff]   ;;  %v258_v40 = vshrl.u32 %v257_v39, 7 }
   0xe   : > { %317 = vmatpush1.bf16.msra.mxu0 %v965_v1  ;;  %931 = vmatprep.subr.bf16.mxu1 %v1050_v2  ;;  %s1113_s7 = scalar_lea.vmem %s1387_s0, %s894_s27  ;;  %v973_v34 = vld [vmem:[%s1390_s3] sm:$0xff]   ;;  %v974_v35 = vld [vmem:[%s1390_s3 + $0x58] sm:$0xff]   ;;  %v975_v36 = vld [vmem:[%s1390_s3 + $0x50] sm:$0xff]   ;;  %s1350_s12 = scalar_lea.vmem %s1392_s5, %s894_s27 }
   0xf   : > { %719 = vmatprep.subr.bf16.mxu0 %v1050_v2  ;;  %v229_v5 = vld [vmem:[%s1113_s7] sm:$0xff]  ;;  %v230_v6 = vld [vmem:[%s1113_s7 + $0x8] sm:$0xff]  ;;  %v231_v9 = vld [vmem:[%s1113_s7 + $0x10] sm:$0xff]  ;;  %v259_v41 = vsub.s32 0, %v258_v40  ;;  %v263_v43 = vsub.s32 1, %v258_v40 }
  0x10   : > { %v245_v7 = vpack.c.bf16 %v230_v6, %v229_v5  ;;  %v232_v10 = vld [vmem:[%s1113_s7 + $0x18] sm:$0xff]  ;;  %v233_v13 = vld [vmem:[%s1113_s7 + $0x20] sm:$0xff]  ;;  %v234_v14 = vld [vmem:[%s1113_s7 + $0x28] sm:$0xff] }
  0x11   : > { %943 = vmatpush1.bf16.msra.mxu1 %v967_v4  ;;  %v246_v12 = vpack.c.bf16 %v232_v10, %v231_v9  ;;  %v247_v15 = vpack.c.bf16 %v234_v14, %v233_v13  ;;  %v235_v16 = vld [vmem:[%s1113_s7 + $0x30] sm:$0xff]  ;;  %v236_v17 = vld [vmem:[%s1113_s7 + $0x38] sm:$0xff]  ;;  %v237_v19 = vld [vmem:[%s1113_s7 + $0x40] sm:$0xff] }
  0x12   : > { %932 = vmatprep.subr.bf16.mxu1 %v1050_v2  ;;  %899 = vmatmul.mubr.msk.bf16.vlgmr.msra.gmra.mxu0 %vm277_vm0, %v245_v7  ;;  %v248_v18 = vpack.c.bf16 %v236_v17, %v235_v16  ;;  %v238_v20 = vld [vmem:[%s1113_s7 + $0x48] sm:$0xff]  ;;  %v239_v22 = vld [vmem:[%s1113_s7 + $0x50] sm:$0xff]  ;;  %v240_v23 = vld [vmem:[%s1113_s7 + $0x58] sm:$0xff] }
  0x13   : > { %344 = vmatprep.mubr.bf16.mxu0 %v1050_v2  ;;  %720 = vmatpush1.bf16.msra.mxu0 %v966_v3  ;;  %v249_v21 = vpack.c.bf16 %v238_v20, %v237_v19  ;;  %v250_v24 = vpack.c.bf16 %v240_v23, %v239_v22  ;;  %v241_v25 = vld [vmem:[%s1113_s7 + $0x60] sm:$0xff]  ;;  %v242_v26 = vld [vmem:[%s1113_s7 + $0x68] sm:$0xff]  ;;  %v243_v28 = vld [vmem:[%s1113_s7 + $0x70] sm:$0xff] }
  0x14   : > { %721 = vmatprep.subr.bf16.mxu0 %v1050_v2  ;;  %v251_v27 = vpack.c.bf16 %v242_v26, %v241_v25  ;;  %v244_v29 = vld [vmem:[%s1113_s7 + $0x78] sm:$0xff]  ;;  %v976_v37 = vld [vmem:[%s1390_s3 + $0x48] sm:$0xff]   ;;  %v977_v38 = vld [vmem:[%s1390_s3 + $0x40] sm:$0xff]  }
  0x15   : > { %944 = vmatpush1.bf16.msra.mxu1 %v968_v8  ;;  %v252_v30 = vpack.c.bf16 %v244_v29, %v243_v28  ;;  %v255_v42 = vld [vmem:[%s1389_s2] sm:$0x3] }
  0x16   : > { %933 = vmatprep.subr.bf16.mxu1 %v1050_v2  ;;  %v1200_v44 = vrot.slane %v255_v42, %v259_v41  ;;  %v1202_v45 = vrot.slane %v255_v42, %v263_v43 }
  0x17   : > { %722 = vmatpush1.bf16.msra.mxu0 %v967_v4 }
  0x18   : > { %723 = vmatprep.subr.bf16.mxu0 %v1050_v2 }
  0x19   : > { %945 = vmatpush1.bf16.msra.mxu1 %v969_v11 }
  0x1a   : > { %934 = vmatprep.subr.bf16.mxu1 %v1050_v2  ;;  %900 = vmatmul.mubr.msk.bf16.gmra.mxu0 %vm277_vm0, %v246_v12 }
  0x1b   : > { %354 = vmatprep.mubr.bf16.mxu0 %v1050_v2  ;;  %724 = vmatpush1.bf16.msra.mxu0 %v968_v8 }
  0x1c   : > { %725 = vmatprep.subr.bf16.mxu0 %v1050_v2 }
  0x1d   : > { %946 = vmatpush1.bf16.msra.mxu1 %v970_v31 }
  0x1e   : > { %935 = vmatprep.subr.bf16.mxu1 %v1050_v2 }
  0x1f   : > { %726 = vmatpush1.bf16.msra.mxu0 %v969_v11 }
  0x20   : > { %727 = vmatprep.subr.bf16.mxu0 %v1050_v2 }
  0x21   : > { %947 = vmatpush1.bf16.msra.mxu1 %v971_v32 }
  0x22   : > { %901 = vmatmul.mubr.msk.bf16.gmra.mxu0 %vm277_vm0, %v247_v15  ;;  %936 = vmatprep.subr.bf16.mxu1 %v1050_v2 }
  0x23   : > { %364 = vmatprep.mubr.bf16.mxu0 %v1050_v2  ;;  %728 = vmatpush1.bf16.msra.mxu0 %v970_v31 }
  0x24   : > { %729 = vmatprep.subr.bf16.mxu0 %v1050_v2 }
  0x25   : > { %948 = vmatpush1.bf16.msra.mxu1 %v972_v33 }
  0x26   : > { %937 = vmatprep.subr.bf16.mxu1 %v1050_v2 }
  0x27   : > { %730 = vmatpush1.bf16.msra.mxu0 %v971_v32 }
  0x28   : > { %731 = vmatprep.subr.bf16.mxu0 %v1050_v2 }
  0x29   : > { %949 = vmatpush1.bf16.msra.mxu1 %v973_v34 }
  0x2a   : > { %902 = vmatmul.mubr.msk.bf16.gmra.mxu0 %vm277_vm0, %v248_v18  ;;  %938 = vmatprep.subr.bf16.mxu1 %v1050_v2 }
  0x2b   : > { %374 = vmatprep.mubr.bf16.mxu0 %v1050_v2  ;;  %732 = vmatpush1.bf16.msra.mxu0 %v972_v33 }
  0x2c   : > { %733 = vmatprep.subr.bf16.mxu0 %v1050_v2 }
  0x2d   : > { %950 = vmatpush2.bf16.msra.mxu1 %v974_v35 }
  0x2e   : > { %939 = vmatprep.subr.bf16.mxu1 %v1050_v2 }
  0x2f   : > { %734 = vmatpush1.bf16.msra.mxu0 %v973_v34 }
  0x30   : > { %743 = vmatprep.subr.bf16.mxu0 %v1050_v2 }
  0x31   : > { %951 = vmatpush2.bf16.msra.mxu1 %v975_v36 }
  0x32   : > { %903 = vmatmul.mubr.msk.bf16.gmra.mxu0 %vm277_vm0, %v249_v21  ;;  %940 = vmatprep.subr.bf16.mxu1 %v1050_v2 }
  0x33   : > { %384 = vmatprep.mubr.bf16.mxu0 %v1050_v2  ;;  %744 = vmatpush2.bf16.msra.mxu0 %v974_v35 }
  0x34   : > { %745 = vmatprep.subr.bf16.mxu0 %v1050_v2 }
  0x35   : > { %952 = vmatpush2.bf16.msra.mxu1 %v976_v37 }
  0x36   : > { %941 = vmatprep.subr.bf16.mxu1 %v1050_v2 }
  0x37   : > { %746 = vmatpush2.bf16.msra.mxu0 %v975_v36 }
  0x38   : > { %747 = vmatprep.subr.bf16.mxu0 %v1050_v2 }
  0x39   : > { %953 = vmatpush2.bf16.msra.mxu1 %v977_v38 }
  0x3a   : > { %904 = vmatmul.mubr.msk.bf16.gmra.mxu0 %vm277_vm0, %v250_v24 }
  0x3b   : > { %394 = vmatprep.mubr.bf16.mxu0 %v1050_v2  ;;  %748 = vmatpush2.bf16.msra.mxu0 %v976_v37 }
  0x3c   : > { %749 = vmatprep.subr.bf16.mxu0 %v1050_v2 }
  0x3f   : > { %750 = vmatpush2.bf16.msra.mxu0 %v977_v38 }
  0x42   : > { %905 = vmatmul.mubr.msk.bf16.gmra.mxu0 %vm277_vm0, %v251_v27 }
  0x43   : > { %404 = vmatprep.mubr.bf16.mxu0 %v1050_v2 }
  0x4a   : > { %906 = vmatmul.mubr.msk.bf16.gmra.mxu0 %vm277_vm0, %v252_v30 }
  0xd2   : > { %v336_v46 = vpop.f32.mrf.mxu0 }
  0xd3   : > { %v337_v47 = vadd.f32 %v336_v46, %v1200_v44 }
  0xd4   : > { %v338_v48 = vpop.f32.mrf.mxu0 }
  0xd5   : > { %v339_v49 = vadd.f32 %v338_v48, %v1202_v45  ;;  %v447_v50 = vmul.f32 0.70710677, %v337_v47  ;;  %v415_v30 = vmul.f32 0.5, %v337_v47 }
  0xd6   : > { %v340_v51 = vpop.f32.mrf.mxu0 }
  0xd7   : > { %v448_v52 = vmul.f32 0.70710677, %v339_v49  ;;  %v341_v53 = vadd.f32 %v340_v51, %v1200_v44  ;;  %v416_v16 = vmul.f32 0.5, %v339_v49 }
  0xd8   : > { %v342_v54 = vpop.f32.mrf.mxu0 }
  0xd9   : > { %978 = verf.f32 %v448_v52  ;;  %v449_v55 = vmul.f32 0.70710677, %v341_v53  ;;  %v343_v56 = vadd.f32 %v342_v54, %v1202_v45  ;;  %v417_v24 = vmul.f32 0.5, %v341_v53 }
  0xda   : > { %980 = verf.f32 %v447_v50  ;;  %v346_v57 = vpop.f32.mrf.mxu0 }
  0xdb   : > { %982 = verf.f32 %v449_v55  ;;  %v450_v58 = vmul.f32 0.70710677, %v343_v56  ;;  %v1209_v59 = vadd.f32 %v346_v57, %v1200_v44  ;;  %v418_v27 = vmul.f32 0.5, %v343_v56 }
  0xdc   : > { %v348_v60 = vpop.f32.mrf.mxu0 }
  0xdd   : > { %984 = verf.f32 %v450_v58  ;;  %v349_v61 = vadd.f32 %v348_v60, %v1202_v45  ;;  %v451_v62 = vmul.f32 0.70710677, %v1209_v59 }
  0xde   : > { %v350_v63 = vpop.f32.mrf.mxu0 }
  0xdf   : > { %v452_v0 = vmul.f32 0.70710677, %v349_v61  ;;  %v1214_v1 = vadd.f32 %v350_v63, %v1200_v44  ;;  %v420_v48 = vmul.f32 0.5, %v349_v61  ;;  %v419_v63 = vmul.f32 0.5, %v1209_v59 }
  0xe0   : > { %v352_v2 = vpop.f32.mrf.mxu0 }
  0xe1   : > { %986 = verf.f32 %v452_v0  ;;  %v453_v3 = vmul.f32 0.70710677, %v1214_v1  ;;  %v1218_v4 = vadd.f32 %v352_v2, %v1202_v45  ;;  %v421_v56 = vmul.f32 0.5, %v1214_v1 }
  0xe2   : > { %988 = verf.f32 %v451_v62  ;;  %v356_v5 = vpop.f32.mrf.mxu0 }
  0xe3   : > { %990 = verf.f32 %v453_v3  ;;  %v454_v6 = vmul.f32 0.70710677, %v1218_v4  ;;  %v1222_v7 = vadd.f32 %v356_v5, %v1200_v44  ;;  %v422_v60 = vmul.f32 0.5, %v1218_v4 }
  0xe4   : > { %v358_v8 = vpop.f32.mrf.mxu0 }
  0xe5   : > { %992 = verf.f32 %v454_v6  ;;  %v455_v9 = vmul.f32 0.70710677, %v1222_v7  ;;  %v1226_v11 = vadd.f32 %v358_v8, %v1202_v45 }
  0xe6   : > { %v979_v10 = vpop.eup %978  ;;  %v360_v12 = vpop.f32.mrf.mxu0 }
  0xe7   : > { %v981_v13 = vpop.eup %980  ;;  %v1229_v14 = vadd.f32 %v360_v12, %v1200_v44  ;;  %v456_v17 = vmul.f32 0.70710677, %v1226_v11  ;;  %v512_v19 = vadd.f32 1.0, %v979_v10  ;;  %994 = verf.f32 %v455_v9 }
  0xe8   : > { %v983_v15 = vpop.eup %982  ;;  %v362_v18 = vpop.f32.mrf.mxu0  ;;  %v511_v23 = vadd.f32 1.0, %v981_v13 }
  0xe9   : > { %v513_v20 = vadd.f32 1.0, %v983_v15  ;;  %v457_v21 = vmul.f32 0.70710677, %v1229_v14  ;;  %996 = verf.f32 %v456_v17  ;;  %v1234_v25 = vadd.f32 %v362_v18, %v1202_v45 }
  0xea   : > { %v985_v22 = vpop.eup %984  ;;  %v366_v26 = vpop.f32.mrf.mxu0  ;;  %v544_v34 = vmul.f32 %v512_v19, %v416_v16  ;;  %v543_v37 = vmul.f32 %v511_v23, %v415_v30  ;;  %v424_v30 = vmul.f32 0.5, %v1226_v11 }
  0xeb   : > { %v514_v28 = vadd.f32 1.0, %v985_v22  ;;  %998 = verf.f32 %v457_v21  ;;  %v1237_v29 = vadd.f32 %v366_v26, %v1200_v44  ;;  %v545_v31 = vmul.f32 %v513_v20, %v417_v24 }
  0xec   : > { %v458_v32 = vmul.f32 0.70710677, %v1234_v25  ;;  %v368_v33 = vpop.f32.mrf.mxu0 }
  0xed   : > { %v546_v35 = vmul.f32 %v514_v28, %v418_v27  ;;  %v459_v38 = vmul.f32 0.70710677, %v1237_v29  ;;  %v1242_v39 = vadd.f32 %v368_v33, %v1202_v45  ;;  %v575_v47 = vpack.c.bf16 %v545_v31, %v543_v37 }
  0xee   : > { %v987_v36 = vpop.eup %986  ;;  %1000 = verf.f32 %v458_v32  ;;  %v370_v40 = vpop.f32.mrf.mxu0  ;;  %v425_v27 = vmul.f32 0.5, %v1229_v14  ;;  %v426_v31 = vmul.f32 0.5, %v1234_v25 }
  0xef   : > { %v989_v41 = vpop.eup %988  ;;  %v576_v42 = vpack.c.bf16 %v546_v35, %v544_v34  ;;  %v1245_v43 = vadd.f32 %v370_v40, %v1200_v44  ;;  %v460_v49 = vmul.f32 0.70710677, %v1242_v39  ;;  %v516_v51 = vadd.f32 1.0, %v987_v36 }
  0xf0   : > { %v991_v46 = vpop.eup %990  ;;  %v372_v50 = vpop.f32.mrf.mxu0  ;;  %1002 = verf.f32 %v459_v38  ;;  %v515_v55 = vadd.f32 1.0, %v989_v41  ;;  %v423_v35 = vmul.f32 0.5, %v1222_v7 }
  0xf1   : > { %v517_v52 = vadd.f32 1.0, %v991_v46  ;;  %v461_v53 = vmul.f32 0.70710677, %v1245_v43  ;;  %920 = vmatprep.mubr.msk.bf16.mxu0 %vm694_vm1, %v576_v42  ;;  %1004 = verf.f32 %v460_v49  ;;  %v1252_v57 = vadd.f32 %v372_v50, %v1202_v45 }
  0xf2   : > { %v993_v54 = vpop.eup %992  ;;  %v376_v58 = vpop.f32.mrf.mxu0  ;;  %752 = vmatmul.mubr.bf16.vlgmr.msra.gmra.mxu0 %v575_v47  ;;  %v548_v1 = vmul.f32 %v516_v51, %v420_v48  ;;  %v547_v9 = vmul.f32 %v515_v55, %v419_v63  ;;  %v428_v63 = vmul.f32 0.5, %v1242_v39 }
  0xf3   : > { %v518_v61 = vadd.f32 1.0, %v993_v54  ;;  %1006 = verf.f32 %v461_v53  ;;  %v1256_v62 = vadd.f32 %v376_v58, %v1200_v44  ;;  %v549_v0 = vmul.f32 %v517_v52, %v421_v56 }
  0xf4   : > { %v462_v2 = vmul.f32 0.70710677, %v1252_v57  ;;  %v378_v3 = vpop.f32.mrf.mxu0  ;;  %v995_v8 = vpop.eup %994 }
  0xf5   : > { %v550_v5 = vmul.f32 %v518_v61, %v422_v60  ;;  %v463_v6 = vmul.f32 0.70710677, %v1256_v62  ;;  %v1262_v4 = vadd.f32 %v378_v3, %v1202_v45  ;;  %v577_v18 = vpack.c.bf16 %v549_v0, %v547_v9 }
  0xf6   : > { %1008 = verf.f32 %v462_v2  ;;  %v380_v10 = vpop.f32.mrf.mxu0  ;;  %v997_v12 = vpop.eup %996  ;;  %v519_v26 = vadd.f32 1.0, %v995_v8  ;;  %v429_v60 = vmul.f32 0.5, %v1245_v43  ;;  %v430_v0 = vmul.f32 0.5, %v1252_v57 }
  0xf7   : > { %v578_v13 = vpack.c.bf16 %v550_v5, %v548_v1  ;;  %v1265_v15 = vadd.f32 %v380_v10, %v1200_v44  ;;  %v464_v16 = vmul.f32 0.70710677, %v1262_v4  ;;  %1010 = verf.f32 %v463_v6 }
  0xf8   : > { %v999_v59 = vpop.eup %998  ;;  %v382_v17 = vpop.f32.mrf.mxu0  ;;  %v520_v23 = vadd.f32 1.0, %v997_v12  ;;  %v551_v25 = vmul.f32 %v519_v26, %v423_v35  ;;  %v427_v5 = vmul.f32 0.5, %v1237_v29  ;;  %v432_v26 = vmul.f32 0.5, %v1262_v4 }
  0xf9   : > { %v521_v19 = vadd.f32 1.0, %v999_v59  ;;  %v465_v20 = vmul.f32 0.70710677, %v1265_v15  ;;  %v1270_v21 = vadd.f32 %v382_v17, %v1202_v45  ;;  %921 = vmatprep.mubr.msk.bf16.mxu0 %vm694_vm1, %v578_v13  ;;  %1012 = verf.f32 %v464_v16 }
  0xfa   : > { %v386_v22 = vpop.f32.mrf.mxu0  ;;  %760 = vmatmul.mubr.bf16.gmra.mxu0 %v577_v18  ;;  %v552_v41 = vmul.f32 %v520_v23, %v424_v30 }
  0xfb   : > { %v1001_v24 = vpop.eup %1000  ;;  %1014 = verf.f32 %v465_v20  ;;  %v466_v28 = vmul.f32 0.70710677, %v1270_v21  ;;  %v1278_v32 = vadd.f32 %v386_v22, %v1200_v44  ;;  %v553_v36 = vmul.f32 %v521_v19, %v425_v27 }
  0xfc   : > { %v388_v33 = vpop.f32.mrf.mxu0  ;;  %v522_v34 = vadd.f32 1.0, %v1001_v24  ;;  %v433_v27 = vmul.f32 0.5, %v1265_v15 }
  0xfd   : > { %1016 = verf.f32 %v466_v28  ;;  %v1282_v37 = vadd.f32 %v388_v33, %v1202_v45  ;;  %v1003_v14 = vpop.eup %1002  ;;  %v467_v38 = vmul.f32 0.70710677, %v1278_v32  ;;  %v579_v52 = vpack.c.bf16 %v553_v36, %v551_v25 }
  0xfe   : > { %v390_v40 = vpop.f32.mrf.mxu0  ;;  %v554_v11 = vmul.f32 %v522_v34, %v426_v31  ;;  %v1005_v42 = vpop.eup %1004  ;;  %v523_v58 = vadd.f32 1.0, %v1003_v14  ;;  %v434_v28 = vmul.f32 0.5, %v1270_v21  ;;  %v431_v36 = vmul.f32 0.5, %v1256_v62 }
  0xff   : > { %v468_v46 = vmul.f32 0.70710677, %v1282_v37  ;;  %v1287_v47 = vadd.f32 %v390_v40, %v1200_v44  ;;  %1018 = verf.f32 %v467_v38  ;;  %v524_v53 = vadd.f32 1.0, %v1005_v42 }
 0x100   : > { %v1007_v48 = vpop.eup %1006  ;;  %v392_v7 = vpop.f32.mrf.mxu0  ;;  %v580_v49 = vpack.c.bf16 %v554_v11, %v552_v41  ;;  %v555_v59 = vmul.f32 %v523_v58, %v427_v5 }
 0x101   : > { %v525_v50 = vadd.f32 1.0, %v1007_v48  ;;  %v469_v51 = vmul.f32 0.70710677, %v1287_v47  ;;  %1020 = verf.f32 %v468_v46  ;;  %v1291_v54 = vadd.f32 %v392_v7, %v1202_v45 }
 0x102   : > { %922 = vmatprep.mubr.msk.bf16.mxu1 %vm694_vm1, %v580_v49  ;;  %v396_v55 = vpop.f32.mrf.mxu0  ;;  %v556_v9 = vmul.f32 %v524_v53, %v428_v63  ;;  %v437_v63 = vmul.f32 0.5, %v1287_v47 }
 0x103   : > { %v1009_v56 = vpop.eup %1008  ;;  %1022 = verf.f32 %v469_v51  ;;  %v1296_v61 = vadd.f32 %v396_v55, %v1200_v44  ;;  %768 = vmatmul.mubr.bf16.vlgmr.msra.gmra.mxu1 %v579_v52  ;;  %v470_v3 = vmul.f32 0.70710677, %v1291_v54  ;;  %v557_v6 = vmul.f32 %v525_v50, %v429_v60 }
 0x104   : > { %v526_v2 = vadd.f32 1.0, %v1009_v56  ;;  %v398_v1 = vpop.f32.mrf.mxu0  ;;  %v1011_v43 = vpop.eup %1010 }
 0x105   : > { %v1303_v8 = vadd.f32 %v398_v1, %v1202_v45  ;;  %1024 = verf.f32 %v470_v3  ;;  %v471_v39 = vmul.f32 0.70710677, %v1296_v61  ;;  %v581_v23 = vpack.c.bf16 %v557_v6, %v555_v59 }
 0x106   : > { %v558_v10 = vmul.f32 %v526_v2, %v430_v0  ;;  %v400_v12 = vpop.f32.mrf.mxu0  ;;  %v1013_v13 = vpop.eup %1012  ;;  %v527_v33 = vadd.f32 1.0, %v1011_v43  ;;  %v436_v2 = vmul.f32 0.5, %v1282_v37 }
 0x107   : > { %v472_v57 = vmul.f32 0.70710677, %v1303_v8  ;;  %v528_v18 = vadd.f32 1.0, %v1013_v13  ;;  %v1308_v29 = vadd.f32 %v400_v12, %v1200_v44  ;;  %v440_v37 = vmul.f32 0.5, %v1303_v8 }
 0x108   : > { %v1015_v16 = vpop.eup %1014  ;;  %v582_v17 = vpack.c.bf16 %v558_v10, %v556_v9  ;;  %v402_v19 = vpop.f32.mrf.mxu0  ;;  %v559_v25 = vmul.f32 %v527_v33, %v431_v36 }
 0x109   : > { %v529_v20 = vadd.f32 1.0, %v1015_v16  ;;  %1026 = verf.f32 %v472_v57  ;;  %v1311_v22 = vadd.f32 %v402_v19, %v1202_v45  ;;  %v473_v30 = vmul.f32 0.70710677, %v1308_v29 }
 0x10a   : > { %v1017_v24 = vpop.eup %1016  ;;  %923 = vmatprep.mubr.msk.bf16.mxu1 %vm694_vm1, %v582_v17  ;;  %v406_v31 = vpop.f32.mrf.mxu0  ;;  %1028 = verf.f32 %v471_v39  ;;  %v560_v14 = vmul.f32 %v528_v18, %v432_v26  ;;  %v439_v18 = vmul.f32 0.5, %v1296_v61 }
 0x10b   : > { %v530_v34 = vadd.f32 1.0, %v1017_v24  ;;  %v474_v35 = vmul.f32 0.70710677, %v1311_v22  ;;  %776 = vmatmul.mubr.bf16.gmra.mxu1 %v581_v23  ;;  %1030 = verf.f32 %v473_v30  ;;  %v1321_v4 = vadd.f32 %v406_v31, %v1200_v44 }
 0x10c   : > { %v408_v15 = vpop.f32.mrf.mxu0  ;;  %v561_v21 = vmul.f32 %v529_v20, %v433_v27  ;;  %v1019_v41 = vpop.eup %1018  ;;  %v442_v16 = vmul.f32 0.5, %v1311_v22 }
 0x10d   : > { %v562_v38 = vmul.f32 %v530_v34, %v434_v28  ;;  %1032 = verf.f32 %v474_v35  ;;  %v409_v40 = vadd.f32 %v408_v15, %v1202_v45  ;;  %v475_v48 = vmul.f32 0.70710677, %v1321_v4 }
 0x10e   : > { %v410_v11 = vpop.f32.mrf.mxu0  ;;  %v1021_v42 = vpop.eup %1020  ;;  %v583_v53 = vpack.c.bf16 %v561_v21, %v559_v25  ;;  %v531_v60 = vadd.f32 1.0, %v1019_v41 }
 0x10f   : > { %v584_v46 = vpack.c.bf16 %v562_v38, %v560_v14  ;;  %v476_v7 = vmul.f32 0.70710677, %v409_v40  ;;  %v411_v49 = vadd.f32 %v410_v11, %v1200_v44  ;;  %v532_v55 = vadd.f32 1.0, %v1021_v42 }
 0x110   : > { %v1023_v62 = vpop.eup %1022  ;;  %v412_v50 = vpop.f32.mrf.mxu0  ;;  %v438_v44 = vmul.f32 0.5, %v1291_v54  ;;  %v443_v14 = vmul.f32 0.5, %v1321_v4 }
 0x111   : > { %v533_v51 = vadd.f32 1.0, %v1023_v62  ;;  %1034 = verf.f32 %v476_v7  ;;  %v413_v52 = vadd.f32 %v412_v50, %v1202_v45  ;;  %924 = vmatprep.mubr.msk.bf16.mxu1 %vm694_vm1, %v584_v46  ;;  %v477_v56 = vmul.f32 0.70710677, %v411_v49 }
 0x112   : > { %v1025_v58 = vpop.eup %1024  ;;  %1036 = verf.f32 %v475_v48  ;;  %v435_v45 = vmul.f32 0.5, %v1278_v32  ;;  %v564_v6 = vmul.f32 %v532_v55, %v436_v2  ;;  %v441_v32 = vmul.f32 0.5, %v1308_v29 }
 0x113   : > { %v478_v0 = vmul.f32 0.70710677, %v413_v52  ;;  %784 = vmatmul.mubr.bf16.gmra.mxu1 %v583_v53  ;;  %v534_v3 = vadd.f32 1.0, %v1025_v58  ;;  %1038 = verf.f32 %v477_v56  ;;  %v565_v1 = vmul.f32 %v533_v51, %v437_v63 }
 0x114   : > { %v563_v9 = vmul.f32 %v531_v60, %v435_v45  ;;  %v444_v29 = vmul.f32 0.5, %v409_v40  ;;  %v445_v35 = vmul.f32 0.5, %v411_v49  ;;  %v446_v36 = vmul.f32 0.5, %v413_v52  ;;  %v1343_v40 = vld [vmem:[%s1391_s4] ss:$0 sm:$0xff] }
 0x115   : > { %1040 = verf.f32 %v478_v0  ;;  %v566_v43 = vmul.f32 %v534_v3, %v438_v44 }
 0x116   : > { %v1027_v5 = vpop.eup %1026  ;;  %v585_v59 = vpack.c.bf16 %v565_v1, %v563_v9 }
 0x117   : > { %v1029_v10 = vpop.eup %1028  ;;  %v586_v12 = vpack.c.bf16 %v566_v43, %v564_v6  ;;  %v536_v13 = vadd.f32 1.0, %v1027_v5 }
 0x118   : > { %v1031_v47 = vpop.eup %1030  ;;  %v535_v54 = vadd.f32 1.0, %v1029_v10 }
 0x119   : > { %v537_v57 = vadd.f32 1.0, %v1031_v47  ;;  %925 = vmatprep.mubr.msk.bf16.mxu1 %vm694_vm1, %v586_v12  ;;  %v568_v19 = vmul.f32 %v536_v13, %v440_v37 }
 0x11a   : > { %v1033_v39 = vpop.eup %1032  ;;  %v567_v26 = vmul.f32 %v535_v54, %v439_v18 }
 0x11b   : > { %v538_v17 = vadd.f32 1.0, %v1033_v39  ;;  %792 = vmatmul.mubr.bf16.gmra.mxu1 %v585_v59  ;;  %v569_v20 = vmul.f32 %v537_v57, %v441_v32 }
 0x11d   : > { %v570_v23 = vmul.f32 %v538_v17, %v442_v16  ;;  %v587_v31 = vpack.c.bf16 %v569_v20, %v567_v26 }
 0x11e   : > { %v1035_v24 = vpop.eup %1034 }
 0x11f   : > { %v588_v27 = vpack.c.bf16 %v570_v23, %v568_v19  ;;  %v1037_v28 = vpop.eup %1036  ;;  %v540_v30 = vadd.f32 1.0, %v1035_v24 }
 0x120   : > { %v1039_v8 = vpop.eup %1038  ;;  %v539_v22 = vadd.f32 1.0, %v1037_v28 }
 0x121   : > { %926 = vmatprep.mubr.msk.bf16.mxu1 %vm694_vm1, %v588_v27  ;;  %v541_v34 = vadd.f32 1.0, %v1039_v8  ;;  %v572_v15 = vmul.f32 %v540_v30, %v444_v29 }
 0x122   : > { %v1041_v33 = vpop.eup %1040  ;;  %v571_v41 = vmul.f32 %v539_v22, %v443_v14 }
 0x123   : > { %v542_v61 = vadd.f32 1.0, %v1041_v33  ;;  %800 = vmatmul.mubr.bf16.gmra.mxu1 %v587_v31  ;;  %v573_v21 = vmul.f32 %v541_v34, %v445_v35 }
 0x125   : > { %v574_v38 = vmul.f32 %v542_v61, %v446_v36  ;;  %v589_v42 = vpack.c.bf16 %v573_v21, %v571_v41 }
 0x127   : > { %v590_v11 = vpack.c.bf16 %v574_v38, %v572_v15 }
 0x129   : > { %927 = vmatprep.mubr.msk.bf16.mxu1 %vm694_vm1, %v590_v11 }
 0x12b   : > { %808 = vmatmul.mubr.bf16.gmra.mxu1 %v589_v42 }
 0x1b2   : > { %v753_v4 = vpop.f32.mrf.mxu0 }
 0x1b3   : > { %v754_v25 = vadd.f32 %v1343_v40, %v753_v4 }
 0x1b4   : > { %v755_v46 = vpop.f32.mrf.mxu0 }
 0x1b5   : > { %816 = vst [vmem:[%s1350_s12] sm:$0xff] %v754_v25 }
 0x1b6   : > { %v756_v48 = vpop.f32.mrf.mxu0 }
 0x1b7   : > { %v757_v7 = vadd.f32 %v1343_v40, %v756_v48 }
 0x1b8   : > { %v758_v62 = vpop.f32.mrf.mxu0 }
 0x1b9   : > { %817 = vst [vmem:[%s1350_s12 + $0x8] sm:$0xff] %v757_v7 }
 0x1ba   : > { %v761_v49 = vpop.f32.mrf.mxu0 }
 0x1bb   : > { %v762_v50 = vadd.f32 %v1343_v40, %v761_v49 }
 0x1bc   : > { %v763_v51 = vpop.f32.mrf.mxu0 }
 0x1bd   : > { %818 = vst [vmem:[%s1350_s12 + $0x10] sm:$0xff] %v762_v50 }
 0x1be   : > { %v764_v52 = vpop.f32.mrf.mxu0 }
 0x1bf   : > { %v765_v53 = vadd.f32 %v1343_v40, %v764_v52 }
 0x1c0   : > { %v766_v55 = vpop.f32.mrf.mxu0 }
 0x1c1   : > { %819 = vst [vmem:[%s1350_s12 + $0x18] sm:$0xff] %v765_v53 }
 0x1c3   : > { %v769_v56 = vpop.f32.mrf.mxu1 }
 0x1c4   : > { %v770_v58 = vadd.f32 %v1343_v40, %v769_v56 }
 0x1c5   : > { %v771_v60 = vpop.f32.mrf.mxu1 }
 0x1c6   : > { %820 = vst [vmem:[%s1350_s12 + $0x20] sm:$0xff] %v770_v58 }
 0x1c7   : > { %v772_v63 = vpop.f32.mrf.mxu1 }
 0x1c8   : > { %v773_v0 = vadd.f32 %v1343_v40, %v772_v63 }
 0x1c9   : > { %v774_v2 = vpop.f32.mrf.mxu1 }
 0x1ca   : > { %821 = vst [vmem:[%s1350_s12 + $0x28] sm:$0xff] %v773_v0 }
 0x1cb   : > { %v777_v44 = vpop.f32.mrf.mxu1 }
 0x1cc   : > { %v778_v3 = vadd.f32 %v1343_v40, %v777_v44 }
 0x1cd   : > { %v779_v45 = vpop.f32.mrf.mxu1 }
 0x1ce   : > { %822 = vst [vmem:[%s1350_s12 + $0x30] sm:$0xff] %v778_v3 }
 0x1cf   : > { %v780_v1 = vpop.f32.mrf.mxu1 }
 0x1d0   : > { %v781_v5 = vadd.f32 %v1343_v40, %v780_v1 }
 0x1d1   : > { %v782_v6 = vpop.f32.mrf.mxu1 }
 0x1d2   : > { %823 = vst [vmem:[%s1350_s12 + $0x38] sm:$0xff] %v781_v5 }
 0x1d3   : > { %v785_v43 = vpop.f32.mrf.mxu1 }
 0x1d4   : > { %v786_v9 = vadd.f32 %v1343_v40, %v785_v43 }
 0x1d5   : > { %v787_v10 = vpop.f32.mrf.mxu1 }
 0x1d6   : > { %824 = vst [vmem:[%s1350_s12 + $0x40] sm:$0xff] %v786_v9 }
 0x1d7   : > { %v788_v12 = vpop.f32.mrf.mxu1 }
 0x1d8   : > { %v789_v47 = vadd.f32 %v1343_v40, %v788_v12 }
 0x1d9   : > { %v790_v13 = vpop.f32.mrf.mxu1 }
 0x1da   : > { %825 = vst [vmem:[%s1350_s12 + $0x48] sm:$0xff] %v789_v47 }
 0x1db   : > { %v793_v59 = vpop.f32.mrf.mxu1 }
 0x1dc   : > { %v794_v39 = vadd.f32 %v1343_v40, %v793_v59 }
 0x1dd   : > { %v795_v37 = vpop.f32.mrf.mxu1 }
 0x1de   : > { %826 = vst [vmem:[%s1350_s12 + $0x50] sm:$0xff] %v794_v39 }
 0x1df   : > { %v796_v57 = vpop.f32.mrf.mxu1 }
 0x1e0   : > { %v797_v54 = vadd.f32 %v1343_v40, %v796_v57 }
 0x1e1   : > { %v798_v32 = vpop.f32.mrf.mxu1 }
 0x1e2   : > { %827 = vst [vmem:[%s1350_s12 + $0x58] sm:$0xff] %v797_v54 }
 0x1e3   : > { %v801_v16 = vpop.f32.mrf.mxu1 }
 0x1e4   : > { %v802_v17 = vadd.f32 %v1343_v40, %v801_v16 }
 0x1e5   : > { %v803_v18 = vpop.f32.mrf.mxu1 }
 0x1e6   : > { %828 = vst [vmem:[%s1350_s12 + $0x60] sm:$0xff] %v802_v17 }
 0x1e7   : > { %v804_v19 = vpop.f32.mrf.mxu1 }
 0x1e8   : > { %v805_v20 = vadd.f32 %v1343_v40, %v804_v19 }
 0x1e9   : > { %v806_v23 = vpop.f32.mrf.mxu1 }
 0x1ea   : > { %829 = vst [vmem:[%s1350_s12 + $0x68] sm:$0xff] %v805_v20 }
 0x1eb   : > { %v809_v24 = vpop.f32.mrf.mxu1 }
 0x1ec   : > { %v810_v26 = vadd.f32 %v1343_v40, %v809_v24 }
 0x1ed   : > { %v811_v27 = vpop.f32.mrf.mxu1 }
 0x1ee   : > { %830 = vst [vmem:[%s1350_s12 + $0x70] sm:$0xff] %v810_v26 }
 0x1ef   : > { %v812_v28 = vpop.f32.mrf.mxu1 }
 0x1f0   : > { %v813_v8 = vadd.f32 %v1343_v40, %v812_v28 }
 0x1f1   : > { %v814_v30 = vpop.f32.mrf.mxu1 }
 0x1f2   : > { %831 = vst [vmem:[%s1350_s12 + $0x78] sm:$0xff] %v813_v8 }
 0x1f3 PF: > { %s15_s18 = sadd.s32 1, %s1048_s18  }
 0x1f4   : > { %p12_p4 = scmp.ge.s32.totalorder %s15_s18, 4  }
 0x1f6   :  { %14 = sbr.rel (!%p12_p4) target bundleno = 1 (0x1), region = 70 }

</bundles_post_ra>
